<compile_context>
chip_gen: v5e
topology: v5e:2x2
jax: 0.10.0
libtpu: 0.0.40
codegen_flags: <defaults>
</compile_context>

<pallas_src>
import functools
import math
from typing import NamedTuple

import jax
import jax.numpy as jnp
from jax import lax
from jax.experimental import pallas as pl
from jax.experimental.pallas import tpu as pltpu

# ----------------------------- module config ---------------------------------
IN_CHANNELS = 3
OUT_CHANNELS = 2          # output_project built in __init__ but unused by forward
EMBED_DIM = 32
CHANNEL_HEADS = 2
X_HEADS = 2
Y_HEADS = 2
NUM_LAYERS = 2            # num_layers % 2 == 0; fully fused path requires 2
MAX_SEQ_LEN = 64
SUB_SIZE_Y = 4
SUB_SIZE_X = 4
NUM_GROUPS = 8            # SequenceGroupNorm2d(8, embed_dim)
HIDDEN = EMBED_DIM        # input_project hidden_channels = embed_dim


class Geom(NamedTuple):
    B: int
    n_sub_x: int
    n_sub_y: int
    S: int
    hs: int
    ws: int
    yh: int
    xh: int
    hy: int
    wx: int
    SQ: int
    PQ: int
    C: int
    Cin: int
    CH: int
    dh: int
    LANES: int
    Bl: int      # batches handled per grid step
    NB: int      # number of grid steps
    Rr: int      # rows per grid step = SQ * Bl * S
    fold: bool   # batch folded into rows (True on single-TC chips)


# ----------------------------- small math helpers ----------------------------

def _erf(x):
    # Abramowitz & Stegun 7.1.26, |error| <= 1.5e-7.
    a = jnp.abs(x)
    t = 1.0 / (1.0 + 0.3275911 * a)
    poly = ((((1.061405429 * t - 1.453152027) * t + 1.421413741) * t
             - 0.284496736) * t + 0.254829592) * t
    y = 1.0 - poly * jnp.exp(-a * a)
    return jnp.where(x >= 0, y, -y)


def _gelu_exact(x):
    # Matches PyTorch nn.GELU() default (erf form).
    return 0.5 * x * (1.0 + _erf(x * 0.7071067811865476))


# ----------------------------- fused Pallas kernel ----------------------------

def _unet_fused_kernel(xin_ref, w1_ref, b1_ref, w2_ref, b2_ref, pos_ref,
                       R_ref, Ag_ref, mask_ref, wqkv_ref, wout_ref, wproj_ref,
                       vecs_ref, o_ref, *, SQ, CH, dh, num_layers):
    """Whole UnetOperator2d forward on the work layout.

    Work layout: rows = (y-quadrant, x-quadrant[, batch], sequence),
                 lanes = (within-quadrant position, channel).
    All head-split / head-merge / per-point permutations are pre-folded into the
    weight operands, so the kernel is only 2-D matmuls, static slices and
    elementwise ops.
    """
    f32 = jnp.float32
    TC = CH * dh

    R = R_ref[...]           # [Bl*S, Rr]   row pooling over spatial quadrants
    Ag = Ag_ref[...]         # [LANES, LANES] group-mean lane pooling
    mask = mask_ref[...]     # [Rr, Rr]     additive block-diagonal mask

    # ---- input_project (pointwise FFN, erf GELU) + learned pos embedding ----
    x_in = xin_ref[0]                                                # [Rr, PQ*Cin]
    h = jnp.dot(x_in, w1_ref[...], preferred_element_type=f32) + b1_ref[...]
    h = _gelu_exact(h)
    x = (jnp.dot(h, w2_ref[...], preferred_element_type=f32) + b2_ref[...]
         + pos_ref[...])                                             # [Rr, LANES]

    def gnorm(v, gamma, beta):
        # GroupNorm(8, C) per (batch, subdomain): row pooling over quadrants,
        # lane pooling over (within-quadrant position, group channels).
        s1 = jnp.dot(R, v, preferred_element_type=f32)               # [Bl*S, LANES]
        s2 = jnp.dot(R, v * v, preferred_element_type=f32)
        mean = jnp.dot(s1, Ag, preferred_element_type=f32)
        ex2 = jnp.dot(s2, Ag, preferred_element_type=f32)
        var = jnp.maximum(ex2 - mean * mean, 0.0)                    # clamp cancellation
        inv = lax.rsqrt(var + 1e-5)                                  # torch eps
        sc = inv * gamma
        sh = beta - mean * sc
        sc_r = jnp.concatenate([sc] * SQ, axis=0)                    # tile back to rows
        sh_r = jnp.concatenate([sh] * SQ, axis=0)
        return v * sc_r + sh_r

    skip = None
    for l in range(num_layers):
        vl = vecs_ref[l]                                             # [5, LANES]
        g1, bt1 = vl[0:1, :], vl[1:2, :]
        g2, bt2 = vl[2:3, :], vl[3:4, :]
        bproj = vl[4:5, :]

        # ---- norm1 + fused QKV (head split + 1/sqrt(dh) folded into weight) --
        hn = gnorm(x, g1, bt1)
        qkv = jnp.dot(hn, wqkv_ref[l], preferred_element_type=f32)   # [Rr, 3*TC]

        # ---- block-masked multi-head attention, batched per channel-head ----
        att = x                                                      # residual
        for m in range(CH):
            q = qkv[:, m * dh:(m + 1) * dh]                          # [Rr, dh]
            k = qkv[:, TC + m * dh:TC + (m + 1) * dh]
            vv = qkv[:, 2 * TC + m * dh:2 * TC + (m + 1) * dh]
            s = lax.dot_general(q, k, (((1,), (1,)), ((), ())),
                                preferred_element_type=f32)          # [Rr, Rr]
            s = s + mask                                             # -1e30 off-block
            mx = jnp.max(s, axis=-1, keepdims=True)
            p = jnp.exp(s - mx)
            den = jnp.sum(p, axis=-1, keepdims=True)
            p = p * pl.reciprocal(den, approx=False)                 # exact (parity)
            o_m = jnp.dot(p, vv, preferred_element_type=f32)         # [Rr, dh]
            att = att + jnp.dot(o_m, wout_ref[l * CH + m],
                                preferred_element_type=f32)          # head-merge folded

        # ---- norm2 + per-point grid projection (scale == 1) ------------------
        h2 = gnorm(att, g2, bt2)
        x = jnp.dot(h2, wproj_ref[l], preferred_element_type=f32) + bproj
        if l == 0:
            skip = x                                                 # U-Net skip

    o_ref[0] = (x + skip).astype(o_ref.dtype)


def _fused_forward_pallas(x_in, consts, g: Geom):
    kernel = functools.partial(_unet_fused_kernel, SQ=g.SQ, CH=g.CH, dh=g.dh,
                               num_layers=NUM_LAYERS)
    zero2 = lambda b: (0, 0)
    zero3 = lambda b: (0, 0, 0)
    batch3 = lambda b: (b, 0, 0)
    return pl.pallas_call(
        kernel,
        out_shape=jax.ShapeDtypeStruct((g.NB, g.Rr, g.LANES), x_in.dtype),
        grid=(g.NB,),
        in_specs=[
            pl.BlockSpec((1, g.Rr, g.PQ * g.Cin), batch3),                 # x_in
            pl.BlockSpec((g.PQ * g.Cin, g.PQ * HIDDEN), zero2),            # W1in
            pl.BlockSpec((1, g.PQ * HIDDEN), zero2),                       # b1in
            pl.BlockSpec((g.PQ * HIDDEN, g.LANES), zero2),                 # W2in
            pl.BlockSpec((1, g.LANES), zero2),                             # b2in
            pl.BlockSpec((g.Rr, g.LANES), zero2),                          # pos
            pl.BlockSpec((g.Bl * g.S, g.Rr), zero2),                       # R
            pl.BlockSpec((g.LANES, g.LANES), zero2),                       # Ag
            pl.BlockSpec((g.Rr, g.Rr), zero2),                             # mask
            pl.BlockSpec((NUM_LAYERS, g.LANES, 3 * g.CH * g.dh), zero3),   # Wqkv
            pl.BlockSpec((NUM_LAYERS * g.CH, g.dh, g.LANES), zero3),       # Wout
            pl.BlockSpec((NUM_LAYERS, g.LANES, g.LANES), zero3),           # Wproj
            pl.BlockSpec((NUM_LAYERS, 5, g.LANES), zero3),                 # vecs
        ],
        out_specs=pl.BlockSpec((1, g.Rr, g.LANES), batch3),
        compiler_params=pltpu.CompilerParams(
            dimension_semantics=("parallel",)),
    )(x_in, consts["W1in"], consts["b1in"], consts["W2in"], consts["b2in"],
      consts["pos"], consts["R"], consts["Ag"], consts["mask"],
      consts["Wqkv"], consts["Wout"], consts["Wproj"], consts["vecs"])


# ----------------------------- layout glue (XLA, tiny tensors) ---------------

def decompose2d(v, n_sub_x, n_sub_y):
    B, C_, H, W = v.shape
    hs, ws = H // n_sub_y, W // n_sub_x
    v = v.reshape(B, C_, n_sub_y, hs, n_sub_x, ws)
    v = v.transpose(0, 2, 4, 1, 3, 5)               # B, ny, nx, C, hs, ws
    return v.reshape(B, n_sub_y * n_sub_x, C_, hs, ws)


def recompose2d(d, n_sub_x, n_sub_y):
    B, S, C_, hs, ws = d.shape
    d = d.reshape(B, n_sub_y, n_sub_x, C_, hs, ws)
    d = d.transpose(0, 3, 1, 4, 2, 5)               # B, C, ny, hs, nx, ws
    return d.reshape(B, C_, n_sub_y * hs, n_sub_x * ws)


def to_work(d, g: Geom):
    """[B,S,C',hs,ws] -> [NB, Rr, PQ*C']; rows ordered (yq, xq[, b], s)."""
    B, S, C_, hs, ws = d.shape
    x = d.reshape(B, S, C_, g.yh, g.hy, g.xh, g.wx)
    if g.fold:
        x = x.transpose(3, 5, 0, 1, 4, 6, 2)        # yh, xh, B, S, hy, wx, C'
        return x.reshape(1, g.SQ * B * S, g.PQ * C_)
    x = x.transpose(0, 3, 5, 1, 4, 6, 2)            # B, yh, xh, S, hy, wx, C'
    return x.reshape(B, g.SQ * S, g.PQ * C_)


def from_work(xw, g: Geom):
    """Inverse of to_work for C' = EMBED_DIM."""
    if g.fold:
        x = xw.reshape(g.yh, g.xh, g.B, g.S, g.hy, g.wx, g.C)
        x = x.transpose(2, 3, 6, 0, 4, 1, 5)        # B, S, C, yh, hy, xh, wx
    else:
        x = xw.reshape(g.B, g.yh, g.xh, g.S, g.hy, g.wx, g.C)
        x = x.transpose(0, 3, 6, 1, 4, 2, 5)
    return x.reshape(g.B, g.S, g.C, g.hs, g.ws)


# ----------------------------- operand preparation (run once) ----------------

def _chip_prefers_batch_grid():
    # Dual-TensorCore chips (v7x, megacore v4/v5p): keep a 2-way parallel grid.
    # Single-core v5e/v6e: fold batch into rows (grid=(1,), M=128 matmuls).
    try:
        kind = jax.devices()[0].device_kind.lower()
    except Exception:
        return False
    return ("v7" in kind) or ("v4" in kind) or ("v5p" in kind)


def prepare_operands(params, B, H, W, domain_size_y, domain_size_x):
    """Builds the fused / permuted weight operands and the geometry, once."""
    assert domain_size_y % SUB_SIZE_Y == 0 and domain_size_x % SUB_SIZE_X == 0
    n_sub_y = domain_size_y // SUB_SIZE_Y
    n_sub_x = domain_size_x // SUB_SIZE_X
    assert H % n_sub_y == 0 and W % n_sub_x == 0
    S = n_sub_y * n_sub_x
    hs, ws = H // n_sub_y, W // n_sub_x
    yh, xh = Y_HEADS, X_HEADS
    assert hs % yh == 0 and ws % xh == 0
    hy, wx = hs // yh, ws // xh
    SQ, PQ = yh * xh, hy * wx
    C, Cin, CH = EMBED_DIM, IN_CHANNELS, CHANNEL_HEADS
    Cd = C // CH
    dh = PQ * Cd
    LANES = PQ * C
    Cg = C // NUM_GROUPS
    assert S <= MAX_SEQ_LEN
    # TODO(synk): num_layers > 2 needs the ProjectToNewGrid2d resample between
    # fused segments (source unavailable); fully fused path covers NUM_LAYERS=2.
    assert NUM_LAYERS == 2

    fold = not _chip_prefers_batch_grid()
    Bl = B if fold else 1
    NB = 1 if fold else B
    Rr = SQ * Bl * S

    geom = Geom(B=B, n_sub_x=n_sub_x, n_sub_y=n_sub_y, S=S, hs=hs, ws=ws,
                yh=yh, xh=xh, hy=hy, wx=wx, SQ=SQ, PQ=PQ, C=C, Cin=Cin,
                CH=CH, dh=dh, LANES=LANES, Bl=Bl, NB=NB, Rr=Rr, fold=fold)

    f32 = jnp.float32
    eyeP = jnp.eye(PQ, dtype=f32)

    # input_project: pointwise FFN replicated per within-quadrant position.
    ip = params["input_project"]
    W1in = jnp.einsum("pq,cj->pcqj", eyeP, ip["w1"].astype(f32)
                      ).reshape(PQ * Cin, PQ * HIDDEN)
    b1in = jnp.tile(ip["b1"].astype(f32), PQ).reshape(1, PQ * HIDDEN)
    W2in = jnp.einsum("pq,jc->pjqc", eyeP, ip["w2"].astype(f32)
                      ).reshape(PQ * HIDDEN, LANES)
    b2in = jnp.tile(ip["b2"].astype(f32), PQ).reshape(1, LANES)

    # TODO(synk): LearnedPosEmbedding2d source unavailable; per-(seq, channel)
    # table broadcast over the spatial grid.
    pos_sc = params["pos_emb"][:S].astype(f32)                    # [S, C]
    pos = jnp.tile(jnp.tile(pos_sc, (1, PQ)), (SQ * Bl, 1))       # [Rr, LANES]

    # GroupNorm pooling matrices and the attention block mask.
    R = jnp.tile(jnp.eye(Bl * S, dtype=f32), (1, SQ))             # [Bl*S, Rr]
    gidx = (jnp.arange(LANES) % C) // Cg
    Ag = (gidx[:, None] == gidx[None, :]).astype(f32) / float(hs * ws * Cg)
    blk = jnp.arange(Rr) // S
    mask = jnp.where(blk[:, None] == blk[None, :], 0.0, -1e30).astype(f32)

    # Per-layer fused weights, stacked along a leading layer axis.
    # TODO(synk): FuncSelfAttention source unavailable; heads split over
    # (channel, y, x) with attention over the subdomain sequence, no biases.
    att_scale = 1.0 / math.sqrt(dh)
    wqkv_l, wout_l, wproj_l, vecs_l = [], [], [], []
    for lp in params["encoder"]:
        wq4 = lp["sa"]["w_qkv"].astype(f32).reshape(C, 3, CH, Cd)
        wq4 = wq4.at[:, 0].multiply(att_scale)          # fold 1/sqrt(dh) into Q
        wqkv_l.append(jnp.einsum("pq,ctmd->pctmqd", eyeP, wq4
                                 ).reshape(LANES, 3 * CH * dh))
        wo3 = lp["sa"]["w_out"].astype(f32).reshape(CH, Cd, C)
        wout_l.append(jnp.einsum("pq,mdc->mpdqc", eyeP, wo3
                                 ).reshape(CH, dh, LANES))
        wproj_l.append(jnp.einsum("pq,cd->pcqd", eyeP,
                                  lp["project"]["w"].astype(f32)
                                  ).reshape(LANES, LANES))
        vecs_l.append(jnp.stack([jnp.tile(lp["norm1"]["g"], PQ),
                                 jnp.tile(lp["norm1"]["b"], PQ),
                                 jnp.tile(lp["norm2"]["g"], PQ),
                                 jnp.tile(lp["norm2"]["b"], PQ),
                                 jnp.tile(lp["project"]["b"], PQ)]).astype(f32))

    consts = dict(W1in=W1in, b1in=b1in, W2in=W2in, b2in=b2in, pos=pos,
                  R=R, Ag=Ag, mask=mask,
                  Wqkv=jnp.stack(wqkv_l),
                  Wout=jnp.stack(wout_l).reshape(NUM_LAYERS * CH, dh, LANES),
                  Wproj=jnp.stack(wproj_l),
                  vecs=jnp.stack(vecs_l))
    return consts, geom


# ----------------------------- UnetOperator2d forward ------------------------

def unet_operator_forward(consts, v, geom: Geom):
    g = geom
    assert v.shape[1] == g.Cin
    d = decompose2d(v, g.n_sub_x, g.n_sub_y)             # [B, S, Cin, hs, ws]
    x_in = to_work(d, g)                                 # [NB, Rr, PQ*Cin]
    yw = _fused_forward_pallas(x_in, consts, g)          # [NB, Rr, LANES]
    y = from_work(yw, g)                                 # [B, S, C, hs, ws]
    # (reference prints (layer_idx, n_sub_x, n_sub_y) each layer; omitted)
    # reference forward returns here WITHOUT applying output_project.
    return recompose2d(y, g.n_sub_x, g.n_sub_y)          # [B, EMBED_DIM, H, W]


# ----------------------------- deterministic parameter init ------------------

def init_params(key):
    def dense(k, cin, cout):
        return jax.random.normal(k, (cin, cout), jnp.float32) / math.sqrt(cin)

    keys = iter(jax.random.split(key, 64))
    params = {
        "input_project": dict(
            w1=dense(next(keys), IN_CHANNELS, EMBED_DIM),
            b1=0.01 * jax.random.normal(next(keys), (EMBED_DIM,), jnp.float32),
            w2=dense(next(keys), EMBED_DIM, EMBED_DIM),
            b2=0.01 * jax.random.normal(next(keys), (EMBED_DIM,), jnp.float32),
        ),
        # output_project: present in __init__ but never used by forward -> not built.
        "pos_emb": 0.02 * jax.random.normal(next(keys), (MAX_SEQ_LEN, EMBED_DIM), jnp.float32),
        "encoder": [],
    }
    for _ in range(NUM_LAYERS):
        params["encoder"].append(dict(
            sa=dict(w_qkv=dense(next(keys), EMBED_DIM, 3 * EMBED_DIM),
                    w_out=dense(next(keys), EMBED_DIM, EMBED_DIM)),
            project=dict(w=dense(next(keys), EMBED_DIM, EMBED_DIM),
                         b=0.01 * jax.random.normal(next(keys), (EMBED_DIM,), jnp.float32)),
            norm1=dict(g=jnp.ones((EMBED_DIM,), jnp.float32),
                       b=jnp.zeros((EMBED_DIM,), jnp.float32)),
            norm2=dict(g=jnp.ones((EMBED_DIM,), jnp.float32),
                       b=jnp.zeros((EMBED_DIM,), jnp.float32)),
        ))
    return params


# ----------------------------- main -------------------------------------------

if __name__ == "__main__":
    key = jax.random.PRNGKey(0)
    pkey, xkey = jax.random.split(key)
    params = init_params(pkey)

    B, H, W = 2, 16, 16
    v = jax.random.normal(xkey, (B, IN_CHANNELS, H, W), jnp.float32)

    # One-time preparation (weight permutations, pooling matrices, masks)
    # hoisted out of the hot forward path.
    consts, geom = prepare_operands(params, B, H, W, H, W)

    fwd = jax.jit(unet_operator_forward, static_argnums=(2,))
    out = fwd(consts, v, geom)
    out = jax.block_until_ready(out)

    assert out.shape == (B, EMBED_DIM, H, W), out.shape
    assert bool(jnp.all(jnp.isfinite(out)))
    print("KERNEL_OK")
</pallas_src>

<mosaic_0001>
module attributes {stable_mosaic.version = 11 : i64} {
  func.func @_unet_fused_kernel(%arg0: i32, %arg1: memref<1x128x12xf32, #tpu.memory_space<vmem>>, %arg2: memref<12x128xf32, #tpu.memory_space<vmem>>, %arg3: memref<1x128xf32, #tpu.memory_space<vmem>>, %arg4: memref<128x128xf32, #tpu.memory_space<vmem>>, %arg5: memref<1x128xf32, #tpu.memory_space<vmem>>, %arg6: memref<128x128xf32, #tpu.memory_space<vmem>>, %arg7: memref<32x128xf32, #tpu.memory_space<vmem>>, %arg8: memref<128x128xf32, #tpu.memory_space<vmem>>, %arg9: memref<128x128xf32, #tpu.memory_space<vmem>>, %arg10: memref<2x128x384xf32, #tpu.memory_space<vmem>>, %arg11: memref<4x64x128xf32, #tpu.memory_space<vmem>>, %arg12: memref<2x128x128xf32, #tpu.memory_space<vmem>>, %arg13: memref<2x5x128xf32, #tpu.memory_space<vmem>>, %arg14: memref<1x128x128xf32, #tpu.memory_space<vmem>>) attributes {dimension_semantics = [#tpu.dimension_semantics<parallel>], iteration_bounds = array<i64: 1>, scalar_prefetch = 0 : i64, scratch_operands = 0 : i64, tpu.core_type = #tpu.core_type<tc>, window_params = [{transform_indices = @transform_0, window_bounds = array<i64: 1, 128, 12>}, {pipeline_mode = #tpu.pipeline_mode<synchronous>, transform_indices = @transform_1, window_bounds = array<i64: 12, 128>}, {pipeline_mode = #tpu.pipeline_mode<synchronous>, transform_indices = @transform_2, window_bounds = array<i64: 1, 128>}, {pipeline_mode = #tpu.pipeline_mode<synchronous>, transform_indices = @transform_3, window_bounds = array<i64: 128, 128>}, {pipeline_mode = #tpu.pipeline_mode<synchronous>, transform_indices = @transform_4, window_bounds = array<i64: 1, 128>}, {pipeline_mode = #tpu.pipeline_mode<synchronous>, transform_indices = @transform_5, window_bounds = array<i64: 128, 128>}, {pipeline_mode = #tpu.pipeline_mode<synchronous>, transform_indices = @transform_6, window_bounds = array<i64: 32, 128>}, {pipeline_mode = #tpu.pipeline_mode<synchronous>, transform_indices = @transform_7, window_bounds = array<i64: 128, 128>}, {pipeline_mode = #tpu.pipeline_mode<synchronous>, transform_indices = @transform_8, window_bounds = array<i64: 128, 128>}, {pipeline_mode = #tpu.pipeline_mode<synchronous>, transform_indices = @transform_9, window_bounds = array<i64: 2, 128, 384>}, {pipeline_mode = #tpu.pipeline_mode<synchronous>, transform_indices = @transform_10, window_bounds = array<i64: 4, 64, 128>}, {pipeline_mode = #tpu.pipeline_mode<synchronous>, transform_indices = @transform_11, window_bounds = array<i64: 2, 128, 128>}, {pipeline_mode = #tpu.pipeline_mode<synchronous>, transform_indices = @transform_12, window_bounds = array<i64: 2, 5, 128>}, {transform_indices = @transform_13, window_bounds = array<i64: 1, 128, 128>}]} {
    %c0 = arith.constant 0 : index
    %c0_0 = arith.constant 0 : index
    %0 = vector.load %arg7[%c0, %c0_0] : memref<32x128xf32, #tpu.memory_space<vmem>>, vector<32x128xf32>
    %c0_1 = arith.constant 0 : index
    %c0_2 = arith.constant 0 : index
    %1 = vector.load %arg8[%c0_1, %c0_2] : memref<128x128xf32, #tpu.memory_space<vmem>>, vector<128x128xf32>
    %c0_3 = arith.constant 0 : index
    %c0_4 = arith.constant 0 : index
    %2 = vector.load %arg9[%c0_3, %c0_4] : memref<128x128xf32, #tpu.memory_space<vmem>>, vector<128x128xf32>
    %c0_5 = arith.constant 0 : index
    %c0_6 = arith.constant 0 : index
    %c0_7 = arith.constant 0 : index
    %3 = vector.load %arg1[%c0_5, %c0_6, %c0_7] : memref<1x128x12xf32, #tpu.memory_space<vmem>>, vector<1x128x12xf32>
    %4 = vector.shape_cast %3 : vector<1x128x12xf32> to vector<128x12xf32>
    %c0_8 = arith.constant 0 : index
    %c0_9 = arith.constant 0 : index
    %5 = vector.load %arg2[%c0_8, %c0_9] : memref<12x128xf32, #tpu.memory_space<vmem>>, vector<12x128xf32>
    %cst = arith.constant dense<0.000000e+00> : vector<128x128xf32>
    %6 = tpu.matmul %4, %5, %cst {dimension_numbers = #tpu.dot_dimension_numbers<[1], [0], [0], [1], [0, 0, 1, 1], [], []>} : vector<128x12xf32>, vector<12x128xf32>, vector<128x128xf32> -> vector<128x128xf32>
    %c0_10 = arith.constant 0 : index
    %c0_11 = arith.constant 0 : index
    %7 = vector.load %arg3[%c0_10, %c0_11] : memref<1x128xf32, #tpu.memory_space<vmem>>, vector<1x128xf32>
    %8 = vector.broadcast %7 : vector<1x128xf32> to vector<128x128xf32>
    %9 = arith.addf %6, %8 : vector<128x128xf32>
    %cst_12 = arith.constant 5.000000e-01 : f32
    %10 = vector.broadcast %cst_12 : f32 to vector<128x128xf32>
    %11 = arith.mulf %10, %9 : vector<128x128xf32>
    %cst_13 = arith.constant 0.707106769 : f32
    %12 = vector.broadcast %cst_13 : f32 to vector<128x128xf32>
    %13 = arith.mulf %9, %12 : vector<128x128xf32>
    %14 = math.absf %13 : vector<128x128xf32>
    %cst_14 = arith.constant 0.327591091 : f32
    %15 = vector.broadcast %cst_14 : f32 to vector<128x128xf32>
    %16 = arith.mulf %15, %14 : vector<128x128xf32>
    %cst_15 = arith.constant 1.000000e+00 : f32
    %17 = vector.broadcast %cst_15 : f32 to vector<128x128xf32>
    %18 = arith.addf %17, %16 : vector<128x128xf32>
    %cst_16 = arith.constant 1.000000e+00 : f32
    %19 = vector.broadcast %cst_16 : f32 to vector<128x128xf32>
    %20 = arith.divf %19, %18 : vector<128x128xf32>
    %cst_17 = arith.constant 1.06140542 : f32
    %21 = vector.broadcast %cst_17 : f32 to vector<128x128xf32>
    %22 = arith.mulf %21, %20 : vector<128x128xf32>
    %cst_18 = arith.constant 1.45315206 : f32
    %23 = vector.broadcast %cst_18 : f32 to vector<128x128xf32>
    %24 = arith.subf %22, %23 : vector<128x128xf32>
    %25 = arith.mulf %24, %20 : vector<128x128xf32>
    %cst_19 = arith.constant 1.42141378 : f32
    %26 = vector.broadcast %cst_19 : f32 to vector<128x128xf32>
    %27 = arith.addf %25, %26 : vector<128x128xf32>
    %28 = arith.mulf %27, %20 : vector<128x128xf32>
    %cst_20 = arith.constant 0.284496725 : f32
    %29 = vector.broadcast %cst_20 : f32 to vector<128x128xf32>
    %30 = arith.subf %28, %29 : vector<128x128xf32>
    %31 = arith.mulf %30, %20 : vector<128x128xf32>
    %cst_21 = arith.constant 0.254829586 : f32
    %32 = vector.broadcast %cst_21 : f32 to vector<128x128xf32>
    %33 = arith.addf %31, %32 : vector<128x128xf32>
    %34 = arith.mulf %33, %20 : vector<128x128xf32>
    %cst_22 = arith.constant 0.000000e+00 : f32
    %35 = vector.broadcast %cst_22 : f32 to vector<128x128xf32>
    %36 = arith.subf %35, %14 : vector<128x128xf32>
    %37 = arith.mulf %36, %14 : vector<128x128xf32>
    %38 = math.exp %37 : vector<128x128xf32>
    %39 = arith.mulf %34, %38 : vector<128x128xf32>
    %cst_23 = arith.constant 1.000000e+00 : f32
    %40 = vector.broadcast %cst_23 : f32 to vector<128x128xf32>
    %41 = arith.subf %40, %39 : vector<128x128xf32>
    %cst_24 = arith.constant 0.000000e+00 : f32
    %42 = vector.broadcast %cst_24 : f32 to vector<128x128xf32>
    %43 = arith.cmpf oge, %13, %42 : vector<128x128xf32>
    %cst_25 = arith.constant 0.000000e+00 : f32
    %44 = vector.broadcast %cst_25 : f32 to vector<128x128xf32>
    %45 = arith.subf %44, %41 : vector<128x128xf32>
    %46 = arith.select %43, %41, %45 : vector<128x128xi1>, vector<128x128xf32>
    %cst_26 = arith.constant 1.000000e+00 : f32
    %47 = vector.broadcast %cst_26 : f32 to vector<128x128xf32>
    %48 = arith.addf %47, %46 : vector<128x128xf32>
    %49 = arith.mulf %11, %48 : vector<128x128xf32>
    %c0_27 = arith.constant 0 : index
    %c0_28 = arith.constant 0 : index
    %50 = vector.load %arg4[%c0_27, %c0_28] : memref<128x128xf32, #tpu.memory_space<vmem>>, vector<128x128xf32>
    %cst_29 = arith.constant dense<0.000000e+00> : vector<128x128xf32>
    %51 = tpu.matmul %49, %50, %cst_29 {dimension_numbers = #tpu.dot_dimension_numbers<[1], [0], [0], [1], [0, 0, 1, 1], [], []>} : vector<128x128xf32>, vector<128x128xf32>, vector<128x128xf32> -> vector<128x128xf32>
    %c0_30 = arith.constant 0 : index
    %c0_31 = arith.constant 0 : index
    %52 = vector.load %arg5[%c0_30, %c0_31] : memref<1x128xf32, #tpu.memory_space<vmem>>, vector<1x128xf32>
    %53 = vector.broadcast %52 : vector<1x128xf32> to vector<128x128xf32>
    %54 = arith.addf %51, %53 : vector<128x128xf32>
    %c0_32 = arith.constant 0 : index
    %c0_33 = arith.constant 0 : index
    %55 = vector.load %arg6[%c0_32, %c0_33] : memref<128x128xf32, #tpu.memory_space<vmem>>, vector<128x128xf32>
    %56 = arith.addf %54, %55 : vector<128x128xf32>
    %c0_34 = arith.constant 0 : index
    %c0_35 = arith.constant 0 : index
    %c0_36 = arith.constant 0 : index
    %57 = vector.load %arg13[%c0_34, %c0_35, %c0_36] : memref<2x5x128xf32, #tpu.memory_space<vmem>>, vector<1x5x128xf32>
    %58 = vector.shape_cast %57 : vector<1x5x128xf32> to vector<5x128xf32>
    %59 = vector.extract_strided_slice %58 {offsets = [0, 0], sizes = [1, 128], strides = [1, 1]} : vector<5x128xf32> to vector<1x128xf32>
    %60 = vector.extract_strided_slice %58 {offsets = [1, 0], sizes = [1, 128], strides = [1, 1]} : vector<5x128xf32> to vector<1x128xf32>
    %61 = vector.extract_strided_slice %58 {offsets = [2, 0], sizes = [1, 128], strides = [1, 1]} : vector<5x128xf32> to vector<1x128xf32>
    %62 = vector.extract_strided_slice %58 {offsets = [3, 0], sizes = [1, 128], strides = [1, 1]} : vector<5x128xf32> to vector<1x128xf32>
    %63 = vector.extract_strided_slice %58 {offsets = [4, 0], sizes = [1, 128], strides = [1, 1]} : vector<5x128xf32> to vector<1x128xf32>
    %cst_37 = arith.constant dense<0.000000e+00> : vector<32x128xf32>
    %64 = tpu.matmul %0, %56, %cst_37 {dimension_numbers = #tpu.dot_dimension_numbers<[1], [0], [0], [1], [0, 0, 1, 1], [], []>} : vector<32x128xf32>, vector<128x128xf32>, vector<32x128xf32> -> vector<32x128xf32>
    %65 = arith.mulf %56, %56 : vector<128x128xf32>
    %cst_38 = arith.constant dense<0.000000e+00> : vector<32x128xf32>
    %66 = tpu.matmul %0, %65, %cst_38 {dimension_numbers = #tpu.dot_dimension_numbers<[1], [0], [0], [1], [0, 0, 1, 1], [], []>} : vector<32x128xf32>, vector<128x128xf32>, vector<32x128xf32> -> vector<32x128xf32>
    %cst_39 = arith.constant dense<0.000000e+00> : vector<32x128xf32>
    %67 = tpu.matmul %64, %1, %cst_39 {dimension_numbers = #tpu.dot_dimension_numbers<[1], [0], [0], [1], [0, 0, 1, 1], [], []>} : vector<32x128xf32>, vector<128x128xf32>, vector<32x128xf32> -> vector<32x128xf32>
    %cst_40 = arith.constant dense<0.000000e+00> : vector<32x128xf32>
    %68 = tpu.matmul %66, %1, %cst_40 {dimension_numbers = #tpu.dot_dimension_numbers<[1], [0], [0], [1], [0, 0, 1, 1], [], []>} : vector<32x128xf32>, vector<128x128xf32>, vector<32x128xf32> -> vector<32x128xf32>
    %69 = arith.mulf %67, %67 : vector<32x128xf32>
    %70 = arith.subf %68, %69 : vector<32x128xf32>
    %cst_41 = arith.constant 0.000000e+00 : f32
    %71 = vector.broadcast %cst_41 : f32 to vector<32x128xf32>
    %72 = arith.maximumf %70, %71 : vector<32x128xf32>
    %cst_42 = arith.constant 9.99999974E-6 : f32
    %73 = vector.broadcast %cst_42 : f32 to vector<32x128xf32>
    %74 = arith.addf %72, %73 : vector<32x128xf32>
    %75 = math.rsqrt %74 : vector<32x128xf32>
    %76 = vector.broadcast %59 : vector<1x128xf32> to vector<32x128xf32>
    %77 = arith.mulf %75, %76 : vector<32x128xf32>
    %78 = arith.mulf %67, %77 : vector<32x128xf32>
    %79 = vector.broadcast %60 : vector<1x128xf32> to vector<32x128xf32>
    %80 = arith.subf %79, %78 : vector<32x128xf32>
    %81 = tpu.concatenate %77, %77, %77, %77 in 0 : vector<32x128xf32>, vector<32x128xf32>, vector<32x128xf32>, vector<32x128xf32> -> vector<128x128xf32>
    %82 = tpu.concatenate %80, %80, %80, %80 in 0 : vector<32x128xf32>, vector<32x128xf32>, vector<32x128xf32>, vector<32x128xf32> -> vector<128x128xf32>
    %83 = arith.mulf %56, %81 : vector<128x128xf32>
    %84 = arith.addf %83, %82 : vector<128x128xf32>
    %c0_43 = arith.constant 0 : index
    %c0_44 = arith.constant 0 : index
    %c0_45 = arith.constant 0 : index
    %85 = vector.load %arg10[%c0_43, %c0_44, %c0_45] : memref<2x128x384xf32, #tpu.memory_space<vmem>>, vector<1x128x384xf32>
    %86 = vector.shape_cast %85 : vector<1x128x384xf32> to vector<128x384xf32>
    %cst_46 = arith.constant dense<0.000000e+00> : vector<128x384xf32>
    %87 = tpu.matmul %84, %86, %cst_46 {dimension_numbers = #tpu.dot_dimension_numbers<[1], [0], [0], [1], [0, 0, 1, 1], [], []>} : vector<128x128xf32>, vector<128x384xf32>, vector<128x384xf32> -> vector<128x384xf32>
    %88 = vector.extract_strided_slice %87 {offsets = [0, 0], sizes = [128, 64], strides = [1, 1]} : vector<128x384xf32> to vector<128x64xf32>
    %89 = vector.extract_strided_slice %87 {offsets = [0, 128], sizes = [128, 64], strides = [1, 1]} : vector<128x384xf32> to vector<128x64xf32>
    %90 = vector.extract_strided_slice %87 {offsets = [0, 256], sizes = [128, 64], strides = [1, 1]} : vector<128x384xf32> to vector<128x64xf32>
    %cst_47 = arith.constant dense<0.000000e+00> : vector<128x128xf32>
    %91 = tpu.matmul %88, %89, %cst_47 {dimension_numbers = #tpu.dot_dimension_numbers<[1], [1], [0], [0], [0, 0, 1, 0], [], []>} : vector<128x64xf32>, vector<128x64xf32>, vector<128x128xf32> -> vector<128x128xf32>
    %92 = arith.addf %91, %2 : vector<128x128xf32>
    %cst_48 = arith.constant dense<0xFF800000> : vector<128xf32>
    %93 = vector.multi_reduction <maximumf>, %92, %cst_48 [1] : vector<128x128xf32> to vector<128xf32>
    %94 = vector.shape_cast %93 : vector<128xf32> to vector<128x1xf32>
    %95 = vector.broadcast %94 : vector<128x1xf32> to vector<128x128xf32>
    %96 = arith.subf %92, %95 : vector<128x128xf32>
    %97 = math.exp %96 : vector<128x128xf32>
    %cst_49 = arith.constant dense<0.000000e+00> : vector<128xf32>
    %98 = vector.multi_reduction <add>, %97, %cst_49 [1] : vector<128x128xf32> to vector<128xf32>
    %99 = vector.shape_cast %98 : vector<128xf32> to vector<128x1xf32>
    %100 = tpu.reciprocal %99 : vector<128x1xf32> -> vector<128x1xf32>
    %101 = vector.broadcast %100 : vector<128x1xf32> to vector<128x128xf32>
    %102 = arith.mulf %97, %101 : vector<128x128xf32>
    %cst_50 = arith.constant dense<0.000000e+00> : vector<128x64xf32>
    %103 = tpu.matmul %102, %90, %cst_50 {dimension_numbers = #tpu.dot_dimension_numbers<[1], [0], [0], [1], [0, 0, 1, 1], [], []>} : vector<128x128xf32>, vector<128x64xf32>, vector<128x64xf32> -> vector<128x64xf32>
    %c0_51 = arith.constant 0 : index
    %c0_52 = arith.constant 0 : index
    %c0_53 = arith.constant 0 : index
    %104 = vector.load %arg11[%c0_51, %c0_52, %c0_53] : memref<4x64x128xf32, #tpu.memory_space<vmem>>, vector<1x64x128xf32>
    %105 = vector.shape_cast %104 : vector<1x64x128xf32> to vector<64x128xf32>
    %cst_54 = arith.constant dense<0.000000e+00> : vector<128x128xf32>
    %106 = tpu.matmul %103, %105, %cst_54 {dimension_numbers = #tpu.dot_dimension_numbers<[1], [0], [0], [1], [0, 0, 1, 1], [], []>} : vector<128x64xf32>, vector<64x128xf32>, vector<128x128xf32> -> vector<128x128xf32>
    %107 = arith.addf %56, %106 : vector<128x128xf32>
    %108 = vector.extract_strided_slice %87 {offsets = [0, 64], sizes = [128, 64], strides = [1, 1]} : vector<128x384xf32> to vector<128x64xf32>
    %109 = vector.extract_strided_slice %87 {offsets = [0, 192], sizes = [128, 64], strides = [1, 1]} : vector<128x384xf32> to vector<128x64xf32>
    %110 = vector.extract_strided_slice %87 {offsets = [0, 320], sizes = [128, 64], strides = [1, 1]} : vector<128x384xf32> to vector<128x64xf32>
    %cst_55 = arith.constant dense<0.000000e+00> : vector<128x128xf32>
    %111 = tpu.matmul %108, %109, %cst_55 {dimension_numbers = #tpu.dot_dimension_numbers<[1], [1], [0], [0], [0, 0, 1, 0], [], []>} : vector<128x64xf32>, vector<128x64xf32>, vector<128x128xf32> -> vector<128x128xf32>
    %112 = arith.addf %111, %2 : vector<128x128xf32>
    %cst_56 = arith.constant dense<0xFF800000> : vector<128xf32>
    %113 = vector.multi_reduction <maximumf>, %112, %cst_56 [1] : vector<128x128xf32> to vector<128xf32>
    %114 = vector.shape_cast %113 : vector<128xf32> to vector<128x1xf32>
    %115 = vector.broadcast %114 : vector<128x1xf32> to vector<128x128xf32>
    %116 = arith.subf %112, %115 : vector<128x128xf32>
    %117 = math.exp %116 : vector<128x128xf32>
    %cst_57 = arith.constant dense<0.000000e+00> : vector<128xf32>
    %118 = vector.multi_reduction <add>, %117, %cst_57 [1] : vector<128x128xf32> to vector<128xf32>
    %119 = vector.shape_cast %118 : vector<128xf32> to vector<128x1xf32>
    %120 = tpu.reciprocal %119 : vector<128x1xf32> -> vector<128x1xf32>
    %121 = vector.broadcast %120 : vector<128x1xf32> to vector<128x128xf32>
    %122 = arith.mulf %117, %121 : vector<128x128xf32>
    %cst_58 = arith.constant dense<0.000000e+00> : vector<128x64xf32>
    %123 = tpu.matmul %122, %110, %cst_58 {dimension_numbers = #tpu.dot_dimension_numbers<[1], [0], [0], [1], [0, 0, 1, 1], [], []>} : vector<128x128xf32>, vector<128x64xf32>, vector<128x64xf32> -> vector<128x64xf32>
    %c1 = arith.constant 1 : index
    %c0_59 = arith.constant 0 : index
    %c0_60 = arith.constant 0 : index
    %124 = vector.load %arg11[%c1, %c0_59, %c0_60] : memref<4x64x128xf32, #tpu.memory_space<vmem>>, vector<1x64x128xf32>
    %125 = vector.shape_cast %124 : vector<1x64x128xf32> to vector<64x128xf32>
    %cst_61 = arith.constant dense<0.000000e+00> : vector<128x128xf32>
    %126 = tpu.matmul %123, %125, %cst_61 {dimension_numbers = #tpu.dot_dimension_numbers<[1], [0], [0], [1], [0, 0, 1, 1], [], []>} : vector<128x64xf32>, vector<64x128xf32>, vector<128x128xf32> -> vector<128x128xf32>
    %127 = arith.addf %107, %126 : vector<128x128xf32>
    %cst_62 = arith.constant dense<0.000000e+00> : vector<32x128xf32>
    %128 = tpu.matmul %0, %127, %cst_62 {dimension_numbers = #tpu.dot_dimension_numbers<[1], [0], [0], [1], [0, 0, 1, 1], [], []>} : vector<32x128xf32>, vector<128x128xf32>, vector<32x128xf32> -> vector<32x128xf32>
    %129 = arith.mulf %127, %127 : vector<128x128xf32>
    %cst_63 = arith.constant dense<0.000000e+00> : vector<32x128xf32>
    %130 = tpu.matmul %0, %129, %cst_63 {dimension_numbers = #tpu.dot_dimension_numbers<[1], [0], [0], [1], [0, 0, 1, 1], [], []>} : vector<32x128xf32>, vector<128x128xf32>, vector<32x128xf32> -> vector<32x128xf32>
    %cst_64 = arith.constant dense<0.000000e+00> : vector<32x128xf32>
    %131 = tpu.matmul %128, %1, %cst_64 {dimension_numbers = #tpu.dot_dimension_numbers<[1], [0], [0], [1], [0, 0, 1, 1], [], []>} : vector<32x128xf32>, vector<128x128xf32>, vector<32x128xf32> -> vector<32x128xf32>
    %cst_65 = arith.constant dense<0.000000e+00> : vector<32x128xf32>
    %132 = tpu.matmul %130, %1, %cst_65 {dimension_numbers = #tpu.dot_dimension_numbers<[1], [0], [0], [1], [0, 0, 1, 1], [], []>} : vector<32x128xf32>, vector<128x128xf32>, vector<32x128xf32> -> vector<32x128xf32>
    %133 = arith.mulf %131, %131 : vector<32x128xf32>
    %134 = arith.subf %132, %133 : vector<32x128xf32>
    %cst_66 = arith.constant 0.000000e+00 : f32
    %135 = vector.broadcast %cst_66 : f32 to vector<32x128xf32>
    %136 = arith.maximumf %134, %135 : vector<32x128xf32>
    %cst_67 = arith.constant 9.99999974E-6 : f32
    %137 = vector.broadcast %cst_67 : f32 to vector<32x128xf32>
    %138 = arith.addf %136, %137 : vector<32x128xf32>
    %139 = math.rsqrt %138 : vector<32x128xf32>
    %140 = vector.broadcast %61 : vector<1x128xf32> to vector<32x128xf32>
    %141 = arith.mulf %139, %140 : vector<32x128xf32>
    %142 = arith.mulf %131, %141 : vector<32x128xf32>
    %143 = vector.broadcast %62 : vector<1x128xf32> to vector<32x128xf32>
    %144 = arith.subf %143, %142 : vector<32x128xf32>
    %145 = tpu.concatenate %141, %141, %141, %141 in 0 : vector<32x128xf32>, vector<32x128xf32>, vector<32x128xf32>, vector<32x128xf32> -> vector<128x128xf32>
    %146 = tpu.concatenate %144, %144, %144, %144 in 0 : vector<32x128xf32>, vector<32x128xf32>, vector<32x128xf32>, vector<32x128xf32> -> vector<128x128xf32>
    %147 = arith.mulf %127, %145 : vector<128x128xf32>
    %148 = arith.addf %147, %146 : vector<128x128xf32>
    %c0_68 = arith.constant 0 : index
    %c0_69 = arith.constant 0 : index
    %c0_70 = arith.constant 0 : index
    %149 = vector.load %arg12[%c0_68, %c0_69, %c0_70] : memref<2x128x128xf32, #tpu.memory_space<vmem>>, vector<1x128x128xf32>
    %150 = vector.shape_cast %149 : vector<1x128x128xf32> to vector<128x128xf32>
    %cst_71 = arith.constant dense<0.000000e+00> : vector<128x128xf32>
    %151 = tpu.matmul %148, %150, %cst_71 {dimension_numbers = #tpu.dot_dimension_numbers<[1], [0], [0], [1], [0, 0, 1, 1], [], []>} : vector<128x128xf32>, vector<128x128xf32>, vector<128x128xf32> -> vector<128x128xf32>
    %152 = vector.broadcast %63 : vector<1x128xf32> to vector<128x128xf32>
    %153 = arith.addf %151, %152 : vector<128x128xf32>
    %c1_72 = arith.constant 1 : index
    %c0_73 = arith.constant 0 : index
    %c0_74 = arith.constant 0 : index
    %154 = vector.load %arg13[%c1_72, %c0_73, %c0_74] : memref<2x5x128xf32, #tpu.memory_space<vmem>>, vector<1x5x128xf32>
    %155 = vector.shape_cast %154 : vector<1x5x128xf32> to vector<5x128xf32>
    %156 = vector.extract_strided_slice %155 {offsets = [0, 0], sizes = [1, 128], strides = [1, 1]} : vector<5x128xf32> to vector<1x128xf32>
    %157 = vector.extract_strided_slice %155 {offsets = [1, 0], sizes = [1, 128], strides = [1, 1]} : vector<5x128xf32> to vector<1x128xf32>
    %158 = vector.extract_strided_slice %155 {offsets = [2, 0], sizes = [1, 128], strides = [1, 1]} : vector<5x128xf32> to vector<1x128xf32>
    %159 = vector.extract_strided_slice %155 {offsets = [3, 0], sizes = [1, 128], strides = [1, 1]} : vector<5x128xf32> to vector<1x128xf32>
    %160 = vector.extract_strided_slice %155 {offsets = [4, 0], sizes = [1, 128], strides = [1, 1]} : vector<5x128xf32> to vector<1x128xf32>
    %cst_75 = arith.constant dense<0.000000e+00> : vector<32x128xf32>
    %161 = tpu.matmul %0, %153, %cst_75 {dimension_numbers = #tpu.dot_dimension_numbers<[1], [0], [0], [1], [0, 0, 1, 1], [], []>} : vector<32x128xf32>, vector<128x128xf32>, vector<32x128xf32> -> vector<32x128xf32>
    %162 = arith.mulf %153, %153 : vector<128x128xf32>
    %cst_76 = arith.constant dense<0.000000e+00> : vector<32x128xf32>
    %163 = tpu.matmul %0, %162, %cst_76 {dimension_numbers = #tpu.dot_dimension_numbers<[1], [0], [0], [1], [0, 0, 1, 1], [], []>} : vector<32x128xf32>, vector<128x128xf32>, vector<32x128xf32> -> vector<32x128xf32>
    %cst_77 = arith.constant dense<0.000000e+00> : vector<32x128xf32>
    %164 = tpu.matmul %161, %1, %cst_77 {dimension_numbers = #tpu.dot_dimension_numbers<[1], [0], [0], [1], [0, 0, 1, 1], [], []>} : vector<32x128xf32>, vector<128x128xf32>, vector<32x128xf32> -> vector<32x128xf32>
    %cst_78 = arith.constant dense<0.000000e+00> : vector<32x128xf32>
    %165 = tpu.matmul %163, %1, %cst_78 {dimension_numbers = #tpu.dot_dimension_numbers<[1], [0], [0], [1], [0, 0, 1, 1], [], []>} : vector<32x128xf32>, vector<128x128xf32>, vector<32x128xf32> -> vector<32x128xf32>
    %166 = arith.mulf %164, %164 : vector<32x128xf32>
    %167 = arith.subf %165, %166 : vector<32x128xf32>
    %cst_79 = arith.constant 0.000000e+00 : f32
    %168 = vector.broadcast %cst_79 : f32 to vector<32x128xf32>
    %169 = arith.maximumf %167, %168 : vector<32x128xf32>
    %cst_80 = arith.constant 9.99999974E-6 : f32
    %170 = vector.broadcast %cst_80 : f32 to vector<32x128xf32>
    %171 = arith.addf %169, %170 : vector<32x128xf32>
    %172 = math.rsqrt %171 : vector<32x128xf32>
    %173 = vector.broadcast %156 : vector<1x128xf32> to vector<32x128xf32>
    %174 = arith.mulf %172, %173 : vector<32x128xf32>
    %175 = arith.mulf %164, %174 : vector<32x128xf32>
    %176 = vector.broadcast %157 : vector<1x128xf32> to vector<32x128xf32>
    %177 = arith.subf %176, %175 : vector<32x128xf32>
    %178 = tpu.concatenate %174, %174, %174, %174 in 0 : vector<32x128xf32>, vector<32x128xf32>, vector<32x128xf32>, vector<32x128xf32> -> vector<128x128xf32>
    %179 = tpu.concatenate %177, %177, %177, %177 in 0 : vector<32x128xf32>, vector<32x128xf32>, vector<32x128xf32>, vector<32x128xf32> -> vector<128x128xf32>
    %180 = arith.mulf %153, %178 : vector<128x128xf32>
    %181 = arith.addf %180, %179 : vector<128x128xf32>
    %c1_81 = arith.constant 1 : index
    %c0_82 = arith.constant 0 : index
    %c0_83 = arith.constant 0 : index
    %182 = vector.load %arg10[%c1_81, %c0_82, %c0_83] : memref<2x128x384xf32, #tpu.memory_space<vmem>>, vector<1x128x384xf32>
    %183 = vector.shape_cast %182 : vector<1x128x384xf32> to vector<128x384xf32>
    %cst_84 = arith.constant dense<0.000000e+00> : vector<128x384xf32>
    %184 = tpu.matmul %181, %183, %cst_84 {dimension_numbers = #tpu.dot_dimension_numbers<[1], [0], [0], [1], [0, 0, 1, 1], [], []>} : vector<128x128xf32>, vector<128x384xf32>, vector<128x384xf32> -> vector<128x384xf32>
    %185 = vector.extract_strided_slice %184 {offsets = [0, 0], sizes = [128, 64], strides = [1, 1]} : vector<128x384xf32> to vector<128x64xf32>
    %186 = vector.extract_strided_slice %184 {offsets = [0, 128], sizes = [128, 64], strides = [1, 1]} : vector<128x384xf32> to vector<128x64xf32>
    %187 = vector.extract_strided_slice %184 {offsets = [0, 256], sizes = [128, 64], strides = [1, 1]} : vector<128x384xf32> to vector<128x64xf32>
    %cst_85 = arith.constant dense<0.000000e+00> : vector<128x128xf32>
    %188 = tpu.matmul %185, %186, %cst_85 {dimension_numbers = #tpu.dot_dimension_numbers<[1], [1], [0], [0], [0, 0, 1, 0], [], []>} : vector<128x64xf32>, vector<128x64xf32>, vector<128x128xf32> -> vector<128x128xf32>
    %189 = arith.addf %188, %2 : vector<128x128xf32>
    %cst_86 = arith.constant dense<0xFF800000> : vector<128xf32>
    %190 = vector.multi_reduction <maximumf>, %189, %cst_86 [1] : vector<128x128xf32> to vector<128xf32>
    %191 = vector.shape_cast %190 : vector<128xf32> to vector<128x1xf32>
    %192 = vector.broadcast %191 : vector<128x1xf32> to vector<128x128xf32>
    %193 = arith.subf %189, %192 : vector<128x128xf32>
    %194 = math.exp %193 : vector<128x128xf32>
    %cst_87 = arith.constant dense<0.000000e+00> : vector<128xf32>
    %195 = vector.multi_reduction <add>, %194, %cst_87 [1] : vector<128x128xf32> to vector<128xf32>
    %196 = vector.shape_cast %195 : vector<128xf32> to vector<128x1xf32>
    %197 = tpu.reciprocal %196 : vector<128x1xf32> -> vector<128x1xf32>
    %198 = vector.broadcast %197 : vector<128x1xf32> to vector<128x128xf32>
    %199 = arith.mulf %194, %198 : vector<128x128xf32>
    %cst_88 = arith.constant dense<0.000000e+00> : vector<128x64xf32>
    %200 = tpu.matmul %199, %187, %cst_88 {dimension_numbers = #tpu.dot_dimension_numbers<[1], [0], [0], [1], [0, 0, 1, 1], [], []>} : vector<128x128xf32>, vector<128x64xf32>, vector<128x64xf32> -> vector<128x64xf32>
    %c2 = arith.constant 2 : index
    %c0_89 = arith.constant 0 : index
    %c0_90 = arith.constant 0 : index
    %201 = vector.load %arg11[%c2, %c0_89, %c0_90] : memref<4x64x128xf32, #tpu.memory_space<vmem>>, vector<1x64x128xf32>
    %202 = vector.shape_cast %201 : vector<1x64x128xf32> to vector<64x128xf32>
    %cst_91 = arith.constant dense<0.000000e+00> : vector<128x128xf32>
    %203 = tpu.matmul %200, %202, %cst_91 {dimension_numbers = #tpu.dot_dimension_numbers<[1], [0], [0], [1], [0, 0, 1, 1], [], []>} : vector<128x64xf32>, vector<64x128xf32>, vector<128x128xf32> -> vector<128x128xf32>
    %204 = arith.addf %153, %203 : vector<128x128xf32>
    %205 = vector.extract_strided_slice %184 {offsets = [0, 64], sizes = [128, 64], strides = [1, 1]} : vector<128x384xf32> to vector<128x64xf32>
    %206 = vector.extract_strided_slice %184 {offsets = [0, 192], sizes = [128, 64], strides = [1, 1]} : vector<128x384xf32> to vector<128x64xf32>
    %207 = vector.extract_strided_slice %184 {offsets = [0, 320], sizes = [128, 64], strides = [1, 1]} : vector<128x384xf32> to vector<128x64xf32>
    %cst_92 = arith.constant dense<0.000000e+00> : vector<128x128xf32>
    %208 = tpu.matmul %205, %206, %cst_92 {dimension_numbers = #tpu.dot_dimension_numbers<[1], [1], [0], [0], [0, 0, 1, 0], [], []>} : vector<128x64xf32>, vector<128x64xf32>, vector<128x128xf32> -> vector<128x128xf32>
    %209 = arith.addf %208, %2 : vector<128x128xf32>
    %cst_93 = arith.constant dense<0xFF800000> : vector<128xf32>
    %210 = vector.multi_reduction <maximumf>, %209, %cst_93 [1] : vector<128x128xf32> to vector<128xf32>
    %211 = vector.shape_cast %210 : vector<128xf32> to vector<128x1xf32>
    %212 = vector.broadcast %211 : vector<128x1xf32> to vector<128x128xf32>
    %213 = arith.subf %209, %212 : vector<128x128xf32>
    %214 = math.exp %213 : vector<128x128xf32>
    %cst_94 = arith.constant dense<0.000000e+00> : vector<128xf32>
    %215 = vector.multi_reduction <add>, %214, %cst_94 [1] : vector<128x128xf32> to vector<128xf32>
    %216 = vector.shape_cast %215 : vector<128xf32> to vector<128x1xf32>
    %217 = tpu.reciprocal %216 : vector<128x1xf32> -> vector<128x1xf32>
    %218 = vector.broadcast %217 : vector<128x1xf32> to vector<128x128xf32>
    %219 = arith.mulf %214, %218 : vector<128x128xf32>
    %cst_95 = arith.constant dense<0.000000e+00> : vector<128x64xf32>
    %220 = tpu.matmul %219, %207, %cst_95 {dimension_numbers = #tpu.dot_dimension_numbers<[1], [0], [0], [1], [0, 0, 1, 1], [], []>} : vector<128x128xf32>, vector<128x64xf32>, vector<128x64xf32> -> vector<128x64xf32>
    %c3 = arith.constant 3 : index
    %c0_96 = arith.constant 0 : index
    %c0_97 = arith.constant 0 : index
    %221 = vector.load %arg11[%c3, %c0_96, %c0_97] : memref<4x64x128xf32, #tpu.memory_space<vmem>>, vector<1x64x128xf32>
    %222 = vector.shape_cast %221 : vector<1x64x128xf32> to vector<64x128xf32>
    %cst_98 = arith.constant dense<0.000000e+00> : vector<128x128xf32>
    %223 = tpu.matmul %220, %222, %cst_98 {dimension_numbers = #tpu.dot_dimension_numbers<[1], [0], [0], [1], [0, 0, 1, 1], [], []>} : vector<128x64xf32>, vector<64x128xf32>, vector<128x128xf32> -> vector<128x128xf32>
    %224 = arith.addf %204, %223 : vector<128x128xf32>
    %cst_99 = arith.constant dense<0.000000e+00> : vector<32x128xf32>
    %225 = tpu.matmul %0, %224, %cst_99 {dimension_numbers = #tpu.dot_dimension_numbers<[1], [0], [0], [1], [0, 0, 1, 1], [], []>} : vector<32x128xf32>, vector<128x128xf32>, vector<32x128xf32> -> vector<32x128xf32>
    %226 = arith.mulf %224, %224 : vector<128x128xf32>
    %cst_100 = arith.constant dense<0.000000e+00> : vector<32x128xf32>
    %227 = tpu.matmul %0, %226, %cst_100 {dimension_numbers = #tpu.dot_dimension_numbers<[1], [0], [0], [1], [0, 0, 1, 1], [], []>} : vector<32x128xf32>, vector<128x128xf32>, vector<32x128xf32> -> vector<32x128xf32>
    %cst_101 = arith.constant dense<0.000000e+00> : vector<32x128xf32>
    %228 = tpu.matmul %225, %1, %cst_101 {dimension_numbers = #tpu.dot_dimension_numbers<[1], [0], [0], [1], [0, 0, 1, 1], [], []>} : vector<32x128xf32>, vector<128x128xf32>, vector<32x128xf32> -> vector<32x128xf32>
    %cst_102 = arith.constant dense<0.000000e+00> : vector<32x128xf32>
    %229 = tpu.matmul %227, %1, %cst_102 {dimension_numbers = #tpu.dot_dimension_numbers<[1], [0], [0], [1], [0, 0, 1, 1], [], []>} : vector<32x128xf32>, vector<128x128xf32>, vector<32x128xf32> -> vector<32x128xf32>
    %230 = arith.mulf %228, %228 : vector<32x128xf32>
    %231 = arith.subf %229, %230 : vector<32x128xf32>
    %cst_103 = arith.constant 0.000000e+00 : f32
    %232 = vector.broadcast %cst_103 : f32 to vector<32x128xf32>
    %233 = arith.maximumf %231, %232 : vector<32x128xf32>
    %cst_104 = arith.constant 9.99999974E-6 : f32
    %234 = vector.broadcast %cst_104 : f32 to vector<32x128xf32>
    %235 = arith.addf %233, %234 : vector<32x128xf32>
    %236 = math.rsqrt %235 : vector<32x128xf32>
    %237 = vector.broadcast %158 : vector<1x128xf32> to vector<32x128xf32>
    %238 = arith.mulf %236, %237 : vector<32x128xf32>
    %239 = arith.mulf %228, %238 : vector<32x128xf32>
    %240 = vector.broadcast %159 : vector<1x128xf32> to vector<32x128xf32>
    %241 = arith.subf %240, %239 : vector<32x128xf32>
    %242 = tpu.concatenate %238, %238, %238, %238 in 0 : vector<32x128xf32>, vector<32x128xf32>, vector<32x128xf32>, vector<32x128xf32> -> vector<128x128xf32>
    %243 = tpu.concatenate %241, %241, %241, %241 in 0 : vector<32x128xf32>, vector<32x128xf32>, vector<32x128xf32>, vector<32x128xf32> -> vector<128x128xf32>
    %244 = arith.mulf %224, %242 : vector<128x128xf32>
    %245 = arith.addf %244, %243 : vector<128x128xf32>
    %c1_105 = arith.constant 1 : index
    %c0_106 = arith.constant 0 : index
    %c0_107 = arith.constant 0 : index
    %246 = vector.load %arg12[%c1_105, %c0_106, %c0_107] : memref<2x128x128xf32, #tpu.memory_space<vmem>>, vector<1x128x128xf32>
    %247 = vector.shape_cast %246 : vector<1x128x128xf32> to vector<128x128xf32>
    %cst_108 = arith.constant dense<0.000000e+00> : vector<128x128xf32>
    %248 = tpu.matmul %245, %247, %cst_108 {dimension_numbers = #tpu.dot_dimension_numbers<[1], [0], [0], [1], [0, 0, 1, 1], [], []>} : vector<128x128xf32>, vector<128x128xf32>, vector<128x128xf32> -> vector<128x128xf32>
    %249 = vector.broadcast %160 : vector<1x128xf32> to vector<128x128xf32>
    %250 = arith.addf %248, %249 : vector<128x128xf32>
    %251 = arith.addf %250, %153 : vector<128x128xf32>
    %c0_109 = arith.constant 0 : index
    %c0_110 = arith.constant 0 : index
    %c0_111 = arith.constant 0 : index
    %252 = vector.load %arg14[%c0_109, %c0_110, %c0_111] : memref<1x128x128xf32, #tpu.memory_space<vmem>>, vector<1x128x128xf32>
    %253 = vector.shape_cast %252 : vector<1x128x128xf32> to vector<128x128xf32>
    %254 = vector.shape_cast %251 : vector<128x128xf32> to vector<1x128x128xf32>
    tpu.vector_store %arg14[%c0_109, %c0_110, %c0_111], %254 {strides = array<i32>} : memref<1x128x128xf32, #tpu.memory_space<vmem>>, vector<1x128x128xf32>,
    return
  }
  func.func @transform_0(%arg0: i32) -> (i32, i32, i32) {
    %c0_i32 = arith.constant 0 : i32
    %c0_i32_0 = arith.constant 0 : i32
    %c0_i32_1 = arith.constant 0 : i32
    return %arg0, %c0_i32, %c0_i32_0 : i32, i32, i32
  }
  func.func @transform_1(%arg0: i32) -> (i32, i32) {
    %c0_i32 = arith.constant 0 : i32
    %c0_i32_0 = arith.constant 0 : i32
    %c0_i32_1 = arith.constant 0 : i32
    return %c0_i32, %c0_i32_0 : i32, i32
  }
  func.func @transform_2(%arg0: i32) -> (i32, i32) {
    %c0_i32 = arith.constant 0 : i32
    %c0_i32_0 = arith.constant 0 : i32
    %c0_i32_1 = arith.constant 0 : i32
    return %c0_i32, %c0_i32_0 : i32, i32
  }
  func.func @transform_3(%arg0: i32) -> (i32, i32) {
    %c0_i32 = arith.constant 0 : i32
    %c0_i32_0 = arith.constant 0 : i32
    %c0_i32_1 = arith.constant 0 : i32
    return %c0_i32, %c0_i32_0 : i32, i32
  }
  func.func @transform_4(%arg0: i32) -> (i32, i32) {
    %c0_i32 = arith.constant 0 : i32
    %c0_i32_0 = arith.constant 0 : i32
    %c0_i32_1 = arith.constant 0 : i32
    return %c0_i32, %c0_i32_0 : i32, i32
  }
  func.func @transform_5(%arg0: i32) -> (i32, i32) {
    %c0_i32 = arith.constant 0 : i32
    %c0_i32_0 = arith.constant 0 : i32
    %c0_i32_1 = arith.constant 0 : i32
    return %c0_i32, %c0_i32_0 : i32, i32
  }
  func.func @transform_6(%arg0: i32) -> (i32, i32) {
    %c0_i32 = arith.constant 0 : i32
    %c0_i32_0 = arith.constant 0 : i32
    %c0_i32_1 = arith.constant 0 : i32
    return %c0_i32, %c0_i32_0 : i32, i32
  }
  func.func @transform_7(%arg0: i32) -> (i32, i32) {
    %c0_i32 = arith.constant 0 : i32
    %c0_i32_0 = arith.constant 0 : i32
    %c0_i32_1 = arith.constant 0 : i32
    return %c0_i32, %c0_i32_0 : i32, i32
  }
  func.func @transform_8(%arg0: i32) -> (i32, i32) {
    %c0_i32 = arith.constant 0 : i32
    %c0_i32_0 = arith.constant 0 : i32
    %c0_i32_1 = arith.constant 0 : i32
    return %c0_i32, %c0_i32_0 : i32, i32
  }
  func.func @transform_9(%arg0: i32) -> (i32, i32, i32) {
    %c0_i32 = arith.constant 0 : i32
    %c0_i32_0 = arith.constant 0 : i32
    %c0_i32_1 = arith.constant 0 : i32
    %c0_i32_2 = arith.constant 0 : i32
    return %c0_i32, %c0_i32_0, %c0_i32_1 : i32, i32, i32
  }
  func.func @transform_10(%arg0: i32) -> (i32, i32, i32) {
    %c0_i32 = arith.constant 0 : i32
    %c0_i32_0 = arith.constant 0 : i32
    %c0_i32_1 = arith.constant 0 : i32
    %c0_i32_2 = arith.constant 0 : i32
    return %c0_i32, %c0_i32_0, %c0_i32_1 : i32, i32, i32
  }
  func.func @transform_11(%arg0: i32) -> (i32, i32, i32) {
    %c0_i32 = arith.constant 0 : i32
    %c0_i32_0 = arith.constant 0 : i32
    %c0_i32_1 = arith.constant 0 : i32
    %c0_i32_2 = arith.constant 0 : i32
    return %c0_i32, %c0_i32_0, %c0_i32_1 : i32, i32, i32
  }
  func.func @transform_12(%arg0: i32) -> (i32, i32, i32) {
    %c0_i32 = arith.constant 0 : i32
    %c0_i32_0 = arith.constant 0 : i32
    %c0_i32_1 = arith.constant 0 : i32
    %c0_i32_2 = arith.constant 0 : i32
    return %c0_i32, %c0_i32_0, %c0_i32_1 : i32, i32, i32
  }
  func.func @transform_13(%arg0: i32) -> (i32, i32, i32) {
    %c0_i32 = arith.constant 0 : i32
    %c0_i32_0 = arith.constant 0 : i32
    %c0_i32_1 = arith.constant 0 : i32
    return %arg0, %c0_i32, %c0_i32_0 : i32, i32, i32
  }
}

</mosaic_0001>

<bundles_post_ra>
// kernel: unet_operator_forward.1
= control target key start
LH: loop header
LB: loop body
LE: loop exit
PB: predicated region body
PF: predicated region fallthrough
CT: control target
= control target key end

     0   :  { %vm151_vm0 = vcmask 1043456   ;;  %vm102_vm1 = vcmask 97280   ;;  %s10833_s1 = inlined_call_operand.vmem [shape: f32[12,128], index: 1, kind: input, shape index: {}]   ;;  %s10834_s0 = inlined_call_operand.vmem [shape: f32[1,128,12], index: 0, kind: input, shape index: {}]   ;;  %s10835_s2 = inlined_call_operand.vmem [shape: f32[1,128], index: 2, kind: input, shape index: {}]   ;;  %s10836_s3 = inlined_call_operand.vmem [shape: f32[128,128], index: 3, kind: input, shape index: {}]   ;;  %s10837_s4 = inlined_call_operand.vmem [shape: f32[1,128], index: 4, kind: input, shape index: {}]   ;;  %s10838_s5 = inlined_call_operand.vmem [shape: f32[128,128], index: 5, kind: input, shape index: {}]   ;;  %s10839_s6 = inlined_call_operand.vmem [shape: f32[32,128], index: 6, kind: input, shape index: {}]   ;;  %s10840_s7 = inlined_call_operand.vmem [shape: f32[128,128], index: 7, kind: input, shape index: {}]   ;;  %s10841_s9 = inlined_call_operand.vmem [shape: f32[2,128,384], index: 9, kind: input, shape index: {}]   ;;  %s10842_s12 = inlined_call_operand.vmem [shape: f32[2,5,128], index: 12, kind: input, shape index: {}]   ;;  %s10843_s8 = inlined_call_operand.vmem [shape: f32[128,128], index: 8, kind: input, shape index: {}]   ;;  %s10844_s10 = inlined_call_operand.vmem [shape: f32[4,64,128], index: 10, kind: input, shape index: {}]   ;;  %s10845_s11 = inlined_call_operand.vmem [shape: f32[2,128,128], index: 11, kind: input, shape index: {}]   ;;  %s10846_s13 = inlined_call_operand.vmem [shape: f32[1,128,128], index: 13, kind: output, shape index: {}]  }
   0x1   :  { %v97_v0 = vld [vmem:[%s10833_s1 + $0x8] sm:$0xf]  ;;  %v96_v1 = vld [vmem:[%s10833_s1] sm:$0xff]  ;;  %v82_v4 = vld [vmem:[%s10834_s0 + $0x10] sm:$0xff] }
   0x2   :  { %5660 = vmatpush.msk.msra.mxu0 %vm151_vm0, %v97_v0  ;;  %v80_v2 = vld [vmem:[%s10834_s0] sm:$0xff]  ;;  %v81_v3 = vld [vmem:[%s10834_s0 + $0x8] sm:$0xff]  ;;  %v83_v5 = vld [vmem:[%s10834_s0 + $0x18] sm:$0xff] }
   0x3   :  { %v84_v6 = vld [vmem:[%s10834_s0 + $0x20] sm:$0xff]  ;;  %v85_v7 = vld [vmem:[%s10834_s0 + $0x28] sm:$0xff]  ;;  %v86_v8 = vld [vmem:[%s10834_s0 + $0x30] sm:$0xff] }
   0x4   :  { %170 = vmatpush.msra.mxu0 %v96_v1  ;;  %v87_v9 = vld [vmem:[%s10834_s0 + $0x38] sm:$0xff]  ;;  %v88_v10 = vld [vmem:[%s10834_s0 + $0x40] sm:$0xff]  ;;  %v89_v11 = vld [vmem:[%s10834_s0 + $0x48] sm:$0xff] }
   0x5   :  { %5661 = vmatmul.msk.f32.vlgmr.msra.gmra.mxu0 %vm102_vm1, %v80_v2  ;;  %v90_v12 = vld [vmem:[%s10834_s0 + $0x50] sm:$0xff]  ;;  %v91_v13 = vld [vmem:[%s10834_s0 + $0x58] sm:$0xff]  ;;  %v92_v14 = vld [vmem:[%s10834_s0 + $0x60] sm:$0xff] }
   0x6   :  { %v93_v15 = vld [vmem:[%s10834_s0 + $0x68] sm:$0xff]  ;;  %v94_v16 = vld [vmem:[%s10834_s0 + $0x70] sm:$0xff]  ;;  %v95_v17 = vld [vmem:[%s10834_s0 + $0x78] sm:$0xff] }
   0x7   :  { %v875_v18 = vld [vmem:[%s10836_s3 + $0x78] sm:$0xff]  ;;  %v874_v19 = vld [vmem:[%s10836_s3 + $0x70] sm:$0xff]  ;;  %v6681_v20 = vld [vmem:[%s10835_s2] ss:$0 sm:$0xff] }
   0x8   :  { %880 = vmatpush.msra.mxu1 %v875_v18  ;;  %v873_v21 = vld [vmem:[%s10836_s3 + $0x68] sm:$0xff]  ;;  %v872_v22 = vld [vmem:[%s10836_s3 + $0x60] sm:$0xff]  ;;  %v871_v25 = vld [vmem:[%s10836_s3 + $0x58] sm:$0xff] }
   0x9   :  { %v870_v27 = vld [vmem:[%s10836_s3 + $0x50] sm:$0xff]  ;;  %v869_v29 = vld [vmem:[%s10836_s3 + $0x48] sm:$0xff]  ;;  %v868_v31 = vld [vmem:[%s10836_s3 + $0x40] sm:$0xff] }
   0xa   :  { %881 = vmatpush.msra.mxu1 %v874_v19  ;;  %v867_v35 = vld [vmem:[%s10836_s3 + $0x38] sm:$0xff]  ;;  %v866_v37 = vld [vmem:[%s10836_s3 + $0x30] sm:$0xff]  ;;  %v865_v39 = vld [vmem:[%s10836_s3 + $0x28] sm:$0xff] }
   0xb   :  { %v864_v41 = vld [vmem:[%s10836_s3 + $0x20] sm:$0xff]  ;;  %v863_v46 = vld [vmem:[%s10836_s3 + $0x18] sm:$0xff]  ;;  %v862_v49 = vld [vmem:[%s10836_s3 + $0x10] sm:$0xff] }
   0xc   :  { %882 = vmatpush.msra.mxu1 %v873_v21  ;;  %v861_v52 = vld [vmem:[%s10836_s3 + $0x8] sm:$0xff]  ;;  %v860_v57 = vld [vmem:[%s10836_s3] sm:$0xff] }
   0xd   :  { %5662 = vmatmul.msk.f32.gmra.mxu0 %vm102_vm1, %v81_v3 }
   0xe   :  { %883 = vmatpush.msra.mxu1 %v872_v22 }
  0x10   :  { %884 = vmatpush.msra.mxu1 %v871_v25 }
  0x12   :  { %885 = vmatpush.msra.mxu1 %v870_v27 }
  0x14   :  { %886 = vmatpush.msra.mxu1 %v869_v29 }
  0x15   :  { %5663 = vmatmul.msk.f32.gmra.mxu0 %vm102_vm1, %v82_v4 }
  0x16   :  { %887 = vmatpush.msra.mxu1 %v868_v31 }
  0x18   :  { %888 = vmatpush.msra.mxu1 %v867_v35 }
  0x1a   :  { %889 = vmatpush.msra.mxu1 %v866_v37 }
  0x1c   :  { %890 = vmatpush.msra.mxu1 %v865_v39 }
  0x1d   :  { %5664 = vmatmul.msk.f32.gmra.mxu0 %vm102_vm1, %v83_v5 }
  0x1e   :  { %891 = vmatpush.msra.mxu1 %v864_v41 }
  0x20   :  { %892 = vmatpush.msra.mxu1 %v863_v46 }
  0x22   :  { %893 = vmatpush.msra.mxu1 %v862_v49 }
  0x24   :  { %894 = vmatpush.msra.mxu1 %v861_v52 }
  0x25   :  { %5665 = vmatmul.msk.f32.gmra.mxu0 %vm102_vm1, %v84_v6 }
  0x26   :  { %895 = vmatpush.msra.mxu1 %v860_v57 }
  0x2d   :  { %5666 = vmatmul.msk.f32.gmra.mxu0 %vm102_vm1, %v85_v7 }
  0x35   :  { %5667 = vmatmul.msk.f32.gmra.mxu0 %vm102_vm1, %v86_v8 }
  0x3d   :  { %5668 = vmatmul.msk.f32.gmra.mxu0 %vm102_vm1, %v87_v9 }
  0x45   :  { %5669 = vmatmul.msk.f32.gmra.mxu0 %vm102_vm1, %v88_v10 }
  0x4d   :  { %5670 = vmatmul.msk.f32.gmra.mxu0 %vm102_vm1, %v89_v11 }
  0x55   :  { %5671 = vmatmul.msk.f32.gmra.mxu0 %vm102_vm1, %v90_v12 }
  0x5d   :  { %5672 = vmatmul.msk.f32.gmra.mxu0 %vm102_vm1, %v91_v13 }
  0x65   :  { %5673 = vmatmul.msk.f32.gmra.mxu0 %vm102_vm1, %v92_v14 }
  0x6d   :  { %5674 = vmatmul.msk.f32.gmra.mxu0 %vm102_vm1, %v93_v15 }
  0x75   :  { %5675 = vmatmul.msk.f32.gmra.mxu0 %vm102_vm1, %v94_v16 }
  0x7d   :  { %5676 = vmatmul.msk.f32.gmra.mxu0 %vm102_vm1, %v95_v17 }
  0x82   :  { %v172_v23 = vpop.f32.mrf.mxu0 }
  0x83   :  { %v6690_v24 = vadd.f32 %v6681_v20, %v172_v23 }
  0x85   :  { %v6696_v26 = vmul.f32 0.70710677, %v6690_v24  ;;  %v6785_v39 = vmul.f32 0.5, %v6690_v24 }
  0x87   :  { %v252_v28 = vand.u32 2147483647, %v6696_v26  ;;  %vm780_vm14 = vcmp.ge.f32.partialorder %v6696_v26, 0.0 }
  0x89   :  { %v268_v30 = vmul.f32 0.3275911, %v252_v28  ;;  %v684_v58 = vsub.f32 0.0, %v252_v28 }
  0x8a   :  { %v175_v32 = vpop.f32.mrf.mxu0 }
  0x8b   :  { %v284_v33 = vadd.f32 1.0, %v268_v30  ;;  %v6709_v34 = vadd.f32 %v6681_v20, %v175_v32  ;;  %v700_v5 = vmul.f32 %v684_v58, %v252_v28 }
  0x8d   :  { %6105 = vrcp.f32 %v284_v33  ;;  %v6715_v36 = vmul.f32 0.70710677, %v6709_v34  ;;  %v311_v53 = vand.u32 2147483648, %v284_v33  ;;  %v309_v55 = vand.u32 2147483647, %v284_v33 }
  0x8e   :  { %vm305_vm3 = vweird.f32 %v284_v33  ;;  %v716_v15 = vmul.f32 1.442695, %v700_v5 }
  0x8f   :  { %v253_v38 = vand.u32 2147483647, %v6715_v36  ;;  %v312_v0 = vor.u32 1.1754944e-38, %v311_v53  ;;  %vm310_vm5 = vcmp.eq.f32.partialorder %v309_v55, 8.507059e+37 }
  0x91   :  { %v269_v40 = vmul.f32 0.3275911, %v253_v38  ;;  %v685_v8 = vsub.f32 0.0, %v253_v38 }
  0x92   :  { %v178_v42 = vpop.f32.mrf.mxu0 }
  0x93   :  { %v6106_v43 = vpop.eup %6105  ;;  %v285_v44 = vadd.f32 1.0, %v269_v40  ;;  %v6728_v45 = vadd.f32 %v6681_v20, %v178_v42  ;;  %v701_v21 = vmul.f32 %v685_v8, %v253_v38 }
  0x94   :  { %v301_v47 = vmul.f32 %v6106_v43, %v284_v33  ;;  %vm306_vm2 = vweird.f32 %v6106_v43 }
  0x95   :  { %6107 = vrcp.f32 %v285_v44  ;;  %v6734_v48 = vmul.f32 0.70710677, %v6728_v45  ;;  %vm307_vm4 = vmor %vm305_vm3, %vm306_vm2  ;;  %v326_v10 = vand.u32 2147483648, %v285_v44  ;;  %v324_v13 = vand.u32 2147483647, %v285_v44 }
  0x96   :  { %v302_v50 = vsub.f32 1.0, %v301_v47  ;;  %vm320_vm7 = vweird.f32 %v285_v44  ;;  %v718_v46 = vmul.f32 1.442695, %v701_v21  ;;  %vm781_vm2 = vcmp.ge.f32.partialorder %v6715_v36, 0.0 }
  0x97   :  { %v6740_v51 = vand.u32 2147483647, %v6734_v48  ;;  %v327_v25 = vor.u32 1.1754944e-38, %v326_v10  ;;  %vm325_vm9 = vcmp.eq.f32.partialorder %v324_v13, 8.507059e+37  ;;  %v6817_v10 = vmul.f32 0.5, %v6709_v34 }
  0x98   :  { %v303_v54 = vmul.f32 %v6106_v43, %v302_v50 }
  0x99   :  { %v270_v56 = vmul.f32 0.3275911, %v6740_v51  ;;  %v686_v30 = vsub.f32 0.0, %v6740_v51 }
  0x9a   :  { %v181_v59 = vpop.f32.mrf.mxu0  ;;  %v304_v60 = vadd.f32 %v6106_v43, %v303_v54 }
  0x9b   :  { %v6108_v61 = vpop.eup %6107  ;;  %v6749_v62 = vadd.f32 1.0, %v270_v56  ;;  %v6752_v63 = vadd.f32 %v6681_v20, %v181_v59  ;;  %v702_v47 = vmul.f32 %v686_v30, %v6740_v51 }
  0x9c   :  { %v316_v1 = vmul.f32 %v6108_v61, %v285_v44  ;;  %v308_v2 = vsel %vm307_vm4, %v6106_v43, %v304_v60  ;;  %vm321_vm6 = vweird.f32 %v6108_v61 }
  0x9d   :  { %6109 = vrcp.f32 %v6749_v62  ;;  %v6756_v3 = vmul.f32 0.70710677, %v6752_v63  ;;  %v6758_v4 = vsel %vm310_vm5, %v312_v0, %v308_v2  ;;  %vm322_vm8 = vmor %vm320_vm7, %vm321_vm6  ;;  %v339_v40 = vand.u32 2147483647, %v6749_v62 }
  0x9e   :  { %v317_v6 = vsub.f32 1.0, %v316_v1  ;;  %v540_v7 = vmul.f32 1.0614054, %v6758_v4  ;;  %v341_v41 = vand.u32 2147483648, %v6749_v62  ;;  %vm335_vm11 = vweird.f32 %v6749_v62 }
  0x9f   :  { %v6762_v9 = vand.u32 2147483647, %v6756_v3  ;;  %vm340_vm13 = vcmp.eq.f32.partialorder %v339_v40, 8.507059e+37 }
  0xa0   :  { %v5677_v11 = vadd.f32 -1.4531521, %v540_v7  ;;  %v318_v12 = vmul.f32 %v6108_v61, %v317_v6  ;;  %v342_v51 = vor.u32 1.1754944e-38, %v341_v41  ;;  %v720_v7 = vmul.f32 1.442695, %v702_v47 }
  0xa1   :  { %v271_v14 = vmul.f32 0.3275911, %v6762_v9 }
  0xa2   :  { %v184_v16 = vpop.f32.mrf.mxu0  ;;  %v572_v17 = vmul.f32 %v5677_v11, %v6758_v4  ;;  %v319_v18 = vadd.f32 %v6108_v61, %v318_v12 }
  0xa3   :  { %v6110_v19 = vpop.eup %6109  ;;  %v6766_v22 = vadd.f32 1.0, %v271_v14  ;;  %v6769_v23 = vadd.f32 %v6681_v20, %v184_v16 }
  0xa4   :  { %v331_v27 = vmul.f32 %v6110_v19, %v6749_v62  ;;  %v588_v28 = vadd.f32 1.4214138, %v572_v17  ;;  %v323_v29 = vsel %vm322_vm8, %v6108_v61, %v319_v18  ;;  %vm336_vm10 = vweird.f32 %v6110_v19 }
  0xa5   :  { %6111 = vrcp.f32 %v6766_v22  ;;  %v6775_v31 = vmul.f32 0.70710677, %v6769_v23  ;;  %v6777_v32 = vsel %vm325_vm9, %v327_v25, %v323_v29  ;;  %vm337_vm12 = vmor %vm335_vm11, %vm336_vm10  ;;  %v356_v16 = vand.u32 2147483648, %v6766_v22 }
  0xa6   :  { %v332_v33 = vsub.f32 1.0, %v331_v27  ;;  %v604_v35 = vmul.f32 %v588_v28, %v6758_v4  ;;  %v541_v37 = vmul.f32 1.0614054, %v6777_v32  ;;  %6113 = vpow2.f32 %v716_v15 }
  0xa7   :  { %v6782_v38 = vand.u32 2147483647, %v6775_v31  ;;  %vm350_vm0 = vweird.f32 %v6766_v22  ;;  %v354_v29 = vand.u32 2147483647, %v6766_v22  ;;  %vm782_vm8 = vcmp.ge.f32.partialorder %v6734_v48, 0.0 }
  0xa8   :  { %v5693_v42 = vadd.f32 -0.28449672, %v604_v35  ;;  %v5678_v43 = vadd.f32 -1.4531521, %v541_v37  ;;  %v333_v44 = vmul.f32 %v6110_v19, %v332_v33 }
  0xa9   :  { %v272_v49 = vmul.f32 0.3275911, %v6782_v38  ;;  %vm355_vm3 = vcmp.eq.f32.partialorder %v354_v29, 8.507059e+37  ;;  %v688_v36 = vsub.f32 0.0, %v6782_v38 }
  0xaa   :  { %v187_v50 = vpop.f32.mrf.mxu0  ;;  %v636_v52 = vmul.f32 %v5693_v42, %v6758_v4  ;;  %v573_v24 = vmul.f32 %v5678_v43, %v6777_v32  ;;  %v334_v53 = vadd.f32 %v6110_v19, %v333_v44  ;;  %v357_v43 = vor.u32 1.1754944e-38, %v356_v16 }
  0xab   :  { %v6794_v54 = vpop.eup %6111  ;;  %v6796_v55 = vadd.f32 1.0, %v272_v49  ;;  %v6799_v56 = vadd.f32 %v6681_v20, %v187_v50 }
  0xac   :  { %v346_v57 = vmul.f32 %v6794_v54, %v6766_v22  ;;  %v652_v58 = vadd.f32 0.2548296, %v636_v52  ;;  %v589_v59 = vadd.f32 1.4214138, %v573_v24  ;;  %v338_v60 = vsel %vm337_vm12, %v6110_v19, %v334_v53  ;;  %v6114_v6 = vpop.eup %6113 }
  0xad   :  { %6115 = vrcp.f32 %v6796_v55  ;;  %v6806_v61 = vmul.f32 0.70710677, %v6799_v56  ;;  %v6808_v62 = vsel %vm340_vm13, %v342_v51, %v338_v60  ;;  %vm351_vm15 = vweird.f32 %v6794_v54 }
  0xae   :  { %v347_v0 = vsub.f32 1.0, %v346_v57  ;;  %v668_v1 = vmul.f32 %v652_v58, %v6758_v4  ;;  %v605_v2 = vmul.f32 %v589_v59, %v6777_v32  ;;  %v542_v5 = vmul.f32 1.0614054, %v6808_v62  ;;  %vm6840_vm1 = vmor %vm350_vm0, %vm351_vm15 }
  0xaf   :  { %6117 = vpow2.f32 %v718_v46  ;;  %v6814_v8 = vand.u32 2147483647, %v6806_v61  ;;  %v687_v4 = vsub.f32 0.0, %v6762_v9  ;;  %vm365_vm5 = vweird.f32 %v6796_v55 }
  0xb0   :  { %v748_v11 = vmul.f32 %v6114_v6, %v668_v1  ;;  %v5694_v12 = vadd.f32 -0.28449672, %v605_v2  ;;  %v5679_v13 = vadd.f32 -1.4531521, %v542_v5  ;;  %v348_v14 = vmul.f32 %v6794_v54, %v347_v0 }
  0xb1   :  { %v273_v15 = vmul.f32 0.3275911, %v6814_v8  ;;  %v703_v58 = vmul.f32 %v687_v4, %v6762_v9  ;;  %vm783_vm13 = vcmp.ge.f32.partialorder %v6756_v3, 0.0  ;;  %vm784_vm15 = vcmp.ge.f32.partialorder %v6775_v31, 0.0 }
  0xb2   :  { %v190_v17 = vpop.f32.mrf.mxu0  ;;  %v764_v18 = vsub.f32 1.0, %v748_v11  ;;  %v637_v19 = vmul.f32 %v5694_v12, %v6777_v32  ;;  %v574_v34 = vmul.f32 %v5679_v13, %v6808_v62  ;;  %v349_v21 = vadd.f32 %v6794_v54, %v348_v14 }
  0xb3   :  { %v6827_v25 = vpop.eup %6115  ;;  %v6829_v27 = vadd.f32 1.0, %v273_v15  ;;  %v6832_v28 = vadd.f32 %v6681_v20, %v190_v17  ;;  %v369_v14 = vand.u32 2147483647, %v6796_v55 }
  0xb4   :  { %v361_v30 = vmul.f32 %v6827_v25, %v6796_v55  ;;  %v796_v33 = vsub.f32 0.0, %v764_v18  ;;  %v653_v35 = vadd.f32 0.2548296, %v637_v19  ;;  %v590_v37 = vadd.f32 1.4214138, %v574_v34 }
  0xb5   :  { %v6118_v41 = vpop.eup %6117  ;;  %6119 = vrcp.f32 %v6829_v27  ;;  %v6846_v42 = vmul.f32 0.70710677, %v6832_v28  ;;  %v353_v22 = vsel %vm6840_vm1, %v6794_v54, %v349_v21  ;;  %vm366_vm4 = vweird.f32 %v6827_v25 }
  0xb6   :  { %v362_v44 = vsub.f32 1.0, %v361_v30  ;;  %v812_v46 = vsel %vm780_vm14, %v764_v18, %v796_v33  ;;  %v669_v47 = vmul.f32 %v653_v35, %v6777_v32  ;;  %v606_v49 = vmul.f32 %v590_v37, %v6808_v62  ;;  %vm6888_vm6 = vmor %vm365_vm5, %vm366_vm4 }
  0xb7   :  { %v6857_v50 = vand.u32 2147483647, %v6846_v42  ;;  %v828_v52 = vadd.f32 1.0, %v812_v46  ;;  %v6859_v51 = vsel %vm355_vm3, %v357_v43, %v353_v22  ;;  %6121 = vpow2.f32 %v720_v7 }
  0xb8   :  { %v749_v24 = vmul.f32 %v6118_v41, %v669_v47  ;;  %v5695_v53 = vadd.f32 -0.28449672, %v606_v49  ;;  %v363_v54 = vmul.f32 %v6827_v25, %v362_v44  ;;  %v543_v57 = vmul.f32 1.0614054, %v6859_v51 }
  0xb9   :  { %v274_v26 = vmul.f32 0.3275911, %v6857_v50  ;;  %v844_v32 = vmul.f32 %v828_v52, %v6785_v39  ;;  %v371_v18 = vand.u32 2147483648, %v6796_v55  ;;  %v722_v34 = vmul.f32 1.442695, %v703_v58 }
  0xba   :  { %v193_v59 = vpop.f32.mrf.mxu0  ;;  %v765_v60 = vsub.f32 1.0, %v749_v24  ;;  %v638_v0 = vmul.f32 %v5695_v53, %v6808_v62  ;;  %v364_v1 = vadd.f32 %v6827_v25, %v363_v54  ;;  %v5680_v7 = vadd.f32 -1.4531521, %v543_v57 }
  0xbb   :  { %v6868_v2 = vpop.eup %6119  ;;  %v6870_v5 = vadd.f32 1.0, %v274_v26  ;;  %v6873_v6 = vadd.f32 %v6681_v20, %v193_v59  ;;  %896 = vmatmul.f32.vlgmr.msra.gmra.mxu1 %v844_v32  ;;  %v372_v35 = vor.u32 1.1754944e-38, %v371_v18  ;;  %v222_v55 = vmul.f32 0.5, %v6728_v45 }
  0xbc   :  { %v376_v9 = vmul.f32 %v6868_v2, %v6829_v27  ;;  %v797_v39 = vsub.f32 0.0, %v765_v60  ;;  %v654_v11 = vadd.f32 0.2548296, %v638_v0  ;;  %v575_v13 = vmul.f32 %v5680_v7, %v6859_v51 }
  0xbd   :  { %6123 = vrcp.f32 %v6870_v5  ;;  %v6881_v12 = vmul.f32 0.70710677, %v6873_v6  ;;  %v6122_v19 = vpop.eup %6121  ;;  %v368_v30 = vsel %vm6888_vm6, %v6827_v25, %v364_v1  ;;  %vm370_vm7 = vcmp.eq.f32.partialorder %v369_v14, 8.507059e+37 }
  0xbe   :  { %v377_v4 = vsub.f32 1.0, %v376_v9  ;;  %v813_v15 = vsel %vm781_vm2, %v765_v60, %v797_v39  ;;  %v670_v16 = vmul.f32 %v654_v11, %v6808_v62  ;;  %v591_v62 = vadd.f32 1.4214138, %v575_v13 }
  0xbf   :  { %v6894_v21 = vand.u32 2147483647, %v6881_v12  ;;  %v829_v29 = vadd.f32 1.0, %v813_v15  ;;  %v6904_v44 = vsel %vm370_vm7, %v372_v35, %v368_v30  ;;  %6125 = vpow2.f32 %v722_v34 }
  0xc0   :  { %v750_v33 = vmul.f32 %v6122_v19, %v670_v16  ;;  %v607_v43 = vmul.f32 %v591_v62, %v6859_v51  ;;  %v378_v25 = vmul.f32 %v6868_v2, %v377_v4  ;;  %v544_v45 = vmul.f32 1.0614054, %v6904_v44 }
  0xc1   :  { %v275_v37 = vmul.f32 0.3275911, %v6894_v21  ;;  %v845_v40 = vmul.f32 %v829_v29, %v6817_v10  ;;  %v704_v10 = vmul.f32 %v688_v36, %v6782_v38  ;;  %v689_v53 = vsub.f32 0.0, %v6814_v8 }
  0xc2   :  { %v196_v41 = vpop.f32.mrf.mxu0  ;;  %v766_v22 = vsub.f32 1.0, %v750_v33  ;;  %v5696_v24 = vadd.f32 -0.28449672, %v607_v43  ;;  %v5681_v26 = vadd.f32 -1.4531521, %v544_v45  ;;  %v379_v58 = vadd.f32 %v6868_v2, %v378_v25 }
  0xc3   :  { %v6907_v46 = vpop.eup %6123  ;;  %v6911_v47 = vadd.f32 %v6681_v20, %v196_v41  ;;  %899 = vmatmul.f32.gmra.mxu1 %v845_v40  ;;  %v6915_v49 = vadd.f32 1.0, %v275_v37  ;;  %vm381_vm9 = vweird.f32 %v6868_v2  ;;  %v690_v38 = vsub.f32 0.0, %v6857_v50 }
  0xc4   :  { %v798_v52 = vsub.f32 0.0, %v766_v22  ;;  %v391_v54 = vmul.f32 %v6907_v46, %v6870_v5  ;;  %v639_v57 = vmul.f32 %v5696_v24, %v6859_v51  ;;  %vm380_vm10 = vweird.f32 %v6829_v27 }
  0xc5   :  { %v6921_v48 = vmul.f32 0.70710677, %v6911_v47  ;;  %6127 = vrcp.f32 %v6915_v49  ;;  %v576_v1 = vmul.f32 %v5681_v26, %v6904_v44  ;;  %v384_v7 = vand.u32 2147483647, %v6829_v27  ;;  %v6126_v9 = vpop.eup %6125  ;;  %vm6935_vm11 = vmor %vm380_vm10, %vm381_vm9 }
  0xc6   :  { %v814_v32 = vsel %vm782_vm8, %v766_v22, %v798_v52  ;;  %v655_v0 = vadd.f32 0.2548296, %v639_v57  ;;  %v392_v39 = vsub.f32 1.0, %v391_v54  ;;  %v386_v4 = vand.u32 2147483648, %v6829_v27 }
  0xc7   :  { %v6928_v59 = vand.u32 2147483647, %v6921_v48  ;;  %v830_v60 = vadd.f32 1.0, %v814_v32  ;;  %v592_v17 = vadd.f32 1.4214138, %v576_v1  ;;  %v383_v18 = vsel %vm6935_vm11, %v6868_v2, %v379_v58 }
  0xc8   :  { %v671_v16 = vmul.f32 %v655_v0, %v6859_v51  ;;  %v724_v19 = vmul.f32 1.442695, %v704_v10  ;;  %v705_v34 = vmul.f32 %v689_v53, %v6814_v8  ;;  %v387_v30 = vor.u32 1.1754944e-38, %v386_v4 }
  0xc9   :  { %v276_v11 = vmul.f32 0.3275911, %v6928_v59  ;;  %v846_v13 = vmul.f32 %v830_v60, %v222_v55  ;;  %v706_v36 = vmul.f32 %v690_v38, %v6857_v50  ;;  %v608_v27 = vmul.f32 %v592_v17, %v6904_v44 }
  0xca   :  { %v199_v15 = vpop.f32.mrf.mxu0  ;;  %v751_v33 = vmul.f32 %v6126_v9, %v671_v16  ;;  %vm385_vm12 = vcmp.eq.f32.partialorder %v384_v7, 8.507059e+37  ;;  %v393_v8 = vmul.f32 %v6907_v46, %v392_v39  ;;  %6129 = vpow2.f32 %v724_v19 }
  0xcb   :  { %v6946_v29 = vadd.f32 %v6681_v20, %v199_v15  ;;  %902 = vmatmul.f32.gmra.mxu1 %v846_v13  ;;  %v6950_v51 = vadd.f32 1.0, %v276_v11  ;;  %v6955_v2 = vsel %vm385_vm12, %v387_v30, %v383_v18  ;;  %v6958_v35 = vpop.eup %6127  ;;  %v5697_v40 = vadd.f32 -0.28449672, %v608_v27 }
  0xcc   :  { %v767_v37 = vsub.f32 1.0, %v751_v33  ;;  %v545_v55 = vmul.f32 1.0614054, %v6955_v2  ;;  %v726_v50 = vmul.f32 1.442695, %v705_v34  ;;  %v223_v41 = vmul.f32 0.5, %v6752_v63 }
  0xcd   :  { %v6953_v62 = vmul.f32 0.70710677, %v6946_v29  ;;  %v728_v22 = vmul.f32 1.442695, %v706_v36  ;;  %v640_v25 = vmul.f32 %v5697_v40, %v6904_v44  ;;  %v406_v10 = vmul.f32 %v6958_v35, %v6915_v49 }
  0xce   :  { %v799_v43 = vsub.f32 0.0, %v767_v37  ;;  %v5682_v45 = vadd.f32 -1.4531521, %v545_v55  ;;  %6131 = vrcp.f32 %v6950_v51  ;;  %v394_v24 = vadd.f32 %v6907_v46, %v393_v8 }
  0xcf   :  { %v6968_v52 = vand.u32 2147483647, %v6953_v62  ;;  %v656_v54 = vadd.f32 0.2548296, %v640_v25  ;;  %vm396_vm14 = vweird.f32 %v6907_v46  ;;  %v691_v26 = vsub.f32 0.0, %v6894_v21 }
  0xd0   :  { %v815_v53 = vsel %vm783_vm13, %v767_v37, %v799_v43  ;;  %v577_v63 = vmul.f32 %v5682_v45, %v6955_v2  ;;  %v401_v58 = vand.u32 2147483648, %v6870_v5  ;;  %vm395_vm0 = vweird.f32 %v6870_v5  ;;  %v6130_v1 = vpop.eup %6129 }
  0xd1   :  { %v831_v57 = vadd.f32 1.0, %v815_v53  ;;  %v672_v38 = vmul.f32 %v656_v54, %v6904_v44  ;;  %v399_v0 = vand.u32 2147483647, %v6870_v5  ;;  %v407_v7 = vsub.f32 1.0, %v406_v10  ;;  %vm6988_vm1 = vmor %vm395_vm0, %vm396_vm14 }
  0xd2   :  { %v202_v3 = vpop.f32.mrf.mxu0  ;;  %v593_v60 = vadd.f32 1.4214138, %v577_v63  ;;  %v277_v9 = vmul.f32 0.3275911, %v6968_v52  ;;  %v224_v44 = vmul.f32 0.5, %v6769_v23  ;;  %v398_v5 = vsel %vm6988_vm1, %v6907_v46, %v394_v24 }
  0xd3   :  { %v6976_v32 = vadd.f32 %v6681_v20, %v202_v3  ;;  %v847_v11 = vmul.f32 %v831_v57, %v223_v41  ;;  %v752_v14 = vmul.f32 %v6130_v1, %v672_v38  ;;  %6133 = vpow2.f32 %v726_v50 }
  0xd4   :  { %v609_v4 = vmul.f32 %v593_v60, %v6955_v2  ;;  %v6997_v15 = vpop.eup %6131  ;;  %v692_v16 = vsub.f32 0.0, %v6928_v59  ;;  %v402_v18 = vor.u32 1.1754944e-38, %v401_v58  ;;  %v707_v19 = vmul.f32 %v691_v26, %v6894_v21 }
  0xd5   :  { %v6984_v39 = vmul.f32 0.70710677, %v6976_v32  ;;  %905 = vmatmul.f32.gmra.mxu1 %v847_v11  ;;  %v768_v23 = vsub.f32 1.0, %v752_v14  ;;  %vm400_vm2 = vcmp.eq.f32.partialorder %v399_v0, 8.507059e+37  ;;  %6135 = vpow2.f32 %v728_v22 }
  0xd6   :  { %v5698_v34 = vadd.f32 -0.28449672, %v609_v4  ;;  %v7004_v30 = vadd.f32 1.0, %v277_v9  ;;  %v7006_v36 = vsel %vm400_vm2, %v402_v18, %v398_v5  ;;  %v408_v46 = vmul.f32 %v6958_v35, %v407_v7 }
  0xd7   :  { %v7001_v17 = vand.u32 2147483647, %v6984_v39  ;;  %v421_v33 = vmul.f32 %v6997_v15, %v6950_v51  ;;  %v800_v8 = vsub.f32 0.0, %v768_v23  ;;  %v546_v40 = vmul.f32 1.0614054, %v7006_v36 }
  0xd8   :  { %v641_v37 = vmul.f32 %v5698_v34, %v6955_v2  ;;  %v708_v21 = vmul.f32 %v692_v16, %v6928_v59  ;;  %v7019_v41 = vmul.f32 0.5, %v6799_v56  ;;  %v730_v22 = vmul.f32 1.442695, %v707_v19 }
  0xd9   :  { %v278_v55 = vmul.f32 0.3275911, %v7001_v17  ;;  %v816_v43 = vsel %vm784_vm15, %v768_v23, %v800_v8  ;;  %v5683_v45 = vadd.f32 -1.4531521, %v546_v40  ;;  %v6134_v10 = vpop.eup %6133  ;;  %vm785_vm3 = vcmp.ge.f32.partialorder %v6806_v61, 0.0 }
  0xda   :  { %v205_v27 = vpop.f32.mrf.mxu0  ;;  %v657_v25 = vadd.f32 0.2548296, %v641_v37  ;;  %v832_v59 = vadd.f32 1.0, %v816_v43  ;;  %v409_v3 = vadd.f32 %v6958_v35, %v408_v46  ;;  %vm411_vm4 = vweird.f32 %v6958_v35 }
  0xdb   :  { %v7016_v50 = vadd.f32 %v6681_v20, %v205_v27  ;;  %v422_v53 = vsub.f32 1.0, %v421_v33  ;;  %6137 = vrcp.f32 %v7004_v30  ;;  %v578_v31 = vmul.f32 %v5683_v45, %v7006_v36  ;;  %v7032_v54 = vpop.eup %6135 }
  0xdc   :  { %v673_v56 = vmul.f32 %v657_v25, %v6955_v2  ;;  %v732_v63 = vmul.f32 1.442695, %v708_v21  ;;  %v7034_v26 = vadd.f32 1.0, %v278_v55  ;;  %v848_v57 = vmul.f32 %v832_v59, %v224_v44 }
  0xdd   :  { %v7025_v24 = vmul.f32 0.70710677, %v7016_v50  ;;  %vm410_vm5 = vweird.f32 %v6915_v49  ;;  %v594_v38 = vadd.f32 1.4214138, %v578_v31  ;;  %v414_v0 = vand.u32 2147483647, %v6915_v49 }
  0xde   :  { %v753_v58 = vmul.f32 %v6134_v10, %v673_v56  ;;  %vm7037_vm6 = vmor %vm410_vm5, %vm411_vm4  ;;  %v416_v2 = vand.u32 2147483648, %v6915_v49  ;;  %v693_v1 = vsub.f32 0.0, %v6968_v52  ;;  %v694_v7 = vsub.f32 0.0, %v7001_v17  ;;  %908 = vmatmul.f32.gmra.mxu1 %v848_v57 }
  0xdf   :  { %v263_v9 = vand.u32 2147483647, %v7025_v24  ;;  %v413_v11 = vsel %vm7037_vm6, %v6958_v35, %v409_v3  ;;  %v610_v14 = vmul.f32 %v594_v38, %v7006_v36  ;;  %v423_v5 = vmul.f32 %v6997_v15, %v422_v53 }
  0xe0   :  { %v769_v44 = vsub.f32 1.0, %v753_v58  ;;  %v417_v4 = vor.u32 1.1754944e-38, %v416_v2  ;;  %6139 = vpow2.f32 %v730_v22  ;;  %v7055_v16 = vmul.f32 0.5, %v6832_v28 }
  0xe1   :  { %vm415_vm7 = vcmp.eq.f32.partialorder %v414_v0, 8.507059e+37  ;;  %v7057_v18 = vpop.eup %6137  ;;  %6141 = vrcp.f32 %v7034_v26  ;;  %v5699_v19 = vadd.f32 -0.28449672, %v610_v14  ;;  %v709_v34 = vmul.f32 %v693_v1, %v6968_v52 }
  0xe2   :  { %v208_v13 = vpop.f32.mrf.mxu0  ;;  %v801_v35 = vsub.f32 0.0, %v769_v44  ;;  %v7060_v23 = vsel %vm415_vm7, %v417_v4, %v413_v11  ;;  %6143 = vpow2.f32 %v732_v63  ;;  %v710_v46 = vmul.f32 %v694_v7, %v7001_v17 }
  0xe3   :  { %v7052_v49 = vadd.f32 %v6681_v20, %v208_v13  ;;  %v547_v33 = vmul.f32 1.0614054, %v7060_v23  ;;  %v279_v27 = vmul.f32 0.3275911, %v263_v9  ;;  %v642_v8 = vmul.f32 %v5699_v19, %v7006_v36 }
  0xe4   :  { %v817_v28 = vsel %vm785_vm3, %v769_v44, %v801_v35  ;;  %v424_v37 = vadd.f32 %v6997_v15, %v423_v5  ;;  %v436_v40 = vmul.f32 %v7057_v18, %v7004_v30  ;;  %vm425_vm8 = vweird.f32 %v6950_v51 }
  0xe5   :  { %v7072_v21 = vmul.f32 0.70710677, %v7052_v49  ;;  %v833_v55 = vadd.f32 1.0, %v817_v28  ;;  %v658_v52 = vadd.f32 0.2548296, %v642_v8  ;;  %vm426_vm9 = vweird.f32 %v6997_v15 }
  0xe6   :  { %v5684_v17 = vadd.f32 -1.4531521, %v547_v33  ;;  %v429_v61 = vand.u32 2147483647, %v6950_v51  ;;  %v7077_v22 = vpop.eup %6139  ;;  %vm786_vm10 = vcmp.ge.f32.partialorder %v6846_v42, 0.0  ;;  %v695_v25 = vsub.f32 0.0, %v263_v9  ;;  %vm7081_vm11 = vmor %vm425_vm8, %vm426_vm9 }
  0xe7   :  { %v734_v43 = vmul.f32 1.442695, %v709_v34  ;;  %v849_v45 = vmul.f32 %v833_v55, %v7019_v41  ;;  %v431_v59 = vand.u32 2147483648, %v6950_v51  ;;  %v7086_v3 = vpop.eup %6141  ;;  %v7088_v53 = vadd.f32 1.0, %v279_v27 }
  0xe8   :  { %v674_v31 = vmul.f32 %v658_v52, %v7006_v36  ;;  %v579_v63 = vmul.f32 %v5684_v17, %v7060_v23  ;;  %v428_v57 = vsel %vm7081_vm11, %v6997_v15, %v424_v37  ;;  %v7095_v41 = vpop.eup %6143  ;;  %v736_v58 = vmul.f32 1.442695, %v710_v46 }
  0xe9   :  { %v264_v38 = vand.u32 2147483647, %v7072_v21  ;;  %911 = vmatmul.f32.gmra.mxu1 %v849_v45  ;;  %v432_v60 = vor.u32 1.1754944e-38, %v431_v59  ;;  %v437_v0 = vsub.f32 1.0, %v436_v40  ;;  %vm430_vm12 = vcmp.eq.f32.partialorder %v429_v61, 8.507059e+37 }
  0xea   :  { %v211_v56 = vpop.f32.mrf.mxu0  ;;  %v754_v2 = vmul.f32 %v7032_v54, %v674_v31  ;;  %v595_v36 = vadd.f32 1.4214138, %v579_v63  ;;  %v451_v1 = vmul.f32 %v7086_v3, %v7034_v26  ;;  %v711_v7 = vmul.f32 %v695_v25, %v263_v9 }
  0xeb   :  { %v7099_v51 = vadd.f32 %v6681_v20, %v211_v56  ;;  %v7107_v11 = vsel %vm430_vm12, %v432_v60, %v428_v57  ;;  %6145 = vrcp.f32 %v7088_v53  ;;  %v280_v54 = vmul.f32 0.3275911, %v264_v38 }
  0xec   :  { %v770_v13 = vsub.f32 1.0, %v754_v2  ;;  %v611_v44 = vmul.f32 %v595_v36, %v7060_v23  ;;  %v548_v14 = vmul.f32 1.0614054, %v7107_v11  ;;  %6147 = vpow2.f32 %v734_v43 }
  0xed   :  { %v7105_v15 = vmul.f32 0.70710677, %v7099_v51  ;;  %v7116_v5 = vmul.f32 0.5, %v6873_v6  ;;  %v438_v34 = vmul.f32 %v7057_v18, %v437_v0  ;;  %v452_v46 = vsub.f32 1.0, %v451_v1 }
  0xee   :  { %v802_v9 = vsub.f32 0.0, %v770_v13  ;;  %v5700_v35 = vadd.f32 -0.28449672, %v611_v44  ;;  %v5685_v19 = vadd.f32 -1.4531521, %v548_v14  ;;  %6149 = vpow2.f32 %v736_v58 }
  0xef   :  { %v7113_v4 = vand.u32 2147483647, %v7105_v15  ;;  %v738_v33 = vmul.f32 1.442695, %v711_v7  ;;  %v7120_v27 = vmul.f32 0.5, %v6911_v47  ;;  %v7127_v55 = vadd.f32 1.0, %v280_v54 }
  0xf0   :  { %v818_v8 = vsel %vm786_vm10, %v770_v13, %v802_v9  ;;  %v643_v6 = vmul.f32 %v5700_v35, %v7060_v23  ;;  %v580_v40 = vmul.f32 %v5685_v19, %v7107_v11  ;;  %v696_v52 = vsub.f32 0.0, %v264_v38 }
  0xf1   :  { %v281_v28 = vmul.f32 0.3275911, %v7113_v4  ;;  %v834_v17 = vadd.f32 1.0, %v818_v8  ;;  %v7132_v43 = vpop.eup %6145  ;;  %v439_v45 = vadd.f32 %v7057_v18, %v438_v34  ;;  %vm441_vm13 = vweird.f32 %v7057_v18 }
  0xf2   :  { %v214_v37 = vpop.f32.mrf.mxu0  ;;  %v659_v47 = vadd.f32 0.2548296, %v643_v6  ;;  %v596_v25 = vadd.f32 1.4214138, %v580_v40  ;;  %v7136_v42 = vpop.eup %6147  ;;  %vm787_vm14 = vcmp.ge.f32.partialorder %v6881_v12, 0.0  ;;  %6151 = vpow2.f32 %v738_v33 }
  0xf3   :  { %v7130_v61 = vadd.f32 %v6681_v20, %v214_v37  ;;  %v850_v10 = vmul.f32 %v834_v17, %v7055_v16  ;;  %vm440_vm15 = vweird.f32 %v7004_v30  ;;  %v7144_v56 = vadd.f32 1.0, %v281_v28 }
  0xf4   :  { %v675_v31 = vmul.f32 %v659_v47, %v7060_v23  ;;  %v612_v63 = vmul.f32 %v596_v25, %v7107_v11  ;;  %v444_v57 = vand.u32 2147483647, %v7004_v30  ;;  %v7149_v58 = vpop.eup %6149  ;;  %v466_v60 = vmul.f32 %v7132_v43, %v7088_v53  ;;  %vm7158_vm0 = vmor %vm440_vm15, %vm441_vm13 }
  0xf5   :  { %v7141_v59 = vmul.f32 0.70710677, %v7130_v61  ;;  %v712_v0 = vmul.f32 %v696_v52, %v264_v38  ;;  %914 = vmatmul.f32.gmra.mxu1 %v850_v10  ;;  %v446_v23 = vand.u32 2147483648, %v7004_v30  ;;  %6153 = vrcp.f32 %v7127_v55 }
  0xf6   :  { %v755_v36 = vmul.f32 %v7077_v22, %v675_v31  ;;  %v5701_v1 = vadd.f32 -0.28449672, %v612_v63  ;;  %v443_v38 = vsel %vm7158_vm0, %v7057_v18, %v439_v45  ;;  %v697_v7 = vsub.f32 0.0, %v7113_v4 }
  0xf7   :  { %v7154_v16 = vand.u32 2147483647, %v7141_v59  ;;  %v447_v44 = vor.u32 1.1754944e-38, %v446_v23  ;;  %v453_v14 = vmul.f32 %v7086_v3, %v452_v46  ;;  %6155 = vrcp.f32 %v7144_v56 }
  0xf8   :  { %v771_v54 = vsub.f32 1.0, %v755_v36  ;;  %v644_v9 = vmul.f32 %v5701_v1, %v7107_v11  ;;  %vm445_vm1 = vcmp.eq.f32.partialorder %v444_v57, 8.507059e+37  ;;  %v7173_v22 = vpop.eup %6151  ;;  %v740_v35 = vmul.f32 1.442695, %v712_v0 }
  0xf9   :  { %v282_v13 = vmul.f32 0.3275911, %v7154_v16  ;;  %v7180_v34 = vsel %vm445_vm1, %v447_v44, %v443_v38  ;;  %v7183_v46 = vmul.f32 0.5, %v6946_v29  ;;  %vm788_vm2 = vcmp.ge.f32.partialorder %v6921_v48, 0.0 }
  0xfa   :  { %v217_v30 = vpop.f32.mrf.mxu0  ;;  %v803_v33 = vsub.f32 0.0, %v771_v54  ;;  %v660_v28 = vadd.f32 0.2548296, %v644_v9  ;;  %v549_v8 = vmul.f32 1.0614054, %v7180_v34  ;;  %v467_v37 = vsub.f32 1.0, %v466_v60 }
  0xfb   :  { %v7175_v19 = vadd.f32 1.0, %v282_v13  ;;  %v7178_v18 = vadd.f32 %v6681_v20, %v217_v30  ;;  %v454_v40 = vadd.f32 %v7086_v3, %v453_v14  ;;  %vm456_vm3 = vweird.f32 %v7086_v3  ;;  %v7192_v20 = vpop.eup %6153 }
  0xfc   :  { %v713_v52 = vmul.f32 %v697_v7, %v7113_v4  ;;  %v819_v29 = vsel %vm787_vm14, %v771_v54, %v803_v33  ;;  %v676_v17 = vmul.f32 %v660_v28, %v7107_v11  ;;  %v5686_v47 = vadd.f32 -1.4531521, %v549_v8 }
  0xfd   :  { %v7188_v6 = vmul.f32 0.70710677, %v7178_v18  ;;  %6157 = vrcp.f32 %v7175_v19  ;;  %v835_v25 = vadd.f32 1.0, %v819_v29  ;;  %vm455_vm4 = vweird.f32 %v7034_v26  ;;  %v7203_v10 = vpop.eup %6155 }
  0xfe   :  { %v756_v31 = vmul.f32 %v7095_v41, %v676_v17  ;;  %v581_v4 = vmul.f32 %v5686_v47, %v7180_v34  ;;  %vm7207_vm5 = vmor %vm455_vm4, %vm456_vm3  ;;  %v459_v11 = vand.u32 2147483647, %v7034_v26  ;;  %v461_v63 = vand.u32 2147483648, %v7034_v26 }
  0xff   :  { %v7200_v45 = vand.u32 2147483647, %v7188_v6  ;;  %v481_v57 = vmul.f32 %v7192_v20, %v7127_v55  ;;  %v851_v60 = vmul.f32 %v835_v25, %v7116_v5  ;;  %v458_v41 = vsel %vm7207_vm5, %v7086_v3, %v454_v40 }
 0x100   :  { %6159 = vpow2.f32 %v740_v35  ;;  %v772_v2 = vsub.f32 1.0, %v756_v31  ;;  %v597_v23 = vadd.f32 1.4214138, %v581_v4  ;;  %v462_v36 = vor.u32 1.1754944e-38, %v461_v63 }
 0x101   :  { %v283_v0 = vmul.f32 0.3275911, %v7200_v45  ;;  %v496_v1 = vmul.f32 %v7203_v10, %v7144_v56  ;;  %917 = vmatmul.f32.gmra.mxu1 %v851_v60  ;;  %vm460_vm6 = vcmp.eq.f32.partialorder %v459_v11, 8.507059e+37  ;;  %v468_v38 = vmul.f32 %v7132_v43, %v467_v37 }
 0x102   :  { %v7225_v5 = vmul.f32 1.442695, %v713_v52  ;;  %v804_v7 = vsub.f32 0.0, %v772_v2  ;;  %v613_v13 = vmul.f32 %v597_v23, %v7180_v34  ;;  %v7228_v44 = vsel %vm460_vm6, %v462_v36, %v458_v41 }
 0x103   :  { %v7222_v26 = vadd.f32 1.0, %v283_v0  ;;  %v7230_v3 = vpop.eup %6157  ;;  %v482_v14 = vsub.f32 1.0, %v481_v57  ;;  %v550_v54 = vmul.f32 1.0614054, %v7228_v44  ;;  %v469_v30 = vadd.f32 %v7132_v43, %v468_v38 }
 0x104   :  { %v820_v9 = vsel %vm788_vm2, %v772_v2, %v804_v7  ;;  %v5702_v35 = vadd.f32 -0.28449672, %v613_v13  ;;  %vm470_vm7 = vweird.f32 %v7088_v53  ;;  %vm471_vm8 = vweird.f32 %v7132_v43 }
 0x105   :  { %6161 = vrcp.f32 %v7222_v26  ;;  %v497_v33 = vsub.f32 1.0, %v496_v1  ;;  %v836_v28 = vadd.f32 1.0, %v820_v9  ;;  %v5687_v8 = vadd.f32 -1.4531521, %v550_v54  ;;  %vm7239_vm9 = vmor %vm470_vm7, %vm471_vm8 }
 0x106   :  { %v474_v40 = vand.u32 2147483647, %v7088_v53  ;;  %v7244_v52 = vpop.eup %6159  ;;  %v511_v48 = vmul.f32 %v7230_v3, %v7175_v19  ;;  %v645_v29 = vmul.f32 %v5702_v35, %v7180_v34  ;;  %v473_v17 = vsel %vm7239_vm9, %v7132_v43, %v469_v30 }
 0x107   :  { %v476_v47 = vand.u32 2147483648, %v7088_v53  ;;  %v852_v25 = vmul.f32 %v836_v28, %v7120_v27  ;;  %v582_v31 = vmul.f32 %v5687_v8, %v7228_v44  ;;  %v483_v12 = vmul.f32 %v7192_v20, %v482_v14 }
 0x108   :  { %vm7255_vm10 = vcmp.eq.f32.partialorder %v474_v40, 8.507059e+37  ;;  %v661_v11 = vadd.f32 0.2548296, %v645_v29  ;;  %vm485_vm11 = vweird.f32 %v7127_v55  ;;  %vm486_vm12 = vweird.f32 %v7192_v20 }
 0x109   :  { %v477_v63 = vor.u32 1.1754944e-38, %v476_v47  ;;  %vm789_vm13 = vcmp.ge.f32.partialorder %v6953_v62, 0.0  ;;  %920 = vmatmul.f32.gmra.mxu1 %v852_v25  ;;  %v598_v53 = vadd.f32 1.4214138, %v582_v31  ;;  %v484_v27 = vadd.f32 %v7192_v20, %v483_v12  ;;  %vm487_vm14 = vmor %vm485_vm11, %vm486_vm12 }
 0x10a   :  { %v489_v43 = vand.u32 2147483647, %v7127_v55  ;;  %v491_v60 = vand.u32 2147483648, %v7127_v55  ;;  %v512_v0 = vsub.f32 1.0, %v511_v48  ;;  %v677_v41 = vmul.f32 %v661_v11, %v7180_v34 }
 0x10b   :  { %v7262_v57 = vpop.eup %6161  ;;  %v7270_v2 = vmul.f32 0.5, %v6976_v32  ;;  %v7274_v23 = vsel %vm7255_vm10, %v477_v63, %v473_v17  ;;  %v614_v1 = vmul.f32 %v598_v53, %v7228_v44  ;;  %v488_v55 = vsel %vm487_vm14, %v7192_v20, %v484_v27 }
 0x10c   :  { %v526_v36 = vmul.f32 %v7262_v57, %v7222_v26  ;;  %v551_v38 = vmul.f32 1.0614054, %v7274_v23  ;;  %v757_v7 = vmul.f32 %v7136_v42, %v677_v41  ;;  %vm490_vm15 = vcmp.eq.f32.partialorder %v489_v43, 8.507059e+37 }
 0x10d   :  { %v492_v34 = vor.u32 1.1754944e-38, %v491_v60  ;;  %v498_v32 = vmul.f32 %v7203_v10, %v497_v33  ;;  %v5703_v13 = vadd.f32 -0.28449672, %v614_v1  ;;  %vm500_vm0 = vweird.f32 %v7144_v56 }
 0x10e   :  { %v5688_v14 = vadd.f32 -1.4531521, %v551_v38  ;;  %vm501_vm1 = vweird.f32 %v7203_v10  ;;  %v773_v54 = vsub.f32 1.0, %v757_v7  ;;  %v504_v35 = vand.u32 2147483647, %v7144_v56 }
 0x10f   :  { %v7285_v30 = vsel %vm490_vm15, %v492_v34, %v488_v55  ;;  %v499_v9 = vadd.f32 %v7203_v10, %v498_v32  ;;  %v646_v20 = vmul.f32 %v5703_v13, %v7228_v44  ;;  %vm7292_vm2 = vmor %vm500_vm0, %vm501_vm1  ;;  %v506_v8 = vand.u32 2147483648, %v7144_v56 }
 0x110   :  { %v583_v42 = vmul.f32 %v5688_v14, %v7274_v23  ;;  %v552_v28 = vmul.f32 1.0614054, %v7285_v30  ;;  %v527_v37 = vsub.f32 1.0, %v526_v36  ;;  %v805_v40 = vsub.f32 0.0, %v773_v54 }
 0x111   :  { %v503_v48 = vsel %vm7292_vm2, %v7203_v10, %v499_v9  ;;  %vm505_vm3 = vcmp.eq.f32.partialorder %v504_v35, 8.507059e+37  ;;  %v662_v29 = vadd.f32 0.2548296, %v646_v20  ;;  %v513_v25 = vmul.f32 %v7230_v3, %v512_v0 }
 0x112   :  { %v599_v17 = vadd.f32 1.4214138, %v583_v42  ;;  %v5689_v47 = vadd.f32 -1.4531521, %v552_v28  ;;  %vm790_vm4 = vcmp.ge.f32.partialorder %v6984_v39, 0.0  ;;  %v821_v31 = vsel %vm789_vm13, %v773_v54, %v805_v40 }
 0x113   :  { %v507_v4 = vor.u32 1.1754944e-38, %v506_v8  ;;  %vm515_vm5 = vweird.f32 %v7175_v19  ;;  %vm516_vm6 = vweird.f32 %v7230_v3  ;;  %v837_v56 = vadd.f32 1.0, %v821_v31 }
 0x114   :  { %v678_v12 = vmul.f32 %v662_v29, %v7228_v44  ;;  %v615_v10 = vmul.f32 %v599_v17, %v7274_v23  ;;  %v584_v11 = vmul.f32 %v5689_v47, %v7285_v30  ;;  %v514_v53 = vadd.f32 %v7230_v3, %v513_v25  ;;  %vm517_vm7 = vmor %vm515_vm5, %vm516_vm6 }
 0x115   :  { %v7309_v63 = vsel %vm505_vm3, %v507_v4, %v503_v48  ;;  %v519_v27 = vand.u32 2147483647, %v7175_v19  ;;  %v521_v62 = vand.u32 2147483648, %v7175_v19  ;;  %v853_v43 = vmul.f32 %v837_v56, %v7183_v46 }
 0x116   :  { %v758_v60 = vmul.f32 %v7149_v58, %v678_v12  ;;  %v5704_v0 = vadd.f32 -0.28449672, %v615_v10  ;;  %v600_v41 = vadd.f32 1.4214138, %v584_v11  ;;  %v698_v44 = vsub.f32 0.0, %v7154_v16 }
 0x117   :  { %v553_v36 = vmul.f32 1.0614054, %v7309_v63  ;;  %v518_v1 = vsel %vm517_vm7, %v7230_v3, %v514_v53  ;;  %v522_v38 = vor.u32 1.1754944e-38, %v521_v62  ;;  %923 = vmatmul.f32.gmra.mxu1 %v853_v43  ;;  %vm520_vm8 = vcmp.eq.f32.partialorder %v519_v27, 8.507059e+37 }
 0x118   :  { %v774_v55 = vsub.f32 1.0, %v758_v60  ;;  %v647_v7 = vmul.f32 %v5704_v0, %v7274_v23  ;;  %v616_v19 = vmul.f32 %v600_v41, %v7285_v30  ;;  %v528_v58 = vmul.f32 %v7262_v57, %v527_v37 }
 0x119   :  { %v5690_v46 = vadd.f32 -1.4531521, %v553_v36  ;;  %v7321_v34 = vsel %vm520_vm8, %v522_v38, %v518_v1  ;;  %vm530_vm9 = vweird.f32 %v7222_v26  ;;  %vm531_vm10 = vweird.f32 %v7262_v57 }
 0x11a   :  { %v806_v32 = vsub.f32 0.0, %v774_v55  ;;  %v663_v13 = vadd.f32 0.2548296, %v647_v7  ;;  %v5705_v14 = vadd.f32 -0.28449672, %v616_v19  ;;  %v529_v9 = vadd.f32 %v7262_v57, %v528_v58  ;;  %vm7334_vm11 = vmor %vm530_vm9, %vm531_vm10 }
 0x11b   :  { %v585_v3 = vmul.f32 %v5690_v46, %v7309_v63  ;;  %v554_v54 = vmul.f32 1.0614054, %v7321_v34  ;;  %v534_v35 = vand.u32 2147483647, %v7222_v26  ;;  %v536_v8 = vand.u32 2147483648, %v7222_v26 }
 0x11c   :  { %v822_v20 = vsel %vm790_vm4, %v774_v55, %v806_v32  ;;  %v679_v42 = vmul.f32 %v663_v13, %v7274_v23  ;;  %v648_v28 = vmul.f32 %v5705_v14, %v7285_v30  ;;  %v533_v29 = vsel %vm7334_vm11, %v7262_v57, %v529_v9 }
 0x11d   :  { %v838_v37 = vadd.f32 1.0, %v822_v20  ;;  %v601_v40 = vadd.f32 1.4214138, %v585_v3  ;;  %v5691_v48 = vadd.f32 -1.4531521, %v554_v54  ;;  %v714_v39 = vmul.f32 %v698_v44, %v7154_v16 }
 0x11e   :  { %v759_v17 = vmul.f32 %v7173_v22, %v679_v42  ;;  %v664_v23 = vadd.f32 0.2548296, %v648_v28  ;;  %v537_v47 = vor.u32 1.1754944e-38, %v536_v8  ;;  %vm535_vm12 = vcmp.eq.f32.partialorder %v534_v35, 8.507059e+37 }
 0x11f   :  { %v854_v25 = vmul.f32 %v838_v37, %v7270_v2  ;;  %v617_v31 = vmul.f32 %v601_v40, %v7309_v63  ;;  %v586_v4 = vmul.f32 %v5691_v48, %v7321_v34  ;;  %v699_v26 = vsub.f32 0.0, %v7200_v45 }
 0x120   :  { %v775_v56 = vsub.f32 1.0, %v759_v17  ;;  %v680_v12 = vmul.f32 %v664_v23, %v7285_v30  ;;  %v538_v10 = vsel %vm535_vm12, %v537_v47, %v533_v29  ;;  %6163 = vpow2.f32 %v7225_v5 }
 0x121   :  { %926 = vmatmul.f32.gmra.mxu1 %v854_v25  ;;  %v5706_v57 = vadd.f32 -0.28449672, %v617_v31  ;;  %v602_v16 = vadd.f32 1.4214138, %v586_v4  ;;  %v555_v11 = vmul.f32 1.0614054, %v538_v10  ;;  %v715_v30 = vmul.f32 %v699_v26, %v7200_v45 }
 0x122   :  { %v744_v22 = vmul.f32 1.442695, %v714_v39  ;;  %v807_v53 = vsub.f32 0.0, %v775_v56  ;;  %v760_v2 = vmul.f32 %v7244_v52, %v680_v12  ;;  %vm791_vm13 = vcmp.ge.f32.partialorder %v7025_v24, 0.0 }
 0x123   :  { %v649_v27 = vmul.f32 %v5706_v57, %v7309_v63  ;;  %v618_v62 = vmul.f32 %v602_v16, %v7321_v34  ;;  %v5692_v43 = vadd.f32 -1.4531521, %v555_v11  ;;  %v231_v60 = vmul.f32 0.5, %v7016_v50 }
 0x124   :  { %v823_v0 = vsel %vm791_vm13, %v775_v56, %v807_v53  ;;  %v776_v41 = vsub.f32 1.0, %v760_v2  ;;  %vm792_vm14 = vcmp.ge.f32.partialorder %v7072_v21, 0.0  ;;  %6165 = vpow2.f32 %v744_v22 }
 0x125   :  { %v839_v44 = vadd.f32 1.0, %v823_v0  ;;  %v665_v36 = vadd.f32 0.2548296, %v649_v27  ;;  %v5707_v5 = vadd.f32 -0.28449672, %v618_v62  ;;  %v587_v1 = vmul.f32 %v5692_v43, %v538_v10  ;;  %v959_v0 = vld [vmem:[%s10838_s5 + $0x70] sm:$0xff] }
 0x126   :  { %v808_v52 = vsub.f32 0.0, %v776_v41  ;;  %v6164_v19 = vpop.eup %6163  ;;  %v746_v45 = vmul.f32 1.442695, %v715_v30  ;;  %v232_v14 = vmul.f32 0.5, %v7052_v49  ;;  %vm793_vm15 = vcmp.ge.f32.partialorder %v7105_v15, 0.0 }
 0x127   :  { %v855_v24 = vmul.f32 %v839_v44, %v231_v60  ;;  %v681_v38 = vmul.f32 %v665_v36, %v7309_v63  ;;  %v650_v55 = vmul.f32 %v5707_v5, %v7321_v34  ;;  %v603_v7 = vadd.f32 1.4214138, %v587_v1  ;;  %v7380_v30 = vld [vmem:[%s10837_s4] ss:$0 sm:$0xff]  ;;  %v960_v44 = vld [vmem:[%s10838_s5 + $0x78] sm:$0xff]  ;;  %v958_v1 = vld [vmem:[%s10838_s5 + $0x68] sm:$0xff] }
 0x128   :  { %v824_v46 = vsel %vm792_vm14, %v776_v41, %v808_v52  ;;  %6167 = vpow2.f32 %v746_v45  ;;  %v233_v29 = vmul.f32 0.5, %v7099_v51  ;;  %vm794_vm0 = vcmp.ge.f32.partialorder %v7141_v59, 0.0 }
 0x129   :  { %929 = vmatmul.f32.gmra.mxu1 %v855_v24  ;;  %v840_v50 = vadd.f32 1.0, %v824_v46  ;;  %v761_v58 = vmul.f32 %v6164_v19, %v681_v38  ;;  %v666_v32 = vadd.f32 0.2548296, %v650_v55  ;;  %v619_v13 = vmul.f32 %v603_v7, %v538_v10  ;;  %v957_v55 = vld [vmem:[%s10838_s5 + $0x60] sm:$0xff]  ;;  %v956_v46 = vld [vmem:[%s10838_s5 + $0x58] sm:$0xff] }
 0x12a   :  { %v6166_v9 = vpop.eup %6165  ;;  %v234_v15 = vmul.f32 0.5, %v7130_v61  ;;  %vm795_vm1 = vcmp.ge.f32.partialorder %v7188_v6, 0.0  ;;  %v235_v51 = vmul.f32 0.5, %v7178_v18  ;;  %vm1455_vm14 = vcmask 523264  }
 0x12b   :  { %v777_v3 = vsub.f32 1.0, %v761_v58  ;;  %v682_v21 = vmul.f32 %v666_v32, %v7321_v34  ;;  %v5708_v54 = vadd.f32 -0.28449672, %v619_v13  ;;  %v856_v63 = vmul.f32 %v840_v50, %v232_v14  ;;  %v955_v13 = vld [vmem:[%s10838_s5 + $0x50] sm:$0xff] }
 0x12d   :  { %v809_v35 = vsub.f32 0.0, %v777_v3  ;;  %v762_v20 = vmul.f32 %v6166_v9, %v682_v21  ;;  %v651_v42 = vmul.f32 %v5708_v54, %v538_v10  ;;  %v954_v54 = vld [vmem:[%s10838_s5 + $0x48] sm:$0xff] }
 0x12e   :  { %v6168_v48 = vpop.eup %6167 }
 0x12f   :  { %v825_v28 = vsel %vm793_vm15, %v777_v3, %v809_v35  ;;  %v778_v33 = vsub.f32 1.0, %v762_v20  ;;  %v667_v8 = vadd.f32 0.2548296, %v651_v42  ;;  %v953_v20 = vld [vmem:[%s10838_s5 + $0x40] sm:$0xff] }
 0x130   :  { %v841_v37 = vadd.f32 1.0, %v825_v28 }
 0x131   :  { %932 = vmatmul.f32.gmra.mxu1 %v856_v63  ;;  %v683_v40 = vmul.f32 %v667_v8, %v538_v10  ;;  %v810_v49 = vsub.f32 0.0, %v778_v33  ;;  %v952_v8 = vld [vmem:[%s10838_s5 + $0x38] sm:$0xff] }
 0x132   :  { %v857_v39 = vmul.f32 %v841_v37, %v233_v29 }
 0x133   :  { %v763_v34 = vmul.f32 %v6168_v48, %v683_v40  ;;  %v826_v17 = vsel %vm794_vm0, %v778_v33, %v810_v49  ;;  %v951_v49 = vld [vmem:[%s10838_s5 + $0x30] sm:$0xff] }
 0x134   :  { %v842_v47 = vadd.f32 1.0, %v826_v17  ;;  %v950_v17 = vld [vmem:[%s10838_s5 + $0x28] sm:$0xff] }
 0x135   :  { %v779_v23 = vsub.f32 1.0, %v763_v34 }
 0x136   :  { %v858_v4 = vmul.f32 %v842_v47, %v234_v15  ;;  %v949_v15 = vld [vmem:[%s10838_s5 + $0x20] sm:$0xff] }
 0x137   :  { %v811_v25 = vsub.f32 0.0, %v779_v23 }
 0x138   :  { %v7365_v31 = vpop.f32.mrf.mxu1 }
 0x139   :  { %935 = vmatmul.f32.gmra.mxu1 %v857_v39  ;;  %v827_v26 = vsel %vm795_vm1, %v779_v23, %v811_v25 }
 0x13a   :  { %v843_v56 = vadd.f32 1.0, %v827_v26 }
 0x13c   :  { %v859_v12 = vmul.f32 %v843_v56, %v235_v51  ;;  %v948_v51 = vld [vmem:[%s10838_s5 + $0x18] sm:$0xff] }
 0x140   :  { %v7369_v59 = vpop.f32.mrf.mxu1 }
 0x141   :  { %938 = vmatmul.f32.gmra.mxu1 %v858_v4 }
 0x148   :  { %v7371_v10 = vpop.f32.mrf.mxu1 }
 0x149   :  { %941 = vmatmul.f32.gmra.mxu1 %v859_v12  ;;  %v904_v12 = vadd.f32 %v7380_v30, %v7371_v10 }
 0x152   :  { %v7373_v57 = vpop.f32.mrf.mxu1 }
 0x153   :  { %v907_v4 = vadd.f32 %v7380_v30, %v7373_v57 }
 0x15b   :  { %v7375_v16 = vpop.f32.mrf.mxu1 }
 0x15c   :  { %v910_v23 = vadd.f32 %v7380_v30, %v7375_v16 }
 0x15e   :  { %v7487_v16 = vadd.f32 %v949_v15, %v910_v23  ;;  %v1258_v23 = vld [vmem:[%s10841_s9 + $0x170] sm:$0xff]  ;;  %v1255_v15 = vld [vmem:[%s10841_s9 + $0x158] sm:$0xff] }
 0x15f   :  { %1325 = vmatpush.msrb.mxu0 %v1258_v23 }
 0x160   :  { %10900 = vst [vmem:[#allocation11_spill] sm:$0xff] %v7487_v16 }
 0x161   :  { %1326 = vmatpush.msrb.mxu0 %v1255_v15 }
 0x166   :  { %v912_v61 = vpop.f32.mrf.mxu1 }
 0x167   :  { %v913_v29 = vadd.f32 %v7380_v30, %v912_v61  ;;  %v947_v61 = vld [vmem:[%s10838_s5 + $0x10] sm:$0xff] }
 0x169   :  { %v7477_v26 = vadd.f32 %v950_v17, %v913_v29  ;;  %v1257_v17 = vld [vmem:[%s10841_s9 + $0x168] sm:$0xff] }
 0x16b   :  { %10899 = vst [vmem:[#allocation10_spill] sm:$0xff] %v7477_v26  ;;  %v1012_v10 = vmul.f32 %v7477_v26, %v7477_v26 }
 0x172   :  { %v915_v11 = vpop.f32.mrf.mxu1 }
 0x173   :  { %v916_v37 = vadd.f32 %v7380_v30, %v915_v11  ;;  %v901_v11 = vadd.f32 %v7380_v30, %v7369_v59  ;;  %v1011_v59 = vmul.f32 %v7487_v16, %v7487_v16 }
 0x175   :  { %v7467_v47 = vadd.f32 %v951_v49, %v916_v37 }
 0x177   :  { %10898 = vst [vmem:[#allocation9_spill] sm:$0xff] %v7467_v47  ;;  %v1013_v57 = vmul.f32 %v7467_v47, %v7467_v47 }
 0x17e   :  { %v918_v22 = vpop.f32.mrf.mxu1 }
 0x17f   :  { %v919_v42 = vadd.f32 %v7380_v30, %v918_v22  ;;  %v7497_v22 = vadd.f32 %v948_v51, %v907_v4  ;;  %v1251_v4 = vld [vmem:[%s10841_s9 + $0x138] sm:$0xff]  ;;  %v1248_v51 = vld [vmem:[%s10841_s9 + $0x120] sm:$0xff] }
 0x181   :  { %v7457_v34 = vadd.f32 %v952_v8, %v919_v42  ;;  %10901 = vst [vmem:[#allocation12_spill] sm:$0xff] %v7497_v22 }
 0x183   :  { %10897 = vst [vmem:[#allocation8_spill] sm:$0xff] %v7457_v34  ;;  %v1014_v56 = vmul.f32 %v7457_v34, %v7457_v34 }
 0x186   :  { %v921_v6 = vpop.f32.mrf.mxu1 }
 0x187   :  { %v922_v9 = vadd.f32 %v7380_v30, %v921_v6  ;;  %v946_v6 = vld [vmem:[%s10838_s5 + $0x8] sm:$0xff] }
 0x189   :  { %v7448_v40 = vadd.f32 %v953_v20, %v922_v9  ;;  %v50_v9 = vld [vmem:[%s10840_s7 + $0x10] sm:$0xff]  ;;  %v48_v20 = vld [vmem:[%s10840_s7] sm:$0xff] }
 0x18b   :  { %10896 = vst [vmem:[#allocation7_spill] sm:$0xff] %v7448_v40  ;;  %v1015_v25 = vmul.f32 %v7448_v40, %v7448_v40 }
 0x194   :  { %v924_v53 = vpop.f32.mrf.mxu1 }
 0x195   :  { %v925_v14 = vadd.f32 %v7380_v30, %v924_v53  ;;  %v898_v53 = vadd.f32 %v7380_v30, %v7365_v31  ;;  %v1010_v31 = vmul.f32 %v7497_v22, %v7497_v22 }
 0x197   :  { %v7439_v28 = vadd.f32 %v954_v54, %v925_v14  ;;  %v52_v14 = vld [vmem:[%s10840_s7 + $0x20] sm:$0xff]  ;;  %v51_v54 = vld [vmem:[%s10840_s7 + $0x18] sm:$0xff] }
 0x199   :  { %10895 = vst [vmem:[#allocation6_spill] sm:$0xff] %v7439_v28  ;;  %v1016_v39 = vmul.f32 %v7439_v28, %v7439_v28 }
 0x19e   :  { %v927_v2 = vpop.f32.mrf.mxu1 }
 0x19f   :  { %v928_v50 = vadd.f32 %v7380_v30, %v927_v2  ;;  %v7507_v2 = vadd.f32 %v947_v61, %v904_v12  ;;  %v1249_v12 = vld [vmem:[%s10841_s9 + $0x128] sm:$0xff]  ;;  %v1246_v61 = vld [vmem:[%s10841_s9 + $0x110] sm:$0xff] }
 0x1a1   :  { %v7430_v63 = vadd.f32 %v955_v13, %v928_v50  ;;  %10902 = vst [vmem:[#allocation13_spill] sm:$0xff] %v7507_v2  ;;  %v55_v50 = vld [vmem:[%s10840_s7 + $0x38] sm:$0xff]  ;;  %v53_v13 = vld [vmem:[%s10840_s7 + $0x28] sm:$0xff] }
 0x1a3   :  { %10894 = vst [vmem:[#allocation5_spill] sm:$0xff] %v7430_v63  ;;  %v1017_v48 = vmul.f32 %v7430_v63, %v7430_v63 }
 0x1a6   :  { %v930_v27 = vpop.f32.mrf.mxu1 }
 0x1a7   :  { %v931_v7 = vadd.f32 %v7380_v30, %v930_v27  ;;  %v945_v27 = vld [vmem:[%s10838_s5] sm:$0xff]  ;;  %s6531_s5 = smov 64  }
 0x1a9   :  { %v7421_v3 = vadd.f32 %v956_v46, %v931_v7  ;;  %v57_v7 = vld [vmem:[%s10840_s7 + $0x48] sm:$0xff]  ;;  %v46_v46 = vld [vmem:[%s10839_s6 + $0x10] sm:$0xff] }
 0x1ab   :  { %10893 = vst [vmem:[#allocation4_spill] sm:$0xff] %v7421_v3  ;;  %v1018_v33 = vmul.f32 %v7421_v3, %v7421_v3 }
 0x1ae   :  { %v933_v62 = vpop.f32.mrf.mxu1 }
 0x1af   :  { %v934_v52 = vadd.f32 %v7380_v30, %v933_v62  ;;  %v7515_v62 = vadd.f32 %v946_v6, %v901_v11  ;;  %v1242_v11 = vld [vmem:[%s10841_s9 + $0xf0] sm:$0xff]  ;;  %v1239_v6 = vld [vmem:[%s10841_s9 + $0xd8] sm:$0xff] }
 0x1b1   :  { %v7412_v58 = vadd.f32 %v957_v55, %v934_v52  ;;  %10903 = vst [vmem:[#allocation14_spill] sm:$0xff] %v7515_v62  ;;  %v59_v52 = vld [vmem:[%s10840_s7 + $0x58] sm:$0xff]  ;;  %v58_v55 = vld [vmem:[%s10840_s7 + $0x50] sm:$0xff] }
 0x1b3   :  { %10892 = vst [vmem:[#allocation3_spill] sm:$0xff] %v7412_v58  ;;  %v1019_v35 = vmul.f32 %v7412_v58, %v7412_v58 }
 0x1b6   :  { %v936_v43 = vpop.f32.mrf.mxu1 }
 0x1b7   :  { %v937_v36 = vadd.f32 %v7380_v30, %v936_v43  ;;  %v7520_v43 = vadd.f32 %v945_v27, %v898_v53  ;;  %v1240_v53 = vld [vmem:[%s10841_s9 + $0xe0] sm:$0xff]  ;;  %v1237_v27 = vld [vmem:[%s10841_s9 + $0xc8] sm:$0xff] }
 0x1b9   :  { %v7403_v19 = vadd.f32 %v958_v1, %v937_v36  ;;  %10904 = vst [vmem:[#allocation15_spill] sm:$0xff] %v7520_v43  ;;  %v61_v36 = vld [vmem:[%s10840_s7 + $0x68] sm:$0xff] }
 0x1ba   :  { %v45_v1 = vld [vmem:[%s10839_s6 + $0x8] sm:$0xff] }
 0x1bb   :  { %v1020_v21 = vmul.f32 %v7403_v19, %v7403_v19 }
 0x1be   :  { %v939_v18 = vpop.f32.mrf.mxu1 }
 0x1bf   :  { %v940_v60 = vadd.f32 %v7380_v30, %v939_v18  ;;  %v1009_v18 = vmul.f32 %v7507_v2, %v7507_v2 }
 0x1c1   :  { %v7395_v24 = vadd.f32 %v959_v0, %v940_v60  ;;  %v44_v60 = vld [vmem:[%s10839_s6] sm:$0xff]  ;;  %v63_v0 = vld [vmem:[%s10840_s7 + $0x78] sm:$0xff] }
 0x1c3   :  { %10891 = vst [vmem:[#allocation2_spill] sm:$0xff] %v7395_v24  ;;  %v1021_v32 = vmul.f32 %v7395_v24, %v7395_v24 }
 0x1c6   :  { %v942_v41 = vpop.f32.mrf.mxu1 }
 0x1c7   :  { %v943_v5 = vadd.f32 %v7380_v30, %v942_v41  ;;  %v1008_v30 = vmul.f32 %v7515_v62, %v7515_v62  ;;  %v1007_v41 = vmul.f32 %v7520_v43, %v7520_v43 }
 0x1c9   :  { %v7397_v38 = vadd.f32 %v960_v44, %v943_v5  ;;  %v62_v44 = vld [vmem:[%s10840_s7 + $0x70] sm:$0xff]  ;;  %v60_v5 = vld [vmem:[%s10840_s7 + $0x60] sm:$0xff] }
 0x1cb   :  { %978 = vmatpush.msra.mxu2 %v7397_v38  ;;  %v1022_v45 = vmul.f32 %v7397_v38, %v7397_v38 }
 0x1cd   :  { %979 = vmatpush.msra.mxu2 %v7395_v24  ;;  %1023 = vmatpush.msra.mxu3 %v1022_v45  ;;  %v56_v45 = vld [vmem:[%s10840_s7 + $0x40] sm:$0xff] }
 0x1cf   :  { %980 = vmatpush.msra.mxu2 %v7403_v19  ;;  %1024 = vmatpush.msra.mxu3 %v1021_v32  ;;  %v54_v32 = vld [vmem:[%s10840_s7 + $0x30] sm:$0xff] }
 0x1d1   :  { %981 = vmatpush.msra.mxu2 %v7412_v58  ;;  %1025 = vmatpush.msra.mxu3 %v1020_v21  ;;  %v47_v21 = vld [vmem:[%s10839_s6 + $0x18] sm:$0xff] }
 0x1d3   :  { %982 = vmatpush.msra.mxu2 %v7421_v3  ;;  %1026 = vmatpush.msra.mxu3 %v1019_v35  ;;  %v49_v35 = vld [vmem:[%s10840_s7 + $0x8] sm:$0xff] }
 0x1d5   :  { %983 = vmatpush.msra.mxu2 %v7430_v63  ;;  %1027 = vmatpush.msra.mxu3 %v1018_v33 }
 0x1d7   :  { %984 = vmatpush.msra.mxu2 %v7439_v28  ;;  %1028 = vmatpush.msra.mxu3 %v1017_v48 }
 0x1d9   :  { %985 = vmatpush.msra.mxu2 %v7448_v40  ;;  %1029 = vmatpush.msra.mxu3 %v1016_v39 }
 0x1db   :  { %986 = vmatpush.msra.mxu2 %v7457_v34  ;;  %1030 = vmatpush.msra.mxu3 %v1015_v25  ;;  %v1254_v25 = vld [vmem:[%s10841_s9 + $0x150] sm:$0xff] }
 0x1dd   :  { %987 = vmatpush.msra.mxu2 %v7467_v47  ;;  %1031 = vmatpush.msra.mxu3 %v1014_v56  ;;  %v1252_v56 = vld [vmem:[%s10841_s9 + $0x140] sm:$0xff] }
 0x1de   :  { %1327 = vmatpush.msrb.mxu0 %v1252_v56 }
 0x1df   :  { %988 = vmatpush.msra.mxu2 %v7477_v26  ;;  %1032 = vmatpush.msra.mxu3 %v1013_v57  ;;  %v1245_v57 = vld [vmem:[%s10841_s9 + $0x108] sm:$0xff] }
 0x1e0   :  { %1328 = vmatpush.msrb.mxu0 %v1249_v12 }
 0x1e1   :  { %989 = vmatpush.msra.mxu2 %v7487_v16  ;;  %1033 = vmatpush.msra.mxu3 %v1012_v10  ;;  %v1243_v10 = vld [vmem:[%s10841_s9 + $0xf8] sm:$0xff] }
 0x1e2   :  { %1329 = vmatpush.msrb.mxu0 %v1246_v61 }
 0x1e3   :  { %990 = vmatpush.msra.mxu2 %v7497_v22  ;;  %1034 = vmatpush.msra.mxu3 %v1011_v59  ;;  %v1236_v59 = vld [vmem:[%s10841_s9 + $0xc0] sm:$0xff] }
 0x1e4   :  { %1330 = vmatpush.msrb.mxu0 %v1243_v10 }
 0x1e5   :  { %991 = vmatpush.msra.mxu2 %v7507_v2  ;;  %1035 = vmatpush.msra.mxu3 %v1010_v31 }
 0x1e6   :  { %1331 = vmatpush.msrb.mxu0 %v1240_v53 }
 0x1e7   :  { %992 = vmatpush.msra.mxu2 %v7515_v62  ;;  %1036 = vmatpush.msra.mxu3 %v1009_v18  ;;  %v1233_v18 = vld [vmem:[%s10841_s9 + $0xa8] sm:$0xff] }
 0x1e8   :  { %1332 = vmatpush.msrb.mxu0 %v1237_v27 }
 0x1e9   :  { %993 = vmatpush.msra.mxu2 %v7520_v43  ;;  %1037 = vmatpush.msra.mxu3 %v1008_v30  ;;  %v1234_v30 = vld [vmem:[%s10841_s9 + $0xb0] sm:$0xff] }
 0x1ea   :  { %994 = vmatmul.f32.vlgmr.msra.gmra.mxu2 %v44_v60  ;;  %1333 = vmatpush.msrb.mxu0 %v1234_v30 }
 0x1eb   :  { %1038 = vmatpush.msra.mxu3 %v1007_v41  ;;  %1052 = vmatpush.msrb.mxu2 %v63_v0  ;;  %v1230_v41 = vld [vmem:[%s10841_s9 + $0x90] sm:$0xff] }
 0x1ec   :  { %1039 = vmatmul.f32.vlgmr.msra.gmra.mxu3 %v44_v60 }
 0x1ed   :  { %1053 = vmatpush.msrb.mxu2 %v62_v44  ;;  %1081 = vmatpush.msrb.mxu3 %v63_v0 }
 0x1ef   :  { %1054 = vmatpush.msrb.mxu2 %v61_v36  ;;  %1082 = vmatpush.msrb.mxu3 %v62_v44  ;;  %v1231_v44 = vld [vmem:[%s10841_s9 + $0x98] sm:$0xff] }
 0x1f0   :  { %1334 = vmatpush.msrb.mxu0 %v1231_v44 }
 0x1f1   :  { %1055 = vmatpush.msrb.mxu2 %v60_v5  ;;  %1083 = vmatpush.msrb.mxu3 %v61_v36 }
 0x1f2   :  { %997 = vmatmul.f32.gmra.mxu2 %v45_v1 }
 0x1f3   :  { %1056 = vmatpush.msrb.mxu2 %v59_v52  ;;  %1084 = vmatpush.msrb.mxu3 %v60_v5  ;;  %v1227_v5 = vld [vmem:[%s10841_s9 + $0x78] sm:$0xff] }
 0x1f4   :  { %1042 = vmatmul.f32.gmra.mxu3 %v45_v1  ;;  %v1228_v1 = vld [vmem:[%s10841_s9 + $0x80] sm:$0xff] }
 0x1f5   :  { %1057 = vmatpush.msrb.mxu2 %v58_v55  ;;  %1085 = vmatpush.msrb.mxu3 %v59_v52 }
 0x1f6   :  { %1335 = vmatpush.msrb.mxu0 %v1228_v1 }
 0x1f7   :  { %1058 = vmatpush.msrb.mxu2 %v57_v7  ;;  %1086 = vmatpush.msrb.mxu3 %v58_v55  ;;  %v1224_v55 = vld [vmem:[%s10841_s9 + $0x60] sm:$0xff] }
 0x1f9   :  { %1059 = vmatpush.msrb.mxu2 %v56_v45  ;;  %1087 = vmatpush.msrb.mxu3 %v57_v7  ;;  %v1225_v7 = vld [vmem:[%s10841_s9 + $0x68] sm:$0xff] }
 0x1fa   :  { %1000 = vmatmul.f32.gmra.mxu2 %v46_v46  ;;  %1336 = vmatpush.msrb.mxu0 %v1225_v7 }
 0x1fb   :  { %1060 = vmatpush.msrb.mxu2 %v55_v50  ;;  %1088 = vmatpush.msrb.mxu3 %v56_v45 }
 0x1fc   :  { %1045 = vmatmul.f32.gmra.mxu3 %v46_v46 }
 0x1fd   :  { %1061 = vmatpush.msrb.mxu2 %v54_v32  ;;  %1089 = vmatpush.msrb.mxu3 %v55_v50  ;;  %v1221_v50 = vld [vmem:[%s10841_s9 + $0x48] sm:$0xff] }
 0x1ff   :  { %1062 = vmatpush.msrb.mxu2 %v53_v13  ;;  %1090 = vmatpush.msrb.mxu3 %v54_v32  ;;  %v1222_v32 = vld [vmem:[%s10841_s9 + $0x50] sm:$0xff] }
 0x200   :  { %1337 = vmatpush.msrb.mxu0 %v1222_v32 }
 0x201   :  { %1063 = vmatpush.msrb.mxu2 %v52_v14  ;;  %1091 = vmatpush.msrb.mxu3 %v53_v13 }
 0x202   :  { %1003 = vmatmul.f32.gmra.mxu2 %v47_v21 }
 0x203   :  { %1064 = vmatpush.msrb.mxu2 %v51_v54  ;;  %1092 = vmatpush.msrb.mxu3 %v52_v14 }
 0x204   :  { %1048 = vmatmul.f32.gmra.mxu3 %v47_v21  ;;  %v1218_v21 = vld [vmem:[%s10841_s9 + $0x30] sm:$0xff] }
 0x205   :  { %1065 = vmatpush.msrb.mxu2 %v50_v9  ;;  %1093 = vmatpush.msrb.mxu3 %v51_v54  ;;  %v1219_v54 = vld [vmem:[%s10841_s9 + $0x38] sm:$0xff] }
 0x206   :  { %1338 = vmatpush.msrb.mxu0 %v1219_v54 }
 0x207   :  { %1066 = vmatpush.msrb.mxu2 %v49_v35  ;;  %1094 = vmatpush.msrb.mxu3 %v50_v9 }
 0x209   :  { %1095 = vmatpush.msrb.mxu3 %v49_v35  ;;  %1067 = vmatpush.msrb.mxu2 %v48_v20  ;;  %v1215_v35 = vld [vmem:[%s10841_s9 + $0x18] sm:$0xff] }
 0x20b   :  { %1096 = vmatpush.msrb.mxu3 %v48_v20  ;;  %1260 = vmatpush.msra.mxu2 %v1257_v17  ;;  %v1216_v20 = vld [vmem:[%s10841_s9 + $0x20] sm:$0xff] }
 0x20c   :  { %1339 = vmatpush.msrb.mxu0 %v1216_v20 }
 0x20d   :  { %5990 = vmatpush.msra.mxu3 %v1258_v23  ;;  %1261 = vmatpush.msra.mxu2 %v1254_v25 }
 0x20f   :  { %5991 = vmatpush.msra.mxu3 %v1255_v15  ;;  %1262 = vmatpush.msra.mxu2 %v1251_v4  ;;  %v977_v15 = vld [vmem:[%s10842_s12] sm:$0x1f] }
 0x211   :  { %5992 = vmatpush.msra.mxu3 %v1252_v56  ;;  %1263 = vmatpush.msra.mxu2 %v1248_v51 }
 0x213   :  { %5993 = vmatpush.msra.mxu3 %v1249_v12  ;;  %1264 = vmatpush.msra.mxu2 %v1245_v57  ;;  %v7702_v57 = vperm.slane %v977_v15, 0 }
 0x215   :  { %5994 = vmatpush.msra.mxu3 %v1246_v61  ;;  %1265 = vmatpush.msra.mxu2 %v1242_v11 }
 0x217   :  { %5995 = vmatpush.msra.mxu3 %v1243_v10  ;;  %1266 = vmatpush.msra.mxu2 %v1239_v6 }
 0x219   :  { %5996 = vmatpush.msra.mxu3 %v1240_v53  ;;  %1267 = vmatpush.msra.mxu2 %v1236_v59 }
 0x21b   :  { %5997 = vmatpush.msra.mxu3 %v1237_v27  ;;  %1268 = vmatpush.msra.mxu2 %v1233_v18 }
 0x21d   :  { %5998 = vmatpush.msra.mxu3 %v1234_v30  ;;  %1269 = vmatpush.msra.mxu2 %v1230_v41 }
 0x21f   :  { %5999 = vmatpush.msra.mxu3 %v1231_v44  ;;  %1270 = vmatpush.msra.mxu2 %v1227_v5 }
 0x221   :  { %6000 = vmatpush.msra.mxu3 %v1228_v1  ;;  %1271 = vmatpush.msra.mxu2 %v1224_v55 }
 0x223   :  { %6001 = vmatpush.msra.mxu3 %v1225_v7  ;;  %1272 = vmatpush.msra.mxu2 %v1221_v50 }
 0x225   :  { %6002 = vmatpush.msra.mxu3 %v1222_v32  ;;  %1273 = vmatpush.msra.mxu2 %v1218_v21 }
 0x227   :  { %6003 = vmatpush.msra.mxu3 %v1219_v54  ;;  %1274 = vmatpush.msra.mxu2 %v1215_v35  ;;  %v1259_v35 = vld [vmem:[%s10841_s9 + $0x178] sm:$0xff] }
 0x229   :  { %6004 = vmatpush.msra.mxu3 %v1216_v20  ;;  %v1256_v20 = vld [vmem:[%s10841_s9 + $0x160] sm:$0xff] }
 0x26d   :  { %v995_v42 = vpop.f32.mrf.mxu2 }
 0x26e   :  { %1068 = vmatmul.f32.vlgmr.msrb.gmra.mxu2 %v995_v42 }
 0x26f   :  { %v1040_v33 = vpop.f32.mrf.mxu3 }
 0x270   :  { %1097 = vmatmul.f32.vlgmr.msrb.gmra.mxu3 %v1040_v33  ;;  %v1212_v33 = vld [vmem:[%s10841_s9] sm:$0xff] }
 0x271   :  { %1275 = vmatpush.msra.mxu2 %v1212_v33 }
 0x275   :  { %v998_v8 = vpop.f32.mrf.mxu2 }
 0x276   :  { %1071 = vmatmul.f32.gmra.mxu2 %v998_v8  ;;  %v1213_v8 = vld [vmem:[%s10841_s9 + $0x8] sm:$0xff] }
 0x277   :  { %v1043_v37 = vpop.f32.mrf.mxu3  ;;  %1340 = vmatpush.msrb.mxu0 %v1213_v8  ;;  %6005 = vmatpush.msra.mxu3 %v1213_v8  ;;  %v1253_v8 = vld [vmem:[%s10841_s9 + $0x148] sm:$0xff] }
 0x278   :  { %1100 = vmatmul.f32.gmra.mxu3 %v1043_v37 }
 0x279   :  { %1390 = vmatpush.msra.mxu0 %v1259_v35  ;;  %v1220_v35 = vld [vmem:[%s10841_s9 + $0x40] sm:$0xff] }
 0x27b   :  { %1391 = vmatpush.msra.mxu0 %v1256_v20 }
 0x27d   :  { %v1001_v48 = vpop.f32.mrf.mxu2  ;;  %1392 = vmatpush.msra.mxu0 %v1253_v8 }
 0x27e   :  { %1074 = vmatmul.f32.gmra.mxu2 %v1001_v48 }
 0x27f   :  { %v1046_v49 = vpop.f32.mrf.mxu3 }
 0x280   :  { %1103 = vmatmul.f32.gmra.mxu3 %v1046_v49 }
 0x285   :  { %v1004_v29 = vpop.f32.mrf.mxu2 }
 0x286   :  { %1077 = vmatmul.f32.gmra.mxu2 %v1004_v29 }
 0x287   :  { %v1049_v39 = vpop.f32.mrf.mxu3 }
 0x288   :  { %1106 = vmatmul.f32.gmra.mxu3 %v1049_v39 }
 0x2f1   :  { %v7639_v31 = vpop.f32.mrf.mxu2 }
 0x2f2   :  { %v1110_v60 = vmul.f32 %v7639_v31, %v7639_v31 }
 0x2f3   :  { %v1098_v0 = vpop.f32.mrf.mxu3 }
 0x2f4   :  { %v1114_v36 = vsub.f32 %v1098_v0, %v1110_v60  ;;  %v7711_v0 = vperm.slane %v977_v15, 1  ;;  %v1250_v15 = vld [vmem:[%s10841_s9 + $0x130] sm:$0xff] }
 0x2f5   :  { %1393 = vmatpush.msra.mxu0 %v1250_v15 }
 0x2f6   :  { %v1118_v52 = vmax.f32 %v1114_v36, 0.0 }
 0x2f8   :  { %v1122_v45 = vadd.f32 1e-05, %v1118_v52 }
 0x2f9   :  { %v7667_v46 = vpop.f32.mrf.mxu2 }
 0x2fa   :  { %6169 = vrsqrt.f32 %v1122_v45  ;;  %v1111_v13 = vmul.f32 %v7667_v46, %v7667_v46  ;;  %vm1132_vm3 = vweird.f32 %v1122_v45 }
 0x2fb   :  { %v1101_v14 = vpop.f32.mrf.mxu3 }
 0x2fc   :  { %v1115_v9 = vsub.f32 %v1101_v14, %v1111_v13 }
 0x2fe   :  { %v1119_v42 = vmax.f32 %v1115_v9, 0.0 }
 0x300   :  { %v6170_v37 = vpop.eup %6169  ;;  %v1123_v48 = vadd.f32 1e-05, %v1119_v42 }
 0x301   :  { %v1127_v49 = vmul.f32 %v6170_v37, %v1122_v45  ;;  %v7695_v29 = vpop.f32.mrf.mxu2  ;;  %vm1133_vm2 = vweird.f32 %v6170_v37 }
 0x302   :  { %6171 = vrsqrt.f32 %v1123_v48  ;;  %v1112_v39 = vmul.f32 %v7695_v29, %v7695_v29  ;;  %vm1134_vm4 = vmor %vm1132_vm3, %vm1133_vm2  ;;  %vm1142_vm6 = vweird.f32 %v1123_v48 }
 0x303   :  { %v1128_v17 = vmul.f32 %v6170_v37, %v1127_v49  ;;  %v1104_v23 = vpop.f32.mrf.mxu3 }
 0x304   :  { %v1116_v25 = vsub.f32 %v1104_v23, %v1112_v39 }
 0x305   :  { %v1129_v4 = vmul.f32 0.5, %v1128_v17 }
 0x306   :  { %v1120_v56 = vmax.f32 %v1116_v25, 0.0 }
 0x307   :  { %v1130_v51 = vsub.f32 1.5, %v1129_v4 }
 0x308   :  { %v6172_v12 = vpop.eup %6171  ;;  %v1124_v61 = vadd.f32 1e-05, %v1120_v56 }
 0x309   :  { %v1131_v11 = vmul.f32 %v6170_v37, %v1130_v51  ;;  %v1137_v10 = vmul.f32 %v6172_v12, %v1123_v48  ;;  %v7704_v6 = vpop.f32.mrf.mxu2  ;;  %vm1143_vm5 = vweird.f32 %v6172_v12 }
 0x30a   :  { %6173 = vrsqrt.f32 %v1124_v61  ;;  %v1113_v53 = vmul.f32 %v7704_v6, %v7704_v6  ;;  %vm1144_vm7 = vmor %vm1142_vm6, %vm1143_vm5  ;;  %vm1152_vm9 = vweird.f32 %v1124_v61 }
 0x30b   :  { %v1135_v59 = vsel %vm1134_vm4, %v6170_v37, %v1131_v11  ;;  %v1138_v27 = vmul.f32 %v6172_v12, %v1137_v10  ;;  %v1107_v18 = vpop.f32.mrf.mxu3  ;;  %v1244_v10 = vld [vmem:[%s10841_s9 + $0x100] sm:$0xff] }
 0x30c   :  { %v7709_v30 = vmul.f32 %v7702_v57, %v1135_v59  ;;  %v1117_v60 = vsub.f32 %v1107_v18, %v1113_v53 }
 0x30d   :  { %v1139_v41 = vmul.f32 0.5, %v1138_v27 }
 0x30e   :  { %v1121_v44 = vmax.f32 %v1117_v60, 0.0  ;;  %v1171_v36 = vmul.f32 %v7709_v30, %v7639_v31  ;;  %v1180_v7 = vmul.f32 %v7709_v30, %v7520_v43  ;;  %v1188_v45 = vmul.f32 %v7709_v30, %v7448_v40  ;;  %v1241_v60 = vld [vmem:[%s10841_s9 + $0xe8] sm:$0xff] }
 0x30f   :  { %v1140_v5 = vsub.f32 1.5, %v1139_v41  ;;  %v1184_v20 = vmul.f32 %v7709_v30, %v7487_v16 }
 0x310   :  { %v6174_v1 = vpop.eup %6173  ;;  %v1125_v52 = vadd.f32 1e-05, %v1121_v44  ;;  %v7716_v55 = vsub.f32 %v7711_v0, %v1171_v36  ;;  %v1238_v36 = vld [vmem:[%s10841_s9 + $0xd0] sm:$0xff] }
 0x311   :  { %v1141_v50 = vmul.f32 %v6172_v12, %v1140_v5  ;;  %v1147_v32 = vmul.f32 %v6174_v1, %v1124_v61  ;;  %vm1153_vm8 = vweird.f32 %v6174_v1  ;;  %v1247_v61 = vld [vmem:[%s10841_s9 + $0x118] sm:$0xff] }
 0x312   :  { %6175 = vrsqrt.f32 %v1125_v52  ;;  %v7723_v31 = vadd.f32 %v1180_v7, %v7716_v55  ;;  %v7726_v13 = vadd.f32 %v1188_v45, %v7716_v55  ;;  %vm1154_vm10 = vmor %vm1152_vm9, %vm1153_vm8  ;;  %1394 = vmatpush.msra.mxu0 %v1247_v61  ;;  %vm1162_vm12 = vweird.f32 %v1125_v52  ;;  %v1232_v45 = vld [vmem:[%s10841_s9 + $0xa0] sm:$0xff] }
 0x313   :  { %v1145_v14 = vsel %vm1144_vm7, %v6172_v12, %v1141_v50  ;;  %v1148_v21 = vmul.f32 %v6174_v1, %v1147_v32  ;;  %v1200_v8 = vadd.f32 %v1184_v20, %v7716_v55 }
 0x314   :  { %v7729_v54 = vmul.f32 %v7702_v57, %v1145_v14  ;;  %1276 = vmatmul.f32.vlgmr.msra.gmra.mxu2 %v7723_v31  ;;  %1341 = vmatmul.f32.vlgmr.msrb.gmra.mxu0 %v7723_v31  ;;  %v1229_v14 = vld [vmem:[%s10841_s9 + $0x88] sm:$0xff] }
 0x315   :  { %v1149_v9 = vmul.f32 0.5, %v1148_v21  ;;  %1365 = vmatmul.f32.vlgmr.msra.gmra.mxu3 %v7726_v13  ;;  %1395 = vmatpush.msra.mxu0 %v1244_v10 }
 0x316   :  { %v1172_v42 = vmul.f32 %v7729_v54, %v7667_v46  ;;  %v1181_v49 = vmul.f32 %v7729_v54, %v7515_v62  ;;  %v1189_v39 = vmul.f32 %v7729_v54, %v7439_v28 }
 0x317   :  { %v1150_v33 = vsub.f32 1.5, %v1149_v9  ;;  %1396 = vmatpush.msra.mxu0 %v1241_v60 }
 0x318   :  { %v6176_v37 = vpop.eup %6175  ;;  %v7746_v48 = vsub.f32 %v7711_v0, %v1172_v42  ;;  %v1217_v42 = vld [vmem:[%s10841_s9 + $0x28] sm:$0xff] }
 0x319   :  { %v1151_v17 = vmul.f32 %v6174_v1, %v1150_v33  ;;  %v1157_v46 = vmul.f32 %v6176_v37, %v1125_v52  ;;  %vm1163_vm11 = vweird.f32 %v6176_v37  ;;  %1397 = vmatpush.msra.mxu0 %v1238_v36  ;;  %v1235_v52 = vld [vmem:[%s10841_s9 + $0xb8] sm:$0xff]  ;;  %v1192_v33 = vmul.f32 %v7709_v30, %v7412_v58 }
 0x31a   :  { %v7753_v23 = vadd.f32 %v1181_v49, %v7746_v48  ;;  %v7756_v25 = vadd.f32 %v1189_v39, %v7746_v48  ;;  %vm1164_vm13 = vmor %vm1162_vm12, %vm1163_vm11  ;;  %v1185_v39 = vmul.f32 %v7729_v54, %v7477_v26  ;;  %v1193_v30 = vmul.f32 %v7729_v54, %v7403_v19 }
 0x31b   :  { %v1155_v4 = vsel %vm1154_vm10, %v6174_v1, %v1151_v17  ;;  %v1158_v56 = vmul.f32 %v6176_v37, %v1157_v46  ;;  %1398 = vmatpush.msra.mxu0 %v1235_v52  ;;  %v1208_v49 = vadd.f32 %v1192_v33, %v7716_v55 }
 0x31c   :  { %v7762_v51 = vmul.f32 %v7702_v57, %v1155_v4  ;;  %1279 = vmatmul.f32.gmra.mxu2 %v7753_v23  ;;  %1344 = vmatmul.f32.gmra.mxu0 %v7753_v23  ;;  %v1201_v17 = vadd.f32 %v1185_v39, %v7746_v48  ;;  %v1209_v46 = vadd.f32 %v1193_v30, %v7746_v48 }
 0x31d   :  { %v1159_v12 = vmul.f32 0.5, %v1158_v56  ;;  %1368 = vmatmul.f32.gmra.mxu3 %v7756_v25  ;;  %1399 = vmatpush.msra.mxu0 %v1232_v45 }
 0x31e   :  { %v1173_v11 = vmul.f32 %v7762_v51, %v7695_v29  ;;  %v1182_v27 = vmul.f32 %v7762_v51, %v7507_v2  ;;  %v1190_v18 = vmul.f32 %v7762_v51, %v7430_v63  ;;  %v1186_v55 = vmul.f32 %v7762_v51, %v7467_v47 }
 0x31f   :  { %v1160_v53 = vsub.f32 1.5, %v1159_v12  ;;  %1400 = vmatpush.msra.mxu0 %v1229_v14  ;;  %v1194_v15 = vmul.f32 %v7762_v51, %v7395_v24 }
 0x320   :  { %v1178_v59 = vsub.f32 %v7711_v0, %v1173_v11 }
 0x321   :  { %v1161_v29 = vmul.f32 %v6176_v37, %v1160_v53 }
 0x322   :  { %v7783_v41 = vadd.f32 %v1182_v27, %v1178_v59  ;;  %v7785_v44 = vadd.f32 %v1190_v18, %v1178_v59  ;;  %v1202_v4 = vadd.f32 %v1186_v55, %v1178_v59  ;;  %v1210_v56 = vadd.f32 %v1194_v15, %v1178_v59 }
 0x323   :  { %v1165_v5 = vsel %vm1164_vm13, %v6176_v37, %v1161_v29  ;;  %v1214_v37 = vld [vmem:[%s10841_s9 + $0x10] sm:$0xff] }
 0x324   :  { %v1170_v1 = vmul.f32 %v7702_v57, %v1165_v5  ;;  %1282 = vmatmul.f32.gmra.mxu2 %v7783_v41  ;;  %1347 = vmatmul.f32.gmra.mxu0 %v7783_v41 }
 0x325   :  { %1371 = vmatmul.f32.gmra.mxu3 %v7785_v44 }
 0x326   :  { %v1174_v7 = vmul.f32 %v1170_v1, %v7704_v6  ;;  %v1183_v50 = vmul.f32 %v1170_v1, %v7497_v22  ;;  %v1191_v32 = vmul.f32 %v1170_v1, %v7421_v3  ;;  %v1226_v6 = vld [vmem:[%s10841_s9 + $0x70] sm:$0xff]  ;;  %v1187_v54 = vmul.f32 %v1170_v1, %v7457_v34 }
 0x327   :  { %1401 = vmatpush.msra.mxu0 %v1226_v6  ;;  %v1195_v12 = vmul.f32 %v1170_v1, %v7397_v38 }
 0x328   :  { %v1179_v57 = vsub.f32 %v7711_v0, %v1174_v7  ;;  %v1223_v0 = vld [vmem:[%s10841_s9 + $0x58] sm:$0xff] }
 0x329   :  { %1402 = vmatpush.msra.mxu0 %v1223_v0 }
 0x32a   :  { %v1199_v21 = vadd.f32 %v1183_v50, %v1179_v57  ;;  %v7807_v9 = vadd.f32 %v1191_v32, %v1179_v57  ;;  %v1203_v61 = vadd.f32 %v1187_v54, %v1179_v57  ;;  %v1211_v48 = vadd.f32 %v1195_v12, %v1179_v57 }
 0x32b   :  { %1403 = vmatpush.msra.mxu0 %v1220_v35 }
 0x32c   :  { %1285 = vmatmul.f32.gmra.mxu2 %v1199_v21  ;;  %1350 = vmatmul.f32.gmra.mxu0 %v1199_v21 }
 0x32d   :  { %1374 = vmatmul.f32.gmra.mxu3 %v7807_v9  ;;  %1404 = vmatpush.msra.mxu0 %v1217_v42 }
 0x32f   :  { %1405 = vmatpush.msra.mxu0 %v1214_v37 }
 0x334   :  { %1288 = vmatmul.f32.gmra.mxu2 %v1200_v8  ;;  %1353 = vmatmul.f32.gmra.mxu0 %v1200_v8 }
 0x335   :  { %1377 = vmatmul.f32.gmra.mxu3 %v1208_v49 }
 0x33c   :  { %1291 = vmatmul.f32.gmra.mxu2 %v1201_v17  ;;  %1356 = vmatmul.f32.gmra.mxu0 %v1201_v17 }
 0x33d   :  { %1380 = vmatmul.f32.gmra.mxu3 %v1209_v46 }
 0x344   :  { %1294 = vmatmul.f32.gmra.mxu2 %v1202_v4  ;;  %1359 = vmatmul.f32.gmra.mxu0 %v1202_v4 }
 0x345   :  { %1383 = vmatmul.f32.gmra.mxu3 %v1210_v56 }
 0x34c   :  { %1297 = vmatmul.f32.gmra.mxu2 %v1203_v61  ;;  %1362 = vmatmul.f32.gmra.mxu0 %v1203_v61 }
 0x34d   :  { %1386 = vmatmul.f32.gmra.mxu3 %v1211_v48 }
 0x354   :  { %1300 = vmatmul.f32.gmra.mxu2 %v7726_v13  ;;  %1406 = vmatmul.f32.vlgmr.msra.gmra.mxu0 %v7723_v31 }
 0x35c   :  { %1303 = vmatmul.f32.gmra.mxu2 %v7756_v25  ;;  %1409 = vmatmul.f32.gmra.mxu0 %v7753_v23 }
 0x364   :  { %1306 = vmatmul.f32.gmra.mxu2 %v7785_v44  ;;  %1412 = vmatmul.f32.gmra.mxu0 %v7783_v41 }
 0x36c   :  { %1309 = vmatmul.f32.gmra.mxu2 %v7807_v9  ;;  %1415 = vmatmul.f32.gmra.mxu0 %v1199_v21 }
 0x374   :  { %1312 = vmatmul.f32.gmra.mxu2 %v1208_v49  ;;  %1418 = vmatmul.f32.gmra.mxu0 %v1200_v8 }
 0x37c   :  { %1315 = vmatmul.f32.gmra.mxu2 %v1209_v46  ;;  %1421 = vmatmul.f32.gmra.mxu0 %v1201_v17 }
 0x384   :  { %1318 = vmatmul.f32.gmra.mxu2 %v1210_v56  ;;  %1424 = vmatmul.f32.gmra.mxu0 %v1202_v4 }
 0x38c   :  { %1321 = vmatmul.f32.gmra.mxu2 %v1211_v48  ;;  %1427 = vmatmul.f32.gmra.mxu0 %v1203_v61 }
 0x391   :  { %v7850_v31 = vpop.f32.mrf.mxu0 }
 0x394   :  { %1430 = vmatmul.f32.gmra.mxu0 %v7726_v13 }
 0x397   :  { %v7853_v23 = vpop.f32.mrf.mxu2 }
 0x398   :  { %v1366_v51 = vpop.f32.mrf.mxu3 }
 0x399   :  { %v7855_v11 = vpop.f32.mrf.mxu0 }
 0x39c   :  { %1433 = vmatmul.f32.gmra.mxu0 %v7756_v25 }
 0x39f   :  { %v7858_v10 = vpop.f32.mrf.mxu2 }
 0x3a0   :  { %v1369_v53 = vpop.f32.mrf.mxu3 }
 0x3a1   :  { %v7860_v59 = vpop.f32.mrf.mxu0 }
 0x3a4   :  { %1436 = vmatmul.f32.gmra.mxu0 %v7785_v44 }
 0x3a7   :  { %v7863_v27 = vpop.f32.mrf.mxu2 }
 0x3a8   :  { %v1372_v18 = vpop.f32.mrf.mxu3 }
 0x3a9   :  { %v7865_v60 = vpop.f32.mrf.mxu0 }
 0x3ac   :  { %1439 = vmatmul.f32.gmra.mxu0 %v7807_v9 }
 0x3af   :  { %v7868_v13 = vpop.f32.mrf.mxu2 }
 0x3b0   :  { %v1375_v29 = vpop.f32.mrf.mxu3 }
 0x3b1   :  { %2225 = vrot.lane.b32.xlu2 %v1375_v29, %s6531_s5  ;;  %v1354_v25 = vpop.f32.mrf.mxu0 }
 0x3b4   :  { %1442 = vmatmul.f32.gmra.mxu0 %v1208_v49 }
 0x3b7   :  { %v7871_v41 = vpop.f32.mrf.mxu2 }
 0x3b8   :  { %v1378_v36 = vpop.f32.mrf.mxu3 }
 0x3b9   :  { %2223 = vrot.lane.b32.xlu2 %v1372_v18, %s6531_s5  ;;  %v1357_v44 = vpop.f32.mrf.mxu0 }
 0x3bc   :  { %1445 = vmatmul.f32.gmra.mxu0 %v1209_v46 }
 0x3bf   :  { %v7874_v5 = vpop.f32.mrf.mxu2 }
 0x3c0   :  { %v1381_v1 = vpop.f32.mrf.mxu3 }
 0x3c1   :  { %2229 = vrot.lane.b32.xlu1 %v1381_v1, %s6531_s5  ;;  %v1360_v52 = vpop.f32.mrf.mxu0 }
 0x3c4   :  { %1448 = vmatmul.f32.gmra.mxu0 %v1210_v56 }
 0x3c7   :  { %v7877_v7 = vpop.f32.mrf.mxu2 }
 0x3c8   :  { %v1384_v45 = vpop.f32.mrf.mxu3 }
 0x3c9   :  { %2227 = vrot.lane.b32.xlu1 %v1378_v36, %s6531_s5  ;;  %v1363_v57 = vpop.f32.mrf.mxu0 }
 0x3ca   :  { %2217 = vrot.lane.b32.xlu2 %v1363_v57, %s6531_s5 }
 0x3cc   :  { %1451 = vmatmul.f32.gmra.mxu0 %v1211_v48 }
 0x3cf   :  { %v7881_v50 = vpop.f32.mrf.mxu2 }
 0x3d0   :  { %v1387_v32 = vpop.f32.mrf.mxu3 }
 0x3d1   :  { %2219 = vrot.lane.b32.xlu1 %v1366_v51, %s6531_s5  ;;  %2233 = vrot.lane.b32.xlu0 %v1387_v32, %s6531_s5  ;;  %v7885_v14 = vpop.f32.mrf.mxu0 }
 0x3d2   :  { %5709 = vmatpush.xpose.msk.msrb.mxu1 %vm1455_vm14, %v1387_v32  ;;  %2211 = vrot.lane.b32.xlu2 %v1354_v25, %s6531_s5 }
 0x3d6   :  { %5710 = vmatpush.xpose.msk.msrb.mxu1 %vm1455_vm14, %v1384_v45 }
 0x3d7   :  { %v7890_v21 = vpop.f32.mrf.mxu2 }
 0x3d9   :  { %2231 = vrot.lane.b32.xlu0 %v1384_v45, %s6531_s5  ;;  %2213 = vrot.lane.b32.xlu1 %v1357_v44, %s6531_s5  ;;  %v7894_v9 = vpop.f32.mrf.mxu0 }
 0x3da   :  { %5711 = vmatpush.xpose.msk.msrb.mxu1 %vm1455_vm14, %v1381_v1  ;;  %2205 = vrot.lane.b32.xlu2 %v7855_v11, %s6531_s5 }
 0x3de   :  { %5712 = vmatpush.xpose.msk.msrb.mxu1 %vm1455_vm14, %v1378_v36 }
 0x3df   :  { %v7900_v6 = vpop.f32.mrf.mxu2 }
 0x3e1   :  { %2221 = vrot.lane.b32.xlu0 %v1369_v53, %s6531_s5  ;;  %2207 = vrot.lane.b32.xlu1 %v7860_v59, %s6531_s5  ;;  %v7905_v0 = vpop.f32.mrf.mxu0 }
 0x3e2   :  { %5713 = vmatpush.xpose.msk.msrb.mxu1 %vm1455_vm14, %v1375_v29  ;;  %2173 = vrot.lane.b32.xlu2 %v7858_v10, %s6531_s5 }
 0x3e6   :  { %5714 = vmatpush.xpose.msk.msrb.mxu1 %vm1455_vm14, %v1372_v18 }
 0x3e7   :  { %v7911_v35 = vpop.f32.mrf.mxu2 }
 0x3e9   :  { %2171 = vrot.lane.b32.xlu1 %v7853_v23, %s6531_s5  ;;  %2215 = vrot.lane.b32.xlu0 %v1360_v52, %s6531_s5  ;;  %v7916_v20 = vpop.f32.mrf.mxu0 }
 0x3ea   :  { %5715 = vmatpush.xpose.msk.msrb.mxu1 %vm1455_vm14, %v1369_v53  ;;  %2179 = vrot.lane.b32.xlu2 %v7871_v41, %s6531_s5 }
 0x3ee   :  { %5716 = vmatpush.xpose.msk.msrb.mxu1 %vm1455_vm14, %v1366_v51 }
 0x3ef   :  { %v7922_v42 = vpop.f32.mrf.mxu2 }
 0x3f1   :  { %2209 = vrot.lane.b32.xlu0 %v7865_v60, %s6531_s5  ;;  %2177 = vrot.lane.b32.xlu1 %v7868_v13, %s6531_s5  ;;  %v7928_v33 = vpop.f32.mrf.mxu0 }
 0x3f2   :  { %5717 = vmatpush.xpose.msk.msrb.mxu1 %vm1455_vm14, %v1363_v57  ;;  %2185 = vrot.lane.b32.xlu2 %v7881_v50, %s6531_s5 }
 0x3f6   :  { %5718 = vmatpush.xpose.msk.msrb.mxu1 %vm1455_vm14, %v1360_v52 }
 0x3f7   :  { %v7934_v8 = vpop.f32.mrf.mxu2 }
 0x3f9   :  { %2203 = vrot.lane.b32.xlu0 %v7850_v31, %s6531_s5  ;;  %2183 = vrot.lane.b32.xlu1 %v7877_v7, %s6531_s5  ;;  %v7940_v37 = vpop.f32.mrf.mxu0 }
 0x3fa   :  { %5719 = vmatpush.xpose.msk.msrb.mxu1 %vm1455_vm14, %v1357_v44  ;;  %2191 = vrot.lane.b32.xlu2 %v7911_v35, %s6531_s5  ;;  %v6028_v15 = vpack.i.bf16 %v7928_v33, %v7940_v37 }
 0x3fe   :  { %5720 = vmatpush.xpose.msk.msrb.mxu1 %vm1455_vm14, %v1354_v25 }
 0x3ff   :  { %v7946_v49 = vpop.f32.mrf.mxu2 }
 0x401   :  { %2175 = vrot.lane.b32.xlu0 %v7863_v27, %s6531_s5  ;;  %2189 = vrot.lane.b32.xlu1 %v7900_v6, %s6531_s5  ;;  %v7952_v39 = vpop.f32.mrf.mxu0 }
 0x402   :  { %5721 = vmatpush.xpose.msk.msrb.mxu1 %vm1455_vm14, %v7865_v60  ;;  %2197 = vrot.lane.b32.xlu2 %v7946_v49, %s6531_s5 }
 0x406   :  { %5722 = vmatpush.xpose.msk.msrb.mxu1 %vm1455_vm14, %v7860_v59 }
 0x407   :  { %v7960_v30 = vpop.f32.mrf.mxu2 }
 0x409   :  { %2181 = vrot.lane.b32.xlu0 %v7874_v5, %s6531_s5  ;;  %2195 = vrot.lane.b32.xlu1 %v7934_v8, %s6531_s5  ;;  %v1428_v17 = vpop.f32.mrf.mxu0 }
 0x40a   :  { %5723 = vmatpush.xpose.msk.msrb.mxu1 %vm1455_vm14, %v7855_v11  ;;  %v6023_v12 = vpack.i.bf16 %v7952_v39, %v1428_v17 }
 0x40e   :  { %5724 = vmatpush.xpose.msk.msrb.mxu1 %vm1455_vm14, %v7850_v31 }
 0x40f   :  { %v7970_v46 = vpop.f32.mrf.mxu2 }
 0x411   :  { %5725 = vmatmul.msk.f32.vlgmr.msrb.gmra.mxu1 %vm1455_vm14, %v7853_v23  ;;  %2187 = vrot.lane.b32.xlu0 %v7890_v21, %s6531_s5  ;;  %v1431_v55 = vpop.f32.mrf.mxu0  ;;  %v2226_v23 = vpop.permute.xlu2 %2225 }
 0x412   :  { %2201 = vrot.lane.b32.xlu1 %v7970_v46, %s6531_s5 }
 0x419   :  { %5726 = vmatmul.msk.f32.gmra.mxu1 %vm1455_vm14, %v7858_v10  ;;  %2193 = vrot.lane.b32.xlu0 %v7922_v42, %s6531_s5  ;;  %v1434_v4 = vpop.f32.mrf.mxu0  ;;  %v2224_v53 = vpop.permute.xlu2 %2223 }
 0x41a   :  { %6029 = vrot.lane.b32.xlu1 %v6028_v15, %s6531_s5  ;;  %v6033_v56 = vpack.i.bf16 %v1431_v55, %v1434_v4 }
 0x41c   :  { %6034 = vrot.lane.b32.xlu2 %v6033_v56, %s6531_s5 }
 0x421   :  { %5727 = vmatmul.msk.f32.gmra.mxu1 %vm1455_vm14, %v7863_v27  ;;  %2199 = vrot.lane.b32.xlu0 %v7960_v30, %s6531_s5  ;;  %v1437_v54 = vpop.f32.mrf.mxu0 }
 0x424   :  { %v2218_v60 = vpop.permute.xlu2 %2217 }
 0x429   :  { %5728 = vmatmul.msk.f32.gmra.mxu1 %vm1455_vm14, %v7868_v13  ;;  %6024 = vrot.lane.b32.xlu0 %v6023_v12, %s6531_s5  ;;  %v1440_v61 = vpop.f32.mrf.mxu0 }
 0x42a   :  { %v6038_v48 = vpack.i.bf16 %v1437_v54, %v1440_v61 }
 0x42c   :  { %6039 = vrot.lane.b32.xlu2 %v6038_v48, %s6531_s5  ;;  %v2212_v36 = vpop.permute.xlu2 %2211  ;;  %v8080_v48 = vld [vmem:[%s10843_s8 + $0x10] sm:$0xff] }
 0x431   :  { %5729 = vmatmul.msk.f32.gmra.mxu1 %vm1455_vm14, %v7871_v41  ;;  %v1443_v31 = vpop.f32.mrf.mxu0 }
 0x433   :  { %v2230_v51 = vpop.permute.xlu1 %2229 }
 0x439   :  { %5730 = vmatmul.msk.f32.gmra.mxu1 %vm1455_vm14, %v7874_v5  ;;  %v1446_v11 = vpop.f32.mrf.mxu0  ;;  %v2206_v5 = vpop.permute.xlu2 %2205 }
 0x43a   :  { %v6043_v10 = vpack.i.bf16 %v1443_v31, %v1446_v11 }
 0x43b   :  { %v2228_v27 = vpop.permute.xlu1 %2227 }
 0x43c   :  { %6044 = vrot.lane.b32.xlu1 %v6043_v10, %s6531_s5  ;;  %v8092_v10 = vld [vmem:[%s10843_s8 + $0x18] sm:$0xff] }
 0x441   :  { %5731 = vmatmul.msk.f32.gmra.mxu1 %vm1455_vm14, %v7877_v7  ;;  %v1449_v59 = vpop.f32.mrf.mxu0  ;;  %v2174_v7 = vpop.permute.xlu2 %2173 }
 0x443   :  { %v2234_v18 = vpop.permute.xlu0 %2233  ;;  %v2220_v41 = vpop.permute.xlu1 %2219 }
 0x444   :  { %5757 = vmatpush.xpose.msk.msrb.mxu0 %vm1455_vm14, %v2234_v18 }
 0x449   :  { %5732 = vmatmul.msk.f32.gmra.mxu1 %vm1455_vm14, %v7881_v50  ;;  %v1452_v13 = vpop.f32.mrf.mxu0  ;;  %v2180_v50 = vpop.permute.xlu2 %2179 }
 0x44a   :  { %v6048_v29 = vpack.i.bf16 %v1449_v59, %v1452_v13  ;;  %1969 = vmatpush.msrb.mxu2 %v1452_v13 }
 0x44b   :  { %v2232_v25 = vpop.permute.xlu0 %2231  ;;  %v2214_v44 = vpop.permute.xlu1 %2213 }
 0x44c   :  { %5758 = vmatpush.xpose.msk.msrb.mxu0 %vm1455_vm14, %v2232_v25  ;;  %1970 = vmatpush.msrb.mxu2 %v1449_v59 }
 0x44d   :  { %6049 = vrot.lane.b32.xlu2 %v6048_v29, %s6531_s5  ;;  %v8102_v29 = vld [vmem:[%s10843_s8 + $0x20] sm:$0xff] }
 0x44e   :  { %1971 = vmatpush.msrb.mxu2 %v1446_v11 }
 0x450   :  { %5759 = vmatpush.xpose.msk.msrb.mxu0 %vm1455_vm14, %v2230_v51  ;;  %1972 = vmatpush.msrb.mxu2 %v1443_v31 }
 0x451   :  { %5733 = vmatmul.msk.f32.gmra.mxu1 %vm1455_vm14, %v7890_v21 }
 0x452   :  { %1973 = vmatpush.msrb.mxu2 %v1440_v61 }
 0x453   :  { %v2222_v1 = vpop.permute.xlu0 %2221  ;;  %v2208_v52 = vpop.permute.xlu1 %2207 }
 0x454   :  { %5760 = vmatpush.xpose.msk.msrb.mxu0 %vm1455_vm14, %v2228_v27  ;;  %1974 = vmatpush.msrb.mxu2 %v1437_v54 }
 0x456   :  { %1975 = vmatpush.msrb.mxu2 %v1434_v4 }
 0x458   :  { %5761 = vmatpush.xpose.msk.msrb.mxu0 %vm1455_vm14, %v2226_v23  ;;  %1976 = vmatpush.msrb.mxu2 %v1431_v55 }
 0x459   :  { %5734 = vmatmul.msk.f32.gmra.mxu1 %vm1455_vm14, %v7900_v6  ;;  %v8037_v6 = vpop.permute.xlu2 %2185 }
 0x45a   :  { %1977 = vmatpush.msrb.mxu2 %v1428_v17 }
 0x45b   :  { %v2216_v45 = vpop.permute.xlu0 %2215  ;;  %v2172_v57 = vpop.permute.xlu1 %2171 }
 0x45c   :  { %5762 = vmatpush.xpose.msk.msrb.mxu0 %vm1455_vm14, %v2224_v53  ;;  %1978 = vmatpush.msrb.mxu2 %v7952_v39 }
 0x45e   :  { %1979 = vmatpush.msrb.mxu2 %v7940_v37 }
 0x460   :  { %5763 = vmatpush.xpose.msk.msrb.mxu0 %vm1455_vm14, %v2222_v1  ;;  %1980 = vmatpush.msrb.mxu2 %v7928_v33 }
 0x461   :  { %5735 = vmatmul.msk.f32.gmra.mxu1 %vm1455_vm14, %v7911_v35  ;;  %v8044_v33 = vpop.permute.xlu2 %2191 }
 0x462   :  { %1981 = vmatpush.msrb.mxu2 %v7916_v20 }
 0x463   :  { %v2210_v32 = vpop.permute.xlu0 %2209  ;;  %v2178_v21 = vpop.permute.xlu1 %2177 }
 0x464   :  { %5764 = vmatpush.xpose.msk.msrb.mxu0 %vm1455_vm14, %v2220_v41  ;;  %1982 = vmatpush.msrb.mxu2 %v7905_v0 }
 0x466   :  { %1983 = vmatpush.msrb.mxu2 %v7894_v9 }
 0x468   :  { %5765 = vmatpush.xpose.msk.msrb.mxu0 %vm1455_vm14, %v2218_v60  ;;  %1984 = vmatpush.msrb.mxu2 %v7885_v14 }
 0x469   :  { %5736 = vmatmul.msk.f32.gmra.mxu1 %vm1455_vm14, %v7922_v42  ;;  %v8056_v17 = vpop.permute.xlu2 %2197 }
 0x46b   :  { %v2204_v35 = vpop.permute.xlu0 %2203  ;;  %v2184_v42 = vpop.permute.xlu1 %2183 }
 0x46c   :  { %5766 = vmatpush.xpose.msk.msrb.mxu0 %vm1455_vm14, %v2216_v45 }
 0x470   :  { %5767 = vmatpush.xpose.msk.msrb.mxu0 %vm1455_vm14, %v2214_v44 }
 0x471   :  { %5737 = vmatmul.msk.f32.gmra.mxu1 %vm1455_vm14, %v7934_v8 }
 0x473   :  { %v2176_v8 = vpop.permute.xlu0 %2175  ;;  %v8047_v37 = vpop.permute.xlu1 %2189 }
 0x474   :  { %5768 = vmatpush.xpose.msk.msrb.mxu0 %vm1455_vm14, %v2212_v36 }
 0x476   :  { %v6035_v56 = vpop.permute.xlu2 %6034 }
 0x478   :  { %5769 = vmatpush.xpose.msk.msrb.mxu0 %vm1455_vm14, %v2210_v32 }
 0x479   :  { %5738 = vmatmul.msk.f32.gmra.mxu1 %vm1455_vm14, %v7946_v49  ;;  %v8054_v49 = vld [vmem:[%s10843_s8] sm:$0xff] }
 0x47b   :  { %v8063_v15 = vpop.permute.xlu1 %2195 }
 0x47c   :  { %5770 = vmatpush.xpose.msk.msrb.mxu0 %vm1455_vm14, %v2208_v52 }
 0x480   :  { %5771 = vmatpush.xpose.msk.msrb.mxu0 %vm1455_vm14, %v2206_v5 }
 0x481   :  { %5739 = vmatmul.msk.f32.gmra.mxu1 %vm1455_vm14, %v7960_v30  ;;  %v2182_v30 = vpop.permute.xlu0 %2181 }
 0x484   :  { %5772 = vmatpush.xpose.msk.msrb.mxu0 %vm1455_vm14, %v2204_v35  ;;  %v8075_v61 = vpop.permute.xlu1 %2201  ;;  %v6037_v35 = vunpack.i.h.bf16 %v6035_v56 }
 0x486   :  { %v6040_v23 = vpop.permute.xlu2 %6039 }
 0x487   :  { %5773 = vmatmul.msk.f32.vlgmr.msrb.gmra.mxu0 %vm1455_vm14, %v2172_v57  ;;  %v6041_v52 = vunpack.i.l.bf16 %v6040_v23  ;;  %v6042_v45 = vunpack.i.h.bf16 %v6040_v23  ;;  %v8133_v23 = vld [vmem:[%s10843_s8 + $0x38] sm:$0xff] }
 0x489   :  { %5740 = vmatmul.msk.f32.gmra.mxu1 %vm1455_vm14, %v7970_v46  ;;  %v8068_v46 = vld [vmem:[%s10843_s8 + $0x8] sm:$0xff]  ;;  %v2188_v12 = vpop.permute.xlu0 %2187 }
 0x48c   :  { %v6030_v53 = vpop.permute.xlu1 %6029 }
 0x48e   :  { %v1569_v39 = vpop.f32.mrf.mxu1 }
 0x48f   :  { %5774 = vmatmul.msk.f32.gmra.mxu0 %vm1455_vm14, %v2174_v7  ;;  %v8060_v55 = vadd.f32 %v1569_v39, %v8054_v49  ;;  %v8112_v7 = vld [vmem:[%s10843_s8 + $0x28] sm:$0xff]  ;;  %v8122_v39 = vld [vmem:[%s10843_s8 + $0x30] sm:$0xff] }
 0x491   :  { %1617 = vmax.xlane.f32.xlu2 %v8060_v55  ;;  %v8087_v11 = vpop.permute.xlu0 %2193 }
 0x496   :  { %v1572_v4 = vpop.f32.mrf.mxu1 }
 0x497   :  { %5775 = vmatmul.msk.f32.gmra.mxu0 %vm1455_vm14, %v2176_v8  ;;  %v8072_v54 = vadd.f32 %v1572_v4, %v8068_v46 }
 0x499   :  { %1619 = vmax.xlane.f32.xlu0 %v8072_v54  ;;  %v2200_v25 = vpop.permute.xlu0 %2199 }
 0x49e   :  { %v1575_v31 = vpop.f32.mrf.mxu1 }
 0x49f   :  { %5776 = vmatmul.msk.f32.gmra.mxu0 %vm1455_vm14, %v2178_v21  ;;  %v8084_v51 = vadd.f32 %v1575_v31, %v8080_v48 }
 0x4a1   :  { %1621 = vmax.xlane.f32.xlu2 %v8084_v51  ;;  %v6025_v21 = vpop.permute.xlu0 %6024 }
 0x4a2   :  { %v6026_v8 = vunpack.i.l.bf16 %v6025_v21 }
 0x4a6   :  { %v1578_v59 = vpop.f32.mrf.mxu1 }
 0x4a7   :  { %5777 = vmatmul.msk.f32.gmra.mxu0 %vm1455_vm14, %v2180_v50  ;;  %v6050_v27 = vpop.permute.xlu2 %6049  ;;  %v8096_v18 = vadd.f32 %v1578_v59, %v8092_v10  ;;  %v6036_v50 = vunpack.i.l.bf16 %v6035_v56  ;;  %v6032_v56 = vunpack.i.h.bf16 %v6030_v53 }
 0x4a8   :  { %v6051_v60 = vunpack.i.l.bf16 %v6050_v27  ;;  %v6052_v13 = vunpack.i.h.bf16 %v6050_v27 }
 0x4a9   :  { %1623 = vmax.xlane.f32.xlu0 %v8096_v18 }
 0x4aa   :  { %2780 = vmatpush.msra.mxu1 %v6051_v60 }
 0x4ac   :  { %2781 = vmatpush.msra.mxu1 %v6052_v13 }
 0x4ae   :  { %v1581_v41 = vpop.f32.mrf.mxu1  ;;  %v6045_v36 = vpop.permute.xlu1 %6044 }
 0x4af   :  { %5778 = vmatmul.msk.f32.gmra.mxu0 %vm1455_vm14, %v2182_v30  ;;  %v6046_v44 = vunpack.i.l.bf16 %v6045_v36  ;;  %v8106_v5 = vadd.f32 %v1581_v41, %v8102_v29  ;;  %v6047_v1 = vunpack.i.h.bf16 %v6045_v36  ;;  %v6027_v30 = vunpack.i.h.bf16 %v6025_v21 }
 0x4b1   :  { %1625 = vmax.xlane.f32.xlu2 %v8106_v5  ;;  %2782 = vmatpush.msra.mxu1 %v6046_v44 }
 0x4b3   :  { %2783 = vmatpush.msra.mxu1 %v6047_v1 }
 0x4b5   :  { %2784 = vmatpush.msra.mxu1 %v6041_v52 }
 0x4b6   :  { %v1584_v57 = vpop.f32.mrf.mxu1 }
 0x4b7   :  { %5779 = vmatmul.msk.f32.gmra.mxu0 %vm1455_vm14, %v2184_v42  ;;  %v8116_v32 = vadd.f32 %v1584_v57, %v8112_v7  ;;  %2785 = vmatpush.msra.mxu1 %v6042_v45  ;;  %v6031_v42 = vunpack.i.l.bf16 %v6030_v53 }
 0x4b9   :  { %1627 = vmax.xlane.f32.xlu1 %v8116_v32  ;;  %2786 = vmatpush.msra.mxu1 %v6036_v50 }
 0x4bb   :  { %2787 = vmatpush.msra.mxu1 %v6037_v35 }
 0x4bd   :  { %2788 = vmatpush.msra.mxu1 %v6026_v8 }
 0x4be   :  { %v1587_v4 = vpop.f32.mrf.mxu1 }
 0x4bf   :  { %5780 = vmatmul.msk.f32.gmra.mxu0 %vm1455_vm14, %v8037_v6  ;;  %v8127_v31 = vadd.f32 %v1587_v4, %v8122_v39  ;;  %2789 = vmatpush.msra.mxu1 %v6027_v30  ;;  %v8143_v6 = vld [vmem:[%s10843_s8 + $0x40] sm:$0xff] }
 0x4c1   :  { %1629 = vmax.xlane.f32.xlu0 %v8127_v31  ;;  %2790 = vmatpush.msra.mxu1 %v6031_v42 }
 0x4c3   :  { %2791 = vmatpush.msra.mxu1 %v6032_v56 }
 0x4c6   :  { %v1590_v59 = vpop.f32.mrf.mxu1 }
 0x4c7   :  { %5781 = vmatmul.msk.f32.gmra.mxu0 %vm1455_vm14, %v2188_v12  ;;  %v8137_v27 = vadd.f32 %v1590_v59, %v8133_v23  ;;  %v8154_v12 = vld [vmem:[%s10843_s8 + $0x48] sm:$0xff] }
 0x4c9   :  { %1631 = vmax.xlane.f32.xlu0 %v8137_v27 }
 0x4ce   :  { %v1593_v53 = vpop.f32.mrf.mxu1 }
 0x4cf   :  { %5782 = vmatmul.msk.f32.gmra.mxu0 %vm1455_vm14, %v8047_v37  ;;  %v8148_v60 = vadd.f32 %v1593_v53, %v8143_v6 }
 0x4d1   :  { %1633 = vmax.xlane.f32.xlu0 %v8148_v60 }
 0x4d6   :  { %v1596_v13 = vpop.f32.mrf.mxu1 }
 0x4d7   :  { %5783 = vmatmul.msk.f32.gmra.mxu0 %vm1455_vm14, %v8044_v33  ;;  %v8159_v41 = vadd.f32 %v1596_v13, %v8154_v12 }
 0x4d9   :  { %1635 = vmax.xlane.f32.xlu2 %v8159_v41 }
 0x4df   :  { %5784 = vmatmul.msk.f32.gmra.mxu0 %vm1455_vm14, %v8087_v11 }
 0x4e7   :  { %5785 = vmatmul.msk.f32.gmra.mxu0 %vm1455_vm14, %v8063_v15 }
 0x4ef   :  { %5786 = vmatmul.msk.f32.gmra.mxu0 %vm1455_vm14, %v8056_v17 }
 0x4f7   :  { %5787 = vmatmul.msk.f32.gmra.mxu0 %vm1455_vm14, %v2200_v25 }
 0x4ff   :  { %5788 = vmatmul.msk.f32.gmra.mxu0 %vm1455_vm14, %v8075_v61 }
 0x504   :  { %v1618_v33 = vpop.xlane.xlu2 %1617  ;;  %v2316_v37 = vpop.f32.mrf.mxu0 }
 0x505   :  { %v1649_v36 = vsub.f32 %v8060_v55, %v1618_v33  ;;  %v8173_v44 = vadd.f32 %v2316_v37, %v8054_v49 }
 0x507   :  { %v1665_v1 = vmul.f32 1.442695, %v1649_v36  ;;  %2364 = vmax.xlane.f32.xlu1 %v8173_v44  ;;  %v6053_v36 = vpack.i.bf16 %v7905_v0, %v7916_v20 }
 0x509   :  { %6177 = vpow2.f32 %v1665_v1 }
 0x50c   :  { %v1620_v15 = vpop.xlane.xlu0 %1619  ;;  %v2319_v11 = vpop.f32.mrf.mxu0 }
 0x50d   :  { %v1650_v17 = vsub.f32 %v8072_v54, %v1620_v15  ;;  %v8178_v25 = vadd.f32 %v2319_v11, %v8068_v46  ;;  %v74_v11 = vld [vmem:[%s10843_s8 + $0x50] sm:$0xff] }
 0x50f   :  { %v8180_v52 = vpop.eup %6177  ;;  %v1667_v61 = vmul.f32 1.442695, %v1650_v17  ;;  %2366 = vmax.xlane.f32.xlu2 %v8178_v25 }
 0x510   :  { %1697 = vadd.xlane.f32.xlu0 %v8180_v52 }
 0x511   :  { %6179 = vpow2.f32 %v1667_v61 }
 0x514   :  { %v2322_v49 = vpop.f32.mrf.mxu0  ;;  %v1622_v55 = vpop.xlane.xlu2 %1621 }
 0x515   :  { %v8185_v45 = vadd.f32 %v2322_v49, %v8080_v48  ;;  %v1651_v46 = vsub.f32 %v8084_v51, %v1622_v55 }
 0x517   :  { %v8187_v57 = vpop.eup %6179  ;;  %2368 = vmax.xlane.f32.xlu1 %v8185_v45  ;;  %v1669_v54 = vmul.f32 1.442695, %v1651_v46 }
 0x518   :  { %1699 = vadd.xlane.f32.xlu0 %v8187_v57 }
 0x519   :  { %6181 = vpow2.f32 %v1669_v54 }
 0x51c   :  { %v1624_v50 = vpop.xlane.xlu0 %1623  ;;  %v2325_v21 = vpop.f32.mrf.mxu0 }
 0x51d   :  { %v1652_v35 = vsub.f32 %v8096_v18, %v1624_v50  ;;  %v8194_v8 = vadd.f32 %v2325_v21, %v8092_v10 }
 0x51f   :  { %v1671_v30 = vmul.f32 1.442695, %v1652_v35  ;;  %v8200_v51 = vpop.eup %6181 }
 0x520   :  { %2370 = vmax.xlane.f32.xlu0 %v8194_v8 }
 0x521   :  { %6183 = vpow2.f32 %v1671_v30 }
 0x524   :  { %v2328_v48 = vpop.f32.mrf.mxu0  ;;  %v1626_v42 = vpop.xlane.xlu2 %1625 }
 0x525   :  { %v8198_v4 = vadd.f32 %v2328_v48, %v8102_v29  ;;  %v1653_v10 = vsub.f32 %v8106_v5, %v1626_v42  ;;  %v1599_v29 = vpop.f32.mrf.mxu1 }
 0x526   :  { %v8237_v61 = vadd.f32 %v1599_v29, %v74_v11 }
 0x527   :  { %v8202_v56 = vpop.eup %6183  ;;  %2372 = vmax.xlane.f32.xlu2 %v8198_v4  ;;  %v1673_v59 = vmul.f32 1.442695, %v1653_v10 }
 0x528   :  { %1701 = vadd.xlane.f32.xlu0 %v8200_v51  ;;  %1703 = vadd.xlane.f32.xlu1 %v8202_v56 }
 0x529   :  { %6185 = vpow2.f32 %v1673_v59 }
 0x52c   :  { %v2331_v18 = vpop.f32.mrf.mxu0 }
 0x52d   :  { %v8209_v53 = vadd.f32 %v2331_v18, %v8112_v7  ;;  %v1602_v5 = vpop.f32.mrf.mxu1  ;;  %v8222_v7 = vld [vmem:[%s10843_s8 + $0x58] sm:$0xff] }
 0x52e   :  { %v8227_v1 = vadd.f32 %v1602_v5, %v8222_v7 }
 0x52f   :  { %v8215_v37 = vpop.eup %6185 }
 0x530   :  { %2374 = vmax.xlane.f32.xlu1 %v8209_v53 }
 0x534   :  { %v2334_v13 = vpop.f32.mrf.mxu0  ;;  %v1630_v0 = vpop.xlane.xlu0 %1629 }
 0x535   :  { %v8213_v33 = vadd.f32 %v2334_v13, %v8122_v39  ;;  %v6058_v39 = vpack.i.bf16 %v7885_v14, %v7894_v9  ;;  %v1628_v9 = vpop.xlane.xlu1 %1627  ;;  %v1655_v54 = vsub.f32 %v8127_v31, %v1630_v0 }
 0x536   :  { %v1654_v29 = vsub.f32 %v8116_v32, %v1628_v9 }
 0x537   :  { %2376 = vmax.xlane.f32.xlu0 %v8213_v33  ;;  %v1677_v48 = vmul.f32 1.442695, %v1655_v54 }
 0x538   :  { %1705 = vadd.xlane.f32.xlu1 %v8215_v37  ;;  %v1675_v5 = vmul.f32 1.442695, %v1654_v29 }
 0x53c   :  { %v2337_v15 = vpop.f32.mrf.mxu0  ;;  %v8244_v14 = vpop.xlane.xlu0 %1631 }
 0x53d   :  { %v8241_v20 = vadd.f32 %v2337_v15, %v8133_v23 }
 0x53f   :  { %6054 = vrot.lane.b32.xlu2 %v6053_v36, %s6531_s5 }
 0x540   :  { %1639 = vmax.xlane.f32.xlu1 %v8227_v1 }
 0x544   :  { %v2340_v17 = vpop.f32.mrf.mxu0  ;;  %v8257_v21 = vpop.xlane.xlu0 %1633 }
 0x545   :  { %v8251_v46 = vadd.f32 %v2340_v17, %v8143_v6 }
 0x54b   :  { %6059 = vrot.lane.b32.xlu0 %v6058_v39, %s6531_s5 }
 0x54c   :  { %v2343_v49 = vpop.f32.mrf.mxu0  ;;  %v8255_v23 = vpop.xlane.xlu2 %1635 }
 0x54d   :  { %v8247_v55 = vadd.f32 %v2343_v49, %v8154_v12  ;;  %v1658_v43 = vsub.f32 %v8159_v41, %v8255_v23 }
 0x54f   :  { %v1683_v62 = vmul.f32 1.442695, %v1658_v43 }
 0x554   :  { %v2346_v35 = vpop.f32.mrf.mxu0 }
 0x555   :  { %v8260_v42 = vadd.f32 %v2346_v35, %v74_v11 }
 0x568   :  { %1637 = vmax.xlane.f32.xlu2 %v8237_v61 }
 0x570   :  { %2378 = vmax.xlane.f32.xlu2 %v8241_v20 }
 0x575   :  { %2382 = vmax.xlane.f32.xlu0 %v8247_v55 }
 0x578   :  { %2380 = vmax.xlane.f32.xlu2 %v8251_v46 }
 0x57a   :  { %v2365_v50 = vpop.xlane.xlu1 %2364 }
 0x57b   :  { %v2396_v30 = vsub.f32 %v8173_v44, %v2365_v50 }
 0x57d   :  { %v2412_v12 = vmul.f32 1.442695, %v2396_v30 }
 0x57f   :  { %6187 = vpow2.f32 %v2412_v12 }
 0x580   :  { %2384 = vmax.xlane.f32.xlu2 %v8260_v42  ;;  %6189 = vpow2.f32 %v1677_v48 }
 0x582   :  { %v2367_v6 = vpop.xlane.xlu2 %2366 }
 0x583   :  { %v2397_v10 = vsub.f32 %v8178_v25, %v2367_v6  ;;  %v1698_v31 = vpop.xlane.xlu0 %1697 }
 0x584   :  { %6191 = vrcp.f32 %v1698_v31  ;;  %v1740_v32 = vand.u32 2147483648, %v1698_v31  ;;  %v1738_v9 = vand.u32 2147483647, %v1698_v31  ;;  %vm1734_vm0 = vweird.f32 %v1698_v31 }
 0x585   :  { %v8264_v18 = vpop.eup %6187  ;;  %v2414_v59 = vmul.f32 1.442695, %v2397_v10 }
 0x586   :  { %2444 = vadd.xlane.f32.xlu1 %v8264_v18  ;;  %v8268_v44 = vpop.eup %6189  ;;  %v1741_v35 = vor.u32 1.1754944e-38, %v1740_v32  ;;  %vm1739_vm2 = vcmp.eq.f32.partialorder %v1738_v9, 8.507059e+37 }
 0x587   :  { %6193 = vpow2.f32 %v2414_v59 }
 0x588   :  { %1709 = vadd.xlane.f32.xlu2 %v8268_v44 }
 0x58a   :  { %v6192_v13 = vpop.eup %6191  ;;  %v2369_v36 = vpop.xlane.xlu1 %2368 }
 0x58b   :  { %v1730_v39 = vmul.f32 %v6192_v13, %v1698_v31  ;;  %v1700_v15 = vpop.xlane.xlu0 %1699  ;;  %v2398_v25 = vsub.f32 %v8185_v45, %v2369_v36  ;;  %vm1735_vm15 = vweird.f32 %v6192_v13  ;;  %v1656_v31 = vsub.f32 %v8137_v27, %v8244_v14 }
 0x58c   :  { %6195 = vrcp.f32 %v1700_v15  ;;  %vm1736_vm1 = vmor %vm1734_vm0, %vm1735_vm15  ;;  %vm1748_vm4 = vweird.f32 %v1700_v15 }
 0x58d   :  { %v8272_v11 = vpop.eup %6193  ;;  %v1731_v17 = vsub.f32 1.0, %v1730_v39  ;;  %v2416_v0 = vmul.f32 1.442695, %v2398_v25  ;;  %6197 = vpow2.f32 %v1675_v5  ;;  %v1752_v25 = vand.u32 2147483647, %v1700_v15 }
 0x58e   :  { %2446 = vadd.xlane.f32.xlu1 %v8272_v11  ;;  %v1679_v27 = vmul.f32 1.442695, %v1656_v31 }
 0x58f   :  { %v1732_v49 = vmul.f32 %v6192_v13, %v1731_v17  ;;  %6199 = vpow2.f32 %v2416_v0  ;;  %vm1753_vm6 = vcmp.eq.f32.partialorder %v1752_v25, 8.507059e+37 }
 0x591   :  { %v1733_v54 = vadd.f32 %v6192_v13, %v1732_v49 }
 0x592   :  { %v6196_v50 = vpop.eup %6195 }
 0x593   :  { %v1737_v30 = vsel %vm1736_vm1, %v6192_v13, %v1733_v54  ;;  %v1744_v45 = vmul.f32 %v6196_v50, %v1700_v15  ;;  %v2371_v48 = vpop.xlane.xlu0 %2370  ;;  %v8275_v12 = vpop.eup %6197  ;;  %v1754_v13 = vand.u32 2147483648, %v1700_v15  ;;  %vm1749_vm3 = vweird.f32 %v6196_v50 }
 0x594   :  { %v2399_v6 = vsub.f32 %v8194_v8, %v2371_v48  ;;  %v1742_v10 = vsel %vm1739_vm2, %v1741_v35, %v1737_v30  ;;  %v1605_v8 = vpop.f32.mrf.mxu1  ;;  %vm1750_vm5 = vmor %vm1748_vm4, %vm1749_vm3 }
 0x595   :  { %v8278_v59 = vpop.eup %6199  ;;  %v1745_v29 = vsub.f32 1.0, %v1744_v45  ;;  %v1953_v5 = vmul.f32 %v8180_v52, %v1742_v10  ;;  %v8288_v52 = vld [vmem:[%s10843_s8 + $0x60] sm:$0xff]  ;;  %v1755_v0 = vor.u32 1.1754944e-38, %v1754_v13 }
 0x596   :  { %v2418_v36 = vmul.f32 1.442695, %v2399_v6  ;;  %1707 = vadd.xlane.f32.xlu1 %v8275_v12  ;;  %2448 = vadd.xlane.f32.xlu0 %v8278_v59  ;;  %v8294_v15 = vadd.f32 %v1605_v8, %v8288_v52 }
 0x597   :  { %1985 = vmatmul.f32.vlgmr.msrb.gmra.mxu2 %v1953_v5  ;;  %v1746_v39 = vmul.f32 %v6196_v50, %v1745_v29 }
 0x598   :  { %6201 = vpow2.f32 %v2418_v36 }
 0x599   :  { %v1747_v17 = vadd.f32 %v6196_v50, %v1746_v39 }
 0x59a   :  { %v2373_v14 = vpop.xlane.xlu2 %2372 }
 0x59b   :  { %v2400_v32 = vsub.f32 %v8198_v4, %v2373_v14  ;;  %v1702_v49 = vpop.xlane.xlu0 %1701  ;;  %v8291_v9 = vpop.xlane.xlu1 %1703  ;;  %v1751_v54 = vsel %vm1750_vm5, %v6196_v50, %v1747_v17 }
 0x59c   :  { %6203 = vrcp.f32 %v1702_v49  ;;  %v1756_v35 = vsel %vm1753_vm6, %v1755_v0, %v1751_v54  ;;  %v2349_v4 = vpop.f32.mrf.mxu0  ;;  %v1766_v0 = vand.u32 2147483647, %v1702_v49  ;;  %v1608_v54 = vpop.f32.mrf.mxu1  ;;  %vm1762_vm8 = vweird.f32 %v1702_v49 }
 0x59d   :  { %v2420_v30 = vmul.f32 1.442695, %v2400_v32  ;;  %6205 = vrcp.f32 %v8291_v9  ;;  %v1954_v45 = vmul.f32 %v8187_v57, %v1756_v35  ;;  %v8312_v17 = vadd.f32 %v2349_v4, %v8222_v7  ;;  %v77_v35 = vld [vmem:[%s10843_s8 + $0x68] sm:$0xff] }
 0x59e   :  { %v8298_v48 = vpop.eup %6201  ;;  %6207 = vpow2.f32 %v1679_v27  ;;  %1641 = vmax.xlane.f32.xlu0 %v8294_v15  ;;  %v1768_v32 = vand.u32 2147483648, %v1702_v49  ;;  %vm1767_vm10 = vcmp.eq.f32.partialorder %v1766_v0, 8.507059e+37  ;;  %vm1776_vm12 = vweird.f32 %v8291_v9 }
 0x59f   :  { %6209 = vpow2.f32 %v2420_v30  ;;  %1988 = vmatmul.f32.gmra.mxu2 %v1954_v45  ;;  %2450 = vadd.xlane.f32.xlu1 %v8298_v48 }
 0x5a2   :  { %v6204_v50 = vpop.eup %6203  ;;  %v6055_v6 = vpop.permute.xlu2 %6054 }
 0x5a3   :  { %v8302_v10 = vpop.eup %6205  ;;  %v1758_v29 = vmul.f32 %v6204_v50, %v1702_v49  ;;  %v6056_v5 = vunpack.i.l.bf16 %v6055_v6  ;;  %v2375_v31 = vpop.xlane.xlu1 %2374  ;;  %v6057_v8 = vunpack.i.h.bf16 %v6055_v6  ;;  %vm1763_vm7 = vweird.f32 %v6204_v50 }
 0x5a4   :  { %v8304_v36 = vpop.eup %6207  ;;  %v1772_v57 = vmul.f32 %v8302_v10, %v8291_v9  ;;  %v2401_v13 = vsub.f32 %v8209_v53, %v2375_v31  ;;  %v2352_v30 = vpop.f32.mrf.mxu0  ;;  %vm1764_vm9 = vmor %vm1762_vm8, %vm1763_vm7  ;;  %v1769_v6 = vor.u32 1.1754944e-38, %v1768_v32  ;;  %vm1777_vm11 = vweird.f32 %v8302_v10 }
 0x5a5   :  { %v8309_v39 = vpop.eup %6209  ;;  %v1759_v25 = vsub.f32 1.0, %v1758_v29  ;;  %2792 = vmatpush.msra.mxu1 %v6056_v5  ;;  %v8321_v29 = vadd.f32 %v1608_v54, %v77_v35  ;;  %vm1778_vm13 = vmor %vm1776_vm12, %vm1777_vm11 }
 0x5a6   :  { %v1773_v27 = vsub.f32 1.0, %v1772_v57  ;;  %v2422_v14 = vmul.f32 1.442695, %v2401_v13  ;;  %2452 = vadd.xlane.f32.xlu2 %v8309_v39  ;;  %1711 = vadd.xlane.f32.xlu0 %v8304_v36 }
 0x5a7   :  { %2386 = vmax.xlane.f32.xlu1 %v8312_v17  ;;  %2793 = vmatpush.msra.mxu1 %v6057_v8  ;;  %v1760_v53 = vmul.f32 %v6204_v50, %v1759_v25  ;;  %v1782_v25 = vand.u32 2147483648, %v8291_v9  ;;  %v8328_v8 = vadd.f32 %v2352_v30, %v8288_v52 }
 0x5a8   :  { %v1774_v7 = vmul.f32 %v8302_v10, %v1773_v27  ;;  %6211 = vpow2.f32 %v2422_v14 }
 0x5a9   :  { %v1761_v45 = vadd.f32 %v6204_v50, %v1760_v53  ;;  %v1783_v32 = vor.u32 1.1754944e-38, %v1782_v25 }
 0x5aa   :  { %v2377_v4 = vpop.xlane.xlu0 %2376  ;;  %v1775_v13 = vadd.f32 %v8302_v10, %v1774_v7 }
 0x5ab   :  { %v2402_v5 = vsub.f32 %v8213_v33, %v2377_v4  ;;  %v1706_v31 = vpop.xlane.xlu1 %1705  ;;  %v1765_v57 = vsel %vm1764_vm9, %v6204_v50, %v1761_v45  ;;  %v1780_v33 = vand.u32 2147483647, %v8291_v9  ;;  %v1657_v50 = vsub.f32 %v8148_v60, %v8257_v21  ;;  %v78_v9 = vld [vmem:[%s10843_s8 + $0x70] sm:$0xff] }
 0x5ac   :  { %6213 = vrcp.f32 %v1706_v31  ;;  %v1770_v49 = vsel %vm1767_vm10, %v1769_v6, %v1765_v57  ;;  %v1779_v52 = vsel %vm1778_vm13, %v8302_v10, %v1775_v13  ;;  %v2355_v7 = vpop.f32.mrf.mxu0  ;;  %v1796_v21 = vand.u32 2147483648, %v1706_v31 }
 0x5ad   :  { %v2424_v27 = vmul.f32 1.442695, %v2402_v5  ;;  %v1955_v14 = vmul.f32 %v8200_v51, %v1770_v49  ;;  %v1611_v51 = vpop.f32.mrf.mxu1  ;;  %vm1781_vm15 = vcmp.eq.f32.partialorder %v1780_v33, 8.507059e+37  ;;  %v1681_v45 = vmul.f32 1.442695, %v1657_v50 }
 0x5ae   :  { %v8333_v0 = vpop.eup %6211  ;;  %2388 = vmax.xlane.f32.xlu2 %v8328_v8  ;;  %v1784_v53 = vsel %vm1781_vm15, %v1783_v32, %v1779_v52  ;;  %v8344_v4 = vadd.f32 %v1611_v51, %v78_v9  ;;  %v8350_v5 = vadd.f32 %v2355_v7, %v77_v35  ;;  %v1794_v13 = vand.u32 2147483647, %v1706_v31  ;;  %v79_v35 = vld [vmem:[%s10843_s8 + $0x78] sm:$0xff] }
 0x5af   :  { %6215 = vpow2.f32 %v2424_v27  ;;  %1991 = vmatmul.f32.gmra.mxu2 %v1955_v14  ;;  %1643 = vmax.xlane.f32.xlu1 %v8321_v29  ;;  %v1956_v60 = vmul.f32 %v8202_v56, %v1784_v53  ;;  %vm1790_vm1 = vweird.f32 %v1706_v31  ;;  %v1797_v49 = vor.u32 1.1754944e-38, %v1796_v21  ;;  %v8395_v21 = vld [vmem:[%s10840_s7 + $0x58] sm:$0xff] }
 0x5b0   :  { %2454 = vadd.xlane.f32.xlu0 %v8333_v0  ;;  %6217 = vpow2.f32 %v1681_v45  ;;  %vm1795_vm3 = vcmp.eq.f32.partialorder %v1794_v13, 8.507059e+37  ;;  %v8382_v45 = vld [vmem:[%s10840_s7 + $0x68] sm:$0xff] }
 0x5b2   :  { %v6214_v54 = vpop.eup %6213 }
 0x5b3   :  { %v1786_v30 = vmul.f32 %v6214_v54, %v1706_v31  ;;  %vm1791_vm0 = vweird.f32 %v6214_v54 }
 0x5b4   :  { %vm1792_vm2 = vmor %vm1790_vm1, %vm1791_vm0  ;;  %v2358_v31 = vpop.f32.mrf.mxu0 }
 0x5b5   :  { %v8346_v10 = vpop.eup %6215  ;;  %v1787_v6 = vsub.f32 1.0, %v1786_v30  ;;  %v1614_v27 = vpop.f32.mrf.mxu1  ;;  %v8370_v7 = vadd.f32 %v2358_v31, %v78_v9  ;;  %v8375_v30 = vld [vmem:[%s10840_s7 + $0x70] sm:$0xff]  ;;  %v8389_v9 = vld [vmem:[%s10840_s7 + $0x60] sm:$0xff] }
 0x5b6   :  { %1645 = vmax.xlane.f32.xlu2 %v8344_v4  ;;  %v8358_v50 = vpop.eup %6217  ;;  %v8360_v51 = vadd.f32 %v1614_v27, %v79_v35  ;;  %v8422_v27 = vld [vmem:[%s10840_s7 + $0x38] sm:$0xff]  ;;  %v8455_v31 = vld [vmem:[%s10840_s7 + $0x10] sm:$0xff] }
 0x5b7   :  { %v1788_v57 = vmul.f32 %v6214_v54, %v1787_v6  ;;  %2456 = vadd.xlane.f32.xlu1 %v8346_v10  ;;  %1994 = vmatmul.f32.gmra.mxu2 %v1956_v60 }
 0x5b8   :  { %2390 = vmax.xlane.f32.xlu0 %v8350_v5 }
 0x5b9   :  { %v1789_v25 = vadd.f32 %v6214_v54, %v1788_v57 }
 0x5bb   :  { %v1793_v56 = vsel %vm1792_vm2, %v6214_v54, %v1789_v25  ;;  %v8367_v54 = vld [vmem:[%s10840_s7 + $0x78] sm:$0xff]  ;;  %v8410_v25 = vld [vmem:[%s10840_s7 + $0x48] sm:$0xff] }
 0x5bc   :  { %v1798_v14 = vsel %vm1795_vm3, %v1797_v49, %v1793_v56  ;;  %v2361_v60 = vpop.f32.mrf.mxu0  ;;  %v8416_v49 = vld [vmem:[%s10840_s7 + $0x40] sm:$0xff]  ;;  %v8428_v56 = vld [vmem:[%s10840_s7 + $0x30] sm:$0xff] }
 0x5bd   :  { %v6060_v33 = vpop.permute.xlu0 %6059  ;;  %v1957_v52 = vmul.f32 %v8215_v37, %v1798_v14  ;;  %v1640_v37 = vpop.xlane.xlu1 %1639  ;;  %v8398_v13 = vadd.f32 %v2361_v60, %v79_v35  ;;  %v8437_v14 = vld [vmem:[%s10840_s7 + $0x28] sm:$0xff] }
 0x5be   :  { %v6061_v32 = vunpack.i.l.bf16 %v6060_v33  ;;  %v6062_v53 = vunpack.i.h.bf16 %v6060_v33  ;;  %v1660_v6 = vsub.f32 %v8227_v1, %v1640_v37  ;;  %v8403_v1 = vld [vmem:[%s10840_s7 + $0x50] sm:$0xff]  ;;  %v8443_v33 = vld [vmem:[%s10840_s7 + $0x20] sm:$0xff] }
 0x5bf   :  { %1713 = vadd.xlane.f32.xlu1 %v8358_v50  ;;  %1997 = vmatmul.f32.gmra.mxu2 %v1957_v52  ;;  %v8467_v37 = vld [vmem:[%s10840_s7] sm:$0xff] }
 0x5c0   :  { %1647 = vmax.xlane.f32.xlu0 %v8360_v51  ;;  %2794 = vmatpush.msra.mxu1 %v6061_v32  ;;  %v1687_v57 = vmul.f32 1.442695, %v1660_v6  ;;  %v8449_v32 = vld [vmem:[%s10840_s7 + $0x18] sm:$0xff] }
 0x5c2   :  { %2795 = vmatpush.msra.mxu1 %v6062_v53  ;;  %6219 = vpow2.f32 %v1687_v57  ;;  %v8461_v53 = vld [vmem:[%s10840_s7 + $0x8] sm:$0xff] }
 0x5c4   :  { %3057 = vmatpush.msrb.mxu1 %v8367_v54 }
 0x5c6   :  { %3058 = vmatpush.msrb.mxu1 %v8375_v30 }
 0x5c7   :  { %2392 = vmax.xlane.f32.xlu1 %v8370_v7 }
 0x5c8   :  { %3059 = vmatpush.msrb.mxu1 %v8382_v45  ;;  %v8431_v35 = vpop.eup %6219 }
 0x5ca   :  { %3060 = vmatpush.msrb.mxu1 %v8389_v9 }
 0x5cc   :  { %3061 = vmatpush.msrb.mxu1 %v8395_v21 }
 0x5ce   :  { %3062 = vmatpush.msrb.mxu1 %v8403_v1 }
 0x5cf   :  { %2394 = vmax.xlane.f32.xlu1 %v8398_v13 }
 0x5d0   :  { %3063 = vmatpush.msrb.mxu1 %v8410_v25 }
 0x5d2   :  { %3064 = vmatpush.msrb.mxu1 %v8416_v49 }
 0x5d4   :  { %3065 = vmatpush.msrb.mxu1 %v8422_v27 }
 0x5d6   :  { %3066 = vmatpush.msrb.mxu1 %v8428_v56 }
 0x5d7   :  { %1719 = vadd.xlane.f32.xlu1 %v8431_v35 }
 0x5d8   :  { %3067 = vmatpush.msrb.mxu1 %v8437_v14 }
 0x5da   :  { %3068 = vmatpush.msrb.mxu1 %v8443_v33 }
 0x5db   :  { %v1638_v52 = vpop.xlane.xlu2 %1637 }
 0x5dc   :  { %3069 = vmatpush.msrb.mxu1 %v8449_v32  ;;  %v1659_v34 = vsub.f32 %v8237_v61, %v1638_v52  ;;  %v2038_v61 = vld [vmem:[%s10844_s10 + $0x20] sm:$0xff]  ;;  %v2037_v52 = vld [vmem:[%s10844_s10 + $0x18] sm:$0xff] }
 0x5de   :  { %3070 = vmatpush.msrb.mxu1 %v8455_v31 }
 0x5e0   :  { %3071 = vmatpush.msrb.mxu1 %v8461_v53 }
 0x5e2   :  { %3072 = vmatpush.msrb.mxu1 %v8467_v37 }
 0x5e3   :  { %v2379_v6 = vpop.xlane.xlu2 %2378 }
 0x5e4   :  { %v2403_v60 = vsub.f32 %v8241_v20, %v2379_v6  ;;  %v1685_v6 = vmul.f32 1.442695, %v1659_v34  ;;  %v2040_v34 = vld [vmem:[%s10844_s10 + $0x30] sm:$0xff] }
 0x5e6   :  { %v2426_v57 = vmul.f32 1.442695, %v2403_v60 }
 0x5e8   :  { %6221 = vpow2.f32 %v2426_v57  ;;  %v2383_v16 = vpop.xlane.xlu0 %2382  ;;  %v2036_v57 = vld [vmem:[%s10844_s10 + $0x10] sm:$0xff] }
 0x5e9   :  { %6223 = vpow2.f32 %v1683_v62  ;;  %v2405_v20 = vsub.f32 %v8247_v55, %v2383_v16  ;;  %v2039_v16 = vld [vmem:[%s10844_s10 + $0x28] sm:$0xff] }
 0x5eb   :  { %v2381_v2 = vpop.xlane.xlu2 %2380  ;;  %v2430_v41 = vmul.f32 1.442695, %v2405_v20 }
 0x5ec   :  { %v2404_v22 = vsub.f32 %v8251_v46, %v2381_v2  ;;  %v2041_v2 = vld [vmem:[%s10844_s10 + $0x38] sm:$0xff] }
 0x5ed   :  { %2098 = vmatpush.msrb.mxu3 %v2041_v2 }
 0x5ee   :  { %v8474_v26 = vpop.eup %6221  ;;  %v2428_v47 = vmul.f32 1.442695, %v2404_v22 }
 0x5ef   :  { %2458 = vadd.xlane.f32.xlu2 %v8474_v26  ;;  %v8479_v23 = vpop.eup %6223  ;;  %2099 = vmatpush.msrb.mxu3 %v2040_v34 }
 0x5f0   :  { %6225 = vpow2.f32 %v2428_v47 }
 0x5f1   :  { %6227 = vpow2.f32 %v1685_v6  ;;  %2100 = vmatpush.msrb.mxu3 %v2039_v16 }
 0x5f2   :  { %6229 = vpow2.f32 %v2430_v41  ;;  %v2035_v41 = vld [vmem:[%s10844_s10 + $0x8] sm:$0xff] }
 0x5f3   :  { %v2385_v60 = vpop.xlane.xlu2 %2384  ;;  %2101 = vmatpush.msrb.mxu3 %v2038_v61 }
 0x5f4   :  { %v2406_v22 = vsub.f32 %v8260_v42, %v2385_v60 }
 0x5f5   :  { %2102 = vmatpush.msrb.mxu3 %v2037_v52 }
 0x5f6   :  { %v8481_v43 = vpop.eup %6225  ;;  %v2432_v62 = vmul.f32 1.442695, %v2406_v22  ;;  %v2034_v22 = vld [vmem:[%s10844_s10] sm:$0xff] }
 0x5f7   :  { %1715 = vadd.xlane.f32.xlu2 %v8479_v23  ;;  %2460 = vadd.xlane.f32.xlu0 %v8481_v43  ;;  %v8498_v55 = vpop.eup %6227 }
 0x5f8   :  { %v8502_v42 = vpop.eup %6229  ;;  %2103 = vmatpush.msrb.mxu3 %v2036_v57 }
 0x5f9   :  { %v2445_v47 = vpop.xlane.xlu1 %2444 }
 0x5fa   :  { %6231 = vrcp.f32 %v2445_v47  ;;  %v2487_v34 = vand.u32 2147483648, %v2445_v47  ;;  %2104 = vmatpush.msrb.mxu3 %v2035_v41  ;;  %v2485_v61 = vand.u32 2147483647, %v2445_v47  ;;  %vm2481_vm5 = vweird.f32 %v2445_v47 }
 0x5fb   :  { %v8500_v46 = vpop.xlane.xlu2 %1709  ;;  %6233 = vpow2.f32 %v2432_v62 }
 0x5fc   :  { %6235 = vrcp.f32 %v8500_v46  ;;  %2105 = vmatpush.msrb.mxu3 %v2034_v22  ;;  %vm2486_vm7 = vcmp.eq.f32.partialorder %v2485_v61, 8.507059e+37  ;;  %vm1818_vm12 = vweird.f32 %v8500_v46 }
 0x5ff   :  { %1717 = vadd.xlane.f32.xlu2 %v8498_v55  ;;  %2462 = vadd.xlane.f32.xlu0 %v8502_v42 }
 0x600   :  { %v6232_v20 = vpop.eup %6231 }
 0x601   :  { %v2477_v6 = vmul.f32 %v6232_v20, %v2445_v47  ;;  %v2447_v60 = vpop.xlane.xlu1 %2446  ;;  %v8519_v16 = vpop.eup %6233  ;;  %vm2482_vm4 = vweird.f32 %v6232_v20 }
 0x602   :  { %6237 = vrcp.f32 %v2447_v60  ;;  %v8521_v52 = vpop.eup %6235  ;;  %vm2483_vm6 = vmor %vm2481_vm5, %vm2482_vm4  ;;  %v2501_v47 = vand.u32 2147483648, %v2447_v60  ;;  %vm2495_vm9 = vweird.f32 %v2447_v60 }
 0x603   :  { %v2478_v2 = vsub.f32 1.0, %v2477_v6  ;;  %v2488_v6 = vor.u32 1.1754944e-38, %v2487_v34  ;;  %v1814_v41 = vmul.f32 %v8521_v52, %v8500_v46  ;;  %vm1819_vm13 = vweird.f32 %v8521_v52 }
 0x604   :  { %vm8569_vm1 = vmor %vm1818_vm12, %vm1819_vm13 }
 0x605   :  { %v2479_v62 = vmul.f32 %v6232_v20, %v2478_v2  ;;  %v1815_v34 = vsub.f32 1.0, %v1814_v41 }
 0x607   :  { %v2480_v40 = vadd.f32 %v6232_v20, %v2479_v62  ;;  %2464 = vadd.xlane.f32.xlu2 %v8519_v16 }
 0x608   :  { %v6238_v57 = vpop.eup %6237 }
 0x609   :  { %v2484_v28 = vsel %vm2483_vm6, %v6232_v20, %v2480_v40  ;;  %v2491_v63 = vmul.f32 %v6238_v57, %v2447_v60  ;;  %v8526_v3 = vpop.xlane.xlu0 %2448  ;;  %v8528_v2 = vpop.xlane.xlu1 %1707  ;;  %vm2496_vm8 = vweird.f32 %v6238_v57  ;;  %v2499_v20 = vand.u32 2147483647, %v2447_v60 }
 0x60a   :  { %v2489_v58 = vsel %vm2486_vm7, %v2488_v6, %v2484_v28  ;;  %6239 = vrcp.f32 %v8526_v3  ;;  %v2502_v28 = vor.u32 1.1754944e-38, %v2501_v47  ;;  %vm2497_vm10 = vmor %vm2495_vm9, %vm2496_vm8  ;;  %vm2509_vm0 = vweird.f32 %v8526_v3 }
 0x60b   :  { %v2492_v22 = vsub.f32 1.0, %v2491_v63  ;;  %6241 = vrcp.f32 %v8528_v2  ;;  %v2700_v62 = vmul.f32 %v8264_v18, %v2489_v58  ;;  %v1816_v63 = vmul.f32 %v8521_v52, %v1815_v34 }
 0x60c   :  { %vm2500_vm11 = vcmp.eq.f32.partialorder %v2499_v20, 8.507059e+37  ;;  %vm1804_vm4 = vweird.f32 %v8528_v2 }
 0x60d   :  { %v2493_v40 = vmul.f32 %v6238_v57, %v2492_v22  ;;  %2796 = vmatmul.f32.vlgmr.msra.gmra.mxu1 %v2700_v62  ;;  %v1824_v62 = vand.u32 2147483648, %v8500_v46  ;;  %v1817_v20 = vadd.f32 %v8521_v52, %v1816_v63  ;;  %v2513_v63 = vand.u32 2147483647, %v8526_v3 }
 0x60e   :  { %3086 = vmatpush.msra.mxu1 %v8367_v54 }
 0x60f   :  { %v2494_v61 = vadd.f32 %v6238_v57, %v2493_v40  ;;  %vm2514_vm8 = vcmp.eq.f32.partialorder %v2513_v63, 8.507059e+37 }
 0x610   :  { %v8534_v24 = vpop.eup %6239  ;;  %3087 = vmatpush.msra.mxu1 %v8375_v30 }
 0x611   :  { %v8536_v6 = vpop.eup %6241  ;;  %v2505_v58 = vmul.f32 %v8534_v24, %v8526_v3  ;;  %v1642_v18 = vpop.xlane.xlu0 %1641  ;;  %v2498_v41 = vsel %vm2497_vm10, %v6238_v57, %v2494_v61  ;;  %vm2510_vm15 = vweird.f32 %v8534_v24  ;;  %v1822_v61 = vand.u32 2147483647, %v8500_v46 }
 0x612   :  { %v1800_v60 = vmul.f32 %v8536_v6, %v8528_v2  ;;  %v1661_v54 = vsub.f32 %v8294_v15, %v1642_v18  ;;  %v8545_v22 = vpop.xlane.xlu1 %2450  ;;  %v2503_v47 = vsel %vm2500_vm11, %v2502_v28, %v2498_v41  ;;  %3088 = vmatpush.msra.mxu1 %v8382_v45  ;;  %v2515_v28 = vand.u32 2147483648, %v8526_v3  ;;  %vm8578_vm3 = vmor %vm2509_vm0, %vm2510_vm15 }
 0x613   :  { %v2506_v34 = vsub.f32 1.0, %v2505_v58  ;;  %6243 = vrcp.f32 %v8545_v22  ;;  %v2701_v30 = vmul.f32 %v8272_v11, %v2503_v47  ;;  %v1810_v58 = vand.u32 2147483648, %v8528_v2 }
 0x614   :  { %v1801_v57 = vsub.f32 1.0, %v1800_v60  ;;  %v1689_v40 = vmul.f32 1.442695, %v1661_v54  ;;  %3089 = vmatpush.msra.mxu1 %v8389_v9  ;;  %v1808_v11 = vand.u32 2147483647, %v8528_v2  ;;  %v1825_v41 = vor.u32 1.1754944e-38, %v1824_v62 }
 0x615   :  { %v2507_v15 = vmul.f32 %v8534_v24, %v2506_v34  ;;  %2799 = vmatmul.f32.gmra.mxu1 %v2701_v30  ;;  %vm1805_vm2 = vweird.f32 %v8536_v6  ;;  %v1821_v62 = vsel %vm8569_vm1, %v8521_v52, %v1817_v20  ;;  %vm8595_vm5 = vcmp.eq.f32.partialorder %v1822_v61, 8.507059e+37 }
 0x616   :  { %v1802_v45 = vmul.f32 %v8536_v6, %v1801_v57  ;;  %6245 = vpow2.f32 %v1689_v40  ;;  %3090 = vmatpush.msra.mxu1 %v8395_v21  ;;  %v2516_v57 = vor.u32 1.1754944e-38, %v2515_v28  ;;  %v1811_v40 = vor.u32 1.1754944e-38, %v1810_v58  ;;  %vm1806_vm6 = vmor %vm1804_vm4, %vm1805_vm2 }
 0x617   :  { %v2508_v18 = vadd.f32 %v8534_v24, %v2507_v15  ;;  %vm1809_vm7 = vcmp.eq.f32.partialorder %v1808_v11, 8.507059e+37  ;;  %v2529_v28 = vand.u32 2147483648, %v8545_v22  ;;  %vm2523_vm10 = vweird.f32 %v8545_v22 }
 0x618   :  { %v1803_v60 = vadd.f32 %v8536_v6, %v1802_v45  ;;  %3091 = vmatpush.msra.mxu1 %v8403_v1 }
 0x619   :  { %v8582_v3 = vpop.eup %6243  ;;  %v8585_v46 = vpop.xlane.xlu2 %2452  ;;  %v2512_v21 = vsel %vm8578_vm3, %v8534_v24, %v2508_v18 }
 0x61a   :  { %v8587_v47 = vpop.xlane.xlu0 %1711  ;;  %v2519_v30 = vmul.f32 %v8582_v3, %v8545_v22  ;;  %6247 = vrcp.f32 %v8585_v46  ;;  %v2387_v15 = vpop.xlane.xlu1 %2386  ;;  %3092 = vmatpush.msra.mxu1 %v8410_v25  ;;  %v1807_v20 = vsel %vm1806_vm6, %v8536_v6, %v1803_v60  ;;  %v2517_v61 = vsel %vm2514_vm8, %v2516_v57, %v2512_v21 }
 0x61b   :  { %v1986_v45 = vpop.f32.mrf.mxu2  ;;  %6249 = vrcp.f32 %v8587_v47  ;;  %v2407_v24 = vsub.f32 %v8312_v17, %v2387_v15  ;;  %v1826_v17 = vsel %vm8595_vm5, %v1825_v41, %v1821_v62  ;;  %v1812_v18 = vsel %vm1809_vm7, %v1811_v40, %v1807_v20 }
 0x61c   :  { %5741 = vmatmul.msk.f32.vlgmr.msrb.gmra.mxu3 %vm1455_vm14, %v1986_v45  ;;  %v8611_v1 = vpop.eup %6245  ;;  %v2520_v52 = vsub.f32 1.0, %v2519_v30  ;;  %v2702_v2 = vmul.f32 %v8278_v59, %v2517_v61  ;;  %3093 = vmatpush.msra.mxu1 %v8416_v49  ;;  %v1958_v11 = vmul.f32 %v8275_v12, %v1812_v18  ;;  %vm2524_vm9 = vweird.f32 %v8582_v3 }
 0x61d   :  { %v2434_v58 = vmul.f32 1.442695, %v2407_v24  ;;  %1721 = vadd.xlane.f32.xlu0 %v8611_v1  ;;  %v2527_v6 = vand.u32 2147483647, %v8545_v22  ;;  %v2530_v49 = vor.u32 1.1754944e-38, %v2529_v28  ;;  %v1959_v60 = vmul.f32 %v8268_v44, %v1826_v17  ;;  %vm2525_vm11 = vmor %vm2523_vm10, %vm2524_vm9 }
 0x61e   :  { %v2521_v25 = vmul.f32 %v8582_v3, %v2520_v52  ;;  %2802 = vmatmul.f32.gmra.mxu1 %v2702_v2  ;;  %2000 = vmatmul.f32.gmra.mxu2 %v1958_v11  ;;  %v2543_v57 = vand.u32 2147483648, %v8585_v46  ;;  %v1838_v20 = vand.u32 2147483648, %v8587_v47  ;;  %vm2537_vm0 = vweird.f32 %v8585_v46 }
 0x61f   :  { %6251 = vpow2.f32 %v2434_v58  ;;  %3094 = vmatpush.msra.mxu1 %v8422_v27  ;;  %vm2528_vm12 = vcmp.eq.f32.partialorder %v2527_v6, 8.507059e+37  ;;  %vm1832_vm1 = vweird.f32 %v8587_v47 }
 0x620   :  { %v6248_v63 = vpop.eup %6247  ;;  %v2522_v59 = vadd.f32 %v8582_v3, %v2521_v25  ;;  %v1839_v18 = vor.u32 1.1754944e-38, %v1838_v20 }
 0x621   :  { %v8627_v9 = vpop.eup %6249  ;;  %v2533_v41 = vmul.f32 %v6248_v63, %v8585_v46  ;;  %v2389_v12 = vpop.xlane.xlu2 %2388  ;;  %3095 = vmatpush.msra.mxu1 %v8428_v56  ;;  %vm2538_vm13 = vweird.f32 %v6248_v63 }
 0x622   :  { %v1828_v54 = vmul.f32 %v8627_v9, %v8587_v47  ;;  %v2408_v21 = vsub.f32 %v8328_v8, %v2389_v12  ;;  %v1644_v22 = vpop.xlane.xlu1 %1643  ;;  %v2526_v34 = vsel %vm2525_vm11, %v8582_v3, %v2522_v59  ;;  %v2541_v8 = vand.u32 2147483647, %v8585_v46  ;;  %vm2539_vm2 = vmor %vm2537_vm0, %vm2538_vm13 }
 0x623   :  { %v1989_v62 = vpop.f32.mrf.mxu2  ;;  %v2534_v27 = vsub.f32 1.0, %v2533_v41  ;;  %v8637_v40 = vpop.xlane.xlu0 %2454  ;;  %v1662_v44 = vsub.f32 %v8321_v29, %v1644_v22  ;;  %v2531_v30 = vsel %vm2528_vm12, %v2530_v49, %v2526_v34  ;;  %3096 = vmatpush.msra.mxu1 %v8437_v14  ;;  %vm1833_vm15 = vweird.f32 %v8627_v9 }
 0x624   :  { %5742 = vmatmul.msk.f32.gmra.mxu3 %vm1455_vm14, %v1989_v62  ;;  %v1829_v15 = vsub.f32 1.0, %v1828_v54  ;;  %v2436_v45 = vmul.f32 1.442695, %v2408_v21  ;;  %6253 = vrcp.f32 %v8637_v40  ;;  %v2703_v52 = vmul.f32 %v8298_v48, %v2531_v30  ;;  %vm8658_vm3 = vmor %vm1832_vm1, %vm1833_vm15 }
 0x625   :  { %v8644_v3 = vpop.eup %6251  ;;  %v2535_v56 = vmul.f32 %v6248_v63, %v2534_v27  ;;  %v1691_v24 = vmul.f32 1.442695, %v1662_v44  ;;  %3097 = vmatpush.msra.mxu1 %v8443_v33  ;;  %v1836_v14 = vand.u32 2147483647, %v8587_v47  ;;  %v2544_v48 = vor.u32 1.1754944e-38, %v2543_v57 }
 0x626   :  { %v1830_v29 = vmul.f32 %v8627_v9, %v1829_v15  ;;  %6255 = vpow2.f32 %v2436_v45  ;;  %2466 = vadd.xlane.f32.xlu1 %v8644_v3  ;;  %2805 = vmatmul.f32.gmra.mxu1 %v2703_v52  ;;  %vm2542_vm4 = vcmp.eq.f32.partialorder %v2541_v8, 8.507059e+37  ;;  %vm2551_vm7 = vweird.f32 %v8637_v40 }
 0x627   :  { %6257 = vpow2.f32 %v1691_v24  ;;  %v2536_v61 = vadd.f32 %v6248_v63, %v2535_v56  ;;  %2003 = vmatmul.f32.gmra.mxu2 %v1959_v60  ;;  %3098 = vmatpush.msra.mxu1 %v8449_v32  ;;  %vm1837_vm5 = vcmp.eq.f32.partialorder %v1836_v14, 8.507059e+37  ;;  %v2557_v60 = vand.u32 2147483648, %v8637_v40 }
 0x628   :  { %v1831_v17 = vadd.f32 %v8627_v9, %v1830_v29 }
 0x629   :  { %v1646_v28 = vpop.xlane.xlu2 %1645  ;;  %v2540_v46 = vsel %vm2539_vm2, %v6248_v63, %v2536_v61  ;;  %3099 = vmatpush.msra.mxu1 %v8455_v31  ;;  %v2558_v21 = vor.u32 1.1754944e-38, %v2557_v60 }
 0x62a   :  { %v6254_v58 = vpop.eup %6253  ;;  %v1663_v2 = vsub.f32 %v8344_v4, %v1646_v28  ;;  %v8663_v25 = vpop.xlane.xlu1 %2456  ;;  %v1835_v47 = vsel %vm8658_vm3, %v8627_v9, %v1831_v17  ;;  %v2545_v11 = vsel %vm2542_vm4, %v2544_v48, %v2540_v46 }
 0x62b   :  { %v2547_v32 = vmul.f32 %v6254_v58, %v8637_v40  ;;  %v2391_v6 = vpop.xlane.xlu0 %2390  ;;  %6259 = vrcp.f32 %v8663_v25  ;;  %v1840_v49 = vsel %vm1837_vm5, %v1839_v18, %v1835_v47  ;;  %v2704_v41 = vmul.f32 %v8309_v39, %v2545_v11  ;;  %3100 = vmatpush.msra.mxu1 %v8461_v53 }
 0x62c   :  { %v8671_v63 = vpop.eup %6255  ;;  %v1693_v59 = vmul.f32 1.442695, %v1663_v2  ;;  %v2409_v4 = vsub.f32 %v8350_v5, %v2391_v6  ;;  %v1960_v31 = vmul.f32 %v8304_v36, %v1840_v49  ;;  %vm2552_vm6 = vweird.f32 %v6254_v58 }
 0x62d   :  { %v8676_v9 = vpop.eup %6257  ;;  %v2548_v12 = vsub.f32 1.0, %v2547_v32  ;;  %2468 = vadd.xlane.f32.xlu0 %v8671_v63  ;;  %3101 = vmatpush.msra.mxu1 %v8467_v37  ;;  %v2555_v39 = vand.u32 2147483647, %v8637_v40  ;;  %vm2553_vm8 = vmor %vm2551_vm7, %vm2552_vm6  ;;  %v2571_v40 = vand.u32 2147483648, %v8663_v25  ;;  %v2569_v52 = vand.u32 2147483647, %v8663_v25 }
 0x62e   :  { %6261 = vpow2.f32 %v1693_v59  ;;  %v2438_v54 = vmul.f32 1.442695, %v2409_v4  ;;  %1723 = vadd.xlane.f32.xlu2 %v8676_v9  ;;  %2808 = vmatmul.f32.gmra.mxu1 %v2704_v41  ;;  %vm2565_vm11 = vweird.f32 %v8663_v25 }
 0x62f   :  { %v2549_v5 = vmul.f32 %v6254_v58, %v2548_v12  ;;  %2006 = vmatmul.f32.gmra.mxu2 %v1960_v31  ;;  %vm2556_vm9 = vcmp.eq.f32.partialorder %v2555_v39, 8.507059e+37  ;;  %v2572_v20 = vor.u32 1.1754944e-38, %v2571_v40  ;;  %vm2570_vm13 = vcmp.eq.f32.partialorder %v2569_v52, 8.507059e+37 }
 0x630   :  { %6263 = vpow2.f32 %v2438_v54 }
 0x631   :  { %v6260_v53 = vpop.eup %6259  ;;  %v2550_v36 = vadd.f32 %v6254_v58, %v2549_v5 }
 0x632   :  { %v2561_v22 = vmul.f32 %v6260_v53, %v8663_v25  ;;  %v1714_v62 = vpop.xlane.xlu1 %1713  ;;  %v1992_v34 = vpop.f32.mrf.mxu2  ;;  %vm2566_vm10 = vweird.f32 %v6260_v53 }
 0x633   :  { %6265 = vrcp.f32 %v1714_v62  ;;  %v1648_v27 = vpop.xlane.xlu0 %1647  ;;  %5743 = vmatmul.msk.f32.gmra.mxu3 %vm1455_vm14, %v1992_v34  ;;  %v2554_v37 = vsel %vm2553_vm8, %v6254_v58, %v2550_v36  ;;  %vm2567_vm12 = vmor %vm2565_vm11, %vm2566_vm10  ;;  %v1852_v58 = vand.u32 2147483648, %v1714_v62  ;;  %v1850_v47 = vand.u32 2147483647, %v1714_v62 }
 0x634   :  { %v8687_v57 = vpop.eup %6261  ;;  %v2562_v44 = vsub.f32 1.0, %v2561_v22  ;;  %v1664_v30 = vsub.f32 %v8360_v51, %v1648_v27  ;;  %v2559_v15 = vsel %vm2556_vm9, %v2558_v21, %v2554_v37  ;;  %vm1846_vm0 = vweird.f32 %v1714_v62 }
 0x635   :  { %1725 = vadd.xlane.f32.xlu1 %v8687_v57  ;;  %v2705_v45 = vmul.f32 %v8333_v0, %v2559_v15  ;;  %vm1851_vm2 = vcmp.eq.f32.partialorder %v1850_v47, 8.507059e+37 }
 0x636   :  { %v8693_v8 = vpop.eup %6263  ;;  %v2563_v56 = vmul.f32 %v6260_v53, %v2562_v44  ;;  %v1695_v24 = vmul.f32 1.442695, %v1664_v30 }
 0x637   :  { %2470 = vadd.xlane.f32.xlu2 %v8693_v8  ;;  %2811 = vmatmul.f32.gmra.mxu1 %v2705_v45 }
 0x638   :  { %6267 = vpow2.f32 %v1695_v24  ;;  %v2564_v51 = vadd.f32 %v6260_v53, %v2563_v56 }
 0x639   :  { %v6266_v29 = vpop.eup %6265 }
 0x63a   :  { %v1842_v14 = vmul.f32 %v6266_v29, %v1714_v62  ;;  %v2393_v61 = vpop.xlane.xlu1 %2392  ;;  %v1995_v0 = vpop.f32.mrf.mxu2  ;;  %v2568_v48 = vsel %vm2567_vm12, %v6260_v53, %v2564_v51  ;;  %vm1847_vm15 = vweird.f32 %v6266_v29 }
 0x63b   :  { %v2410_v17 = vsub.f32 %v8370_v7, %v2393_v61  ;;  %5744 = vmatmul.msk.f32.gmra.mxu3 %vm1455_vm14, %v1995_v0  ;;  %v2573_v28 = vsel %vm2570_vm13, %v2572_v20, %v2568_v48  ;;  %v1853_v7 = vor.u32 1.1754944e-38, %v1852_v58  ;;  %vm1848_vm1 = vmor %vm1846_vm0, %vm1847_vm15 }
 0x63c   :  { %v1843_v33 = vsub.f32 1.0, %v1842_v14  ;;  %v2706_v46 = vmul.f32 %v8346_v10, %v2573_v28 }
 0x63d   :  { %v2440_v18 = vmul.f32 1.442695, %v2410_v17 }
 0x63e   :  { %v8701_v2 = vpop.eup %6267  ;;  %v1844_v25 = vmul.f32 %v6266_v29, %v1843_v33 }
 0x63f   :  { %6269 = vpow2.f32 %v2440_v18  ;;  %2814 = vmatmul.f32.gmra.mxu1 %v2706_v46  ;;  %1727 = vadd.xlane.f32.xlu0 %v8701_v2 }
 0x640   :  { %v1845_v11 = vadd.f32 %v6266_v29, %v1844_v25 }
 0x642   :  { %v2395_v32 = vpop.xlane.xlu1 %2394  ;;  %v1998_v6 = vpop.f32.mrf.mxu2  ;;  %v1849_v59 = vsel %vm1848_vm1, %v6266_v29, %v1845_v11 }
 0x643   :  { %v2411_v10 = vsub.f32 %v8398_v13, %v2395_v32  ;;  %5745 = vmatmul.msk.f32.gmra.mxu3 %vm1455_vm14, %v1998_v6  ;;  %v1854_v4 = vsel %vm1851_vm2, %v1853_v7, %v1849_v59 }
 0x644   :  { %v1961_v49 = vmul.f32 %v8358_v50, %v1854_v4 }
 0x645   :  { %v8707_v41 = vpop.eup %6269  ;;  %v2442_v12 = vmul.f32 1.442695, %v2411_v10 }
 0x646   :  { %2009 = vmatmul.f32.gmra.mxu2 %v1961_v49  ;;  %2472 = vadd.xlane.f32.xlu1 %v8707_v41 }
 0x647   :  { %6271 = vpow2.f32 %v2442_v12 }
 0x64a   :  { %v8713_v54 = vpop.xlane.xlu1 %1719 }
 0x64d   :  { %v8710_v31 = vpop.eup %6271 }
 0x64e   :  { %2474 = vadd.xlane.f32.xlu2 %v8710_v31 }
 0x662   :  { %v2459_v60 = vpop.xlane.xlu2 %2458 }
 0x663   :  { %6273 = vrcp.f32 %v2459_v60  ;;  %v2585_v21 = vand.u32 2147483648, %v2459_v60  ;;  %vm2579_vm4 = vweird.f32 %v2459_v60  ;;  %v2583_v34 = vand.u32 2147483647, %v2459_v60 }
 0x664   :  { %6275 = vrcp.f32 %v8713_v54 }
 0x665   :  { %v2586_v56 = vor.u32 1.1754944e-38, %v2585_v21  ;;  %vm2584_vm6 = vcmp.eq.f32.partialorder %v2583_v34, 8.507059e+37 }
 0x669   :  { %v6274_v13 = vpop.eup %6273 }
 0x66a   :  { %v2575_v5 = vmul.f32 %v6274_v13, %v2459_v60  ;;  %v1716_v50 = vpop.xlane.xlu2 %1715  ;;  %v2461_v39 = vpop.xlane.xlu0 %2460  ;;  %vm2580_vm3 = vweird.f32 %v6274_v13 }
 0x66b   :  { %6277 = vrcp.f32 %v1716_v50  ;;  %v8716_v22 = vpop.eup %6275  ;;  %vm8718_vm5 = vmor %vm2579_vm4, %vm2580_vm3  ;;  %v1866_v29 = vand.u32 2147483648, %v1716_v50  ;;  %v2599_v0 = vand.u32 2147483648, %v2461_v39  ;;  %v1864_v28 = vand.u32 2147483647, %v1716_v50 }
 0x66c   :  { %v2576_v53 = vsub.f32 1.0, %v2575_v5  ;;  %6279 = vrcp.f32 %v2461_v39  ;;  %v1884_v51 = vmul.f32 %v8716_v22, %v8713_v54  ;;  %v2597_v33 = vand.u32 2147483647, %v2461_v39 }
 0x66d   :  { %vm1860_vm8 = vweird.f32 %v1716_v50  ;;  %vm2593_vm10 = vweird.f32 %v2461_v39  ;;  %v1867_v7 = vor.u32 1.1754944e-38, %v1866_v29  ;;  %v2600_v32 = vor.u32 1.1754944e-38, %v2599_v0 }
 0x66e   :  { %v2577_v36 = vmul.f32 %v6274_v13, %v2576_v53  ;;  %v1885_v18 = vsub.f32 1.0, %v1884_v51  ;;  %vm1865_vm12 = vcmp.eq.f32.partialorder %v1864_v28, 8.507059e+37  ;;  %vm2598_vm15 = vcmp.eq.f32.partialorder %v2597_v33, 8.507059e+37 }
 0x66f   :  { %v1894_v51 = vand.u32 2147483648, %v8713_v54  ;;  %v1892_v0 = vand.u32 2147483647, %v8713_v54 }
 0x670   :  { %v2578_v62 = vadd.f32 %v6274_v13, %v2577_v36 }
 0x671   :  { %v6278_v27 = vpop.eup %6277 }
 0x672   :  { %v6280_v44 = vpop.eup %6279  ;;  %v1856_v30 = vmul.f32 %v6278_v27, %v1716_v50  ;;  %v8722_v15 = vpop.xlane.xlu2 %1717  ;;  %v2582_v45 = vsel %vm8718_vm5, %v6274_v13, %v2578_v62  ;;  %vm1861_vm7 = vweird.f32 %v6278_v27  ;;  %v1886_v62 = vmul.f32 %v8716_v22, %v1885_v18 }
 0x673   :  { %v8724_v40 = vpop.xlane.xlu0 %2462  ;;  %v2589_v24 = vmul.f32 %v6280_v44, %v2461_v39  ;;  %6281 = vrcp.f32 %v8722_v15  ;;  %v2587_v14 = vsel %vm2584_vm6, %v2586_v56, %v2582_v45  ;;  %vm2594_vm9 = vweird.f32 %v6280_v44  ;;  %vm8733_vm11 = vmor %vm1860_vm8, %vm1861_vm7 }
 0x674   :  { %v1857_v52 = vsub.f32 1.0, %v1856_v30  ;;  %6283 = vrcp.f32 %v8724_v40  ;;  %v2707_v48 = vmul.f32 %v8474_v26, %v2587_v14  ;;  %vm2595_vm13 = vmor %vm2593_vm10, %vm2594_vm9  ;;  %v1880_v49 = vand.u32 2147483648, %v8722_v15 }
 0x675   :  { %v2590_v20 = vsub.f32 1.0, %v2589_v24  ;;  %v2613_v5 = vand.u32 2147483648, %v8724_v40  ;;  %v1878_v21 = vand.u32 2147483647, %v8722_v15  ;;  %vm1874_vm2 = vweird.f32 %v8722_v15 }
 0x676   :  { %v1858_v61 = vmul.f32 %v6278_v27, %v1857_v52  ;;  %2817 = vmatmul.f32.gmra.mxu1 %v2707_v48  ;;  %vm2607_vm3 = vweird.f32 %v8724_v40  ;;  %vm1889_vm5 = vweird.f32 %v8716_v22  ;;  %vm1888_vm9 = vweird.f32 %v8713_v54 }
 0x677   :  { %v2591_v17 = vmul.f32 %v6280_v44, %v2590_v20  ;;  %v2614_v30 = vor.u32 1.1754944e-38, %v2613_v5  ;;  %vm1879_vm6 = vcmp.eq.f32.partialorder %v1878_v21, 8.507059e+37  ;;  %vm1890_vm10 = vmor %vm1888_vm9, %vm1889_vm5  ;;  %v5795_v21 = vld [vmem:[%s10844_s10 + $0x70] sm:$0xff] }
 0x678   :  { %v1859_v46 = vadd.f32 %v6278_v27, %v1858_v61 }
 0x679   :  { %v6282_v58 = vpop.eup %6281  ;;  %v2592_v47 = vadd.f32 %v6280_v44, %v2591_v17 }
 0x67a   :  { %v6284_v11 = vpop.eup %6283  ;;  %v1870_v26 = vmul.f32 %v6282_v58, %v8722_v15  ;;  %v8738_v6 = vpop.xlane.xlu2 %2464  ;;  %v1863_v59 = vsel %vm8733_vm11, %v6278_v27, %v1859_v46  ;;  %vm1875_vm0 = vweird.f32 %v6282_v58  ;;  %v2611_v27 = vand.u32 2147483647, %v8724_v40 }
 0x67b   :  { %v2603_v10 = vmul.f32 %v6284_v11, %v8724_v40  ;;  %6285 = vrcp.f32 %v8738_v6  ;;  %v1868_v12 = vsel %vm1865_vm12, %v1867_v7, %v1863_v59  ;;  %v2596_v60 = vsel %vm2595_vm13, %v6280_v44, %v2592_v47  ;;  %vm1876_vm4 = vmor %vm1874_vm2, %vm1875_vm0 }
 0x67c   :  { %v1871_v4 = vsub.f32 1.0, %v1870_v26  ;;  %v1962_v50 = vmul.f32 %v8479_v23, %v1868_v12  ;;  %v2601_v39 = vsel %vm2598_vm15, %v2600_v32, %v2596_v60  ;;  %vm2608_vm1 = vweird.f32 %v6284_v11 }
 0x67d   :  { %v2604_v13 = vsub.f32 1.0, %v2603_v10  ;;  %v2708_v36 = vmul.f32 %v8481_v43, %v2601_v39  ;;  %v1881_v23 = vor.u32 1.1754944e-38, %v1880_v49  ;;  %vm2609_vm7 = vmor %vm2607_vm3, %vm2608_vm1  ;;  %vm2612_vm8 = vcmp.eq.f32.partialorder %v2611_v27, 8.507059e+37 }
 0x67e   :  { %v1872_v53 = vmul.f32 %v6282_v58, %v1871_v4  ;;  %2012 = vmatmul.f32.gmra.mxu2 %v1962_v50  ;;  %v1887_v15 = vadd.f32 %v8716_v22, %v1886_v62  ;;  %v2627_v14 = vand.u32 2147483648, %v8738_v6  ;;  %v2625_v17 = vand.u32 2147483647, %v8738_v6 }
 0x67f   :  { %v2605_v34 = vmul.f32 %v6284_v11, %v2604_v13  ;;  %2820 = vmatmul.f32.gmra.mxu1 %v2708_v36  ;;  %vm2621_vm12 = vweird.f32 %v8738_v6  ;;  %vm1893_vm13 = vcmp.eq.f32.partialorder %v1892_v0, 8.507059e+37  ;;  %v5796_v36 = vld [vmem:[%s10844_s10 + $0x78] sm:$0xff] }
 0x680   :  { %v1873_v37 = vadd.f32 %v6282_v58, %v1872_v53  ;;  %v1891_v28 = vsel %vm1890_vm10, %v8716_v22, %v1887_v15  ;;  %v2628_v46 = vor.u32 1.1754944e-38, %v2627_v14  ;;  %vm2626_vm0 = vcmp.eq.f32.partialorder %v2625_v17, 8.507059e+37  ;;  %2910 = vmatpush.msra.mxu2 %v5796_v36 }
 0x681   :  { %v6286_v44 = vpop.eup %6285  ;;  %v2606_v43 = vadd.f32 %v6284_v11, %v2605_v34 }
 0x682   :  { %v2617_v45 = vmul.f32 %v6286_v44, %v8738_v6  ;;  %v1877_v56 = vsel %vm1876_vm4, %v6282_v58, %v1873_v37  ;;  %vm2622_vm11 = vweird.f32 %v6286_v44  ;;  %2911 = vmatpush.msra.mxu2 %v5795_v21 }
 0x683   :  { %v1882_v24 = vsel %vm1879_vm6, %v1881_v23, %v1877_v56  ;;  %v2610_v52 = vsel %vm2609_vm7, %v6284_v11, %v2606_v43  ;;  %vm2623_vm15 = vmor %vm2621_vm12, %vm2622_vm11 }
 0x684   :  { %v2618_v29 = vsub.f32 1.0, %v2617_v45  ;;  %v1963_v40 = vmul.f32 %v8498_v55, %v1882_v24  ;;  %v2615_v20 = vsel %vm2612_vm8, %v2614_v30, %v2610_v52  ;;  %v1895_v55 = vor.u32 1.1754944e-38, %v1894_v51 }
 0x685   :  { %v2709_v61 = vmul.f32 %v8502_v42, %v2615_v20 }
 0x686   :  { %v2619_v48 = vmul.f32 %v6286_v44, %v2618_v29  ;;  %2015 = vmatmul.f32.gmra.mxu2 %v1963_v40  ;;  %v1896_v42 = vsel %vm1893_vm13, %v1895_v55, %v1891_v28  ;;  %v5793_v28 = vld [vmem:[%s10844_s10 + $0x60] sm:$0xff] }
 0x687   :  { %2823 = vmatmul.f32.gmra.mxu1 %v2709_v61  ;;  %v1964_v25 = vmul.f32 %v8431_v35, %v1896_v42  ;;  %v5794_v61 = vld [vmem:[%s10844_s10 + $0x68] sm:$0xff] }
 0x688   :  { %v2620_v33 = vadd.f32 %v6286_v44, %v2619_v48  ;;  %2912 = vmatpush.msra.mxu2 %v5794_v61 }
 0x68a   :  { %v2624_v54 = vsel %vm2623_vm15, %v6286_v44, %v2620_v33  ;;  %v5792_v33 = vld [vmem:[%s10844_s10 + $0x58] sm:$0xff]  ;;  %2913 = vmatpush.msra.mxu2 %v5793_v28 }
 0x68b   :  { %v2629_v58 = vsel %vm2626_vm0, %v2628_v46, %v2624_v54 }
 0x68c   :  { %v2710_v18 = vmul.f32 %v8519_v16, %v2629_v58  ;;  %2914 = vmatpush.msra.mxu2 %v5792_v33 }
 0x68e   :  { %2018 = vmatmul.f32.gmra.mxu2 %v1964_v25  ;;  %v5791_v25 = vld [vmem:[%s10844_s10 + $0x50] sm:$0xff] }
 0x68f   :  { %2826 = vmatmul.f32.gmra.mxu1 %v2710_v18  ;;  %2915 = vmatpush.msra.mxu2 %v5791_v25 }
 0x690   :  { %v1722_v47 = vpop.xlane.xlu0 %1721 }
 0x691   :  { %6287 = vrcp.f32 %v1722_v47  ;;  %v1908_v6 = vand.u32 2147483648, %v1722_v47  ;;  %v1906_v59 = vand.u32 2147483647, %v1722_v47  ;;  %vm1902_vm2 = vweird.f32 %v1722_v47 }
 0x693   :  { %v1909_v16 = vor.u32 1.1754944e-38, %v1908_v6  ;;  %vm1907_vm4 = vcmp.eq.f32.partialorder %v1906_v59, 8.507059e+37 }
 0x697   :  { %v6288_v22 = vpop.eup %6287 }
 0x698   :  { %v1898_v11 = vmul.f32 %v6288_v22, %v1722_v47  ;;  %vm1903_vm1 = vweird.f32 %v6288_v22 }
 0x699   :  { %v2467_v7 = vpop.xlane.xlu1 %2466  ;;  %vm1904_vm3 = vmor %vm1902_vm2, %vm1903_vm1 }
 0x69a   :  { %v1899_v32 = vsub.f32 1.0, %v1898_v11  ;;  %6289 = vrcp.f32 %v2467_v7  ;;  %v2641_v62 = vand.u32 2147483648, %v2467_v7  ;;  %v2639_v34 = vand.u32 2147483647, %v2467_v7 }
 0x69b   :  { %vm2635_vm6 = vweird.f32 %v2467_v7 }
 0x69c   :  { %v1900_v26 = vmul.f32 %v6288_v22, %v1899_v32  ;;  %v2642_v30 = vor.u32 1.1754944e-38, %v2641_v62  ;;  %vm2640_vm8 = vcmp.eq.f32.partialorder %v2639_v34, 8.507059e+37 }
 0x69e   :  { %v1901_v10 = vadd.f32 %v6288_v22, %v1900_v26 }
 0x6a0   :  { %v6290_v4 = vpop.eup %6289  ;;  %v8771_v49 = vpop.xlane.xlu0 %2468  ;;  %v1905_v35 = vsel %vm1904_vm3, %v6288_v22, %v1901_v10 }
 0x6a1   :  { %v2631_v12 = vmul.f32 %v6290_v4, %v2467_v7  ;;  %v8773_v60 = vpop.xlane.xlu2 %1723  ;;  %6291 = vrcp.f32 %v8771_v49  ;;  %v1910_v13 = vsel %vm1907_vm4, %v1909_v16, %v1905_v35  ;;  %v2001_v50 = vpop.f32.mrf.mxu2  ;;  %vm2636_vm5 = vweird.f32 %v6290_v4 }
 0x6a2   :  { %6293 = vrcp.f32 %v8773_v60  ;;  %v1965_v39 = vmul.f32 %v8611_v1, %v1910_v13  ;;  %5746 = vmatmul.msk.f32.gmra.mxu3 %vm1455_vm14, %v2001_v50  ;;  %vm2637_vm7 = vmor %vm2635_vm6, %vm2636_vm5  ;;  %v1922_v15 = vand.u32 2147483648, %v8773_v60  ;;  %v2655_v51 = vand.u32 2147483648, %v8771_v49  ;;  %v5789_v13 = vld [vmem:[%s10844_s10 + $0x40] sm:$0xff] }
 0x6a3   :  { %v2632_v5 = vsub.f32 1.0, %v2631_v12  ;;  %v2653_v14 = vand.u32 2147483647, %v8771_v49  ;;  %v1920_v17 = vand.u32 2147483647, %v8773_v60  ;;  %vm2649_vm11 = vweird.f32 %v8771_v49 }
 0x6a4   :  { %2021 = vmatmul.f32.gmra.mxu2 %v1965_v39  ;;  %vm1916_vm12 = vweird.f32 %v8773_v60  ;;  %v2656_v42 = vor.u32 1.1754944e-38, %v2655_v51  ;;  %v1923_v54 = vor.u32 1.1754944e-38, %v1922_v15 }
 0x6a5   :  { %v2633_v53 = vmul.f32 %v6290_v4, %v2632_v5  ;;  %vm2654_vm0 = vcmp.eq.f32.partialorder %v2653_v14, 8.507059e+37  ;;  %vm1921_vm1 = vcmp.eq.f32.partialorder %v1920_v17, 8.507059e+37 }
 0x6a7   :  { %v6292_v27 = vpop.eup %6291  ;;  %v2634_v37 = vadd.f32 %v6290_v4, %v2633_v53 }
 0x6a8   :  { %v6294_v44 = vpop.eup %6293  ;;  %v2645_v1 = vmul.f32 %v6292_v27, %v8771_v49  ;;  %v8786_v23 = vpop.xlane.xlu1 %1725  ;;  %vm2650_vm9 = vweird.f32 %v6292_v27  ;;  %v5790_v49 = vld [vmem:[%s10844_s10 + $0x48] sm:$0xff] }
 0x6a9   :  { %v1912_v43 = vmul.f32 %v6294_v44, %v8773_v60  ;;  %6295 = vrcp.f32 %v8786_v23  ;;  %v2638_v24 = vsel %vm2637_vm7, %v6290_v4, %v2634_v37  ;;  %vm1917_vm10 = vweird.f32 %v6294_v44  ;;  %vm2651_vm13 = vmor %vm2649_vm11, %vm2650_vm9  ;;  %2916 = vmatpush.msra.mxu2 %v5790_v49 }
 0x6aa   :  { %v2646_v45 = vsub.f32 1.0, %v2645_v1  ;;  %v8790_v56 = vpop.xlane.xlu2 %2470  ;;  %v2004_v29 = vpop.f32.mrf.mxu2  ;;  %v2643_v20 = vsel %vm2640_vm8, %v2642_v30, %v2638_v24  ;;  %vm1918_vm15 = vmor %vm1916_vm12, %vm1917_vm10  ;;  %v1936_v59 = vand.u32 2147483648, %v8786_v23  ;;  %v1934_v60 = vand.u32 2147483647, %v8786_v23 }
 0x6ab   :  { %v1913_v52 = vsub.f32 1.0, %v1912_v43  ;;  %6297 = vrcp.f32 %v8790_v56  ;;  %5747 = vmatmul.msk.f32.gmra.mxu3 %vm1455_vm14, %v2004_v29  ;;  %v2711_v48 = vmul.f32 %v8644_v3, %v2643_v20  ;;  %vm1930_vm3 = vweird.f32 %v8786_v23  ;;  %2917 = vmatpush.msra.mxu2 %v5789_v13 }
 0x6ac   :  { %v2647_v40 = vmul.f32 %v6292_v27, %v2646_v45  ;;  %v1937_v50 = vor.u32 1.1754944e-38, %v1936_v59  ;;  %v2667_v39 = vand.u32 2147483647, %v8790_v56  ;;  %vm1935_vm6 = vcmp.eq.f32.partialorder %v1934_v60, 8.507059e+37 }
 0x6ad   :  { %v1914_v0 = vmul.f32 %v6294_v44, %v1913_v52  ;;  %2829 = vmatmul.f32.gmra.mxu1 %v2711_v48  ;;  %vm2663_vm7 = vweird.f32 %v8790_v56 }
 0x6ae   :  { %v2648_v55 = vadd.f32 %v6292_v27, %v2647_v40  ;;  %vm2668_vm9 = vcmp.eq.f32.partialorder %v2667_v39, 8.507059e+37 }
 0x6af   :  { %v6296_v46 = vpop.eup %6295  ;;  %v1915_v3 = vadd.f32 %v6294_v44, %v1914_v0 }
 0x6b0   :  { %v1926_v58 = vmul.f32 %v6296_v46, %v8786_v23  ;;  %v2652_v18 = vsel %vm2651_vm13, %v6292_v27, %v2648_v55  ;;  %vm1931_vm2 = vweird.f32 %v6296_v46 }
 0x6b1   :  { %v6298_v47 = vpop.eup %6297  ;;  %v1919_v22 = vsel %vm1918_vm15, %v6294_v44, %v1915_v3  ;;  %v2657_v11 = vsel %vm2654_vm0, %v2656_v42, %v2652_v18  ;;  %vm1932_vm4 = vmor %vm1930_vm3, %vm1931_vm2  ;;  %v2797_v44 = vpop.f32.mrf.mxu1 }
 0x6b2   :  { %v2659_v7 = vmul.f32 %v6298_v47, %v8790_v56  ;;  %v1927_v32 = vsub.f32 1.0, %v1926_v58  ;;  %v1728_v26 = vpop.xlane.xlu0 %1727  ;;  %v1924_v6 = vsel %vm1921_vm1, %v1923_v54, %v1919_v22  ;;  %v2007_v10 = vpop.f32.mrf.mxu2  ;;  %v2712_v16 = vmul.f32 %v8671_v63, %v2657_v11 }
 0x6b3   :  { %6299 = vrcp.f32 %v1728_v26  ;;  %v1966_v4 = vmul.f32 %v8676_v9, %v1924_v6  ;;  %5748 = vmatmul.msk.f32.gmra.mxu3 %vm1455_vm14, %v2007_v10  ;;  %v2669_v63 = vand.u32 2147483648, %v8790_v56  ;;  %vm2664_vm5 = vweird.f32 %v6298_v47 }
 0x6b4   :  { %v2660_v35 = vsub.f32 1.0, %v2659_v7  ;;  %v1928_v12 = vmul.f32 %v6296_v46, %v1927_v32  ;;  %vm2665_vm8 = vmor %vm2663_vm7, %vm2664_vm5  ;;  %v1950_v45 = vand.u32 2147483648, %v1728_v26  ;;  %v1948_v56 = vand.u32 2147483647, %v1728_v26 }
 0x6b5   :  { %2024 = vmatmul.f32.gmra.mxu2 %v1966_v4  ;;  %2832 = vmatmul.f32.gmra.mxu1 %v2712_v16  ;;  %v2670_v27 = vor.u32 1.1754944e-38, %v2669_v63  ;;  %vm1944_vm11 = vweird.f32 %v1728_v26 }
 0x6b6   :  { %v2661_v9 = vmul.f32 %v6298_v47, %v2660_v35  ;;  %v1929_v5 = vadd.f32 %v6296_v46, %v1928_v12  ;;  %v1951_v29 = vor.u32 1.1754944e-38, %v1950_v45  ;;  %vm1949_vm13 = vcmp.eq.f32.partialorder %v1948_v56, 8.507059e+37 }
 0x6b8   :  { %v1933_v53 = vsel %vm1932_vm4, %v6296_v46, %v1929_v5  ;;  %v2662_v36 = vadd.f32 %v6298_v47, %v2661_v9 }
 0x6b9   :  { %v6300_v21 = vpop.eup %6299  ;;  %v2473_v62 = vpop.xlane.xlu1 %2472  ;;  %v1938_v34 = vsel %vm1935_vm6, %v1937_v50, %v1933_v53 }
 0x6ba   :  { %v1940_v37 = vmul.f32 %v6300_v21, %v1728_v26  ;;  %6301 = vrcp.f32 %v2473_v62  ;;  %v1967_v1 = vmul.f32 %v8687_v57, %v1938_v34  ;;  %v2666_v23 = vsel %vm2665_vm8, %v6298_v47, %v2662_v36 }
 0x6bb   :  { %v2671_v30 = vsel %vm2668_vm9, %v2670_v27, %v2666_v23  ;;  %vm1945_vm10 = vweird.f32 %v6300_v21  ;;  %v2683_v0 = vand.u32 2147483648, %v2473_v62  ;;  %v2681_v28 = vand.u32 2147483647, %v2473_v62 }
 0x6bc   :  { %v1941_v43 = vsub.f32 1.0, %v1940_v37  ;;  %v2713_v24 = vmul.f32 %v8693_v8, %v2671_v30  ;;  %vm1946_vm12 = vmor %vm1944_vm11, %vm1945_vm10  ;;  %v2800_v8 = vpop.f32.mrf.mxu1  ;;  %vm2677_vm0 = vweird.f32 %v2473_v62 }
 0x6bd   :  { %2027 = vmatmul.f32.gmra.mxu2 %v1967_v1  ;;  %v2684_v46 = vor.u32 1.1754944e-38, %v2683_v0  ;;  %vm2682_vm2 = vcmp.eq.f32.partialorder %v2681_v28, 8.507059e+37 }
 0x6be   :  { %v1942_v52 = vmul.f32 %v6300_v21, %v1941_v43  ;;  %2835 = vmatmul.f32.gmra.mxu1 %v2713_v24 }
 0x6c0   :  { %v6302_v15 = vpop.eup %6301  ;;  %v1943_v51 = vadd.f32 %v6300_v21, %v1942_v52 }
 0x6c1   :  { %v2673_v40 = vmul.f32 %v6302_v15, %v2473_v62  ;;  %v2475_v20 = vpop.xlane.xlu2 %2474  ;;  %vm2678_vm15 = vweird.f32 %v6302_v15 }
 0x6c2   :  { %6303 = vrcp.f32 %v2475_v20  ;;  %v1947_v57 = vsel %vm1946_vm12, %v6300_v21, %v1943_v51  ;;  %vm2679_vm1 = vmor %vm2677_vm0, %vm2678_vm15  ;;  %v2697_v25 = vand.u32 2147483648, %v2475_v20  ;;  %v2695_v22 = vand.u32 2147483647, %v2475_v20  ;;  %v8858_v21 = vpop.f32.mrf.mxu3 }
 0x6c3   :  { %v2674_v14 = vsub.f32 1.0, %v2673_v40  ;;  %v1952_v61 = vsel %vm1949_vm13, %v1951_v29, %v1947_v57  ;;  %vm2691_vm4 = vweird.f32 %v2475_v20 }
 0x6c4   :  { %v1968_v48 = vmul.f32 %v8701_v2, %v1952_v61  ;;  %v2803_v11 = vpop.f32.mrf.mxu1  ;;  %v2698_v32 = vor.u32 1.1754944e-38, %v2697_v25  ;;  %vm2696_vm6 = vcmp.eq.f32.partialorder %v2695_v22, 8.507059e+37 }
 0x6c5   :  { %v2675_v17 = vmul.f32 %v6302_v15, %v2674_v14 }
 0x6c6   :  { %2030 = vmatmul.f32.gmra.mxu2 %v1968_v48 }
 0x6c7   :  { %v2676_v55 = vadd.f32 %v6302_v15, %v2675_v17 }
 0x6c8   :  { %v6304_v33 = vpop.eup %6303 }
 0x6c9   :  { %v2687_v42 = vmul.f32 %v6304_v33, %v2475_v20  ;;  %v2010_v3 = vpop.f32.mrf.mxu2  ;;  %v2680_v54 = vsel %vm2679_vm1, %v6302_v15, %v2676_v55  ;;  %vm2692_vm3 = vweird.f32 %v6304_v33 }
 0x6ca   :  { %5749 = vmatmul.msk.f32.gmra.mxu3 %vm1455_vm14, %v2010_v3  ;;  %v2685_v58 = vsel %vm2682_vm2, %v2684_v46, %v2680_v54  ;;  %vm2693_vm5 = vmor %vm2691_vm4, %vm2692_vm3  ;;  %v8864_v37 = vpop.f32.mrf.mxu3 }
 0x6cb   :  { %v2688_v18 = vsub.f32 1.0, %v2687_v42  ;;  %v2714_v2 = vmul.f32 %v8707_v41, %v2685_v58 }
 0x6cc   :  { %v2806_v41 = vpop.f32.mrf.mxu1 }
 0x6cd   :  { %v2689_v47 = vmul.f32 %v6304_v33, %v2688_v18  ;;  %2838 = vmatmul.f32.gmra.mxu1 %v2714_v2 }
 0x6ce   :  { %5797 = vmatmul.msk.f32.vlgmr.msra.gmra.mxu2 %vm1455_vm14, %v2797_v44 }
 0x6cf   :  { %v2690_v7 = vadd.f32 %v6304_v33, %v2689_v47  ;;  %v10917_v47 = vld [vmem:[#allocation2_spill] sm:$0xff] }
 0x6d1   :  { %v2694_v26 = vsel %vm2693_vm5, %v6304_v33, %v2690_v7 }
 0x6d2   :  { %v2699_v6 = vsel %vm2696_vm6, %v2698_v32, %v2694_v26  ;;  %v8869_v23 = vpop.f32.mrf.mxu3  ;;  %v10918_v32 = vld [vmem:[#allocation3_spill] sm:$0xff] }
 0x6d3   :  { %v2715_v59 = vmul.f32 %v8710_v31, %v2699_v6 }
 0x6d4   :  { %v2809_v10 = vpop.f32.mrf.mxu1 }
 0x6d5   :  { %2841 = vmatmul.f32.gmra.mxu1 %v2715_v59  ;;  %v10919_v59 = vld [vmem:[#allocation4_spill] sm:$0xff] }
 0x6d6   :  { %5798 = vmatmul.msk.f32.gmra.mxu2 %vm1455_vm14, %v2800_v8 }
 0x6da   :  { %v2116_v30 = vpop.f32.mrf.mxu3 }
 0x6dc   :  { %v2812_v4 = vpop.f32.mrf.mxu1 }
 0x6de   :  { %5799 = vmatmul.msk.f32.gmra.mxu2 %vm1455_vm14, %v2803_v11 }
 0x6e2   :  { %v2119_v24 = vpop.f32.mrf.mxu3 }
 0x6e4   :  { %v2815_v16 = vpop.f32.mrf.mxu1 }
 0x6e6   :  { %5800 = vmatmul.msk.f32.gmra.mxu2 %vm1455_vm14, %v2806_v41 }
 0x6ee   :  { %5801 = vmatmul.msk.f32.gmra.mxu2 %vm1455_vm14, %v2809_v10 }
 0x6f3   :  { %v2818_v49 = vpop.f32.mrf.mxu1 }
 0x6f6   :  { %5802 = vmatmul.msk.f32.gmra.mxu2 %vm1455_vm14, %v2812_v4 }
 0x6fc   :  { %v2821_v31 = vpop.f32.mrf.mxu1 }
 0x6fe   :  { %5803 = vmatmul.msk.f32.gmra.mxu2 %vm1455_vm14, %v2815_v16  ;;  %v10921_v16 = vld [vmem:[#allocation6_spill] sm:$0xff] }
 0x701   :  { %v2013_v35 = vpop.f32.mrf.mxu2 }
 0x702   :  { %5750 = vmatmul.msk.f32.gmra.mxu3 %vm1455_vm14, %v2013_v35 }
 0x704   :  { %v2824_v13 = vpop.f32.mrf.mxu1 }
 0x706   :  { %5804 = vmatmul.msk.f32.gmra.mxu2 %vm1455_vm14, %v2818_v49 }
 0x709   :  { %v2016_v12 = vpop.f32.mrf.mxu2 }
 0x70a   :  { %5751 = vmatmul.msk.f32.gmra.mxu3 %vm1455_vm14, %v2016_v12 }
 0x70c   :  { %v2827_v9 = vpop.f32.mrf.mxu1 }
 0x70e   :  { %5805 = vmatmul.msk.f32.gmra.mxu2 %vm1455_vm14, %v2821_v31  ;;  %v10922_v31 = vld [vmem:[#allocation7_spill] sm:$0xff] }
 0x711   :  { %v2019_v60 = vpop.f32.mrf.mxu2 }
 0x712   :  { %5752 = vmatmul.msk.f32.gmra.mxu3 %vm1455_vm14, %v2019_v60 }
 0x716   :  { %5806 = vmatmul.msk.f32.gmra.mxu2 %vm1455_vm14, %v2824_v13  ;;  %v10923_v13 = vld [vmem:[#allocation8_spill] sm:$0xff] }
 0x71e   :  { %5807 = vmatmul.msk.f32.gmra.mxu2 %vm1455_vm14, %v2827_v9 }
 0x725   :  { %v2122_v56 = vpop.f32.mrf.mxu3 }
 0x727   :  { %v2022_v63 = vpop.f32.mrf.mxu2 }
 0x728   :  { %5753 = vmatmul.msk.f32.gmra.mxu3 %vm1455_vm14, %v2022_v63 }
 0x72a   :  { %v2830_v5 = vpop.f32.mrf.mxu1 }
 0x72b   :  { %5808 = vmatmul.msk.f32.gmra.mxu2 %vm1455_vm14, %v2830_v5  ;;  %v10924_v5 = vld [vmem:[#allocation9_spill] sm:$0xff] }
 0x72e   :  { %v2125_v51 = vpop.f32.mrf.mxu3 }
 0x732   :  { %v2833_v50 = vpop.f32.mrf.mxu1 }
 0x733   :  { %5809 = vmatmul.msk.f32.gmra.mxu2 %vm1455_vm14, %v2833_v50  ;;  %v2161_v50 = vadd.f32 %v2125_v51, %v10924_v5  ;;  %v10928_v51 = vld [vmem:[#allocation13_spill] sm:$0xff]  ;;  %v3229_v5 = vld [vmem:[%s10845_s11 + $0x60] sm:$0xff] }
 0x736   :  { %v2128_v40 = vpop.f32.mrf.mxu3 }
 0x737   :  { %v2162_v9 = vadd.f32 %v2128_v40, %v10923_v13  ;;  %v10927_v40 = vld [vmem:[#allocation12_spill] sm:$0xff] }
 0x738   :  { %v2025_v39 = vpop.f32.mrf.mxu2 }
 0x739   :  { %5754 = vmatmul.msk.f32.gmra.mxu3 %vm1455_vm14, %v2025_v39 }
 0x73b   :  { %v2836_v53 = vpop.f32.mrf.mxu1 }
 0x73c   :  { %5810 = vmatmul.msk.f32.gmra.mxu2 %vm1455_vm14, %v2836_v53  ;;  %v10925_v53 = vld [vmem:[#allocation10_spill] sm:$0xff] }
 0x740   :  { %v2028_v36 = vpop.f32.mrf.mxu2 }
 0x741   :  { %5755 = vmatmul.msk.f32.gmra.mxu3 %vm1455_vm14, %v2028_v36  ;;  %v2160_v36 = vadd.f32 %v2122_v56, %v10925_v53  ;;  %v3227_v53 = vld [vmem:[%s10845_s11 + $0x50] sm:$0xff] }
 0x749   :  { %v2031_v62 = vpop.f32.mrf.mxu2 }
 0x74a   :  { %5756 = vmatmul.msk.f32.gmra.mxu3 %vm1455_vm14, %v2031_v62  ;;  %v2839_v34 = vpop.f32.mrf.mxu1 }
 0x74b   :  { %5811 = vmatmul.msk.f32.gmra.mxu2 %vm1455_vm14, %v2839_v34  ;;  %v10926_v34 = vld [vmem:[#allocation11_spill] sm:$0xff] }
 0x74d   :  { %v2131_v57 = vpop.f32.mrf.mxu3 }
 0x74e   :  { %v2163_v12 = vadd.f32 %v2131_v57, %v10922_v31  ;;  %v3232_v31 = vld [vmem:[%s10845_s11 + $0x78] sm:$0xff] }
 0x751   :  { %v8862_v27 = vpop.f32.mrf.mxu2 }
 0x752   :  { %v2842_v44 = vpop.f32.mrf.mxu1 }
 0x753   :  { %5812 = vmatmul.msk.f32.gmra.mxu2 %vm1455_vm14, %v2842_v44  ;;  %v2159_v44 = vadd.f32 %v2119_v24, %v10926_v34  ;;  %v3226_v34 = vld [vmem:[%s10845_s11 + $0x48] sm:$0xff] }
 0x759   :  { %v8867_v1 = vpop.f32.mrf.mxu2 }
 0x761   :  { %v8871_v43 = vpop.f32.mrf.mxu2 }
 0x769   :  { %v2928_v45 = vpop.f32.mrf.mxu2 }
 0x771   :  { %v2931_v52 = vpop.f32.mrf.mxu2 }
 0x779   :  { %v2934_v15 = vpop.f32.mrf.mxu2 }
 0x77a   :  { %v8914_v57 = vadd.f32 %v2934_v15, %v2160_v36 }
 0x781   :  { %v2937_v29 = vpop.f32.mrf.mxu2 }
 0x782   :  { %v8910_v62 = vadd.f32 %v2937_v29, %v2161_v50  ;;  %v10929_v29 = vld [vmem:[#allocation14_spill] sm:$0xff]  ;;  %v3228_v50 = vld [vmem:[%s10845_s11 + $0x58] sm:$0xff] }
 0x783   :  { %v2156_v24 = vadd.f32 %v8864_v37, %v10929_v29  ;;  %v3222_v29 = vld [vmem:[%s10845_s11 + $0x28] sm:$0xff] }
 0x785   :  { %v2134_v61 = vpop.f32.mrf.mxu3 }
 0x786   :  { %v2164_v49 = vadd.f32 %v2134_v61, %v10921_v16  ;;  %v8918_v61 = vadd.f32 %v2931_v52, %v2159_v44  ;;  %v3225_v44 = vld [vmem:[%s10845_s11 + $0x40] sm:$0xff] }
 0x789   :  { %v2940_v20 = vpop.f32.mrf.mxu2 }
 0x78a   :  { %v8906_v39 = vadd.f32 %v2940_v20, %v2162_v9  ;;  %v2157_v20 = vadd.f32 %v8869_v23, %v10928_v51  ;;  %v3230_v9 = vld [vmem:[%s10845_s11 + $0x68] sm:$0xff] }
 0x78c   :  { %v8929_v15 = vadd.f32 %v8871_v43, %v2157_v20  ;;  %v8948_v43 = vld [vmem:[%s10839_s6] sm:$0xff] }
 0x78d   :  { %v2137_v48 = vpop.f32.mrf.mxu3 }
 0x791   :  { %v2943_v14 = vpop.f32.mrf.mxu2 }
 0x792   :  { %v8902_v63 = vadd.f32 %v2943_v14, %v2163_v12  ;;  %v2158_v14 = vadd.f32 %v2116_v30, %v10927_v40  ;;  %v10930_v30 = vld [vmem:[#allocation15_spill] sm:$0xff]  ;;  %v3231_v12 = vld [vmem:[%s10845_s11 + $0x70] sm:$0xff]  ;;  %v3224_v40 = vld [vmem:[%s10845_s11 + $0x38] sm:$0xff] }
 0x793   :  { %v2155_v52 = vadd.f32 %v8858_v21, %v10930_v30  ;;  %v3221_v30 = vld [vmem:[%s10845_s11 + $0x20] sm:$0xff] }
 0x794   :  { %v8923_v56 = vadd.f32 %v2928_v45, %v2158_v14  ;;  %v3223_v14 = vld [vmem:[%s10845_s11 + $0x30] sm:$0xff] }
 0x795   :  { %v2140_v17 = vpop.f32.mrf.mxu3  ;;  %v8939_v23 = vadd.f32 %v8862_v27, %v2155_v52 }
 0x796   :  { %v2166_v41 = vadd.f32 %v2140_v17, %v10919_v59 }
 0x799   :  { %v2946_v0 = vpop.f32.mrf.mxu2 }
 0x79a   :  { %v8898_v60 = vadd.f32 %v2946_v0, %v2164_v49  ;;  %v8935_v0 = vadd.f32 %v8867_v1, %v2156_v24 }
 0x79c   :  { %v3021_v17 = vmul.f32 %v8898_v60, %v8898_v60 }
 0x7a1   :  { %v2949_v8 = vpop.f32.mrf.mxu2 }
 0x7ab   :  { %v2143_v55 = vpop.f32.mrf.mxu3 }
 0x7ac   :  { %v2167_v26 = vadd.f32 %v2143_v55, %v10918_v32  ;;  %v3019_v55 = vmul.f32 %v8906_v39, %v8906_v39 }
 0x7ae   :  { %v2952_v28 = vpop.f32.mrf.mxu2 }
 0x7af   :  { %v8890_v4 = vadd.f32 %v2952_v28, %v2166_v41  ;;  %v3020_v28 = vmul.f32 %v8902_v63, %v8902_v63 }
 0x7b1   :  { %v3023_v45 = vmul.f32 %v8890_v4, %v8890_v4 }
 0x7b6   :  { %v2955_v33 = vpop.f32.mrf.mxu2 }
 0x7bc   :  { %v2146_v46 = vpop.f32.mrf.mxu3 }
 0x7bd   :  { %v2168_v25 = vadd.f32 %v2146_v46, %v7403_v19  ;;  %v10920_v19 = vld [vmem:[#allocation5_spill] sm:$0xff]  ;;  %v3018_v46 = vmul.f32 %v8910_v62, %v8910_v62 }
 0x7be   :  { %v2165_v10 = vadd.f32 %v2137_v48, %v10920_v19  ;;  %v8962_v48 = vld [vmem:[%s10839_s6 + $0x8] sm:$0xff] }
 0x7bf   :  { %v2958_v42 = vpop.f32.mrf.mxu2 }
 0x7c0   :  { %v8882_v6 = vadd.f32 %v2958_v42, %v2168_v25  ;;  %v8894_v35 = vadd.f32 %v2949_v8, %v2165_v10  ;;  %v3017_v42 = vmul.f32 %v8914_v57, %v8914_v57  ;;  %v3012_v25 = vmul.f32 %v8939_v23, %v8939_v23 }
 0x7c2   :  { %v3025_v27 = vmul.f32 %v8882_v6, %v8882_v6  ;;  %v3022_v8 = vmul.f32 %v8894_v35, %v8894_v35 }
 0x7c4   :  { %v2149_v3 = vpop.f32.mrf.mxu3 }
 0x7c5   :  { %v2169_v22 = vadd.f32 %v2149_v3, %v10917_v47  ;;  %v3016_v3 = vmul.f32 %v8918_v61, %v8918_v61 }
 0x7cd   :  { %v2152_v58 = vpop.f32.mrf.mxu3 }
 0x7ce   :  { %v2961_v54 = vpop.f32.mrf.mxu2  ;;  %v2170_v18 = vadd.f32 %v2152_v58, %v7397_v38  ;;  %v8886_v38 = vadd.f32 %v2955_v33, %v2167_v26  ;;  %v8976_v33 = vld [vmem:[%s10839_s6 + $0x10] sm:$0xff]  ;;  %v8990_v58 = vld [vmem:[%s10839_s6 + $0x18] sm:$0xff] }
 0x7cf   :  { %v8878_v7 = vadd.f32 %v2961_v54, %v2169_v22  ;;  %v3015_v54 = vmul.f32 %v8923_v56, %v8923_v56 }
 0x7d0   :  { %v3024_v1 = vmul.f32 %v8886_v38, %v8886_v38 }
 0x7d1   :  { %v3026_v21 = vmul.f32 %v8878_v7, %v8878_v7 }
 0x7d6   :  { %v2964_v2 = vpop.f32.mrf.mxu2 }
 0x7d7   :  { %v8876_v11 = vadd.f32 %v2964_v2, %v2170_v18  ;;  %v3014_v18 = vmul.f32 %v8929_v15, %v8929_v15  ;;  %v3013_v2 = vmul.f32 %v8935_v0, %v8935_v0 }
 0x7d9   :  { %2983 = vmatpush.msra.mxu3 %v8876_v11  ;;  %v3027_v37 = vmul.f32 %v8876_v11, %v8876_v11 }
 0x7db   :  { %2984 = vmatpush.msra.mxu3 %v8878_v7 }
 0x7dd   :  { %2985 = vmatpush.msra.mxu3 %v8882_v6 }
 0x7df   :  { %2986 = vmatpush.msra.mxu3 %v8886_v38 }
 0x7e1   :  { %2987 = vmatpush.msra.mxu3 %v8890_v4 }
 0x7e3   :  { %2988 = vmatpush.msra.mxu3 %v8894_v35 }
 0x7e5   :  { %2989 = vmatpush.msra.mxu3 %v8898_v60 }
 0x7e7   :  { %2990 = vmatpush.msra.mxu3 %v8902_v63 }
 0x7e9   :  { %2991 = vmatpush.msra.mxu3 %v8906_v39 }
 0x7eb   :  { %2992 = vmatpush.msra.mxu3 %v8910_v62 }
 0x7ed   :  { %2993 = vmatpush.msra.mxu3 %v8914_v57 }
 0x7ef   :  { %2994 = vmatpush.msra.mxu3 %v8918_v61 }
 0x7f1   :  { %2995 = vmatpush.msra.mxu3 %v8923_v56 }
 0x7f3   :  { %2996 = vmatpush.msra.mxu3 %v8929_v15 }
 0x7f5   :  { %2997 = vmatpush.msra.mxu3 %v8935_v0 }
 0x7f7   :  { %2998 = vmatpush.msra.mxu3 %v8939_v23 }
 0x7f8   :  { %2999 = vmatmul.f32.vlgmr.msra.gmra.mxu3 %v8948_v43 }
 0x7f9   :  { %3028 = vmatpush.msrb.mxu3 %v3027_v37  ;;  %v3220_v37 = vld [vmem:[%s10845_s11 + $0x18] sm:$0xff] }
 0x7fb   :  { %3029 = vmatpush.msrb.mxu3 %v3026_v21 }
 0x7fd   :  { %3030 = vmatpush.msrb.mxu3 %v3025_v27  ;;  %v3219_v27 = vld [vmem:[%s10845_s11 + $0x10] sm:$0xff] }
 0x7ff   :  { %3031 = vmatpush.msrb.mxu3 %v3024_v1 }
 0x800   :  { %3002 = vmatmul.f32.gmra.mxu3 %v8962_v48 }
 0x801   :  { %3032 = vmatpush.msrb.mxu3 %v3023_v45 }
 0x803   :  { %3033 = vmatpush.msrb.mxu3 %v3022_v8  ;;  %v3218_v8 = vld [vmem:[%s10845_s11 + $0x8] sm:$0xff] }
 0x805   :  { %3034 = vmatpush.msrb.mxu3 %v3021_v17 }
 0x807   :  { %3035 = vmatpush.msrb.mxu3 %v3020_v28  ;;  %v3217_v28 = vld [vmem:[%s10845_s11] sm:$0xff] }
 0x808   :  { %3005 = vmatmul.f32.gmra.mxu3 %v8976_v33 }
 0x809   :  { %3036 = vmatpush.msrb.mxu3 %v3019_v55 }
 0x80b   :  { %3037 = vmatpush.msrb.mxu3 %v3018_v46 }
 0x80d   :  { %3038 = vmatpush.msrb.mxu3 %v3017_v42 }
 0x80f   :  { %3039 = vmatpush.msrb.mxu3 %v3016_v3 }
 0x810   :  { %3008 = vmatmul.f32.gmra.mxu3 %v8990_v58 }
 0x811   :  { %3040 = vmatpush.msrb.mxu3 %v3015_v54 }
 0x813   :  { %3041 = vmatpush.msrb.mxu3 %v3014_v18 }
 0x815   :  { %3042 = vmatpush.msrb.mxu3 %v3013_v2 }
 0x817   :  { %3043 = vmatpush.msrb.mxu3 %v3012_v25 }
 0x818   :  { %3044 = vmatmul.f32.vlgmr.msrb.gmra.mxu3 %v8948_v43 }
 0x819   :  { %3234 = vmatpush.msra.mxu3 %v3232_v31 }
 0x81b   :  { %3235 = vmatpush.msra.mxu3 %v3231_v12 }
 0x81d   :  { %3236 = vmatpush.msra.mxu3 %v3230_v9 }
 0x81f   :  { %3237 = vmatpush.msra.mxu3 %v3229_v5 }
 0x820   :  { %3047 = vmatmul.f32.gmra.mxu3 %v8962_v48 }
 0x821   :  { %3238 = vmatpush.msra.mxu3 %v3228_v50 }
 0x823   :  { %3239 = vmatpush.msra.mxu3 %v3227_v53 }
 0x825   :  { %3240 = vmatpush.msra.mxu3 %v3226_v34 }
 0x827   :  { %3241 = vmatpush.msra.mxu3 %v3225_v44 }
 0x828   :  { %3050 = vmatmul.f32.gmra.mxu3 %v8976_v33 }
 0x829   :  { %3242 = vmatpush.msra.mxu3 %v3224_v40 }
 0x82b   :  { %3243 = vmatpush.msra.mxu3 %v3223_v14 }
 0x82d   :  { %3244 = vmatpush.msra.mxu3 %v3222_v29 }
 0x82f   :  { %3245 = vmatpush.msra.mxu3 %v3221_v30 }
 0x830   :  { %3053 = vmatmul.f32.gmra.mxu3 %v8990_v58 }
 0x831   :  { %3246 = vmatpush.msra.mxu3 %v3220_v37 }
 0x833   :  { %3247 = vmatpush.msra.mxu3 %v3219_v27 }
 0x835   :  { %3248 = vmatpush.msra.mxu3 %v3218_v8 }
 0x837   :  { %3249 = vmatpush.msra.mxu3 %v3217_v28 }
 0x87b   :  { %v3000_v47 = vpop.f32.mrf.mxu3 }
 0x87c   :  { %3073 = vmatmul.f32.vlgmr.msrb.gmra.mxu1 %v3000_v47 }
 0x883   :  { %v3003_v22 = vpop.f32.mrf.mxu3 }
 0x884   :  { %3076 = vmatmul.f32.gmra.mxu1 %v3003_v22 }
 0x88b   :  { %v3006_v32 = vpop.f32.mrf.mxu3 }
 0x88c   :  { %3079 = vmatmul.f32.gmra.mxu1 %v3006_v32 }
 0x893   :  { %v3009_v26 = vpop.f32.mrf.mxu3 }
 0x894   :  { %3082 = vmatmul.f32.gmra.mxu1 %v3009_v26 }
 0x89b   :  { %v3045_v59 = vpop.f32.mrf.mxu3 }
 0x89c   :  { %3102 = vmatmul.f32.vlgmr.msra.gmra.mxu1 %v3045_v59  ;;  %v9068_v59 = vld [vmem:[%s10842_s12] sm:$0x1f] }
 0x89d   :  { %v3180_v44 = vperm.slane %v9068_v59, 3 }
 0x8a3   :  { %v3048_v41 = vpop.f32.mrf.mxu3 }
 0x8a4   :  { %3105 = vmatmul.f32.gmra.mxu1 %v3048_v41  ;;  %v9071_v41 = vperm.slane %v9068_v59, 2 }
 0x8ab   :  { %v3051_v19 = vpop.f32.mrf.mxu3 }
 0x8ac   :  { %3108 = vmatmul.f32.gmra.mxu1 %v3051_v19 }
 0x8b3   :  { %v3054_v10 = vpop.f32.mrf.mxu3 }
 0x8b4   :  { %3111 = vmatmul.f32.gmra.mxu1 %v3054_v10 }
 0x8f9   :  { %v9003_v16 = vpop.f32.mrf.mxu1 }
 0x8fa   :  { %v3115_v51 = vmul.f32 %v9003_v16, %v9003_v16 }
 0x901   :  { %v9005_v49 = vpop.f32.mrf.mxu1 }
 0x902   :  { %v3116_v1 = vmul.f32 %v9005_v49, %v9005_v49 }
 0x909   :  { %v9013_v13 = vpop.f32.mrf.mxu1 }
 0x90a   :  { %v3117_v54 = vmul.f32 %v9013_v13, %v9013_v13 }
 0x911   :  { %v9027_v36 = vpop.f32.mrf.mxu1 }
 0x912   :  { %v3118_v12 = vmul.f32 %v9027_v36, %v9027_v36 }
 0x919   :  { %v3103_v20 = vpop.f32.mrf.mxu1 }
 0x91a   :  { %v3119_v24 = vsub.f32 %v3103_v20, %v3115_v51 }
 0x91c   :  { %v3123_v52 = vmax.f32 %v3119_v24, 0.0 }
 0x91e   :  { %v3127_v21 = vadd.f32 1e-05, %v3123_v52 }
 0x920   :  { %6305 = vrsqrt.f32 %v3127_v21  ;;  %vm3137_vm8 = vweird.f32 %v3127_v21 }
 0x921   :  { %v3106_v45 = vpop.f32.mrf.mxu1 }
 0x922   :  { %v3120_v17 = vsub.f32 %v3106_v45, %v3116_v1 }
 0x924   :  { %v3124_v55 = vmax.f32 %v3120_v17, 0.0 }
 0x926   :  { %v6306_v46 = vpop.eup %6305  ;;  %v3128_v42 = vadd.f32 1e-05, %v3124_v55 }
 0x927   :  { %v3132_v3 = vmul.f32 %v6306_v46, %v3127_v21  ;;  %vm3138_vm7 = vweird.f32 %v6306_v46 }
 0x928   :  { %6307 = vrsqrt.f32 %v3128_v42  ;;  %vm3139_vm9 = vmor %vm3137_vm8, %vm3138_vm7  ;;  %vm3147_vm11 = vweird.f32 %v3128_v42 }
 0x929   :  { %v3133_v18 = vmul.f32 %v6306_v46, %v3132_v3  ;;  %v3109_v2 = vpop.f32.mrf.mxu1 }
 0x92a   :  { %v3121_v25 = vsub.f32 %v3109_v2, %v3117_v54 }
 0x92b   :  { %v3134_v47 = vmul.f32 0.5, %v3133_v18 }
 0x92c   :  { %v3125_v22 = vmax.f32 %v3121_v25, 0.0 }
 0x92d   :  { %v3135_v32 = vsub.f32 1.5, %v3134_v47 }
 0x92e   :  { %v6308_v26 = vpop.eup %6307  ;;  %v3129_v19 = vadd.f32 1e-05, %v3125_v22 }
 0x92f   :  { %v3136_v10 = vmul.f32 %v6306_v46, %v3135_v32  ;;  %v3142_v31 = vmul.f32 %v6308_v26, %v3128_v42  ;;  %vm3148_vm10 = vweird.f32 %v6308_v26 }
 0x930   :  { %6309 = vrsqrt.f32 %v3129_v19  ;;  %vm3149_vm12 = vmor %vm3147_vm11, %vm3148_vm10  ;;  %vm3157_vm15 = vweird.f32 %v3129_v19 }
 0x931   :  { %v3140_v9 = vsel %vm3139_vm9, %v6306_v46, %v3136_v10  ;;  %v3143_v5 = vmul.f32 %v6308_v26, %v3142_v31  ;;  %v3112_v50 = vpop.f32.mrf.mxu1 }
 0x932   :  { %v9076_v53 = vmul.f32 %v9071_v41, %v3140_v9  ;;  %v3122_v34 = vsub.f32 %v3112_v50, %v3118_v12 }
 0x933   :  { %v3144_v40 = vmul.f32 0.5, %v3143_v5 }
 0x934   :  { %v3126_v14 = vmax.f32 %v3122_v34, 0.0  ;;  %v3176_v51 = vmul.f32 %v9076_v53, %v9003_v16  ;;  %v3185_v52 = vmul.f32 %v9076_v53, %v8939_v23  ;;  %v3193_v27 = vmul.f32 %v9076_v53, %v8902_v63 }
 0x935   :  { %v3145_v20 = vsub.f32 1.5, %v3144_v40  ;;  %v3197_v1 = vmul.f32 %v9076_v53, %v8886_v38 }
 0x936   :  { %v6310_v29 = vpop.eup %6309  ;;  %v3130_v24 = vadd.f32 1e-05, %v3126_v14  ;;  %v3181_v30 = vsub.f32 %v3180_v44, %v3176_v51 }
 0x937   :  { %v3146_v37 = vmul.f32 %v6308_v26, %v3145_v20  ;;  %v3152_v21 = vmul.f32 %v6310_v29, %v3129_v19  ;;  %vm3158_vm13 = vweird.f32 %v6310_v29 }
 0x938   :  { %6311 = vrsqrt.f32 %v3130_v24  ;;  %v3201_v16 = vadd.f32 %v3185_v52, %v3181_v30  ;;  %v3209_v17 = vadd.f32 %v3193_v27, %v3181_v30  ;;  %v9087_v28 = vadd.f32 %v3197_v1, %v3181_v30  ;;  %vm3159_vm0 = vmor %vm3157_vm15, %vm3158_vm13 }
 0x939   :  { %v3150_v45 = vsel %vm3149_vm12, %v6308_v26, %v3146_v37  ;;  %v3153_v8 = vmul.f32 %v6310_v29, %v3152_v21  ;;  %vm3167_vm2 = vweird.f32 %v3130_v24  ;;  %v3189_v37 = vmul.f32 %v9076_v53, %v8918_v61 }
 0x93a   :  { %v3173_v55 = vmul.f32 %v9071_v41, %v3150_v45  ;;  %3250 = vmatmul.f32.vlgmr.msra.gmra.mxu3 %v3201_v16 }
 0x93b   :  { %v3154_v23 = vmul.f32 0.5, %v3153_v8  ;;  %v3205_v21 = vadd.f32 %v3189_v37, %v3181_v30  ;;  %v6481_v37 = vld [vmem:[%s10840_s7 + $0x60] sm:$0xff] }
 0x93c   :  { %v3177_v46 = vmul.f32 %v3173_v55, %v9005_v49  ;;  %v3186_v38 = vmul.f32 %v3173_v55, %v8935_v0  ;;  %v3194_v54 = vmul.f32 %v3173_v55, %v8898_v60  ;;  %v3198_v18 = vmul.f32 %v3173_v55, %v8882_v6 }
 0x93d   :  { %v3155_v42 = vsub.f32 1.5, %v3154_v23 }
 0x93e   :  { %v6312_v63 = vpop.eup %6311  ;;  %v3182_v3 = vsub.f32 %v3180_v44, %v3177_v46  ;;  %v3233_v46 = vperm.slane %v9068_v59, 4 }
 0x93f   :  { %v3156_v2 = vmul.f32 %v6310_v29, %v3155_v42  ;;  %v3162_v25 = vmul.f32 %v6312_v63, %v3130_v24  ;;  %vm3168_vm1 = vweird.f32 %v6312_v63 }
 0x940   :  { %v3202_v47 = vadd.f32 %v3186_v38, %v3182_v3  ;;  %v3210_v22 = vadd.f32 %v3194_v54, %v3182_v3  ;;  %v3214_v32 = vadd.f32 %v3198_v18, %v3182_v3  ;;  %vm3169_vm3 = vmor %vm3167_vm2, %vm3168_vm1 }
 0x941   :  { %v3160_v26 = vsel %vm3159_vm0, %v6310_v29, %v3156_v2  ;;  %v3163_v10 = vmul.f32 %v6312_v63, %v3162_v25 }
 0x942   :  { %v3174_v49 = vmul.f32 %v9071_v41, %v3160_v26  ;;  %3253 = vmatmul.f32.gmra.mxu3 %v3202_v47 }
 0x943   :  { %v3164_v31 = vmul.f32 0.5, %v3163_v10 }
 0x944   :  { %v3178_v12 = vmul.f32 %v3174_v49, %v9013_v13  ;;  %v3187_v6 = vmul.f32 %v3174_v49, %v8929_v15  ;;  %v3195_v19 = vmul.f32 %v3174_v49, %v8894_v35  ;;  %v3199_v9 = vmul.f32 %v3174_v49, %v8878_v7 }
 0x945   :  { %v3165_v0 = vsub.f32 1.5, %v3164_v31 }
 0x946   :  { %v3183_v60 = vsub.f32 %v3180_v44, %v3178_v12 }
 0x947   :  { %v3166_v5 = vmul.f32 %v6312_v63, %v3165_v0 }
 0x948   :  { %v3203_v50 = vadd.f32 %v3187_v6, %v3183_v60  ;;  %v3211_v34 = vadd.f32 %v3195_v19, %v3183_v60  ;;  %v3215_v40 = vadd.f32 %v3199_v9, %v3183_v60 }
 0x949   :  { %v3170_v14 = vsel %vm3169_vm3, %v6312_v63, %v3166_v5 }
 0x94a   :  { %v3175_v51 = vmul.f32 %v9071_v41, %v3170_v14  ;;  %3256 = vmatmul.f32.gmra.mxu3 %v3203_v50  ;;  %v3190_v41 = vmul.f32 %v3173_v55, %v8914_v57 }
 0x94c   :  { %v3179_v13 = vmul.f32 %v3175_v51, %v9027_v36  ;;  %v3188_v29 = vmul.f32 %v3175_v51, %v8923_v56  ;;  %v3196_v15 = vmul.f32 %v3175_v51, %v8890_v4  ;;  %v3200_v35 = vmul.f32 %v3175_v51, %v8876_v11 }
 0x94d   :  { %v3206_v27 = vadd.f32 %v3190_v41, %v3182_v3  ;;  %v3191_v36 = vmul.f32 %v3174_v49, %v8910_v62  ;;  %v3192_v4 = vmul.f32 %v3175_v51, %v8906_v39  ;;  %v6484_v41 = vld [vmem:[%s10840_s7 + $0x48] sm:$0xff] }
 0x94e   :  { %v3184_v20 = vsub.f32 %v3180_v44, %v3179_v13 }
 0x94f   :  { %v3207_v56 = vadd.f32 %v3191_v36, %v3183_v60  ;;  %v6487_v36 = vld [vmem:[%s10840_s7 + $0x30] sm:$0xff] }
 0x950   :  { %v3204_v7 = vadd.f32 %v3188_v29, %v3184_v20  ;;  %v3212_v52 = vadd.f32 %v3196_v15, %v3184_v20  ;;  %v3216_v24 = vadd.f32 %v3200_v35, %v3184_v20  ;;  %v3208_v11 = vadd.f32 %v3192_v4, %v3184_v20  ;;  %v6489_v4 = vld [vmem:[%s10840_s7 + $0x20] sm:$0xff] }
 0x952   :  { %3259 = vmatmul.f32.gmra.mxu3 %v3204_v7  ;;  %v6478_v7 = vld [vmem:[%s10840_s7 + $0x78] sm:$0xff] }
 0x95a   :  { %3262 = vmatmul.f32.gmra.mxu3 %v3205_v21  ;;  %v6483_v21 = vld [vmem:[%s10840_s7 + $0x50] sm:$0xff] }
 0x962   :  { %3265 = vmatmul.f32.gmra.mxu3 %v3206_v27  ;;  %v6485_v27 = vld [vmem:[%s10840_s7 + $0x40] sm:$0xff] }
 0x96a   :  { %3268 = vmatmul.f32.gmra.mxu3 %v3207_v56  ;;  %v6488_v56 = vld [vmem:[%s10840_s7 + $0x28] sm:$0xff] }
 0x972   :  { %3271 = vmatmul.f32.gmra.mxu3 %v3208_v11  ;;  %v6491_v11 = vld [vmem:[%s10840_s7 + $0x10] sm:$0xff] }
 0x97a   :  { %3274 = vmatmul.f32.gmra.mxu3 %v3209_v17 }
 0x982   :  { %3277 = vmatmul.f32.gmra.mxu3 %v3210_v22 }
 0x98a   :  { %3280 = vmatmul.f32.gmra.mxu3 %v3211_v34 }
 0x992   :  { %3283 = vmatmul.f32.gmra.mxu3 %v3212_v52  ;;  %v6479_v52 = vld [vmem:[%s10840_s7 + $0x70] sm:$0xff] }
 0x99a   :  { %3286 = vmatmul.f32.gmra.mxu3 %v9087_v28 }
 0x9a2   :  { %3289 = vmatmul.f32.gmra.mxu3 %v3214_v32 }
 0x9aa   :  { %3292 = vmatmul.f32.gmra.mxu3 %v3215_v40 }
 0x9b2   :  { %3295 = vmatmul.f32.gmra.mxu3 %v3216_v24  ;;  %v6480_v24 = vld [vmem:[%s10840_s7 + $0x68] sm:$0xff] }
 0x9bd   :  { %v9110_v57 = vpop.f32.mrf.mxu3 }
 0x9be   :  { %v9186_v20 = vadd.f32 %v9110_v57, %v3233_v46  ;;  %v6492_v57 = vld [vmem:[%s10840_s7 + $0x8] sm:$0xff] }
 0x9c0   :  { %10933 = vst [vmem:[#allocation4_spill] sm:$0xff] %v9186_v20  ;;  %v3330_v35 = vmul.f32 %v9186_v20, %v9186_v20 }
 0x9c5   :  { %v9112_v61 = vpop.f32.mrf.mxu3 }
 0x9c6   :  { %v9180_v51 = vadd.f32 %v9112_v61, %v3233_v46  ;;  %v6493_v61 = vld [vmem:[%s10840_s7] sm:$0xff] }
 0x9c8   :  { %10932 = vst [vmem:[#allocation3_spill] sm:$0xff] %v9180_v51  ;;  %v3331_v15 = vmul.f32 %v9180_v51, %v9180_v51 }
 0x9cd   :  { %v3257_v62 = vpop.f32.mrf.mxu3 }
 0x9ce   :  { %v9174_v40 = vadd.f32 %v3257_v62, %v3233_v46 }
 0x9d0   :  { %10931 = vst [vmem:[#allocation2_spill] sm:$0xff] %v9174_v40  ;;  %v3332_v29 = vmul.f32 %v9174_v40, %v9174_v40 }
 0x9d5   :  { %v3260_v53 = vpop.f32.mrf.mxu3 }
 0x9d6   :  { %v9169_v50 = vadd.f32 %v3260_v53, %v3233_v46 }
 0x9d8   :  { %v3333_v13 = vmul.f32 %v9169_v50, %v9169_v50 }
 0x9dd   :  { %v3263_v44 = vpop.f32.mrf.mxu3 }
 0x9de   :  { %v9164_v9 = vadd.f32 %v3263_v44, %v3233_v46 }
 0x9e0   :  { %v3334_v14 = vmul.f32 %v9164_v9, %v9164_v9 }
 0x9e5   :  { %v3266_v30 = vpop.f32.mrf.mxu3 }
 0x9e6   :  { %v9159_v6 = vadd.f32 %v3266_v30, %v3233_v46 }
 0x9e8   :  { %v3335_v34 = vmul.f32 %v9159_v6, %v9159_v6 }
 0x9ed   :  { %v3269_v39 = vpop.f32.mrf.mxu3 }
 0x9ee   :  { %v9154_v0 = vadd.f32 %v3269_v39, %v3233_v46 }
 0x9f0   :  { %v3336_v5 = vmul.f32 %v9154_v0, %v9154_v0 }
 0x9f5   :  { %v3272_v1 = vpop.f32.mrf.mxu3 }
 0x9f6   :  { %v9149_v31 = vadd.f32 %v3272_v1, %v3233_v46 }
 0x9f8   :  { %v3337_v19 = vmul.f32 %v9149_v31, %v9149_v31 }
 0x9fd   :  { %v3275_v16 = vpop.f32.mrf.mxu3 }
 0x9fe   :  { %v9144_v10 = vadd.f32 %v3275_v16, %v3233_v46 }
 0xa00   :  { %v3338_v60 = vmul.f32 %v9144_v10, %v9144_v10 }
 0xa05   :  { %v3278_v45 = vpop.f32.mrf.mxu3 }
 0xa06   :  { %v9139_v32 = vadd.f32 %v3278_v45, %v3233_v46  ;;  %v5859_v45 = vld [vmem:[%s10841_s9 + $0x2e8] sm:$0xff] }
 0xa07   :  { %3584 = vmatpush.msrb.mxu2 %v5859_v45  ;;  %v5822_v45 = vld [vmem:[%s10841_s9 + $0x1c0] sm:$0xff] }
 0xa08   :  { %v3339_v12 = vmul.f32 %v9139_v32, %v9139_v32 }
 0xa0d   :  { %v3281_v8 = vpop.f32.mrf.mxu3 }
 0xa0e   :  { %v9134_v47 = vadd.f32 %v3281_v8, %v3233_v46  ;;  %v5860_v8 = vld [vmem:[%s10841_s9 + $0x2f0] sm:$0xff] }
 0xa10   :  { %v3340_v49 = vmul.f32 %v9134_v47, %v9134_v47 }
 0xa15   :  { %v3284_v17 = vpop.f32.mrf.mxu3 }
 0xa16   :  { %v9129_v2 = vadd.f32 %v3284_v17, %v3233_v46  ;;  %v5861_v17 = vld [vmem:[%s10841_s9 + $0x2f8] sm:$0xff] }
 0xa18   :  { %v3341_v26 = vmul.f32 %v9129_v2, %v9129_v2 }
 0xa1d   :  { %v3287_v55 = vpop.f32.mrf.mxu3 }
 0xa1e   :  { %v9124_v18 = vadd.f32 %v3287_v55, %v3233_v46  ;;  %v5856_v55 = vld [vmem:[%s10841_s9 + $0x2d0] sm:$0xff] }
 0xa1f   :  { %3585 = vmatpush.msrb.mxu2 %v5856_v55  ;;  %v5817_v55 = vld [vmem:[%s10841_s9 + $0x198] sm:$0xff] }
 0xa20   :  { %v3342_v22 = vmul.f32 %v9124_v18, %v9124_v18 }
 0xa25   :  { %v3290_v23 = vpop.f32.mrf.mxu3 }
 0xa26   :  { %v9119_v38 = vadd.f32 %v3290_v23, %v3233_v46  ;;  %v5857_v23 = vld [vmem:[%s10841_s9 + $0x2d8] sm:$0xff] }
 0xa28   :  { %v3343_v25 = vmul.f32 %v9119_v38, %v9119_v38 }
 0xa2d   :  { %v3293_v28 = vpop.f32.mrf.mxu3 }
 0xa2e   :  { %v9115_v63 = vadd.f32 %v3293_v28, %v3233_v46  ;;  %v5858_v28 = vld [vmem:[%s10841_s9 + $0x2e0] sm:$0xff] }
 0xa30   :  { %v3344_v59 = vmul.f32 %v9115_v63, %v9115_v63 }
 0xa35   :  { %v3296_v42 = vpop.f32.mrf.mxu3 }
 0xa36   :  { %v9117_v3 = vadd.f32 %v3296_v42, %v3233_v46  ;;  %v5853_v46 = vld [vmem:[%s10841_s9 + $0x2b8] sm:$0xff]  ;;  %v5854_v42 = vld [vmem:[%s10841_s9 + $0x2c0] sm:$0xff] }
 0xa37   :  { %3586 = vmatpush.msrb.mxu2 %v5853_v46 }
 0xa38   :  { %3301 = vmatpush.msra.mxu0 %v9117_v3  ;;  %v3345_v54 = vmul.f32 %v9117_v3, %v9117_v3 }
 0xa3a   :  { %3302 = vmatpush.msra.mxu0 %v9115_v63  ;;  %3346 = vmatpush.msrb.mxu1 %v3345_v54  ;;  %v5855_v54 = vld [vmem:[%s10841_s9 + $0x2c8] sm:$0xff] }
 0xa3c   :  { %3303 = vmatpush.msra.mxu0 %v9119_v38  ;;  %3347 = vmatpush.msrb.mxu1 %v3344_v59  ;;  %v5850_v59 = vld [vmem:[%s10841_s9 + $0x2a0] sm:$0xff] }
 0xa3d   :  { %3587 = vmatpush.msrb.mxu2 %v5850_v59  ;;  %v5816_v59 = vld [vmem:[%s10841_s9 + $0x190] sm:$0xff] }
 0xa3e   :  { %3304 = vmatpush.msra.mxu0 %v9124_v18  ;;  %3348 = vmatpush.msrb.mxu1 %v3343_v25  ;;  %v5851_v25 = vld [vmem:[%s10841_s9 + $0x2a8] sm:$0xff] }
 0xa40   :  { %3305 = vmatpush.msra.mxu0 %v9129_v2  ;;  %3349 = vmatpush.msrb.mxu1 %v3342_v22  ;;  %v5852_v22 = vld [vmem:[%s10841_s9 + $0x2b0] sm:$0xff] }
 0xa42   :  { %3306 = vmatpush.msra.mxu0 %v9134_v47  ;;  %3350 = vmatpush.msrb.mxu1 %v3341_v26  ;;  %v5847_v26 = vld [vmem:[%s10841_s9 + $0x288] sm:$0xff] }
 0xa43   :  { %3588 = vmatpush.msrb.mxu2 %v5847_v26 }
 0xa44   :  { %3307 = vmatpush.msra.mxu0 %v9139_v32  ;;  %3351 = vmatpush.msrb.mxu1 %v3340_v49  ;;  %v5848_v49 = vld [vmem:[%s10841_s9 + $0x290] sm:$0xff] }
 0xa46   :  { %3308 = vmatpush.msra.mxu0 %v9144_v10  ;;  %3352 = vmatpush.msrb.mxu1 %v3339_v12  ;;  %v5849_v12 = vld [vmem:[%s10841_s9 + $0x298] sm:$0xff] }
 0xa48   :  { %3309 = vmatpush.msra.mxu0 %v9149_v31  ;;  %3353 = vmatpush.msrb.mxu1 %v3338_v60  ;;  %v5844_v60 = vld [vmem:[%s10841_s9 + $0x270] sm:$0xff] }
 0xa49   :  { %3589 = vmatpush.msrb.mxu2 %v5844_v60 }
 0xa4a   :  { %3310 = vmatpush.msra.mxu0 %v9154_v0  ;;  %3354 = vmatpush.msrb.mxu1 %v3337_v19  ;;  %v5845_v19 = vld [vmem:[%s10841_s9 + $0x278] sm:$0xff] }
 0xa4c   :  { %3311 = vmatpush.msra.mxu0 %v9159_v6  ;;  %3355 = vmatpush.msrb.mxu1 %v3336_v5  ;;  %v5846_v5 = vld [vmem:[%s10841_s9 + $0x280] sm:$0xff] }
 0xa4e   :  { %3312 = vmatpush.msra.mxu0 %v9164_v9  ;;  %3356 = vmatpush.msrb.mxu1 %v3335_v34  ;;  %v5841_v34 = vld [vmem:[%s10841_s9 + $0x258] sm:$0xff] }
 0xa4f   :  { %3590 = vmatpush.msrb.mxu2 %v5841_v34 }
 0xa50   :  { %3313 = vmatpush.msra.mxu0 %v9169_v50  ;;  %3357 = vmatpush.msrb.mxu1 %v3334_v14  ;;  %v5842_v14 = vld [vmem:[%s10841_s9 + $0x260] sm:$0xff] }
 0xa52   :  { %3314 = vmatpush.msra.mxu0 %v9174_v40  ;;  %3358 = vmatpush.msrb.mxu1 %v3333_v13  ;;  %v5843_v13 = vld [vmem:[%s10841_s9 + $0x268] sm:$0xff] }
 0xa54   :  { %3315 = vmatpush.msra.mxu0 %v9180_v51  ;;  %3359 = vmatpush.msrb.mxu1 %v3332_v29  ;;  %v5838_v29 = vld [vmem:[%s10841_s9 + $0x240] sm:$0xff] }
 0xa55   :  { %3591 = vmatpush.msrb.mxu2 %v5838_v29 }
 0xa56   :  { %3316 = vmatpush.msra.mxu0 %v9186_v20  ;;  %3360 = vmatpush.msrb.mxu1 %v3331_v15  ;;  %v5839_v15 = vld [vmem:[%s10841_s9 + $0x248] sm:$0xff] }
 0xa57   :  { %3317 = vmatmul.f32.vlgmr.msra.gmra.mxu0 %v8948_v43 }
 0xa58   :  { %3361 = vmatpush.msrb.mxu1 %v3330_v35  ;;  %3375 = vmatpush.msrb.mxu0 %v6478_v7  ;;  %v5840_v35 = vld [vmem:[%s10841_s9 + $0x250] sm:$0xff] }
 0xa59   :  { %3362 = vmatmul.f32.vlgmr.msrb.gmra.mxu1 %v8948_v43  ;;  %v6482_v43 = vld [vmem:[%s10840_s7 + $0x58] sm:$0xff] }
 0xa5a   :  { %3376 = vmatpush.msrb.mxu0 %v6479_v52  ;;  %3404 = vmatpush.msra.mxu1 %v6478_v7  ;;  %v5835_v7 = vld [vmem:[%s10841_s9 + $0x228] sm:$0xff] }
 0xa5b   :  { %3592 = vmatpush.msrb.mxu2 %v5835_v7 }
 0xa5c   :  { %3377 = vmatpush.msrb.mxu0 %v6480_v24  ;;  %3405 = vmatpush.msra.mxu1 %v6479_v52  ;;  %v5836_v52 = vld [vmem:[%s10841_s9 + $0x230] sm:$0xff] }
 0xa5e   :  { %3378 = vmatpush.msrb.mxu0 %v6481_v37  ;;  %3406 = vmatpush.msra.mxu1 %v6480_v24  ;;  %v5837_v24 = vld [vmem:[%s10841_s9 + $0x238] sm:$0xff] }
 0xa5f   :  { %3320 = vmatmul.f32.gmra.mxu0 %v8962_v48 }
 0xa60   :  { %3379 = vmatpush.msrb.mxu0 %v6482_v43  ;;  %3407 = vmatpush.msra.mxu1 %v6481_v37 }
 0xa61   :  { %3365 = vmatmul.f32.gmra.mxu1 %v8962_v48  ;;  %v6486_v48 = vld [vmem:[%s10840_s7 + $0x38] sm:$0xff] }
 0xa62   :  { %3380 = vmatpush.msrb.mxu0 %v6483_v21  ;;  %3408 = vmatpush.msra.mxu1 %v6482_v43  ;;  %v5832_v43 = vld [vmem:[%s10841_s9 + $0x210] sm:$0xff] }
 0xa63   :  { %3593 = vmatpush.msrb.mxu2 %v5832_v43 }
 0xa64   :  { %3381 = vmatpush.msrb.mxu0 %v6484_v41  ;;  %3409 = vmatpush.msra.mxu1 %v6483_v21  ;;  %v5833_v21 = vld [vmem:[%s10841_s9 + $0x218] sm:$0xff] }
 0xa66   :  { %3382 = vmatpush.msrb.mxu0 %v6485_v27  ;;  %3410 = vmatpush.msra.mxu1 %v6484_v41  ;;  %v5834_v41 = vld [vmem:[%s10841_s9 + $0x220] sm:$0xff] }
 0xa67   :  { %3323 = vmatmul.f32.gmra.mxu0 %v8976_v33 }
 0xa68   :  { %3383 = vmatpush.msrb.mxu0 %v6486_v48  ;;  %3411 = vmatpush.msra.mxu1 %v6485_v27 }
 0xa69   :  { %3368 = vmatmul.f32.gmra.mxu1 %v8976_v33  ;;  %v6490_v33 = vld [vmem:[%s10840_s7 + $0x18] sm:$0xff] }
 0xa6a   :  { %3384 = vmatpush.msrb.mxu0 %v6487_v36  ;;  %3412 = vmatpush.msra.mxu1 %v6486_v48 }
 0xa6c   :  { %3385 = vmatpush.msrb.mxu0 %v6488_v56  ;;  %3413 = vmatpush.msra.mxu1 %v6487_v36  ;;  %v5829_v36 = vld [vmem:[%s10841_s9 + $0x1f8] sm:$0xff] }
 0xa6d   :  { %3594 = vmatpush.msrb.mxu2 %v5829_v36 }
 0xa6e   :  { %3386 = vmatpush.msrb.mxu0 %v6489_v4  ;;  %3414 = vmatpush.msra.mxu1 %v6488_v56  ;;  %v5830_v56 = vld [vmem:[%s10841_s9 + $0x200] sm:$0xff] }
 0xa6f   :  { %3326 = vmatmul.f32.gmra.mxu0 %v8990_v58 }
 0xa70   :  { %3387 = vmatpush.msrb.mxu0 %v6490_v33  ;;  %3415 = vmatpush.msra.mxu1 %v6489_v4  ;;  %v5831_v4 = vld [vmem:[%s10841_s9 + $0x208] sm:$0xff] }
 0xa71   :  { %3371 = vmatmul.f32.gmra.mxu1 %v8990_v58 }
 0xa72   :  { %3388 = vmatpush.msrb.mxu0 %v6491_v11  ;;  %3416 = vmatpush.msra.mxu1 %v6490_v33 }
 0xa74   :  { %3389 = vmatpush.msrb.mxu0 %v6492_v57  ;;  %3417 = vmatpush.msra.mxu1 %v6491_v11  ;;  %v5826_v11 = vld [vmem:[%s10841_s9 + $0x1e0] sm:$0xff] }
 0xa75   :  { %3595 = vmatpush.msrb.mxu2 %v5826_v11 }
 0xa76   :  { %3390 = vmatpush.msrb.mxu0 %v6493_v61  ;;  %3418 = vmatpush.msra.mxu1 %v6492_v57  ;;  %v5827_v57 = vld [vmem:[%s10841_s9 + $0x1e8] sm:$0xff] }
 0xa78   :  { %3419 = vmatpush.msra.mxu1 %v6493_v61  ;;  %3649 = vmatpush.msra.mxu0 %v5860_v8  ;;  %v5828_v61 = vld [vmem:[%s10841_s9 + $0x1f0] sm:$0xff] }
 0xa7a   :  { %3714 = vmatpush.msrb.mxu1 %v5861_v17  ;;  %3650 = vmatpush.msra.mxu0 %v5857_v23  ;;  %v5818_v23 = vld [vmem:[%s10841_s9 + $0x1a0] sm:$0xff] }
 0xa7c   :  { %3715 = vmatpush.msrb.mxu1 %v5858_v28  ;;  %3651 = vmatpush.msra.mxu0 %v5854_v42  ;;  %v5819_v28 = vld [vmem:[%s10841_s9 + $0x1a8] sm:$0xff]  ;;  %v5814_v42 = vld [vmem:[%s10841_s9 + $0x180] sm:$0xff] }
 0xa7e   :  { %3716 = vmatpush.msrb.mxu1 %v5855_v54  ;;  %3652 = vmatpush.msra.mxu0 %v5851_v25  ;;  %v5815_v54 = vld [vmem:[%s10841_s9 + $0x188] sm:$0xff] }
 0xa80   :  { %3717 = vmatpush.msrb.mxu1 %v5852_v22  ;;  %3653 = vmatpush.msra.mxu0 %v5848_v49 }
 0xa82   :  { %3718 = vmatpush.msrb.mxu1 %v5849_v12  ;;  %3654 = vmatpush.msra.mxu0 %v5845_v19 }
 0xa84   :  { %3719 = vmatpush.msrb.mxu1 %v5846_v5  ;;  %3655 = vmatpush.msra.mxu0 %v5842_v14  ;;  %v5813_v14 = vld [vmem:[%s10842_s12 + $0x8] sm:$0x1f] }
 0xa85   :  { %v9412_v7 = vperm.slane %v5813_v14, 0 }
 0xa86   :  { %3720 = vmatpush.msrb.mxu1 %v5843_v13  ;;  %3656 = vmatpush.msra.mxu0 %v5839_v15 }
 0xa88   :  { %3721 = vmatpush.msrb.mxu1 %v5840_v35  ;;  %3657 = vmatpush.msra.mxu0 %v5836_v52 }
 0xa8a   :  { %3722 = vmatpush.msrb.mxu1 %v5837_v24  ;;  %3658 = vmatpush.msra.mxu0 %v5833_v21 }
 0xa8c   :  { %3723 = vmatpush.msrb.mxu1 %v5834_v41  ;;  %3659 = vmatpush.msra.mxu0 %v5830_v56 }
 0xa8e   :  { %3724 = vmatpush.msrb.mxu1 %v5831_v4  ;;  %3660 = vmatpush.msra.mxu0 %v5827_v57 }
 0xa90   :  { %3725 = vmatpush.msrb.mxu1 %v5828_v61 }
 0xad4   :  { %v3318_v58 = vpop.f32.mrf.mxu0 }
 0xad5   :  { %3391 = vmatmul.f32.vlgmr.msrb.gmra.mxu0 %v3318_v58 }
 0xad6   :  { %v3363_v62 = vpop.f32.mrf.mxu1 }
 0xad7   :  { %3420 = vmatmul.f32.vlgmr.msra.gmra.mxu1 %v3363_v62  ;;  %v5823_v62 = vld [vmem:[%s10841_s9 + $0x1c8] sm:$0xff] }
 0xad8   :  { %3596 = vmatpush.msrb.mxu2 %v5823_v62 }
 0xadc   :  { %v3321_v53 = vpop.f32.mrf.mxu0 }
 0xadd   :  { %3394 = vmatmul.f32.gmra.mxu0 %v3321_v53  ;;  %v5824_v53 = vld [vmem:[%s10841_s9 + $0x1d0] sm:$0xff] }
 0xade   :  { %v3366_v44 = vpop.f32.mrf.mxu1  ;;  %3661 = vmatpush.msra.mxu0 %v5824_v53 }
 0xadf   :  { %3423 = vmatmul.f32.gmra.mxu1 %v3366_v44  ;;  %v5825_v44 = vld [vmem:[%s10841_s9 + $0x1d8] sm:$0xff] }
 0xae0   :  { %3726 = vmatpush.msrb.mxu1 %v5825_v44 }
 0xae2   :  { %3727 = vmatpush.msrb.mxu1 %v5822_v45 }
 0xae4   :  { %v3324_v30 = vpop.f32.mrf.mxu0  ;;  %3728 = vmatpush.msrb.mxu1 %v5819_v28 }
 0xae5   :  { %3397 = vmatmul.f32.gmra.mxu0 %v3324_v30 }
 0xae6   :  { %v3369_v39 = vpop.f32.mrf.mxu1  ;;  %3729 = vmatpush.msrb.mxu1 %v5816_v59 }
 0xae7   :  { %3426 = vmatmul.f32.gmra.mxu1 %v3369_v39 }
 0xaec   :  { %v3327_v1 = vpop.f32.mrf.mxu0 }
 0xaed   :  { %3400 = vmatmul.f32.gmra.mxu0 %v3327_v1  ;;  %v5820_v1 = vld [vmem:[%s10841_s9 + $0x1b0] sm:$0xff] }
 0xaee   :  { %v3372_v16 = vpop.f32.mrf.mxu1  ;;  %3597 = vmatpush.msrb.mxu2 %v5820_v1 }
 0xaef   :  { %3429 = vmatmul.f32.gmra.mxu1 %v3372_v16  ;;  %v5821_v16 = vld [vmem:[%s10841_s9 + $0x1b8] sm:$0xff] }
 0xaf0   :  { %3662 = vmatpush.msra.mxu0 %v5821_v16  ;;  %3598 = vmatpush.msrb.mxu2 %v5817_v55 }
 0xaf2   :  { %3663 = vmatpush.msra.mxu0 %v5818_v23  ;;  %3599 = vmatpush.msrb.mxu2 %v5814_v42 }
 0xaf4   :  { %3664 = vmatpush.msra.mxu0 %v5815_v54 }
 0xb52   :  { %v9334_v37 = vpop.f32.mrf.mxu0 }
 0xb53   :  { %v3433_v27 = vmul.f32 %v9334_v37, %v9334_v37 }
 0xb54   :  { %v3421_v48 = vpop.f32.mrf.mxu1 }
 0xb55   :  { %v3437_v33 = vsub.f32 %v3421_v48, %v3433_v27 }
 0xb57   :  { %v3441_v58 = vmax.f32 %v3437_v33, 0.0  ;;  %v9421_v33 = vperm.slane %v5813_v14, 1 }
 0xb59   :  { %v3445_v30 = vadd.f32 1e-05, %v3441_v58 }
 0xb5a   :  { %v9374_v39 = vpop.f32.mrf.mxu0 }
 0xb5b   :  { %6313 = vrsqrt.f32 %v3445_v30  ;;  %v3434_v8 = vmul.f32 %v9374_v39, %v9374_v39  ;;  %vm3455_vm5 = vweird.f32 %v3445_v30 }
 0xb5c   :  { %v3424_v17 = vpop.f32.mrf.mxu1 }
 0xb5d   :  { %v3438_v46 = vsub.f32 %v3424_v17, %v3434_v8 }
 0xb5f   :  { %v3442_v25 = vmax.f32 %v3438_v46, 0.0 }
 0xb61   :  { %v6314_v22 = vpop.eup %6313  ;;  %v3446_v26 = vadd.f32 1e-05, %v3442_v25 }
 0xb62   :  { %v3450_v49 = vmul.f32 %v6314_v22, %v3445_v30  ;;  %v9405_v12 = vpop.f32.mrf.mxu0  ;;  %vm3456_vm4 = vweird.f32 %v6314_v22 }
 0xb63   :  { %6315 = vrsqrt.f32 %v3446_v26  ;;  %v3435_v60 = vmul.f32 %v9405_v12, %v9405_v12  ;;  %vm3457_vm6 = vmor %vm3455_vm5, %vm3456_vm4  ;;  %vm3465_vm8 = vweird.f32 %v3446_v26 }
 0xb64   :  { %v3451_v19 = vmul.f32 %v6314_v22, %v3450_v49  ;;  %v3427_v5 = vpop.f32.mrf.mxu1 }
 0xb65   :  { %v3439_v34 = vsub.f32 %v3427_v5, %v3435_v60 }
 0xb66   :  { %v3452_v13 = vmul.f32 0.5, %v3451_v19 }
 0xb67   :  { %v3443_v29 = vmax.f32 %v3439_v34, 0.0 }
 0xb68   :  { %v3453_v15 = vsub.f32 1.5, %v3452_v13 }
 0xb69   :  { %v6316_v35 = vpop.eup %6315  ;;  %v3447_v52 = vadd.f32 1e-05, %v3443_v29 }
 0xb6a   :  { %v3454_v24 = vmul.f32 %v6314_v22, %v3453_v15  ;;  %v3460_v43 = vmul.f32 %v6316_v35, %v3446_v26  ;;  %v9414_v21 = vpop.f32.mrf.mxu0  ;;  %vm3466_vm7 = vweird.f32 %v6316_v35 }
 0xb6b   :  { %6317 = vrsqrt.f32 %v3447_v52  ;;  %v3436_v41 = vmul.f32 %v9414_v21, %v9414_v21  ;;  %vm3467_vm9 = vmor %vm3465_vm8, %vm3466_vm7  ;;  %vm3475_vm11 = vweird.f32 %v3447_v52 }
 0xb6c   :  { %v3458_v27 = vsel %vm3457_vm6, %v6314_v22, %v3454_v24  ;;  %v3461_v48 = vmul.f32 %v6316_v35, %v3460_v43  ;;  %v3430_v36 = vpop.f32.mrf.mxu1 }
 0xb6d   :  { %v9419_v56 = vmul.f32 %v9412_v7, %v3458_v27  ;;  %v3440_v4 = vsub.f32 %v3430_v36, %v3436_v41 }
 0xb6e   :  { %v3462_v11 = vmul.f32 0.5, %v3461_v48 }
 0xb6f   :  { %v3444_v57 = vmax.f32 %v3440_v4, 0.0  ;;  %v3494_v61 = vmul.f32 %v9419_v56, %v9334_v37  ;;  %v3503_v30 = vmul.f32 %v9419_v56, %v9186_v20  ;;  %v3511_v45 = vmul.f32 %v9419_v56, %v9144_v10 }
 0xb70   :  { %v3463_v58 = vsub.f32 1.5, %v3462_v11  ;;  %v3515_v8 = vmul.f32 %v9419_v56, %v9124_v18 }
 0xb71   :  { %v6318_v62 = vpop.eup %6317  ;;  %v3448_v53 = vadd.f32 1e-05, %v3444_v57  ;;  %v9426_v44 = vsub.f32 %v9421_v33, %v3494_v61 }
 0xb72   :  { %v3464_v1 = vmul.f32 %v6316_v35, %v3463_v58  ;;  %v3470_v16 = vmul.f32 %v6318_v62, %v3447_v52  ;;  %vm3476_vm10 = vweird.f32 %v6318_v62 }
 0xb73   :  { %6319 = vrsqrt.f32 %v3448_v53  ;;  %v3519_v37 = vadd.f32 %v3503_v30, %v9426_v44  ;;  %v9436_v23 = vadd.f32 %v3511_v45, %v9426_v44  ;;  %v9439_v28 = vadd.f32 %v3515_v8, %v9426_v44  ;;  %vm3477_vm12 = vmor %vm3475_vm11, %vm3476_vm10 }
 0xb74   :  { %v3468_v17 = vsel %vm3467_vm9, %v6316_v35, %v3464_v1  ;;  %v3471_v55 = vmul.f32 %v6318_v62, %v3470_v16  ;;  %vm3485_vm15 = vweird.f32 %v3448_v53 }
 0xb75   :  { %v3491_v46 = vmul.f32 %v9412_v7, %v3468_v17  ;;  %3600 = vmatmul.f32.vlgmr.msrb.gmra.mxu2 %v3519_v37  ;;  %3665 = vmatmul.f32.vlgmr.msra.gmra.mxu0 %v3519_v37 }
 0xb76   :  { %v3472_v42 = vmul.f32 0.5, %v3471_v55  ;;  %3730 = vmatmul.f32.vlgmr.msrb.gmra.mxu1 %v3519_v37 }
 0xb77   :  { %v3495_v54 = vmul.f32 %v3491_v46, %v9374_v39  ;;  %v3504_v26 = vmul.f32 %v3491_v46, %v9180_v51  ;;  %v3512_v49 = vmul.f32 %v3491_v46, %v9139_v32  ;;  %v3516_v60 = vmul.f32 %v3491_v46, %v9119_v38 }
 0xb78   :  { %v3473_v59 = vsub.f32 1.5, %v3472_v42 }
 0xb79   :  { %v6320_v25 = vpop.eup %6319  ;;  %v3500_v22 = vsub.f32 %v9421_v33, %v3495_v54 }
 0xb7a   :  { %v3474_v19 = vmul.f32 %v6318_v62, %v3473_v59  ;;  %v3480_v5 = vmul.f32 %v6320_v25, %v3448_v53  ;;  %vm3486_vm13 = vweird.f32 %v6320_v25 }
 0xb7b   :  { %v3520_v34 = vadd.f32 %v3504_v26, %v3500_v22  ;;  %v3528_v14 = vadd.f32 %v3512_v49, %v3500_v22  ;;  %v9447_v13 = vadd.f32 %v3516_v60, %v3500_v22  ;;  %vm3487_vm0 = vmor %vm3485_vm15, %vm3486_vm13 }
 0xb7c   :  { %v3478_v39 = vsel %vm3477_vm12, %v6318_v62, %v3474_v19  ;;  %v3481_v29 = vmul.f32 %v6320_v25, %v3480_v5 }
 0xb7d   :  { %v3492_v15 = vmul.f32 %v9412_v7, %v3478_v39  ;;  %3603 = vmatmul.f32.gmra.mxu2 %v3520_v34  ;;  %3668 = vmatmul.f32.gmra.mxu0 %v3520_v34 }
 0xb7e   :  { %v3482_v35 = vmul.f32 0.5, %v3481_v29  ;;  %3733 = vmatmul.f32.gmra.mxu1 %v3520_v34 }
 0xb7f   :  { %v3496_v24 = vmul.f32 %v3492_v15, %v9405_v12  ;;  %v3505_v41 = vmul.f32 %v3492_v15, %v9174_v40  ;;  %v3513_v27 = vmul.f32 %v3492_v15, %v9134_v47  ;;  %v3517_v48 = vmul.f32 %v3492_v15, %v9115_v63 }
 0xb80   :  { %v3483_v43 = vsub.f32 1.5, %v3482_v35  ;;  %v3509_v17 = vmul.f32 %v3492_v15, %v9154_v0 }
 0xb81   :  { %v3501_v52 = vsub.f32 %v9421_v33, %v3496_v24 }
 0xb82   :  { %v3484_v36 = vmul.f32 %v6320_v25, %v3483_v43 }
 0xb83   :  { %v3521_v4 = vadd.f32 %v3505_v41, %v3501_v52  ;;  %v3529_v11 = vadd.f32 %v3513_v27, %v3501_v52  ;;  %v3533_v57 = vadd.f32 %v3517_v48, %v3501_v52  ;;  %v3525_v55 = vadd.f32 %v3509_v17, %v3501_v52 }
 0xb84   :  { %v3488_v61 = vsel %vm3487_vm0, %v6320_v25, %v3484_v36 }
 0xb85   :  { %v3493_v58 = vmul.f32 %v9412_v7, %v3488_v61  ;;  %3606 = vmatmul.f32.gmra.mxu2 %v3521_v4  ;;  %3671 = vmatmul.f32.gmra.mxu0 %v3521_v4  ;;  %v3507_v7 = vmul.f32 %v9419_v56, %v9164_v9 }
 0xb86   :  { %3736 = vmatmul.f32.gmra.mxu1 %v3521_v4 }
 0xb87   :  { %v3497_v12 = vmul.f32 %v3493_v58, %v9414_v21  ;;  %v3506_v30 = vmul.f32 %v3493_v58, %v9169_v50  ;;  %v3514_v1 = vmul.f32 %v3493_v58, %v9129_v2  ;;  %v3518_v53 = vmul.f32 %v3493_v58, %v9117_v3 }
 0xb88   :  { %v3523_v37 = vadd.f32 %v3507_v7, %v9426_v44  ;;  %v3508_v21 = vmul.f32 %v3491_v46, %v9159_v6  ;;  %v3510_v42 = vmul.f32 %v3493_v58, %v9149_v31 }
 0xb89   :  { %v3502_v62 = vsub.f32 %v9421_v33, %v3497_v12 }
 0xb8a   :  { %v3524_v33 = vadd.f32 %v3508_v21, %v3500_v22 }
 0xb8b   :  { %v3522_v16 = vadd.f32 %v3506_v30, %v3502_v62  ;;  %v3530_v45 = vadd.f32 %v3514_v1, %v3502_v62  ;;  %v3534_v8 = vadd.f32 %v3518_v53, %v3502_v62  ;;  %v3526_v56 = vadd.f32 %v3510_v42, %v3502_v62 }
 0xb8d   :  { %3609 = vmatmul.f32.gmra.mxu2 %v3522_v16  ;;  %3674 = vmatmul.f32.gmra.mxu0 %v3522_v16 }
 0xb8e   :  { %3739 = vmatmul.f32.gmra.mxu1 %v3522_v16 }
 0xb95   :  { %3612 = vmatmul.f32.gmra.mxu2 %v3523_v37  ;;  %3677 = vmatmul.f32.gmra.mxu0 %v3523_v37 }
 0xb96   :  { %3742 = vmatmul.f32.gmra.mxu1 %v3523_v37 }
 0xb9d   :  { %3615 = vmatmul.f32.gmra.mxu2 %v3524_v33  ;;  %3680 = vmatmul.f32.gmra.mxu0 %v3524_v33 }
 0xb9e   :  { %3745 = vmatmul.f32.gmra.mxu1 %v3524_v33 }
 0xba5   :  { %3618 = vmatmul.f32.gmra.mxu2 %v3525_v55  ;;  %3683 = vmatmul.f32.gmra.mxu0 %v3525_v55 }
 0xba6   :  { %3748 = vmatmul.f32.gmra.mxu1 %v3525_v55 }
 0xbad   :  { %3621 = vmatmul.f32.gmra.mxu2 %v3526_v56  ;;  %3686 = vmatmul.f32.gmra.mxu0 %v3526_v56 }
 0xbae   :  { %3751 = vmatmul.f32.gmra.mxu1 %v3526_v56 }
 0xbb5   :  { %3624 = vmatmul.f32.gmra.mxu2 %v9436_v23  ;;  %3689 = vmatmul.f32.gmra.mxu0 %v9436_v23 }
 0xbb6   :  { %3754 = vmatmul.f32.gmra.mxu1 %v9436_v23 }
 0xbbd   :  { %3627 = vmatmul.f32.gmra.mxu2 %v3528_v14  ;;  %3692 = vmatmul.f32.gmra.mxu0 %v3528_v14 }
 0xbbe   :  { %3757 = vmatmul.f32.gmra.mxu1 %v3528_v14 }
 0xbc5   :  { %3630 = vmatmul.f32.gmra.mxu2 %v3529_v11  ;;  %3695 = vmatmul.f32.gmra.mxu0 %v3529_v11 }
 0xbc6   :  { %3760 = vmatmul.f32.gmra.mxu1 %v3529_v11 }
 0xbcd   :  { %3633 = vmatmul.f32.gmra.mxu2 %v3530_v45  ;;  %3698 = vmatmul.f32.gmra.mxu0 %v3530_v45 }
 0xbce   :  { %3763 = vmatmul.f32.gmra.mxu1 %v3530_v45 }
 0xbd5   :  { %3636 = vmatmul.f32.gmra.mxu2 %v9439_v28  ;;  %3701 = vmatmul.f32.gmra.mxu0 %v9439_v28 }
 0xbd6   :  { %3766 = vmatmul.f32.gmra.mxu1 %v9439_v28 }
 0xbdd   :  { %3639 = vmatmul.f32.gmra.mxu2 %v9447_v13  ;;  %3704 = vmatmul.f32.gmra.mxu0 %v9447_v13 }
 0xbde   :  { %3769 = vmatmul.f32.gmra.mxu1 %v9447_v13 }
 0xbe5   :  { %3642 = vmatmul.f32.gmra.mxu2 %v3533_v57  ;;  %3707 = vmatmul.f32.gmra.mxu0 %v3533_v57 }
 0xbe6   :  { %3772 = vmatmul.f32.gmra.mxu1 %v3533_v57 }
 0xbed   :  { %3645 = vmatmul.f32.gmra.mxu2 %v3534_v8  ;;  %3710 = vmatmul.f32.gmra.mxu0 %v3534_v8 }
 0xbee   :  { %3775 = vmatmul.f32.gmra.mxu1 %v3534_v8 }
 0xbf2   :  { %v9476_v44 = vpop.f32.mrf.mxu0 }
 0xbf3   :  { %v9478_v23 = vpop.f32.mrf.mxu1 }
 0xbf8   :  { %v9496_v60 = vpop.f32.mrf.mxu2 }
 0xbfa   :  { %v9480_v46 = vpop.f32.mrf.mxu0 }
 0xbfb   :  { %v9482_v54 = vpop.f32.mrf.mxu1 }
 0xc00   :  { %v9502_v34 = vpop.f32.mrf.mxu2 }
 0xc02   :  { %v9484_v28 = vpop.f32.mrf.mxu0 }
 0xc03   :  { %v9486_v59 = vpop.f32.mrf.mxu1 }
 0xc08   :  { %v9508_v39 = vpop.f32.mrf.mxu2 }
 0xc0a   :  { %v9488_v25 = vpop.f32.mrf.mxu0 }
 0xc0b   :  { %v9490_v22 = vpop.f32.mrf.mxu1 }
 0xc10   :  { %v9516_v43 = vpop.f32.mrf.mxu2 }
 0xc12   :  { %v9492_v26 = vpop.f32.mrf.mxu0 }
 0xc13   :  { %v9494_v49 = vpop.f32.mrf.mxu1 }
 0xc18   :  { %v9520_v27 = vpop.f32.mrf.mxu2 }
 0xc1a   :  { %v9498_v19 = vpop.f32.mrf.mxu0 }
 0xc1b   :  { %v9500_v5 = vpop.f32.mrf.mxu1 }
 0xc20   :  { %v9524_v4 = vpop.f32.mrf.mxu2 }
 0xc22   :  { %v9504_v14 = vpop.f32.mrf.mxu0 }
 0xc23   :  { %v9506_v13 = vpop.f32.mrf.mxu1 }
 0xc28   :  { %v9528_v61 = vpop.f32.mrf.mxu2 }
 0xc2a   :  { %v9510_v29 = vpop.f32.mrf.mxu0 }
 0xc2b   :  { %v9512_v15 = vpop.f32.mrf.mxu1 }
 0xc30   :  { %v9535_v1 = vpop.f32.mrf.mxu2 }
 0xc32   :  { %v3690_v35 = vpop.f32.mrf.mxu0 }
 0xc33   :  { %v9514_v24 = vpop.f32.mrf.mxu1 }
 0xc38   :  { %v9541_v45 = vpop.f32.mrf.mxu2 }
 0xc3a   :  { %v3693_v52 = vpop.f32.mrf.mxu0 }
 0xc3b   :  { %v9518_v41 = vpop.f32.mrf.mxu1 }
 0xc40   :  { %v9552_v37 = vpop.f32.mrf.mxu2 }
 0xc42   :  { %v3696_v48 = vpop.f32.mrf.mxu0 }
 0xc43   :  { %v9522_v36 = vpop.f32.mrf.mxu1 }
 0xc48   :  { %v9566_v21 = vpop.f32.mrf.mxu2 }
 0xc4a   :  { %v3699_v11 = vpop.f32.mrf.mxu0 }
 0xc4b   :  { %v9526_v57 = vpop.f32.mrf.mxu1 }
 0xc50   :  { %v9584_v33 = vpop.f32.mrf.mxu2 }
 0xc52   :  { %v3702_v58 = vpop.f32.mrf.mxu0 }
 0xc53   :  { %v9530_v12 = vpop.f32.mrf.mxu1 }
 0xc58   :  { %v9602_v17 = vpop.f32.mrf.mxu2 }
 0xc5a   :  { %v3705_v62 = vpop.f32.mrf.mxu0 }
 0xc5b   :  { %v9532_v30 = vpop.f32.mrf.mxu1  ;;  %4553 = vrot.lane.b32.xlu2 %v3705_v62, %s6531_s5 }
 0xc5c   :  { %v6063_v56 = vpack.i.bf16 %v9530_v12, %v9532_v30 }
 0xc60   :  { %v9614_v55 = vpop.f32.mrf.mxu2 }
 0xc62   :  { %v3708_v53 = vpop.f32.mrf.mxu0 }
 0xc63   :  { %v9537_v16 = vpop.f32.mrf.mxu1  ;;  %4545 = vrot.lane.b32.xlu2 %v3693_v52, %s6531_s5  ;;  %4555 = vrot.lane.b32.xlu1 %v3708_v53, %s6531_s5 }
 0xc68   :  { %v9628_v42 = vpop.f32.mrf.mxu2 }
 0xc6a   :  { %v3711_v8 = vpop.f32.mrf.mxu0 }
 0xc6b   :  { %v9543_v7 = vpop.f32.mrf.mxu1  ;;  %4539 = vrot.lane.b32.xlu2 %v9504_v14, %s6531_s5  ;;  %4549 = vrot.lane.b32.xlu1 %v3699_v11, %s6531_s5 }
 0xc6c   :  { %4292 = vmatpush.msra.mxu2 %v9543_v7  ;;  %4557 = vrot.lane.b32.xlu0 %v3711_v8, %s6531_s5 }
 0xc6d   :  { %5862 = vmatpush.xpose.msk.msrb.mxu3 %vm1455_vm14, %v3711_v8 }
 0xc6e   :  { %4293 = vmatpush.msra.mxu2 %v9537_v16 }
 0xc70   :  { %4294 = vmatpush.msra.mxu2 %v9532_v30 }
 0xc71   :  { %5863 = vmatpush.xpose.msk.msrb.mxu3 %vm1455_vm14, %v3708_v53 }
 0xc72   :  { %4295 = vmatpush.msra.mxu2 %v9530_v12 }
 0xc73   :  { %4533 = vrot.lane.b32.xlu2 %v9488_v25, %s6531_s5  ;;  %4543 = vrot.lane.b32.xlu1 %v3690_v35, %s6531_s5 }
 0xc74   :  { %4296 = vmatpush.msra.mxu2 %v9526_v57  ;;  %4551 = vrot.lane.b32.xlu0 %v3702_v58, %s6531_s5 }
 0xc75   :  { %5864 = vmatpush.xpose.msk.msrb.mxu3 %vm1455_vm14, %v3705_v62 }
 0xc76   :  { %4297 = vmatpush.msra.mxu2 %v9522_v36 }
 0xc78   :  { %4298 = vmatpush.msra.mxu2 %v9518_v41 }
 0xc79   :  { %5865 = vmatpush.xpose.msk.msrb.mxu3 %vm1455_vm14, %v3702_v58 }
 0xc7a   :  { %4299 = vmatpush.msra.mxu2 %v9514_v24 }
 0xc7b   :  { %4527 = vrot.lane.b32.xlu2 %v9476_v44, %s6531_s5  ;;  %4537 = vrot.lane.b32.xlu1 %v9498_v19, %s6531_s5 }
 0xc7c   :  { %4300 = vmatpush.msra.mxu2 %v9512_v15  ;;  %4547 = vrot.lane.b32.xlu0 %v3696_v48, %s6531_s5 }
 0xc7d   :  { %5866 = vmatpush.xpose.msk.msrb.mxu3 %vm1455_vm14, %v3699_v11 }
 0xc7e   :  { %4301 = vmatpush.msra.mxu2 %v9506_v13 }
 0xc80   :  { %4302 = vmatpush.msra.mxu2 %v9500_v5 }
 0xc81   :  { %5867 = vmatpush.xpose.msk.msrb.mxu3 %vm1455_vm14, %v3696_v48 }
 0xc82   :  { %4303 = vmatpush.msra.mxu2 %v9494_v49 }
 0xc83   :  { %4499 = vrot.lane.b32.xlu2 %v9508_v39, %s6531_s5  ;;  %4531 = vrot.lane.b32.xlu1 %v9484_v28, %s6531_s5 }
 0xc84   :  { %4304 = vmatpush.msra.mxu2 %v9490_v22  ;;  %4541 = vrot.lane.b32.xlu0 %v9510_v29, %s6531_s5 }
 0xc85   :  { %5868 = vmatpush.xpose.msk.msrb.mxu3 %vm1455_vm14, %v3693_v52 }
 0xc86   :  { %4305 = vmatpush.msra.mxu2 %v9486_v59 }
 0xc88   :  { %4306 = vmatpush.msra.mxu2 %v9482_v54 }
 0xc89   :  { %5869 = vmatpush.xpose.msk.msrb.mxu3 %vm1455_vm14, %v3690_v35 }
 0xc8a   :  { %4307 = vmatpush.msra.mxu2 %v9478_v23 }
 0xc8b   :  { %4495 = vrot.lane.b32.xlu1 %v9496_v60, %s6531_s5  ;;  %4505 = vrot.lane.b32.xlu2 %v9524_v4, %s6531_s5 }
 0xc8c   :  { %4535 = vrot.lane.b32.xlu0 %v9492_v26, %s6531_s5 }
 0xc8d   :  { %5870 = vmatpush.xpose.msk.msrb.mxu3 %vm1455_vm14, %v9510_v29 }
 0xc91   :  { %5871 = vmatpush.xpose.msk.msrb.mxu3 %vm1455_vm14, %v9504_v14 }
 0xc93   :  { %4501 = vrot.lane.b32.xlu1 %v9516_v43, %s6531_s5  ;;  %4511 = vrot.lane.b32.xlu2 %v9541_v45, %s6531_s5 }
 0xc94   :  { %4529 = vrot.lane.b32.xlu0 %v9480_v46, %s6531_s5 }
 0xc95   :  { %5872 = vmatpush.xpose.msk.msrb.mxu3 %vm1455_vm14, %v9498_v19 }
 0xc99   :  { %5873 = vmatpush.xpose.msk.msrb.mxu3 %vm1455_vm14, %v9492_v26 }
 0xc9b   :  { %4507 = vrot.lane.b32.xlu1 %v9528_v61, %s6531_s5  ;;  %4517 = vrot.lane.b32.xlu2 %v9584_v33, %s6531_s5 }
 0xc9c   :  { %4497 = vrot.lane.b32.xlu0 %v9502_v34, %s6531_s5 }
 0xc9d   :  { %5874 = vmatpush.xpose.msk.msrb.mxu3 %vm1455_vm14, %v9488_v25  ;;  %v9668_v25 = vpop.f32.mrf.mxu2 }
 0xca1   :  { %5875 = vmatpush.xpose.msk.msrb.mxu3 %vm1455_vm14, %v9484_v28  ;;  %v6078_v28 = vpack.i.bf16 %v9506_v13, %v9512_v15 }
 0xca3   :  { %4513 = vrot.lane.b32.xlu1 %v9552_v37, %s6531_s5  ;;  %4523 = vrot.lane.b32.xlu2 %v9628_v42, %s6531_s5 }
 0xca4   :  { %4503 = vrot.lane.b32.xlu0 %v9520_v27, %s6531_s5 }
 0xca5   :  { %5876 = vmatpush.xpose.msk.msrb.mxu3 %vm1455_vm14, %v9480_v46  ;;  %v6088_v46 = vpack.i.bf16 %v9486_v59, %v9490_v22  ;;  %v6068_v59 = vpack.i.bf16 %v9522_v36, %v9526_v57  ;;  %v6073_v22 = vpack.i.bf16 %v9514_v24, %v9518_v41 }
 0xca9   :  { %5877 = vmatpush.xpose.msk.msrb.mxu3 %vm1455_vm14, %v9476_v44  ;;  %v6093_v44 = vpack.i.bf16 %v9537_v16, %v9543_v7 }
 0xcab   :  { %4519 = vrot.lane.b32.xlu1 %v9602_v17, %s6531_s5  ;;  %6064 = vrot.lane.b32.xlu2 %v6063_v56, %s6531_s5 }
 0xcac   :  { %5878 = vmatmul.msk.f32.vlgmr.msrb.gmra.mxu3 %vm1455_vm14, %v9496_v60  ;;  %4509 = vrot.lane.b32.xlu0 %v9535_v1, %s6531_s5  ;;  %v6083_v60 = vpack.i.bf16 %v9494_v49, %v9500_v5 }
 0xcb3   :  { %6079 = vrot.lane.b32.xlu1 %v6078_v28, %s6531_s5  ;;  %6089 = vrot.lane.b32.xlu2 %v6088_v46, %s6531_s5 }
 0xcb4   :  { %5879 = vmatmul.msk.f32.gmra.mxu3 %vm1455_vm14, %v9502_v34  ;;  %4515 = vrot.lane.b32.xlu0 %v9566_v21, %s6531_s5 }
 0xcb5   :  { %v4554_v26 = vpop.permute.xlu2 %4553 }
 0xcbb   :  { %6094 = vrot.lane.b32.xlu1 %v6093_v44, %s6531_s5 }
 0xcbc   :  { %5880 = vmatmul.msk.f32.gmra.mxu3 %vm1455_vm14, %v9508_v39  ;;  %4521 = vrot.lane.b32.xlu0 %v9614_v55, %s6531_s5 }
 0xcbd   :  { %v4546_v19 = vpop.permute.xlu2 %4545 }
 0xcc3   :  { %4525 = vrot.lane.b32.xlu1 %v9668_v25, %s6531_s5 }
 0xcc4   :  { %5881 = vmatmul.msk.f32.gmra.mxu3 %vm1455_vm14, %v9516_v43  ;;  %6069 = vrot.lane.b32.xlu0 %v6068_v59, %s6531_s5 }
 0xcc5   :  { %v4540_v39 = vpop.permute.xlu2 %4539 }
 0xccc   :  { %5882 = vmatmul.msk.f32.gmra.mxu3 %vm1455_vm14, %v9520_v27  ;;  %6074 = vrot.lane.b32.xlu0 %v6073_v22, %s6531_s5  ;;  %v9757_v22 = vld [vmem:[%s10843_s8 + $0x8] sm:$0xff] }
 0xccd   :  { %v4534_v29 = vpop.permute.xlu2 %4533 }
 0xcd4   :  { %5883 = vmatmul.msk.f32.gmra.mxu3 %vm1455_vm14, %v9524_v4  ;;  %6084 = vrot.lane.b32.xlu0 %v6083_v60, %s6531_s5 }
 0xcd5   :  { %v4556_v34 = vpop.permute.xlu1 %4555  ;;  %v4528_v24 = vpop.permute.xlu2 %4527 }
 0xcdc   :  { %5884 = vmatmul.msk.f32.gmra.mxu3 %vm1455_vm14, %v9528_v61 }
 0xcdd   :  { %v4550_v14 = vpop.permute.xlu1 %4549  ;;  %v4500_v41 = vpop.permute.xlu2 %4499 }
 0xcde   :  { %v4558_v13 = vpop.permute.xlu0 %4557 }
 0xcdf   :  { %5918 = vmatpush.xpose.msk.msra.mxu1 %vm1455_vm14, %v4558_v13  ;;  %v9767_v13 = vld [vmem:[%s10843_s8 + $0x10] sm:$0xff] }
 0xce3   :  { %5919 = vmatpush.xpose.msk.msra.mxu1 %vm1455_vm14, %v4556_v34 }
 0xce4   :  { %5885 = vmatmul.msk.f32.gmra.mxu3 %vm1455_vm14, %v9535_v1 }
 0xce5   :  { %v4544_v49 = vpop.permute.xlu1 %4543  ;;  %v9707_v11 = vpop.permute.xlu2 %4505 }
 0xce6   :  { %v4552_v5 = vpop.permute.xlu0 %4551 }
 0xce7   :  { %5920 = vmatpush.xpose.msk.msra.mxu1 %vm1455_vm14, %v4554_v26 }
 0xceb   :  { %5921 = vmatpush.xpose.msk.msra.mxu1 %vm1455_vm14, %v4552_v5 }
 0xcec   :  { %5886 = vmatmul.msk.f32.gmra.mxu3 %vm1455_vm14, %v9541_v45 }
 0xced   :  { %v4538_v15 = vpop.permute.xlu1 %4537  ;;  %v9716_v58 = vpop.permute.xlu2 %4511 }
 0xcee   :  { %v4548_v35 = vpop.permute.xlu0 %4547 }
 0xcef   :  { %5922 = vmatpush.xpose.msk.msra.mxu1 %vm1455_vm14, %v4550_v14 }
 0xcf3   :  { %5923 = vmatpush.xpose.msk.msra.mxu1 %vm1455_vm14, %v4548_v35 }
 0xcf4   :  { %5887 = vmatmul.msk.f32.gmra.mxu3 %vm1455_vm14, %v9552_v37 }
 0xcf5   :  { %v4532_v43 = vpop.permute.xlu1 %4531  ;;  %v9724_v30 = vpop.permute.xlu2 %4517 }
 0xcf6   :  { %v4542_v52 = vpop.permute.xlu0 %4541 }
 0xcf7   :  { %5924 = vmatpush.xpose.msk.msra.mxu1 %vm1455_vm14, %v4546_v19 }
 0xcfb   :  { %5925 = vmatpush.xpose.msk.msra.mxu1 %vm1455_vm14, %v4544_v49 }
 0xcfc   :  { %5888 = vmatmul.msk.f32.gmra.mxu3 %vm1455_vm14, %v9566_v21 }
 0xcfd   :  { %v4496_v27 = vpop.permute.xlu1 %4495  ;;  %v9736_v16 = vpop.permute.xlu2 %4523 }
 0xcfe   :  { %v4536_v48 = vpop.permute.xlu0 %4535 }
 0xcff   :  { %5926 = vmatpush.xpose.msk.msra.mxu1 %vm1455_vm14, %v4542_v52  ;;  %v6497_v52 = vld [vmem:[%s10843_s8 + $0x18] sm:$0xff] }
 0xd03   :  { %5927 = vmatpush.xpose.msk.msra.mxu1 %vm1455_vm14, %v4540_v39 }
 0xd04   :  { %5889 = vmatmul.msk.f32.gmra.mxu3 %vm1455_vm14, %v9584_v33 }
 0xd05   :  { %v4502_v36 = vpop.permute.xlu1 %4501  ;;  %v6065_v33 = vpop.permute.xlu2 %6064 }
 0xd06   :  { %v4530_v4 = vpop.permute.xlu0 %4529  ;;  %v6066_v46 = vunpack.i.l.bf16 %v6065_v33  ;;  %v6067_v28 = vunpack.i.h.bf16 %v6065_v33 }
 0xd07   :  { %5928 = vmatpush.xpose.msk.msra.mxu1 %vm1455_vm14, %v4538_v15 }
 0xd0b   :  { %5929 = vmatpush.xpose.msk.msra.mxu1 %vm1455_vm14, %v4536_v48 }
 0xd0c   :  { %5890 = vmatmul.msk.f32.gmra.mxu3 %vm1455_vm14, %v9602_v17 }
 0xd0d   :  { %v9713_v57 = vpop.permute.xlu1 %4507 }
 0xd0e   :  { %v4498_v61 = vpop.permute.xlu0 %4497 }
 0xd0f   :  { %5930 = vmatpush.xpose.msk.msra.mxu1 %vm1455_vm14, %v4534_v29 }
 0xd13   :  { %5931 = vmatpush.xpose.msk.msra.mxu1 %vm1455_vm14, %v4532_v43  ;;  %v6090_v43 = vpop.permute.xlu2 %6089 }
 0xd14   :  { %5891 = vmatmul.msk.f32.gmra.mxu3 %vm1455_vm14, %v9614_v55  ;;  %v6091_v48 = vunpack.i.l.bf16 %v6090_v43 }
 0xd15   :  { %v9721_v12 = vpop.permute.xlu1 %4513 }
 0xd16   :  { %v4504_v62 = vpop.permute.xlu0 %4503 }
 0xd17   :  { %5932 = vmatpush.xpose.msk.msra.mxu1 %vm1455_vm14, %v4530_v4 }
 0xd1b   :  { %5933 = vmatpush.xpose.msk.msra.mxu1 %vm1455_vm14, %v4528_v24 }
 0xd1c   :  { %5892 = vmatmul.msk.f32.gmra.mxu3 %vm1455_vm14, %v9628_v42  ;;  %v9747_v42 = vld [vmem:[%s10843_s8] sm:$0xff] }
 0xd1d   :  { %v9729_v1 = vpop.permute.xlu1 %4519 }
 0xd1e   :  { %5934 = vmatmul.msk.f32.vlgmr.msra.gmra.mxu1 %vm1455_vm14, %v4496_v27  ;;  %v9732_v53 = vpop.permute.xlu0 %4509 }
 0xd24   :  { %5893 = vmatmul.msk.f32.gmra.mxu3 %vm1455_vm14, %v9668_v25 }
 0xd25   :  { %v6080_v45 = vpop.permute.xlu1 %6079 }
 0xd26   :  { %5935 = vmatmul.msk.f32.gmra.mxu1 %vm1455_vm14, %v4498_v61  ;;  %v9739_v8 = vpop.permute.xlu0 %4515  ;;  %v6081_v5 = vunpack.i.l.bf16 %v6080_v45  ;;  %v6082_v29 = vunpack.i.h.bf16 %v6080_v45  ;;  %v6499_v45 = vld [vmem:[%s10843_s8 + $0x28] sm:$0xff] }
 0xd2d   :  { %v6095_v7 = vpop.permute.xlu1 %6094 }
 0xd2e   :  { %5936 = vmatmul.msk.f32.gmra.mxu1 %vm1455_vm14, %v4500_v41  ;;  %v6096_v37 = vunpack.i.l.bf16 %v6095_v7  ;;  %v9742_v21 = vpop.permute.xlu0 %4521  ;;  %v6097_v55 = vunpack.i.h.bf16 %v6095_v7 }
 0xd2f   :  { %v3892_v17 = vpop.f32.mrf.mxu3 }
 0xd30   :  { %5104 = vmatpush.msra.mxu3 %v6096_v37  ;;  %v9750_v56 = vadd.f32 %v9747_v42, %v3892_v17  ;;  %v6500_v37 = vld [vmem:[%s10843_s8 + $0x30] sm:$0xff]  ;;  %v6501_v17 = vld [vmem:[%s10843_s8 + $0x38] sm:$0xff] }
 0xd32   :  { %3940 = vmax.xlane.f32.xlu2 %v9750_v56  ;;  %5105 = vmatpush.msra.mxu3 %v6097_v55 }
 0xd34   :  { %5106 = vmatpush.msra.mxu3 %v6066_v46  ;;  %v6502_v46 = vld [vmem:[%s10843_s8 + $0x40] sm:$0xff] }
 0xd36   :  { %5937 = vmatmul.msk.f32.gmra.mxu1 %vm1455_vm14, %v4502_v36  ;;  %v6070_v44 = vpop.permute.xlu0 %6069  ;;  %5107 = vmatpush.msra.mxu3 %v6067_v28  ;;  %v6092_v36 = vunpack.i.h.bf16 %v6090_v43 }
 0xd37   :  { %v3895_v59 = vpop.f32.mrf.mxu3  ;;  %v6071_v25 = vunpack.i.l.bf16 %v6070_v44  ;;  %v6072_v60 = vunpack.i.h.bf16 %v6070_v44 }
 0xd38   :  { %v9760_v26 = vadd.f32 %v9757_v22, %v3895_v59 }
 0xd39   :  { %5108 = vmatpush.msra.mxu3 %v6071_v25 }
 0xd3a   :  { %3942 = vmax.xlane.f32.xlu0 %v9760_v26 }
 0xd3b   :  { %5109 = vmatpush.msra.mxu3 %v6072_v60 }
 0xd3e   :  { %5938 = vmatmul.msk.f32.gmra.mxu1 %vm1455_vm14, %v4504_v62  ;;  %v6075_v19 = vpop.permute.xlu0 %6074 }
 0xd3f   :  { %v3898_v34 = vpop.f32.mrf.mxu3  ;;  %v6076_v14 = vunpack.i.l.bf16 %v6075_v19  ;;  %v6077_v49 = vunpack.i.h.bf16 %v6075_v19 }
 0xd40   :  { %v9770_v39 = vadd.f32 %v9767_v13, %v3898_v34 }
 0xd41   :  { %5110 = vmatpush.msra.mxu3 %v6076_v14 }
 0xd42   :  { %3944 = vmax.xlane.f32.xlu1 %v9770_v39 }
 0xd43   :  { %5111 = vmatpush.msra.mxu3 %v6077_v49 }
 0xd45   :  { %5112 = vmatpush.msra.mxu3 %v6081_v5 }
 0xd46   :  { %5939 = vmatmul.msk.f32.gmra.mxu1 %vm1455_vm14, %v9707_v11  ;;  %v6085_v15 = vpop.permute.xlu0 %6084  ;;  %v6498_v11 = vld [vmem:[%s10843_s8 + $0x20] sm:$0xff] }
 0xd47   :  { %v3901_v35 = vpop.f32.mrf.mxu3  ;;  %v6086_v24 = vunpack.i.l.bf16 %v6085_v15  ;;  %5113 = vmatpush.msra.mxu3 %v6082_v29  ;;  %v6087_v27 = vunpack.i.h.bf16 %v6085_v15 }
 0xd48   :  { %v9778_v41 = vadd.f32 %v6497_v52, %v3901_v35 }
 0xd49   :  { %5114 = vmatpush.msra.mxu3 %v6086_v24 }
 0xd4a   :  { %3946 = vmax.xlane.f32.xlu2 %v9778_v41 }
 0xd4b   :  { %5115 = vmatpush.msra.mxu3 %v6087_v27 }
 0xd4d   :  { %5116 = vmatpush.msra.mxu3 %v6091_v48 }
 0xd4e   :  { %5940 = vmatmul.msk.f32.gmra.mxu1 %vm1455_vm14, %v9713_v57 }
 0xd4f   :  { %v3904_v4 = vpop.f32.mrf.mxu3  ;;  %5117 = vmatpush.msra.mxu3 %v6092_v36 }
 0xd50   :  { %v9786_v61 = vadd.f32 %v6498_v11, %v3904_v4 }
 0xd52   :  { %3948 = vmax.xlane.f32.xlu0 %v9786_v61 }
 0xd56   :  { %5941 = vmatmul.msk.f32.gmra.mxu1 %vm1455_vm14, %v9732_v53 }
 0xd57   :  { %v3907_v62 = vpop.f32.mrf.mxu3 }
 0xd58   :  { %v9794_v7 = vadd.f32 %v6499_v45, %v3907_v62  ;;  %v6503_v62 = vld [vmem:[%s10843_s8 + $0x48] sm:$0xff] }
 0xd5a   :  { %3950 = vmax.xlane.f32.xlu0 %v9794_v7 }
 0xd5e   :  { %5942 = vmatmul.msk.f32.gmra.mxu1 %vm1455_vm14, %v9716_v58 }
 0xd5f   :  { %v3910_v57 = vpop.f32.mrf.mxu3 }
 0xd60   :  { %v9802_v33 = vadd.f32 %v6500_v37, %v3910_v57 }
 0xd62   :  { %3952 = vmax.xlane.f32.xlu2 %v9802_v33 }
 0xd66   :  { %5943 = vmatmul.msk.f32.gmra.mxu1 %vm1455_vm14, %v9721_v12  ;;  %v4526_v12 = vpop.permute.xlu1 %4525 }
 0xd67   :  { %v3913_v53 = vpop.f32.mrf.mxu3 }
 0xd68   :  { %v9810_v55 = vadd.f32 %v6501_v17, %v3913_v53 }
 0xd6a   :  { %3954 = vmax.xlane.f32.xlu2 %v9810_v55 }
 0xd6e   :  { %5944 = vmatmul.msk.f32.gmra.mxu1 %vm1455_vm14, %v9739_v8 }
 0xd6f   :  { %v3916_v58 = vpop.f32.mrf.mxu3 }
 0xd70   :  { %v9818_v28 = vadd.f32 %v6502_v46, %v3916_v58 }
 0xd72   :  { %3956 = vmax.xlane.f32.xlu2 %v9818_v28 }
 0xd76   :  { %5945 = vmatmul.msk.f32.gmra.mxu1 %vm1455_vm14, %v9724_v30 }
 0xd7e   :  { %5946 = vmatmul.msk.f32.gmra.mxu1 %vm1455_vm14, %v9729_v1 }
 0xd86   :  { %5947 = vmatmul.msk.f32.gmra.mxu1 %vm1455_vm14, %v9742_v21 }
 0xd8e   :  { %5948 = vmatmul.msk.f32.gmra.mxu1 %vm1455_vm14, %v9736_v16 }
 0xd96   :  { %5949 = vmatmul.msk.f32.gmra.mxu1 %vm1455_vm14, %v4526_v12 }
 0xd9b   :  { %v4640_v8 = vpop.f32.mrf.mxu1 }
 0xd9c   :  { %v4641_v44 = vadd.f32 %v9747_v42, %v4640_v8 }
 0xd9e   :  { %4688 = vmax.xlane.f32.xlu0 %v4641_v44 }
 0xda3   :  { %v4643_v59 = vpop.f32.mrf.mxu1 }
 0xda4   :  { %v4644_v25 = vadd.f32 %v9757_v22, %v4643_v59 }
 0xda5   :  { %v3941_v30 = vpop.xlane.xlu2 %3940 }
 0xda6   :  { %v3972_v60 = vsub.f32 %v9750_v56, %v3941_v30  ;;  %4690 = vmax.xlane.f32.xlu1 %v4644_v25 }
 0xda8   :  { %v3988_v1 = vmul.f32 1.442695, %v3972_v60 }
 0xdaa   :  { %6321 = vpow2.f32 %v3988_v1 }
 0xdab   :  { %v4646_v21 = vpop.f32.mrf.mxu1 }
 0xdac   :  { %v4647_v19 = vadd.f32 %v9767_v13, %v4646_v21 }
 0xdad   :  { %v3943_v16 = vpop.xlane.xlu0 %3942 }
 0xdae   :  { %v3973_v34 = vsub.f32 %v9760_v26, %v3943_v16  ;;  %4692 = vmax.xlane.f32.xlu2 %v4647_v19 }
 0xdb0   :  { %v9835_v14 = vpop.eup %6321  ;;  %v3990_v42 = vmul.f32 1.442695, %v3973_v34 }
 0xdb1   :  { %4020 = vadd.xlane.f32.xlu0 %v9835_v14 }
 0xdb2   :  { %6323 = vpow2.f32 %v3990_v42 }
 0xdb3   :  { %v4649_v22 = vpop.f32.mrf.mxu1 }
 0xdb4   :  { %v9838_v49 = vadd.f32 %v6497_v52, %v4649_v22 }
 0xdb5   :  { %v3945_v29 = vpop.xlane.xlu1 %3944 }
 0xdb6   :  { %v3974_v35 = vsub.f32 %v9770_v39, %v3945_v29 }
 0xdb8   :  { %v9840_v56 = vpop.eup %6323  ;;  %v3992_v24 = vmul.f32 1.442695, %v3974_v35 }
 0xdb9   :  { %4022 = vadd.xlane.f32.xlu2 %v9840_v56  ;;  %4694 = vmax.xlane.f32.xlu0 %v9838_v49 }
 0xdba   :  { %6325 = vpow2.f32 %v3992_v24 }
 0xdbb   :  { %v4652_v13 = vpop.f32.mrf.mxu1 }
 0xdbc   :  { %v9844_v5 = vadd.f32 %v6498_v11, %v4652_v13 }
 0xdbd   :  { %v3947_v57 = vpop.xlane.xlu2 %3946 }
 0xdbe   :  { %4696 = vmax.xlane.f32.xlu1 %v9844_v5 }
 0xdc0   :  { %v9856_v36 = vpop.eup %6325 }
 0xdc3   :  { %v4655_v26 = vpop.f32.mrf.mxu1 }
 0xdc4   :  { %v9847_v15 = vadd.f32 %v6499_v45, %v4655_v26  ;;  %v3919_v26 = vpop.f32.mrf.mxu3 }
 0xdc5   :  { %v9884_v35 = vadd.f32 %v6503_v62, %v3919_v26 }
 0xdc6   :  { %4698 = vmax.xlane.f32.xlu2 %v9847_v15 }
 0xdcb   :  { %v4658_v43 = vpop.f32.mrf.mxu1 }
 0xdcc   :  { %v9851_v52 = vadd.f32 %v6500_v37, %v4658_v43  ;;  %v3949_v37 = vpop.xlane.xlu0 %3948 }
 0xdce   :  { %4700 = vmax.xlane.f32.xlu0 %v9851_v52 }
 0xdd3   :  { %v4661_v27 = vpop.f32.mrf.mxu1 }
 0xdd4   :  { %v9854_v48 = vadd.f32 %v6501_v17, %v4661_v27  ;;  %v9871_v17 = vpop.xlane.xlu0 %3950 }
 0xdd5   :  { %v9869_v53 = vpop.xlane.xlu2 %3952 }
 0xdd6   :  { %4702 = vmax.xlane.f32.xlu2 %v9854_v48  ;;  %4024 = vadd.xlane.f32.xlu0 %v9856_v36 }
 0xddb   :  { %v4664_v4 = vpop.f32.mrf.mxu1 }
 0xddc   :  { %v9860_v11 = vadd.f32 %v6502_v46, %v4664_v4 }
 0xddd   :  { %v9873_v58 = vpop.xlane.xlu2 %3954 }
 0xdde   :  { %4704 = vmax.xlane.f32.xlu1 %v9860_v11 }
 0xde3   :  { %v4667_v39 = vpop.f32.mrf.mxu1 }
 0xde4   :  { %v9866_v45 = vadd.f32 %v6503_v62, %v4667_v39 }
 0xde5   :  { %v9875_v59 = vpop.xlane.xlu2 %3956 }
 0xde6   :  { %4706 = vmax.xlane.f32.xlu0 %v9866_v45 }
 0xdeb   :  { %v4670_v39 = vpop.f32.mrf.mxu1 }
 0xe11   :  { %v4689_v46 = vpop.xlane.xlu0 %4688 }
 0xe12   :  { %v4720_v12 = vsub.f32 %v4641_v44, %v4689_v46  ;;  %v3975_v44 = vsub.f32 %v9778_v41, %v3947_v57 }
 0xe14   :  { %v4736_v8 = vmul.f32 1.442695, %v4720_v12 }
 0xe16   :  { %6327 = vpow2.f32 %v4736_v8 }
 0xe19   :  { %v4691_v30 = vpop.xlane.xlu1 %4690 }
 0xe1a   :  { %v4721_v60 = vsub.f32 %v4644_v25, %v4691_v30  ;;  %v3994_v25 = vmul.f32 1.442695, %v3975_v44  ;;  %v6504_v30 = vld [vmem:[%s10843_s8 + $0x50] sm:$0xff] }
 0xe1c   :  { %v9877_v1 = vpop.eup %6327  ;;  %v4738_v21 = vmul.f32 1.442695, %v4721_v60  ;;  %v9894_v60 = vadd.f32 %v6504_v30, %v4670_v39 }
 0xe1d   :  { %4768 = vadd.xlane.f32.xlu1 %v9877_v1 }
 0xe1e   :  { %6329 = vpow2.f32 %v4738_v21 }
 0xe21   :  { %v4693_v16 = vpop.xlane.xlu2 %4692 }
 0xe22   :  { %v4722_v34 = vsub.f32 %v4647_v19, %v4693_v16  ;;  %v3976_v19 = vsub.f32 %v9786_v61, %v3949_v37  ;;  %v6098_v61 = vpack.i.bf16 %v9478_v23, %v9482_v54 }
 0xe24   :  { %v9880_v42 = vpop.eup %6329  ;;  %v4740_v22 = vmul.f32 1.442695, %v4722_v34  ;;  %v4021_v13 = vpop.xlane.xlu0 %4020  ;;  %v3996_v62 = vmul.f32 1.442695, %v3976_v19 }
 0xe25   :  { %6331 = vrcp.f32 %v4021_v13  ;;  %4770 = vadd.xlane.f32.xlu2 %v9880_v42  ;;  %v4063_v41 = vand.u32 2147483648, %v4021_v13  ;;  %v4061_v46 = vand.u32 2147483647, %v4021_v13  ;;  %vm4057_vm2 = vweird.f32 %v4021_v13 }
 0xe26   :  { %6333 = vpow2.f32 %v4740_v22 }
 0xe27   :  { %v4064_v21 = vor.u32 1.1754944e-38, %v4063_v41  ;;  %vm4062_vm4 = vcmp.eq.f32.partialorder %v4061_v46, 8.507059e+37 }
 0xe2b   :  { %v6332_v29 = vpop.eup %6331 }
 0xe2c   :  { %v9886_v24 = vpop.eup %6333  ;;  %v4053_v43 = vmul.f32 %v6332_v29, %v4021_v13  ;;  %v4023_v27 = vpop.xlane.xlu2 %4022  ;;  %vm4058_vm1 = vweird.f32 %v6332_v29  ;;  %v3977_v13 = vsub.f32 %v9794_v7, %v9871_v17 }
 0xe2d   :  { %6335 = vrcp.f32 %v4023_v27  ;;  %4772 = vadd.xlane.f32.xlu0 %v9886_v24  ;;  %3958 = vmax.xlane.f32.xlu2 %v9884_v35  ;;  %vm4059_vm3 = vmor %vm4057_vm2, %vm4058_vm1  ;;  %v4075_v54 = vand.u32 2147483647, %v4023_v27  ;;  %vm4071_vm6 = vweird.f32 %v4023_v27  ;;  %v4673_v17 = vpop.f32.mrf.mxu1 }
 0xe2e   :  { %6337 = vpow2.f32 %v3994_v25  ;;  %v4054_v4 = vsub.f32 1.0, %v4053_v43  ;;  %v4077_v25 = vand.u32 2147483648, %v4023_v27  ;;  %v3922_v43 = vpop.f32.mrf.mxu3  ;;  %v3998_v19 = vmul.f32 1.442695, %v3977_v13 }
 0xe2f   :  { %6339 = vpow2.f32 %v3996_v62  ;;  %v9906_v41 = vadd.f32 %v6504_v30, %v3922_v43  ;;  %vm4076_vm8 = vcmp.eq.f32.partialorder %v4075_v54, 8.507059e+37 }
 0xe30   :  { %v4055_v57 = vmul.f32 %v6332_v29, %v4054_v4  ;;  %v4078_v39 = vor.u32 1.1754944e-38, %v4077_v25  ;;  %6341 = vpow2.f32 %v3998_v19 }
 0xe32   :  { %v4056_v12 = vadd.f32 %v6332_v29, %v4055_v57  ;;  %v4697_v57 = vpop.xlane.xlu1 %4696 }
 0xe33   :  { %v6336_v8 = vpop.eup %6335  ;;  %v4724_v62 = vsub.f32 %v9844_v5, %v4697_v57 }
 0xe34   :  { %v9896_v16 = vpop.eup %6337  ;;  %v4060_v37 = vsel %vm4059_vm3, %v6332_v29, %v4056_v12  ;;  %v4067_v34 = vmul.f32 %v6336_v8, %v4023_v27  ;;  %vm4072_vm5 = vweird.f32 %v6336_v8  ;;  %v4695_v29 = vpop.xlane.xlu0 %4694 }
 0xe35   :  { %v4065_v22 = vsel %vm4062_vm4, %v4064_v21, %v4060_v37  ;;  %4026 = vadd.xlane.f32.xlu0 %v9896_v16  ;;  %4708 = vmax.xlane.f32.xlu2 %v9894_v60  ;;  %vm4073_vm7 = vmor %vm4071_vm6, %vm4072_vm5  ;;  %v9908_v7 = vpop.eup %6339  ;;  %v4744_v30 = vmul.f32 1.442695, %v4724_v62  ;;  %v6505_v21 = vld [vmem:[%s10843_s8 + $0x58] sm:$0xff]  ;;  %v4723_v54 = vsub.f32 %v9838_v49, %v4695_v29  ;;  %v3979_v29 = vsub.f32 %v9810_v55, %v9873_v58  ;;  %v6507_v55 = vld [vmem:[%s10843_s8 + $0x60] sm:$0xff] }
 0xe36   :  { %v4068_v44 = vsub.f32 1.0, %v4067_v34  ;;  %6099 = vrot.lane.b32.xlu1 %v6098_v61, %s6531_s5  ;;  %v4276_v26 = vmul.f32 %v9835_v14, %v4065_v22  ;;  %v9917_v61 = vadd.f32 %v6505_v21, %v4673_v17  ;;  %v9919_v37 = vpop.eup %6341  ;;  %v4676_v34 = vpop.f32.mrf.mxu1 }
 0xe37   :  { %6343 = vpow2.f32 %v4744_v30  ;;  %v3925_v5 = vpop.f32.mrf.mxu3  ;;  %v4742_v62 = vmul.f32 1.442695, %v4723_v54 }
 0xe38   :  { %v4069_v23 = vmul.f32 %v6336_v8, %v4068_v44  ;;  %4308 = vmatmul.f32.vlgmr.msra.gmra.mxu2 %v4276_v26  ;;  %v9924_v44 = vadd.f32 %v6505_v21, %v3925_v5 }
 0xe3a   :  { %v4070_v4 = vadd.f32 %v6336_v8, %v4069_v23 }
 0xe3c   :  { %v4074_v46 = vsel %vm4073_vm7, %v6336_v8, %v4070_v4  ;;  %v4699_v8 = vpop.xlane.xlu2 %4698  ;;  %v9935_v4 = vld [vmem:[%s10843_s8 + $0x68] sm:$0xff] }
 0xe3d   :  { %4028 = vadd.xlane.f32.xlu0 %v9908_v7  ;;  %3960 = vmax.xlane.f32.xlu2 %v9906_v41  ;;  %v4079_v14 = vsel %vm4076_vm8, %v4078_v39, %v4074_v46  ;;  %v9926_v26 = vpop.eup %6343 }
 0xe3e   :  { %v4277_v27 = vmul.f32 %v9840_v56, %v4079_v14  ;;  %v4725_v56 = vsub.f32 %v9847_v15, %v4699_v8  ;;  %v4679_v23 = vpop.f32.mrf.mxu1 }
 0xe3f   :  { %v9938_v39 = vadd.f32 %v9935_v4, %v4679_v23  ;;  %v3928_v46 = vpop.f32.mrf.mxu3 }
 0xe40   :  { %4311 = vmatmul.f32.gmra.mxu2 %v4277_v27  ;;  %v4746_v13 = vmul.f32 1.442695, %v4725_v56  ;;  %v4002_v56 = vmul.f32 1.442695, %v3979_v29  ;;  %v9953_v58 = vadd.f32 %v6507_v55, %v3928_v46 }
 0xe41   :  { %v4701_v12 = vpop.xlane.xlu0 %4700 }
 0xe42   :  { %v4726_v25 = vsub.f32 %v9851_v52, %v4701_v12 }
 0xe44   :  { %v4748_v19 = vmul.f32 1.442695, %v4726_v25 }
 0xe45   :  { %4030 = vadd.xlane.f32.xlu0 %v9919_v37  ;;  %4710 = vmax.xlane.f32.xlu2 %v9917_v61 }
 0xe49   :  { %v4025_v22 = vpop.xlane.xlu0 %4024  ;;  %v4703_v14 = vpop.xlane.xlu2 %4702 }
 0xe4a   :  { %6345 = vrcp.f32 %v4025_v22  ;;  %v4091_v52 = vand.u32 2147483648, %v4025_v22  ;;  %v4089_v49 = vand.u32 2147483647, %v4025_v22  ;;  %v4727_v12 = vsub.f32 %v9854_v48, %v4703_v14  ;;  %v3931_v48 = vpop.f32.mrf.mxu3 }
 0xe4b   :  { %6347 = vpow2.f32 %v4746_v13  ;;  %vm4085_vm10 = vweird.f32 %v4025_v22  ;;  %v3980_v14 = vsub.f32 %v9818_v28, %v9875_v59 }
 0xe4c   :  { %6349 = vpow2.f32 %v4748_v19  ;;  %v4092_v21 = vor.u32 1.1754944e-38, %v4091_v52  ;;  %vm4090_vm12 = vcmp.eq.f32.partialorder %v4089_v49, 8.507059e+37  ;;  %v4750_v13 = vmul.f32 1.442695, %v4727_v12 }
 0xe4d   :  { %3962 = vmax.xlane.f32.xlu2 %v9924_v44  ;;  %4776 = vadd.xlane.f32.xlu0 %v9926_v26  ;;  %6351 = vpow2.f32 %v4742_v62  ;;  %v6508_v62 = vld [vmem:[%s10843_s8 + $0x70] sm:$0xff] }
 0xe4e   :  { %6353 = vpow2.f32 %v4002_v56 }
 0xe4f   :  { %6355 = vpow2.f32 %v4750_v13 }
 0xe50   :  { %v6346_v43 = vpop.eup %6345 }
 0xe51   :  { %v4081_v15 = vmul.f32 %v6346_v43, %v4025_v22  ;;  %v9940_v17 = vpop.eup %6347  ;;  %vm4086_vm9 = vweird.f32 %v6346_v43 }
 0xe52   :  { %vm4087_vm11 = vmor %vm4085_vm10, %vm4086_vm9  ;;  %v9948_v23 = vpop.eup %6349  ;;  %v3934_v52 = vpop.f32.mrf.mxu3 }
 0xe53   :  { %v4082_v57 = vsub.f32 1.0, %v4081_v15  ;;  %v9957_v22 = vpop.eup %6351 }
 0xe54   :  { %v9962_v54 = vpop.eup %6353 }
 0xe55   :  { %v4083_v27 = vmul.f32 %v6346_v43, %v4082_v57  ;;  %4714 = vmax.xlane.f32.xlu2 %v9938_v39  ;;  %4778 = vadd.xlane.f32.xlu0 %v9940_v17  ;;  %v9964_v15 = vpop.eup %6355  ;;  %v9967_v57 = vadd.f32 %v6507_v55, %v4676_v34  ;;  %v4004_v34 = vmul.f32 1.442695, %v3980_v14  ;;  %v5901_v55 = vld [vmem:[%s10844_s10 + $0xb8] sm:$0xff] }
 0xe56   :  { %4422 = vmatpush.msrb.mxu0 %v5901_v55 }
 0xe57   :  { %v4084_v30 = vadd.f32 %v6346_v43, %v4083_v27  ;;  %v9977_v27 = vadd.f32 %v6508_v62, %v3934_v52  ;;  %v5898_v52 = vld [vmem:[%s10844_s10 + $0xa0] sm:$0xff] }
 0xe59   :  { %v4088_v8 = vsel %vm4087_vm11, %v6346_v43, %v4084_v30  ;;  %v4707_v43 = vpop.xlane.xlu0 %4706 }
 0xe5a   :  { %v4093_v5 = vsel %vm4090_vm12, %v4092_v21, %v4088_v8  ;;  %v4729_v46 = vsub.f32 %v9866_v45, %v4707_v43  ;;  %v4705_v45 = vpop.xlane.xlu1 %4704  ;;  %v9993_v21 = vadd.f32 %v9935_v4, %v3931_v48  ;;  %v3937_v8 = vpop.f32.mrf.mxu3  ;;  %v5900_v48 = vld [vmem:[%s10844_s10 + $0xb0] sm:$0xff] }
 0xe5b   :  { %v4278_v25 = vmul.f32 %v9856_v36, %v4093_v5  ;;  %v3978_v36 = vsub.f32 %v9802_v33, %v9869_v53  ;;  %v4682_v33 = vpop.f32.mrf.mxu1  ;;  %v4728_v59 = vsub.f32 %v9860_v11, %v4705_v45  ;;  %v6509_v11 = vld [vmem:[%s10843_s8 + $0x78] sm:$0xff]  ;;  %4423 = vmatpush.msrb.mxu0 %v5900_v48  ;;  %v5895_v45 = vld [vmem:[%s10844_s10 + $0x88] sm:$0xff]  ;;  %v5894_v48 = vld [vmem:[%s10844_s10 + $0x80] sm:$0xff] }
 0xe5c   :  { %v4754_v53 = vmul.f32 1.442695, %v4729_v46  ;;  %v9979_v49 = vadd.f32 %v6508_v62, %v4682_v33  ;;  %v10000_v56 = vadd.f32 %v6509_v11, %v3937_v8  ;;  %v5897_v33 = vld [vmem:[%s10844_s10 + $0x98] sm:$0xff] }
 0xe5d   :  { %4314 = vmatmul.f32.gmra.mxu2 %v4278_v25  ;;  %4780 = vadd.xlane.f32.xlu2 %v9948_v23  ;;  %v4000_v19 = vmul.f32 1.442695, %v3978_v36  ;;  %v4752_v30 = vmul.f32 1.442695, %v4728_v59  ;;  %v5899_v36 = vld [vmem:[%s10844_s10 + $0xa8] sm:$0xff] }
 0xe5e   :  { %3964 = vmax.xlane.f32.xlu0 %v9953_v58  ;;  %4424 = vmatpush.msrb.mxu0 %v5899_v36 }
 0xe5f   :  { %6357 = vpow2.f32 %v4000_v19 }
 0xe60   :  { %4774 = vadd.xlane.f32.xlu1 %v9957_v22  ;;  %6359 = vpow2.f32 %v4754_v53  ;;  %4425 = vmatpush.msrb.mxu0 %v5898_v52  ;;  %v5896_v53 = vld [vmem:[%s10844_s10 + $0x90] sm:$0xff] }
 0xe61   :  { %6361 = vpow2.f32 %v4004_v34 }
 0xe62   :  { %6363 = vpow2.f32 %v4752_v30  ;;  %4426 = vmatpush.msrb.mxu0 %v5897_v33 }
 0xe63   :  { %v4685_v4 = vpop.f32.mrf.mxu1 }
 0xe64   :  { %v10006_v13 = vadd.f32 %v6509_v11, %v4685_v4  ;;  %4427 = vmatpush.msrb.mxu0 %v5896_v53 }
 0xe65   :  { %4034 = vadd.xlane.f32.xlu2 %v9962_v54  ;;  %v9983_v28 = vpop.eup %6357 }
 0xe66   :  { %4782 = vadd.xlane.f32.xlu0 %v9964_v15  ;;  %v9987_v29 = vpop.eup %6359  ;;  %4428 = vmatpush.msrb.mxu0 %v5895_v45 }
 0xe67   :  { %v9989_v12 = vpop.eup %6361 }
 0xe68   :  { %4712 = vmax.xlane.f32.xlu1 %v9967_v57  ;;  %v10003_v5 = vpop.eup %6363  ;;  %4429 = vmatpush.msrb.mxu0 %v5894_v48 }
 0xe6d   :  { %3968 = vmax.xlane.f32.xlu2 %v9977_v27 }
 0xe6e   :  { %4716 = vmax.xlane.f32.xlu0 %v9979_v49 }
 0xe70   :  { %4032 = vadd.xlane.f32.xlu1 %v9983_v28 }
 0xe75   :  { %4786 = vadd.xlane.f32.xlu2 %v9987_v29 }
 0xe76   :  { %4036 = vadd.xlane.f32.xlu0 %v9989_v12 }
 0xe78   :  { %3966 = vmax.xlane.f32.xlu1 %v9993_v21 }
 0xe7e   :  { %3970 = vmax.xlane.f32.xlu0 %v10000_v56 }
 0xe80   :  { %4784 = vadd.xlane.f32.xlu1 %v10003_v5 }
 0xe88   :  { %4718 = vmax.xlane.f32.xlu1 %v10006_v13 }
 0xe90   :  { %v4769_v25 = vpop.xlane.xlu1 %4768 }
 0xe91   :  { %6365 = vrcp.f32 %v4769_v25  ;;  %v4811_v36 = vand.u32 2147483648, %v4769_v25  ;;  %vm4805_vm15 = vweird.f32 %v4769_v25 }
 0xe93   :  { %v4812_v53 = vor.u32 1.1754944e-38, %v4811_v36 }
 0xe97   :  { %v6366_v43 = vpop.eup %6365 }
 0xe98   :  { %v4801_v19 = vmul.f32 %v6366_v43, %v4769_v25  ;;  %v10018_v46 = vpop.xlane.xlu2 %4770  ;;  %vm4806_vm13 = vweird.f32 %v6366_v43 }
 0xe99   :  { %6367 = vrcp.f32 %v10018_v46  ;;  %vm4807_vm0 = vmor %vm4805_vm15, %vm4806_vm13  ;;  %vm4819_vm3 = vweird.f32 %v10018_v46 }
 0xe9a   :  { %v4802_v14 = vsub.f32 1.0, %v4801_v19 }
 0xe9c   :  { %v4803_v34 = vmul.f32 %v6366_v43, %v4802_v14  ;;  %v4809_v14 = vand.u32 2147483647, %v4769_v25 }
 0xe9e   :  { %v4804_v4 = vadd.f32 %v6366_v43, %v4803_v34  ;;  %vm4810_vm1 = vcmp.eq.f32.partialorder %v4809_v14, 8.507059e+37  ;;  %v4823_v14 = vand.u32 2147483647, %v10018_v46 }
 0xe9f   :  { %v10030_v62 = vpop.eup %6367 }
 0xea0   :  { %v4815_v59 = vmul.f32 %v10030_v62, %v10018_v46  ;;  %v10037_v30 = vpop.xlane.xlu0 %4772  ;;  %v3959_v8 = vpop.xlane.xlu2 %3958  ;;  %v4808_v33 = vsel %vm4807_vm0, %v6366_v43, %v4804_v4  ;;  %vm4820_vm2 = vweird.f32 %v10030_v62  ;;  %vm4824_vm5 = vcmp.eq.f32.partialorder %v4823_v14, 8.507059e+37 }
 0xea1   :  { %6369 = vrcp.f32 %v10037_v30  ;;  %v3981_v11 = vsub.f32 %v9884_v35, %v3959_v8  ;;  %vm4821_vm4 = vmor %vm4819_vm3, %vm4820_vm2  ;;  %vm4833_vm6 = vweird.f32 %v10037_v30 }
 0xea2   :  { %v4816_v55 = vsub.f32 1.0, %v4815_v59 }
 0xea3   :  { %v4006_v19 = vmul.f32 1.442695, %v3981_v11  ;;  %v4813_v11 = vsel %vm4810_vm1, %v4812_v53, %v4808_v33 }
 0xea4   :  { %v4817_v35 = vmul.f32 %v10030_v62, %v4816_v55  ;;  %v4825_v55 = vand.u32 2147483648, %v10018_v46 }
 0xea5   :  { %6371 = vpow2.f32 %v4006_v19 }
 0xea6   :  { %v4818_v43 = vadd.f32 %v10030_v62, %v4817_v35 }
 0xea7   :  { %v10044_v52 = vpop.eup %6369 }
 0xea8   :  { %v4829_v34 = vmul.f32 %v10044_v52, %v10037_v30  ;;  %v10049_v45 = vpop.xlane.xlu0 %4026  ;;  %v4709_v59 = vpop.xlane.xlu2 %4708  ;;  %v4822_v53 = vsel %vm4821_vm4, %v10030_v62, %v4818_v43  ;;  %vm4834_vm7 = vweird.f32 %v10044_v52 }
 0xea9   :  { %6373 = vrcp.f32 %v10049_v45  ;;  %v4730_v8 = vsub.f32 %v9894_v60, %v4709_v59  ;;  %v6100_v25 = vpop.permute.xlu1 %6099  ;;  %v5024_v60 = vmul.f32 %v9877_v1, %v4813_v11  ;;  %vm4099_vm9 = vweird.f32 %v10049_v45  ;;  %vm10083_vm10 = vmor %vm4833_vm6, %vm4834_vm7 }
 0xeaa   :  { %v6101_v48 = vunpack.i.l.bf16 %v6100_v25  ;;  %v4830_v19 = vsub.f32 1.0, %v4829_v34  ;;  %v6102_v36 = vunpack.i.h.bf16 %v6100_v25  ;;  %v4826_v34 = vor.u32 1.1754944e-38, %v4825_v55 }
 0xeab   :  { %v4756_v20 = vmul.f32 1.442695, %v4730_v8  ;;  %v10055_v4 = vpop.eup %6371  ;;  %v4105_v55 = vand.u32 2147483648, %v10049_v45 }
 0xeac   :  { %5118 = vmatpush.msra.mxu3 %v6101_v48  ;;  %4038 = vadd.xlane.f32.xlu1 %v10055_v4  ;;  %v4831_v35 = vmul.f32 %v10044_v52, %v4830_v19  ;;  %v4827_v25 = vsel %vm4824_vm5, %v4826_v34, %v4822_v53  ;;  %v4839_v19 = vand.u32 2147483648, %v10037_v30 }
 0xead   :  { %6375 = vpow2.f32 %v4756_v20 }
 0xeae   :  { %5119 = vmatpush.msra.mxu3 %v6102_v36  ;;  %v4832_v62 = vadd.f32 %v10044_v52, %v4831_v35  ;;  %v4103_v36 = vand.u32 2147483647, %v10049_v45  ;;  %v4840_v34 = vor.u32 1.1754944e-38, %v4839_v19 }
 0xeaf   :  { %v6374_v33 = vpop.eup %6373  ;;  %5120 = vmatmul.f32.vlgmr.msra.gmra.mxu3 %v5024_v60  ;;  %v4837_v60 = vand.u32 2147483647, %v10037_v30 }
 0xeb0   :  { %v4095_v59 = vmul.f32 %v6374_v33, %v10049_v45  ;;  %v10065_v8 = vpop.xlane.xlu0 %4028  ;;  %v3961_v20 = vpop.xlane.xlu2 %3960  ;;  %vm4100_vm8 = vweird.f32 %v6374_v33  ;;  %vm4104_vm12 = vcmp.eq.f32.partialorder %v4103_v36, 8.507059e+37 }
 0xeb1   :  { %6377 = vrcp.f32 %v10065_v8  ;;  %v3982_v1 = vsub.f32 %v9906_v41, %v3961_v20  ;;  %v5025_v41 = vmul.f32 %v9880_v42, %v4827_v25  ;;  %vm4101_vm11 = vmor %vm4099_vm9, %vm4100_vm8  ;;  %v4836_v42 = vsel %vm10083_vm10, %v10044_v52, %v4832_v62 }
 0xeb2   :  { %v4096_v46 = vsub.f32 1.0, %v4095_v59  ;;  %v4106_v59 = vor.u32 1.1754944e-38, %v4105_v55  ;;  %vm4838_vm13 = vcmp.eq.f32.partialorder %v4837_v60, 8.507059e+37  ;;  %v4119_v19 = vand.u32 2147483648, %v10065_v8 }
 0xeb3   :  { %v10069_v11 = vpop.eup %6375  ;;  %v4008_v48 = vmul.f32 1.442695, %v3982_v1  ;;  %vm4113_vm0 = vweird.f32 %v10065_v8 }
 0xeb4   :  { %v4097_v43 = vmul.f32 %v6374_v33, %v4096_v46  ;;  %4788 = vadd.xlane.f32.xlu2 %v10069_v11 }
 0xeb5   :  { %6379 = vpow2.f32 %v4008_v48 }
 0xeb6   :  { %v4098_v14 = vadd.f32 %v6374_v33, %v4097_v43  ;;  %v4841_v43 = vsel %vm4838_vm13, %v4840_v34, %v4836_v42 }
 0xeb7   :  { %v6378_v53 = vpop.eup %6377  ;;  %5123 = vmatmul.f32.gmra.mxu3 %v5025_v41 }
 0xeb8   :  { %v4109_v20 = vmul.f32 %v6378_v53, %v10065_v8  ;;  %v4031_v1 = vpop.xlane.xlu0 %4030  ;;  %v4711_v45 = vpop.xlane.xlu2 %4710  ;;  %v4102_v46 = vsel %vm4101_vm11, %v6374_v33, %v4098_v14  ;;  %vm4114_vm15 = vweird.f32 %v6378_v53  ;;  %v4117_v33 = vand.u32 2147483647, %v10065_v8 }
 0xeb9   :  { %6381 = vrcp.f32 %v4031_v1  ;;  %v4731_v30 = vsub.f32 %v9917_v61, %v4711_v45  ;;  %v4107_v48 = vsel %vm4104_vm12, %v4106_v59, %v4102_v46  ;;  %v5026_v61 = vmul.f32 %v9886_v24, %v4841_v43  ;;  %vm4115_vm1 = vmor %vm4113_vm0, %vm4114_vm15 }
 0xeba   :  { %v4110_v25 = vsub.f32 1.0, %v4109_v20  ;;  %v4279_v52 = vmul.f32 %v9896_v16, %v4107_v48  ;;  %v4120_v16 = vor.u32 1.1754944e-38, %v4119_v19  ;;  %vm4118_vm2 = vcmp.eq.f32.partialorder %v4117_v33, 8.507059e+37 }
 0xebb   :  { %v10092_v41 = vpop.eup %6379  ;;  %v4758_v51 = vmul.f32 1.442695, %v4731_v30  ;;  %v4309_v35 = vpop.f32.mrf.mxu2  ;;  %vm4127_vm4 = vweird.f32 %v4031_v1 }
 0xebc   :  { %v4111_v62 = vmul.f32 %v6378_v53, %v4110_v25  ;;  %5902 = vmatmul.msk.f32.vlgmr.msrb.gmra.mxu0 %vm1455_vm14, %v4309_v35  ;;  %4040 = vadd.xlane.f32.xlu0 %v10092_v41  ;;  %v4133_v25 = vand.u32 2147483648, %v4031_v1 }
 0xebd   :  { %6383 = vpow2.f32 %v4758_v51  ;;  %4317 = vmatmul.f32.gmra.mxu2 %v4279_v52 }
 0xebe   :  { %v4112_v55 = vadd.f32 %v6378_v53, %v4111_v62  ;;  %v4134_v48 = vor.u32 1.1754944e-38, %v4133_v25 }
 0xebf   :  { %v6382_v36 = vpop.eup %6381  ;;  %5126 = vmatmul.f32.gmra.mxu3 %v5026_v61 }
 0xec0   :  { %v4123_v60 = vmul.f32 %v6382_v36, %v4031_v1  ;;  %v3963_v14 = vpop.xlane.xlu2 %3962  ;;  %v10101_v42 = vpop.xlane.xlu0 %4776  ;;  %v4116_v34 = vsel %vm4115_vm1, %v6378_v53, %v4112_v55  ;;  %vm4128_vm3 = vweird.f32 %v6382_v36  ;;  %v4131_v53 = vand.u32 2147483647, %v4031_v1 }
 0xec1   :  { %v3983_v59 = vsub.f32 %v9924_v44, %v3963_v14  ;;  %v4121_v20 = vsel %vm4118_vm2, %v4120_v16, %v4116_v34  ;;  %vm4129_vm5 = vmor %vm4127_vm4, %vm4128_vm3  ;;  %vm4861_vm12 = vweird.f32 %v10101_v42 }
 0xec2   :  { %v4124_v51 = vsub.f32 1.0, %v4123_v60  ;;  %v4280_v8 = vmul.f32 %v9908_v7, %v4121_v20  ;;  %vm4132_vm6 = vcmp.eq.f32.partialorder %v4131_v53, 8.507059e+37 }
 0xec3   :  { %v10104_v24 = vpop.eup %6383  ;;  %v4010_v45 = vmul.f32 1.442695, %v3983_v59  ;;  %v4312_v46 = vpop.f32.mrf.mxu2 }
 0xec4   :  { %v4125_v30 = vmul.f32 %v6382_v36, %v4124_v51  ;;  %5903 = vmatmul.msk.f32.gmra.mxu0 %vm1455_vm14, %v4312_v46  ;;  %4790 = vadd.xlane.f32.xlu1 %v10104_v24 }
 0xec5   :  { %6385 = vpow2.f32 %v4010_v45  ;;  %4320 = vmatmul.f32.gmra.mxu2 %v4280_v8 }
 0xec6   :  { %v4126_v44 = vadd.f32 %v6382_v36, %v4125_v30  ;;  %6387 = vrcp.f32 %v10101_v42 }
 0xec8   :  { %v4715_v43 = vpop.xlane.xlu2 %4714  ;;  %v10109_v35 = vpop.xlane.xlu0 %4778  ;;  %v4130_v52 = vsel %vm4129_vm5, %v6382_v36, %v4126_v44 }
 0xec9   :  { %v4733_v7 = vsub.f32 %v9938_v39, %v4715_v43  ;;  %v4135_v62 = vsel %vm4132_vm6, %v4134_v48, %v4130_v52  ;;  %vm4875_vm1 = vweird.f32 %v10109_v35 }
 0xeca   :  { %v4281_v33 = vmul.f32 %v9919_v37, %v4135_v62 }
 0xecb   :  { %v10112_v19 = vpop.eup %6385  ;;  %v4762_v61 = vmul.f32 1.442695, %v4733_v7 }
 0xecc   :  { %4042 = vadd.xlane.f32.xlu2 %v10112_v19  ;;  %v10119_v16 = vpop.eup %6387 }
 0xecd   :  { %6389 = vpow2.f32 %v4762_v61  ;;  %4323 = vmatmul.f32.gmra.mxu2 %v4281_v33  ;;  %v4857_v37 = vmul.f32 %v10119_v16, %v10101_v42  ;;  %vm4862_vm10 = vweird.f32 %v10119_v16 }
 0xece   :  { %vm10173_vm13 = vmor %vm4861_vm12, %vm4862_vm10 }
 0xecf   :  { %v4858_v20 = vsub.f32 1.0, %v4857_v37 }
 0xed0   :  { %v10117_v1 = vpop.xlane.xlu2 %4780 }
 0xed1   :  { %v3965_v55 = vpop.xlane.xlu0 %3964  ;;  %v4859_v53 = vmul.f32 %v10119_v16, %v4858_v20  ;;  %vm4889_vm5 = vweird.f32 %v10117_v1 }
 0xed2   :  { %v3984_v39 = vsub.f32 %v9953_v58, %v3965_v55 }
 0xed3   :  { %v10122_v36 = vpop.eup %6389  ;;  %v4775_v60 = vpop.xlane.xlu1 %4774  ;;  %v4860_v20 = vadd.f32 %v10119_v16, %v4859_v53 }
 0xed4   :  { %v4012_v14 = vmul.f32 1.442695, %v3984_v39  ;;  %6391 = vrcp.f32 %v4775_v60  ;;  %4794 = vadd.xlane.f32.xlu2 %v10122_v36  ;;  %v4853_v52 = vand.u32 2147483648, %v4775_v60  ;;  %vm4847_vm8 = vweird.f32 %v4775_v60 }
 0xed5   :  { %6393 = vrcp.f32 %v10109_v35 }
 0xed6   :  { %6395 = vpow2.f32 %v4012_v14 }
 0xed7   :  { %6397 = vrcp.f32 %v10117_v1 }
 0xed8   :  { %v10128_v34 = vpop.xlane.xlu2 %4034 }
 0xed9   :  { %v10130_v59 = vpop.xlane.xlu0 %4782  ;;  %6399 = vrcp.f32 %v10128_v34 }
 0xeda   :  { %v6392_v51 = vpop.eup %6391 }
 0xedb   :  { %v10132_v58 = vpop.eup %6393  ;;  %v4843_v45 = vmul.f32 %v6392_v51, %v4775_v60  ;;  %v4713_v46 = vpop.xlane.xlu1 %4712  ;;  %vm4848_vm7 = vweird.f32 %v6392_v51 }
 0xedc   :  { %v10134_v8 = vpop.eup %6395  ;;  %v4732_v30 = vsub.f32 %v9967_v57, %v4713_v46  ;;  %v4871_v44 = vmul.f32 %v10132_v58, %v10109_v35  ;;  %v4851_v57 = vand.u32 2147483647, %v4775_v60  ;;  %vm10146_vm9 = vmor %vm4847_vm8, %vm4848_vm7  ;;  %v4854_v60 = vor.u32 1.1754944e-38, %v4853_v52 }
 0xedd   :  { %v4844_v25 = vsub.f32 1.0, %v4843_v45  ;;  %4044 = vadd.xlane.f32.xlu1 %v10134_v8  ;;  %v10152_v45 = vpop.eup %6397  ;;  %vm4876_vm0 = vweird.f32 %v10132_v58 }
 0xede   :  { %v4760_v48 = vmul.f32 1.442695, %v4732_v30  ;;  %v4872_v39 = vsub.f32 1.0, %v4871_v44  ;;  %vm4852_vm11 = vcmp.eq.f32.partialorder %v4851_v57, 8.507059e+37  ;;  %vm10204_vm2 = vmor %vm4875_vm1, %vm4876_vm0  ;;  %vm4890_vm7 = vweird.f32 %v10152_v45 }
 0xedf   :  { %v4845_v43 = vmul.f32 %v6392_v51, %v4844_v25  ;;  %v4867_v25 = vand.u32 2147483648, %v10101_v42  ;;  %vm10258_vm12 = vmor %vm4889_vm5, %vm4890_vm7  ;;  %vm4903_vm0 = vweird.f32 %v10130_v59 }
 0xee0   :  { %6401 = vpow2.f32 %v4760_v48  ;;  %v3969_v7 = vpop.xlane.xlu2 %3968  ;;  %v4315_v62 = vpop.f32.mrf.mxu2  ;;  %v4865_v48 = vand.u32 2147483647, %v10101_v42  ;;  %v4873_v52 = vmul.f32 %v10132_v58, %v4872_v39  ;;  %v4864_v42 = vsel %vm10173_vm13, %v10119_v16, %v4860_v20 }
 0xee1   :  { %v3986_v61 = vsub.f32 %v9977_v27, %v3969_v7  ;;  %v4717_v33 = vpop.xlane.xlu0 %4716  ;;  %5904 = vmatmul.msk.f32.gmra.mxu0 %vm1455_vm14, %v4315_v62  ;;  %v4846_v55 = vadd.f32 %v6392_v51, %v4845_v43  ;;  %6403 = vrcp.f32 %v10130_v59  ;;  %v4879_v39 = vand.u32 2147483647, %v10109_v35 }
 0xee2   :  { %v4734_v14 = vsub.f32 %v9979_v49, %v4717_v33  ;;  %v10159_v49 = vpop.eup %6399  ;;  %vm4866_vm15 = vcmp.eq.f32.partialorder %v4865_v48, 8.507059e+37  ;;  %v4874_v16 = vadd.f32 %v10132_v58, %v4873_v52 }
 0xee3   :  { %v4016_v27 = vmul.f32 1.442695, %v3986_v61  ;;  %v10155_v46 = vpop.xlane.xlu1 %4032  ;;  %v4850_v30 = vsel %vm10146_vm9, %v6392_v51, %v4846_v55  ;;  %v4885_v51 = vmul.f32 %v10152_v45, %v10117_v1  ;;  %v4151_v57 = vmul.f32 %v10159_v49, %v10128_v34 }
 0xee4   :  { %v4764_v44 = vmul.f32 1.442695, %v4734_v14  ;;  %6405 = vrcp.f32 %v10155_v46  ;;  %v4855_v53 = vsel %vm4852_vm11, %v4854_v60, %v4850_v30  ;;  %v4868_v61 = vor.u32 1.1754944e-38, %v4867_v25 }
 0xee5   :  { %6407 = vpow2.f32 %v4016_v27  ;;  %v5027_v7 = vmul.f32 %v9957_v22, %v4855_v53  ;;  %v4881_v22 = vand.u32 2147483648, %v10109_v35  ;;  %v4886_v37 = vsub.f32 1.0, %v4885_v51 }
 0xee6   :  { %v10165_v43 = vpop.eup %6401  ;;  %6409 = vpow2.f32 %v4764_v44  ;;  %v4869_v60 = vsel %vm4866_vm15, %v4868_v61, %v4864_v42  ;;  %v4152_v27 = vsub.f32 1.0, %v4151_v57  ;;  %vm10208_vm3 = vcmp.eq.f32.partialorder %v4879_v39, 8.507059e+37 }
 0xee7   :  { %4792 = vadd.xlane.f32.xlu0 %v10165_v43  ;;  %5129 = vmatmul.f32.gmra.mxu3 %v5027_v7  ;;  %v10183_v33 = vpop.eup %6403  ;;  %v4882_v48 = vor.u32 1.1754944e-38, %v4881_v22  ;;  %v5028_v52 = vmul.f32 %v9926_v26, %v4869_v60  ;;  %v4878_v26 = vsel %vm10204_vm2, %v10132_v58, %v4874_v16  ;;  %v4147_v22 = vand.u32 2147483648, %v10155_v46 }
 0xee8   :  { %v4899_v35 = vmul.f32 %v10183_v33, %v10130_v59  ;;  %v4153_v42 = vmul.f32 %v10159_v49, %v4152_v27  ;;  %v4145_v60 = vand.u32 2147483647, %v10155_v46  ;;  %vm4141_vm6 = vweird.f32 %v10155_v46 }
 0xee9   :  { %v10186_v55 = vpop.xlane.xlu0 %4036  ;;  %vm4156_vm9 = vweird.f32 %v10159_v49  ;;  %vm4155_vm11 = vweird.f32 %v10128_v34  ;;  %vm4904_vm2 = vweird.f32 %v10183_v33 }
 0xeea   :  { %v6406_v14 = vpop.eup %6405  ;;  %6411 = vrcp.f32 %v10186_v55  ;;  %vm4146_vm10 = vcmp.eq.f32.partialorder %v4145_v60, 8.507059e+37  ;;  %vm10267_vm13 = vmor %vm4155_vm11, %vm4156_vm9 }
 0xeeb   :  { %v10192_v20 = vpop.eup %6407  ;;  %v4137_v30 = vmul.f32 %v6406_v14, %v10155_v46  ;;  %v3967_v25 = vpop.xlane.xlu1 %3966  ;;  %vm4142_vm4 = vweird.f32 %v6406_v14  ;;  %vm4905_vm5 = vmor %vm4903_vm0, %vm4904_vm2 }
 0xeec   :  { %v10195_v44 = vpop.eup %6409  ;;  %v3985_v53 = vsub.f32 %v9993_v21, %v3967_v25  ;;  %4048 = vadd.xlane.f32.xlu2 %v10192_v20  ;;  %v4887_v21 = vmul.f32 %v10152_v45, %v4886_v37  ;;  %v4895_v37 = vand.u32 2147483648, %v10117_v1  ;;  %vm10230_vm8 = vmor %vm4141_vm6, %vm4142_vm4  ;;  %vm4169_vm4 = vweird.f32 %v10186_v55 }
 0xeed   :  { %v4138_v51 = vsub.f32 1.0, %v4137_v30  ;;  %4796 = vadd.xlane.f32.xlu1 %v10195_v44 }
 0xeee   :  { %v4014_v57 = vmul.f32 1.442695, %v3985_v53  ;;  %v4883_v53 = vsel %vm10208_vm3, %v4882_v48, %v4878_v26  ;;  %v4888_v46 = vadd.f32 %v10152_v45, %v4887_v21  ;;  %v4161_v48 = vand.u32 2147483648, %v10128_v34 }
 0xeef   :  { %v4139_v61 = vmul.f32 %v6406_v14, %v4138_v51  ;;  %5132 = vmatmul.f32.gmra.mxu3 %v5028_v52  ;;  %v4900_v51 = vsub.f32 1.0, %v4899_v35  ;;  %v4148_v52 = vor.u32 1.1754944e-38, %v4147_v22  ;;  %v4893_v21 = vand.u32 2147483647, %v10117_v1 }
 0xef0   :  { %v10220_v39 = vpop.eup %6411  ;;  %6413 = vpow2.f32 %v4014_v57  ;;  %v5029_v26 = vmul.f32 %v9940_v17, %v4883_v53  ;;  %v4892_v17 = vsel %vm10258_vm12, %v10152_v45, %v4888_v46 }
 0xef1   :  { %v4165_v58 = vmul.f32 %v10220_v39, %v10186_v55  ;;  %v3971_v16 = vpop.xlane.xlu0 %3970  ;;  %v4140_v27 = vadd.f32 %v6406_v14, %v4139_v61  ;;  %v10243_v61 = vpop.xlane.xlu2 %4786  ;;  %v4901_v60 = vmul.f32 %v10183_v33, %v4900_v51  ;;  %vm4894_vm15 = vcmp.eq.f32.partialorder %v4893_v21, 8.507059e+37 }
 0xef2   :  { %v3987_v30 = vsub.f32 %v10000_v56, %v3971_v16  ;;  %v4154_v56 = vadd.f32 %v10159_v49, %v4153_v42  ;;  %v4159_v42 = vand.u32 2147483647, %v10128_v34  ;;  %v4909_v51 = vand.u32 2147483648, %v10130_v59 }
 0xef3   :  { %v10238_v7 = vpop.xlane.xlu1 %4784  ;;  %v4144_v57 = vsel %vm10230_vm8, %v6406_v14, %v4140_v27  ;;  %v4166_v16 = vsub.f32 1.0, %v4165_v58  ;;  %v4162_v58 = vor.u32 1.1754944e-38, %v4161_v48  ;;  %vm4170_vm3 = vweird.f32 %v10220_v39 }
 0xef4   :  { %v4018_v40 = vmul.f32 1.442695, %v3987_v30  ;;  %6415 = vrcp.f32 %v10238_v7  ;;  %v4149_v62 = vsel %vm4146_vm10, %v4148_v52, %v4144_v57  ;;  %v4158_v34 = vsel %vm10267_vm13, %v10159_v49, %v4154_v56  ;;  %vm4171_vm6 = vmor %vm4169_vm4, %vm4170_vm3 }
 0xef5   :  { %v4282_v14 = vmul.f32 %v9983_v28, %v4149_v62  ;;  %v4896_v28 = vor.u32 1.1754944e-38, %v4895_v37  ;;  %v4167_v1 = vmul.f32 %v10220_v39, %v4166_v16  ;;  %vm4160_vm1 = vcmp.eq.f32.partialorder %v4159_v42, 8.507059e+37 }
 0xef6   :  { %v10249_v35 = vpop.eup %6413  ;;  %6417 = vpow2.f32 %v4018_v40  ;;  %v4163_v45 = vsel %vm4160_vm1, %v4162_v58, %v4158_v34  ;;  %v4902_v37 = vadd.f32 %v10183_v33, %v4901_v60  ;;  %v4175_v56 = vand.u32 2147483648, %v10186_v55 }
 0xef7   :  { %6419 = vrcp.f32 %v10243_v61  ;;  %4046 = vadd.xlane.f32.xlu0 %v10249_v35  ;;  %4326 = vmatmul.f32.gmra.mxu2 %v4282_v14  ;;  %v4897_v30 = vsel %vm4894_vm15, %v4896_v28, %v4892_v17  ;;  %v4168_v52 = vadd.f32 %v10220_v39, %v4167_v1  ;;  %v4907_v62 = vand.u32 2147483647, %v10130_v59 }
 0xef8   :  { %5135 = vmatmul.f32.gmra.mxu3 %v5029_v26  ;;  %v5030_v48 = vmul.f32 %v9948_v23, %v4897_v30  ;;  %v4283_v14 = vmul.f32 %v9962_v54, %v4163_v45  ;;  %v4906_v26 = vsel %vm4905_vm5, %v10183_v33, %v4902_v37  ;;  %v4910_v60 = vor.u32 1.1754944e-38, %v4909_v51 }
 0xef9   :  { %v4172_v22 = vsel %vm4171_vm6, %v10220_v39, %v4168_v52  ;;  %v4176_v54 = vor.u32 1.1754944e-38, %v4175_v56  ;;  %vm4908_vm8 = vcmp.eq.f32.partialorder %v4907_v62, 8.507059e+37  ;;  %v4923_v28 = vand.u32 2147483648, %v10238_v7 }
 0xefa   :  { %v6416_v27 = vpop.eup %6415  ;;  %v4911_v40 = vsel %vm4908_vm8, %v4910_v60, %v4906_v26  ;;  %vm4917_vm10 = vweird.f32 %v10238_v7  ;;  %v4921_v39 = vand.u32 2147483647, %v10238_v7  ;;  %v4937_v37 = vand.u32 2147483648, %v10243_v61 }
 0xefb   :  { %v4913_v25 = vmul.f32 %v6416_v27, %v10238_v7  ;;  %v4719_v53 = vpop.xlane.xlu1 %4718  ;;  %vm4918_vm9 = vweird.f32 %v6416_v27  ;;  %v5031_v34 = vmul.f32 %v9964_v15, %v4911_v40  ;;  %vm4931_vm15 = vweird.f32 %v10243_v61 }
 0xefc   :  { %v10282_v46 = vpop.eup %6417  ;;  %v4735_v49 = vsub.f32 %v10006_v13, %v4719_v53  ;;  %v4173_v13 = vand.u32 2147483647, %v10186_v55  ;;  %vm4919_vm11 = vmor %vm4917_vm10, %vm4918_vm9  ;;  %vm4922_vm12 = vcmp.eq.f32.partialorder %v4921_v39, 8.507059e+37  ;;  %v4938_v51 = vor.u32 1.1754944e-38, %v4937_v37 }
 0xefd   :  { %v6420_v57 = vpop.eup %6419  ;;  %v4914_v16 = vsub.f32 1.0, %v4913_v25  ;;  %4050 = vadd.xlane.f32.xlu1 %v10282_v46  ;;  %v4924_v25 = vor.u32 1.1754944e-38, %v4923_v28 }
 0xefe   :  { %v4766_v21 = vmul.f32 1.442695, %v4735_v49  ;;  %v4927_v42 = vmul.f32 %v6420_v57, %v10243_v61  ;;  %vm4174_vm7 = vcmp.eq.f32.partialorder %v4173_v13, 8.507059e+37  ;;  %vm4932_vm13 = vweird.f32 %v6420_v57 }
 0xeff   :  { %v4915_v23 = vmul.f32 %v6416_v27, %v4914_v16  ;;  %4329 = vmatmul.f32.gmra.mxu2 %v4283_v14  ;;  %v4177_v55 = vsel %vm4174_vm7, %v4176_v54, %v4172_v22  ;;  %vm4933_vm0 = vmor %vm4931_vm15, %vm4932_vm13 }
 0xf00   :  { %6421 = vpow2.f32 %v4766_v21  ;;  %5138 = vmatmul.f32.gmra.mxu3 %v5030_v48  ;;  %v4928_v17 = vsub.f32 1.0, %v4927_v42  ;;  %v4284_v1 = vmul.f32 %v9989_v12, %v4177_v55  ;;  %v4935_v12 = vand.u32 2147483647, %v10243_v61 }
 0xf01   :  { %v4916_v59 = vadd.f32 %v6416_v27, %v4915_v23 }
 0xf02   :  { %v4929_v58 = vmul.f32 %v6420_v57, %v4928_v17  ;;  %vm4936_vm1 = vcmp.eq.f32.partialorder %v4935_v12, 8.507059e+37 }
 0xf03   :  { %v4920_v30 = vsel %vm4919_vm11, %v6416_v27, %v4916_v59 }
 0xf04   :  { %v4925_v53 = vsel %vm4922_vm12, %v4924_v25, %v4920_v30  ;;  %v4930_v45 = vadd.f32 %v6420_v57, %v4929_v58 }
 0xf05   :  { %v5032_v15 = vmul.f32 %v10003_v5, %v4925_v53 }
 0xf06   :  { %v10303_v33 = vpop.eup %6421  ;;  %v4934_v7 = vsel %vm4933_vm0, %v6420_v57, %v4930_v45 }
 0xf07   :  { %4798 = vadd.xlane.f32.xlu0 %v10303_v33  ;;  %4332 = vmatmul.f32.gmra.mxu2 %v4284_v1  ;;  %v4939_v49 = vsel %vm4936_vm1, %v4938_v51, %v4934_v7 }
 0xf08   :  { %5141 = vmatmul.f32.gmra.mxu3 %v5031_v34  ;;  %v5033_v27 = vmul.f32 %v9987_v29, %v4939_v49 }
 0xf10   :  { %5144 = vmatmul.f32.gmra.mxu3 %v5032_v15 }
 0xf18   :  { %5147 = vmatmul.f32.gmra.mxu3 %v5033_v27 }
 0xf1f   :  { %v4039_v52 = vpop.xlane.xlu1 %4038 }
 0xf20   :  { %6423 = vrcp.f32 %v4039_v52  ;;  %v4189_v21 = vand.u32 2147483648, %v4039_v52  ;;  %v4187_v61 = vand.u32 2147483647, %v4039_v52  ;;  %vm4183_vm3 = vweird.f32 %v4039_v52 }
 0xf22   :  { %v4190_v13 = vor.u32 1.1754944e-38, %v4189_v21  ;;  %vm4188_vm5 = vcmp.eq.f32.partialorder %v4187_v61, 8.507059e+37 }
 0xf26   :  { %v6424_v56 = vpop.eup %6423 }
 0xf27   :  { %v4789_v16 = vpop.xlane.xlu2 %4788  ;;  %v4179_v48 = vmul.f32 %v6424_v56, %v4039_v52  ;;  %vm4184_vm2 = vweird.f32 %v6424_v56 }
 0xf28   :  { %6425 = vrcp.f32 %v4789_v16  ;;  %vm4185_vm4 = vmor %vm4183_vm3, %vm4184_vm2  ;;  %v4951_v60 = vand.u32 2147483648, %v4789_v16  ;;  %v4949_v40 = vand.u32 2147483647, %v4789_v16  ;;  %vm4945_vm7 = vweird.f32 %v4789_v16 }
 0xf29   :  { %v4180_v62 = vsub.f32 1.0, %v4179_v48 }
 0xf2a   :  { %v4952_v28 = vor.u32 1.1754944e-38, %v4951_v60  ;;  %vm4950_vm9 = vcmp.eq.f32.partialorder %v4949_v40, 8.507059e+37 }
 0xf2b   :  { %v4181_v5 = vmul.f32 %v6424_v56, %v4180_v62 }
 0xf2d   :  { %v4182_v57 = vadd.f32 %v6424_v56, %v4181_v5 }
 0xf2e   :  { %v6426_v14 = vpop.eup %6425 }
 0xf2f   :  { %v4941_v26 = vmul.f32 %v6426_v14, %v4789_v16  ;;  %v4041_v42 = vpop.xlane.xlu0 %4040  ;;  %v4186_v29 = vsel %vm4185_vm4, %v6424_v56, %v4182_v57  ;;  %vm4946_vm6 = vweird.f32 %v6426_v14 }
 0xf30   :  { %6427 = vrcp.f32 %v4041_v42  ;;  %v4191_v22 = vsel %vm4188_vm5, %v4190_v13, %v4186_v29  ;;  %vm4947_vm8 = vmor %vm4945_vm7, %vm4946_vm6  ;;  %v4203_v53 = vand.u32 2147483648, %v4041_v42  ;;  %v4201_v45 = vand.u32 2147483647, %v4041_v42 }
 0xf31   :  { %v4942_v23 = vsub.f32 1.0, %v4941_v26  ;;  %v4285_v54 = vmul.f32 %v10055_v4, %v4191_v22  ;;  %vm4197_vm11 = vweird.f32 %v4041_v42 }
 0xf32   :  { %v4204_v12 = vor.u32 1.1754944e-38, %v4203_v53  ;;  %vm4202_vm13 = vcmp.eq.f32.partialorder %v4201_v45, 8.507059e+37 }
 0xf33   :  { %v4943_v55 = vmul.f32 %v6426_v14, %v4942_v23  ;;  %4335 = vmatmul.f32.gmra.mxu2 %v4285_v54 }
 0xf35   :  { %v4944_v17 = vadd.f32 %v6426_v14, %v4943_v55 }
 0xf36   :  { %v6428_v59 = vpop.eup %6427 }
 0xf37   :  { %v4193_v1 = vmul.f32 %v6428_v59, %v4041_v42  ;;  %v4791_v34 = vpop.xlane.xlu1 %4790  ;;  %v4948_v39 = vsel %vm4947_vm8, %v6426_v14, %v4944_v17  ;;  %vm4198_vm10 = vweird.f32 %v6428_v59 }
 0xf38   :  { %6429 = vrcp.f32 %v4791_v34  ;;  %v4953_v58 = vsel %vm4950_vm9, %v4952_v28, %v4948_v39  ;;  %vm4199_vm12 = vmor %vm4197_vm11, %vm4198_vm10  ;;  %v4965_v16 = vand.u32 2147483648, %v4791_v34  ;;  %v4963_v62 = vand.u32 2147483647, %v4791_v34 }
 0xf39   :  { %v4194_v30 = vsub.f32 1.0, %v4193_v1  ;;  %v5034_v25 = vmul.f32 %v10069_v11, %v4953_v58  ;;  %vm4959_vm0 = vweird.f32 %v4791_v34 }
 0xf3a   :  { %v4966_v61 = vor.u32 1.1754944e-38, %v4965_v16  ;;  %vm4964_vm2 = vcmp.eq.f32.partialorder %v4963_v62, 8.507059e+37 }
 0xf3b   :  { %v4195_v4 = vmul.f32 %v6428_v59, %v4194_v30  ;;  %5150 = vmatmul.f32.gmra.mxu3 %v5034_v25 }
 0xf3d   :  { %v4196_v37 = vadd.f32 %v6428_v59, %v4195_v4 }
 0xf3e   :  { %v6430_v15 = vpop.eup %6429 }
 0xf3f   :  { %v4955_v7 = vmul.f32 %v6430_v15, %v4791_v34  ;;  %v4043_v51 = vpop.xlane.xlu2 %4042  ;;  %v4200_v49 = vsel %vm4199_vm12, %v6428_v59, %v4196_v37  ;;  %vm4960_vm15 = vweird.f32 %v6430_v15 }
 0xf40   :  { %6431 = vrcp.f32 %v4043_v51  ;;  %v4318_v27 = vpop.f32.mrf.mxu2  ;;  %v4205_v52 = vsel %vm4202_vm13, %v4204_v12, %v4200_v49  ;;  %vm4961_vm1 = vmor %vm4959_vm0, %vm4960_vm15  ;;  %v4217_v29 = vand.u32 2147483648, %v4043_v51  ;;  %v4215_v22 = vand.u32 2147483647, %v4043_v51 }
 0xf41   :  { %v4956_v56 = vsub.f32 1.0, %v4955_v7  ;;  %5905 = vmatmul.msk.f32.gmra.mxu0 %vm1455_vm14, %v4318_v27  ;;  %v4286_v11 = vmul.f32 %v10092_v41, %v4205_v52  ;;  %vm4211_vm4 = vweird.f32 %v4043_v51 }
 0xf42   :  { %v4218_v54 = vor.u32 1.1754944e-38, %v4217_v29  ;;  %vm4216_vm6 = vcmp.eq.f32.partialorder %v4215_v22, 8.507059e+37 }
 0xf43   :  { %v4957_v48 = vmul.f32 %v6430_v15, %v4956_v56  ;;  %4338 = vmatmul.f32.gmra.mxu2 %v4286_v11 }
 0xf45   :  { %v4958_v21 = vadd.f32 %v6430_v15, %v4957_v48 }
 0xf46   :  { %v6432_v5 = vpop.eup %6431 }
 0xf47   :  { %v4207_v14 = vmul.f32 %v6432_v5, %v4043_v51  ;;  %v4962_v57 = vsel %vm4961_vm1, %v6430_v15, %v4958_v21  ;;  %vm4212_vm3 = vweird.f32 %v6432_v5 }
 0xf48   :  { %v4321_v13 = vpop.f32.mrf.mxu2  ;;  %v4967_v26 = vsel %vm4964_vm2, %v4966_v61, %v4962_v57  ;;  %vm4213_vm5 = vmor %vm4211_vm4, %vm4212_vm3  ;;  %v5956_v57 = vld [vmem:[%s10844_s10 + $0xf0] sm:$0xff] }
 0xf49   :  { %v4208_v42 = vsub.f32 1.0, %v4207_v14  ;;  %5906 = vmatmul.msk.f32.gmra.mxu0 %vm1455_vm14, %v4321_v13  ;;  %v5035_v41 = vmul.f32 %v10104_v24, %v4967_v26  ;;  %v10323_v24 = vpop.xlane.xlu2 %4794 }
 0xf4a   :  { %v4993_v22 = vand.u32 2147483648, %v10323_v24  ;;  %vm4987_vm1 = vweird.f32 %v10323_v24 }
 0xf4b   :  { %v4209_v23 = vmul.f32 %v6432_v5, %v4208_v42  ;;  %5153 = vmatmul.f32.gmra.mxu3 %v5035_v41 }
 0xf4d   :  { %v4210_v60 = vadd.f32 %v6432_v5, %v4209_v23 }
 0xf4f   :  { %v4214_v55 = vsel %vm4213_vm5, %v6432_v5, %v4210_v60 }
 0xf50   :  { %v4045_v40 = vpop.xlane.xlu1 %4044  ;;  %v4324_v17 = vpop.f32.mrf.mxu2  ;;  %v4219_v59 = vsel %vm4216_vm6, %v4218_v54, %v4214_v55  ;;  %v5955_v54 = vld [vmem:[%s10844_s10 + $0xe8] sm:$0xff]  ;;  %v5954_v55 = vld [vmem:[%s10844_s10 + $0xe0] sm:$0xff] }
 0xf51   :  { %6433 = vrcp.f32 %v4045_v40  ;;  %5907 = vmatmul.msk.f32.gmra.mxu0 %vm1455_vm14, %v4324_v17  ;;  %v4287_v28 = vmul.f32 %v10112_v19, %v4219_v59  ;;  %v4231_v53 = vand.u32 2147483648, %v4045_v40  ;;  %v4229_v4 = vand.u32 2147483647, %v4045_v40 }
 0xf52   :  { %6435 = vrcp.f32 %v10323_v24  ;;  %vm4225_vm8 = vweird.f32 %v4045_v40  ;;  %v4991_v17 = vand.u32 2147483647, %v10323_v24 }
 0xf53   :  { %4341 = vmatmul.f32.gmra.mxu2 %v4287_v28  ;;  %v4232_v37 = vor.u32 1.1754944e-38, %v4231_v53  ;;  %vm4230_vm10 = vcmp.eq.f32.partialorder %v4229_v4, 8.507059e+37 }
 0xf54   :  { %vm4992_vm3 = vcmp.eq.f32.partialorder %v4991_v17, 8.507059e+37 }
 0xf57   :  { %v6434_v1 = vpop.eup %6433 }
 0xf58   :  { %v4221_v34 = vmul.f32 %v6434_v1, %v4045_v40  ;;  %v10326_v30 = vpop.eup %6435  ;;  %vm4226_vm7 = vweird.f32 %v6434_v1 }
 0xf59   :  { %v4983_v19 = vmul.f32 %v10326_v30, %v10323_v24  ;;  %vm4227_vm9 = vmor %vm4225_vm8, %vm4226_vm7  ;;  %vm4988_vm15 = vweird.f32 %v10326_v30  ;;  %v4994_v24 = vor.u32 1.1754944e-38, %v4993_v22 }
 0xf5a   :  { %v4222_v39 = vsub.f32 1.0, %v4221_v34  ;;  %v4793_v58 = vpop.xlane.xlu0 %4792  ;;  %vm10367_vm2 = vmor %vm4987_vm1, %vm4988_vm15 }
 0xf5b   :  { %6437 = vrcp.f32 %v4793_v58  ;;  %v4984_v27 = vsub.f32 1.0, %v4983_v19  ;;  %v4979_v48 = vand.u32 2147483648, %v4793_v58  ;;  %v4977_v5 = vand.u32 2147483647, %v4793_v58  ;;  %v5951_v19 = vld [vmem:[%s10844_s10 + $0xc8] sm:$0xff] }
 0xf5c   :  { %v4223_v25 = vmul.f32 %v6434_v1, %v4222_v39  ;;  %vm4973_vm12 = vweird.f32 %v4793_v58 }
 0xf5d   :  { %v4985_v21 = vmul.f32 %v10326_v30, %v4984_v27  ;;  %v4980_v13 = vor.u32 1.1754944e-38, %v4979_v48  ;;  %vm4978_vm0 = vcmp.eq.f32.partialorder %v4977_v5, 8.507059e+37 }
 0xf5e   :  { %v4224_v45 = vadd.f32 %v6434_v1, %v4223_v25 }
 0xf5f   :  { %v10333_v52 = vpop.xlane.xlu2 %4048  ;;  %v4986_v29 = vadd.f32 %v10326_v30, %v4985_v21 }
 0xf60   :  { %v10330_v15 = vpop.xlane.xlu1 %4796  ;;  %v4228_v7 = vsel %vm4227_vm9, %v6434_v1, %v4224_v45  ;;  %v4257_v22 = vand.u32 2147483647, %v10333_v52 }
 0xf61   :  { %v6438_v12 = vpop.eup %6437  ;;  %6439 = vrcp.f32 %v10330_v15  ;;  %v4233_v49 = vsel %vm4230_vm10, %v4232_v37, %v4228_v7  ;;  %v4990_v34 = vsel %vm10367_vm2, %v10326_v30, %v4986_v29  ;;  %v5007_v37 = vand.u32 2147483648, %v10330_v15  ;;  %v5950_v7 = vld [vmem:[%s10844_s10 + $0xc0] sm:$0xff] }
 0xf62   :  { %v4969_v51 = vmul.f32 %v6438_v12, %v4793_v58  ;;  %v4288_v56 = vmul.f32 %v10134_v8, %v4233_v49  ;;  %6441 = vrcp.f32 %v10333_v52  ;;  %vm4974_vm11 = vweird.f32 %v6438_v12  ;;  %v5957_v8 = vld [vmem:[%s10844_s10 + $0xf8] sm:$0xff]  ;;  %v5952_v58 = vld [vmem:[%s10844_s10 + $0xd0] sm:$0xff] }
 0xf63   :  { %vm4975_vm13 = vmor %vm4973_vm12, %vm4974_vm11  ;;  %5234 = vmatpush.msrb.mxu2 %v5957_v8  ;;  %v4995_v30 = vsel %vm4992_vm3, %v4994_v24, %v4990_v34  ;;  %vm5001_vm5 = vweird.f32 %v10330_v15  ;;  %v5005_v49 = vand.u32 2147483647, %v10330_v15 }
 0xf64   :  { %v4970_v11 = vsub.f32 1.0, %v4969_v51  ;;  %4344 = vmatmul.f32.gmra.mxu2 %v4288_v56  ;;  %v5037_v51 = vmul.f32 %v10122_v36, %v4995_v30 }
 0xf65   :  { %5235 = vmatpush.msrb.mxu2 %v5956_v57  ;;  %vm5006_vm10 = vcmp.eq.f32.partialorder %v5005_v49, 8.507059e+37 }
 0xf66   :  { %v4971_v16 = vmul.f32 %v6438_v12, %v4970_v11 }
 0xf67   :  { %v10337_v62 = vpop.eup %6439  ;;  %5236 = vmatpush.msrb.mxu2 %v5955_v54 }
 0xf68   :  { %v4997_v61 = vmul.f32 %v10337_v62, %v10330_v15  ;;  %v4972_v14 = vadd.f32 %v6438_v12, %v4971_v16  ;;  %v10353_v23 = vpop.eup %6441  ;;  %vm5002_vm4 = vweird.f32 %v10337_v62  ;;  %v5008_v15 = vor.u32 1.1754944e-38, %v5007_v37 }
 0xf69   :  { %v4249_v28 = vmul.f32 %v10353_v23, %v10333_v52  ;;  %5237 = vmatpush.msrb.mxu2 %v5954_v55  ;;  %vm10400_vm7 = vmor %vm5001_vm5, %vm5002_vm4  ;;  %vm4254_vm11 = vweird.f32 %v10353_v23 }
 0xf6a   :  { %v10348_v26 = vpop.xlane.xlu0 %4046  ;;  %v4976_v42 = vsel %vm4975_vm13, %v6438_v12, %v4972_v14  ;;  %v4998_v41 = vsub.f32 1.0, %v4997_v61  ;;  %vm4253_vm13 = vweird.f32 %v10333_v52 }
 0xf6b   :  { %6443 = vrcp.f32 %v10348_v26  ;;  %v4981_v60 = vsel %vm4978_vm0, %v4980_v13, %v4976_v42  ;;  %v4250_v4 = vsub.f32 1.0, %v4249_v28  ;;  %v4245_v56 = vand.u32 2147483648, %v10348_v26  ;;  %vm4255_vm15 = vmor %vm4253_vm13, %vm4254_vm11  ;;  %v5121_v28 = vpop.f32.mrf.mxu3 }
 0xf6c   :  { %v5036_v40 = vmul.f32 %v10165_v43, %v4981_v60  ;;  %v4999_v1 = vmul.f32 %v10337_v62, %v4998_v41  ;;  %v5953_v43 = vld [vmem:[%s10844_s10 + $0xd8] sm:$0xff]  ;;  %v4243_v21 = vand.u32 2147483647, %v10348_v26  ;;  %vm4239_vm8 = vweird.f32 %v10348_v26 }
 0xf6d   :  { %5238 = vmatpush.msrb.mxu2 %v5953_v43  ;;  %v4251_v48 = vmul.f32 %v10353_v23, %v4250_v4  ;;  %v4246_v14 = vor.u32 1.1754944e-38, %v4245_v56  ;;  %vm4258_vm0 = vcmp.eq.f32.partialorder %v4257_v22, 8.507059e+37 }
 0xf6e   :  { %5156 = vmatmul.f32.gmra.mxu3 %v5036_v40  ;;  %v5000_v45 = vadd.f32 %v10337_v62, %v4999_v1  ;;  %vm4244_vm12 = vcmp.eq.f32.partialorder %v4243_v21, 8.507059e+37 }
 0xf6f   :  { %5239 = vmatpush.msrb.mxu2 %v5952_v58  ;;  %v4252_v42 = vadd.f32 %v10353_v23, %v4251_v48 }
 0xf70   :  { %v10380_v39 = vpop.xlane.xlu1 %4050  ;;  %v5004_v36 = vsel %vm10400_vm7, %v10337_v62, %v5000_v45 }
 0xf71   :  { %v6444_v25 = vpop.eup %6443  ;;  %6445 = vrcp.f32 %v10380_v39  ;;  %5240 = vmatpush.msrb.mxu2 %v5951_v19  ;;  %v5009_v13 = vsel %vm5006_vm10, %v5008_v15, %v5004_v36  ;;  %v4256_v40 = vsel %vm4255_vm15, %v10353_v23, %v4252_v42  ;;  %vm4267_vm2 = vweird.f32 %v10380_v39 }
 0xf72   :  { %v4235_v53 = vmul.f32 %v6444_v25, %v10348_v26  ;;  %vm4240_vm6 = vweird.f32 %v6444_v25  ;;  %v4259_v26 = vand.u32 2147483648, %v10333_v52  ;;  %v5038_v54 = vmul.f32 %v10195_v44, %v5009_v13 }
 0xf73   :  { %5241 = vmatpush.msrb.mxu2 %v5950_v7  ;;  %vm4241_vm9 = vmor %vm4239_vm8, %vm4240_vm6  ;;  %v4271_v23 = vand.u32 2147483647, %v10380_v39 }
 0xf74   :  { %v4236_v12 = vsub.f32 1.0, %v4235_v53  ;;  %v4260_v17 = vor.u32 1.1754944e-38, %v4259_v26  ;;  %v10458_v26 = vpop.f32.mrf.mxu0 }
 0xf75   :  { %vm4272_vm6 = vcmp.eq.f32.partialorder %v4271_v23, 8.507059e+37 }
 0xf76   :  { %v4237_v27 = vmul.f32 %v6444_v25, %v4236_v12  ;;  %5159 = vmatmul.f32.gmra.mxu3 %v5037_v51  ;;  %v4261_v34 = vsel %vm4258_vm0, %v4260_v17, %v4256_v40  ;;  %v5124_v51 = vpop.f32.mrf.mxu3 }
 0xf77   :  { %v10404_v16 = vpop.eup %6445  ;;  %v4290_v58 = vmul.f32 %v10192_v20, %v4261_v34 }
 0xf78   :  { %v4263_v5 = vmul.f32 %v10404_v16, %v10380_v39  ;;  %v4238_v61 = vadd.f32 %v6444_v25, %v4237_v27  ;;  %vm4268_vm1 = vweird.f32 %v10404_v16 }
 0xf79   :  { %vm4269_vm3 = vmor %vm4267_vm2, %vm4268_vm1 }
 0xf7a   :  { %v4799_v8 = vpop.xlane.xlu0 %4798  ;;  %v4242_v57 = vsel %vm4241_vm9, %v6444_v25, %v4238_v61  ;;  %v4264_v41 = vsub.f32 1.0, %v4263_v5  ;;  %v4327_v62 = vpop.f32.mrf.mxu2 }
 0xf7b   :  { %6447 = vrcp.f32 %v4799_v8  ;;  %5908 = vmatmul.msk.f32.gmra.mxu0 %vm1455_vm14, %v4327_v62  ;;  %v4247_v29 = vsel %vm4244_vm12, %v4246_v14, %v4242_v57  ;;  %v5021_v24 = vand.u32 2147483648, %v4799_v8  ;;  %v5019_v53 = vand.u32 2147483647, %v4799_v8 }
 0xf7c   :  { %v4289_v60 = vmul.f32 %v10249_v35, %v4247_v29  ;;  %v4265_v55 = vmul.f32 %v10404_v16, %v4264_v41  ;;  %v4273_v35 = vand.u32 2147483648, %v10380_v39  ;;  %vm5015_vm5 = vweird.f32 %v4799_v8 }
 0xf7d   :  { %v5022_v19 = vor.u32 1.1754944e-38, %v5021_v24  ;;  %vm5020_vm8 = vcmp.eq.f32.partialorder %v5019_v53, 8.507059e+37 }
 0xf7e   :  { %4347 = vmatmul.f32.gmra.mxu2 %v4289_v60  ;;  %5162 = vmatmul.f32.gmra.mxu3 %v5038_v54  ;;  %v4266_v52 = vadd.f32 %v10404_v16, %v4265_v55  ;;  %v4274_v4 = vor.u32 1.1754944e-38, %v4273_v35  ;;  %v5127_v27 = vpop.f32.mrf.mxu3  ;;  %v10462_v60 = vpop.f32.mrf.mxu0 }
 0xf80   :  { %v4270_v30 = vsel %vm4269_vm3, %v10404_v16, %v4266_v52 }
 0xf81   :  { %v6448_v59 = vpop.eup %6447  ;;  %v4275_v37 = vsel %vm4272_vm6, %v4274_v4, %v4270_v30 }
 0xf82   :  { %v5011_v1 = vmul.f32 %v6448_v59, %v4799_v8  ;;  %v4330_v44 = vpop.f32.mrf.mxu2  ;;  %vm5016_vm4 = vweird.f32 %v6448_v59  ;;  %v4291_v49 = vmul.f32 %v10282_v46, %v4275_v37 }
 0xf83   :  { %5909 = vmatmul.msk.f32.gmra.mxu0 %vm1455_vm14, %v4330_v44  ;;  %vm5017_vm7 = vmor %vm5015_vm5, %vm5016_vm4 }
 0xf84   :  { %v5012_v43 = vsub.f32 1.0, %v5011_v1 }
 0xf86   :  { %v5013_v25 = vmul.f32 %v6448_v59, %v5012_v43  ;;  %4350 = vmatmul.f32.gmra.mxu2 %v4290_v58  ;;  %v5130_v56 = vpop.f32.mrf.mxu3  ;;  %v10466_v55 = vpop.f32.mrf.mxu0 }
 0xf88   :  { %v5014_v45 = vadd.f32 %v6448_v59, %v5013_v25 }
 0xf8a   :  { %v5018_v12 = vsel %vm5017_vm7, %v6448_v59, %v5014_v45  ;;  %v4333_v39 = vpop.f32.mrf.mxu2 }
 0xf8b   :  { %v5023_v7 = vsel %vm5020_vm8, %v5022_v19, %v5018_v12  ;;  %5910 = vmatmul.msk.f32.gmra.mxu0 %vm1455_vm14, %v4333_v39 }
 0xf8c   :  { %v5039_v20 = vmul.f32 %v10303_v33, %v5023_v7 }
 0xf8e   :  { %5165 = vmatmul.f32.gmra.mxu3 %v5039_v20  ;;  %4353 = vmatmul.f32.gmra.mxu2 %v4291_v49  ;;  %v5133_v11 = vpop.f32.mrf.mxu3 }
 0xf96   :  { %5958 = vmatmul.msk.f32.vlgmr.msrb.gmra.mxu2 %vm1455_vm14, %v5121_v28  ;;  %v5136_v16 = vpop.f32.mrf.mxu3 }
 0xf9e   :  { %5959 = vmatmul.msk.f32.gmra.mxu2 %vm1455_vm14, %v5124_v51  ;;  %v5139_v46 = vpop.f32.mrf.mxu3 }
 0xfa6   :  { %5960 = vmatmul.msk.f32.gmra.mxu2 %vm1455_vm14, %v5127_v27  ;;  %v5142_v33 = vpop.f32.mrf.mxu3 }
 0xfae   :  { %5961 = vmatmul.msk.f32.gmra.mxu2 %vm1455_vm14, %v5130_v56  ;;  %v5145_v36 = vpop.f32.mrf.mxu3 }
 0xfb6   :  { %v4336_v48 = vpop.f32.mrf.mxu2  ;;  %5962 = vmatmul.msk.f32.gmra.mxu2 %vm1455_vm14, %v5133_v11  ;;  %v5148_v5 = vpop.f32.mrf.mxu3 }
 0xfb7   :  { %5911 = vmatmul.msk.f32.gmra.mxu0 %vm1455_vm14, %v4336_v48 }
 0xfbe   :  { %5963 = vmatmul.msk.f32.gmra.mxu2 %vm1455_vm14, %v5136_v16  ;;  %v5151_v61 = vpop.f32.mrf.mxu3  ;;  %v4440_v17 = vpop.f32.mrf.mxu0 }
 0xfbf   :  { %v4482_v1 = vadd.f32 %v4440_v17, %v9169_v50 }
 0xfc6   :  { %v4339_v21 = vpop.f32.mrf.mxu2  ;;  %5964 = vmatmul.msk.f32.gmra.mxu2 %vm1455_vm14, %v5139_v46  ;;  %v4443_v28 = vpop.f32.mrf.mxu0 }
 0xfc7   :  { %5912 = vmatmul.msk.f32.gmra.mxu0 %vm1455_vm14, %v4339_v21  ;;  %v4483_v44 = vadd.f32 %v4443_v28, %v9164_v9 }
 0xfce   :  { %5965 = vmatmul.msk.f32.gmra.mxu2 %vm1455_vm14, %v5142_v33  ;;  %v5154_v8 = vpop.f32.mrf.mxu3  ;;  %v4446_v35 = vpop.f32.mrf.mxu0 }
 0xfcf   :  { %v4484_v24 = vadd.f32 %v4446_v35, %v9159_v6 }
 0xfd6   :  { %v4342_v15 = vpop.f32.mrf.mxu2  ;;  %5966 = vmatmul.msk.f32.gmra.mxu2 %vm1455_vm14, %v5145_v36 }
 0xfd7   :  { %5913 = vmatmul.msk.f32.gmra.mxu0 %vm1455_vm14, %v4342_v15 }
 0xfde   :  { %5967 = vmatmul.msk.f32.gmra.mxu2 %vm1455_vm14, %v5148_v5 }
 0xfe6   :  { %5968 = vmatmul.msk.f32.gmra.mxu2 %vm1455_vm14, %v5151_v61 }
 0xfe7   :  { %v4345_v14 = vpop.f32.mrf.mxu2 }
 0xfe8   :  { %5914 = vmatmul.msk.f32.gmra.mxu0 %vm1455_vm14, %v4345_v14 }
 0xfee   :  { %5969 = vmatmul.msk.f32.gmra.mxu2 %vm1455_vm14, %v5154_v8 }
 0xff1   :  { %v5157_v57 = vpop.f32.mrf.mxu3 }
 0xff6   :  { %5970 = vmatmul.msk.f32.gmra.mxu2 %vm1455_vm14, %v5157_v57 }
 0xff8   :  { %v4449_v58 = vpop.f32.mrf.mxu0 }
 0xff9   :  { %v5160_v13 = vpop.f32.mrf.mxu3  ;;  %v4485_v30 = vadd.f32 %v4449_v58, %v9154_v0 }
 0xffe   :  { %5971 = vmatmul.msk.f32.gmra.mxu2 %vm1455_vm14, %v5160_v13 }
0x1000   :  { %v4452_v19 = vpop.f32.mrf.mxu0 }
0x1001   :  { %v4348_v42 = vpop.f32.mrf.mxu2  ;;  %v5163_v41 = vpop.f32.mrf.mxu3  ;;  %v4486_v37 = vadd.f32 %v4452_v19, %v9149_v31 }
0x1002   :  { %5915 = vmatmul.msk.f32.gmra.mxu0 %vm1455_vm14, %v4348_v42 }
0x1006   :  { %5972 = vmatmul.msk.f32.gmra.mxu2 %vm1455_vm14, %v5163_v41 }
0x1008   :  { %v4455_v7 = vpop.f32.mrf.mxu0 }
0x1009   :  { %v4351_v62 = vpop.f32.mrf.mxu2  ;;  %v4487_v51 = vadd.f32 %v4455_v7, %v9144_v10 }
0x100a   :  { %5916 = vmatmul.msk.f32.gmra.mxu0 %vm1455_vm14, %v4351_v62 }
0x1011   :  { %v5166_v29 = vpop.f32.mrf.mxu3  ;;  %v4354_v22 = vpop.f32.mrf.mxu2 }
0x1012   :  { %5973 = vmatmul.msk.f32.gmra.mxu2 %vm1455_vm14, %v5166_v29  ;;  %5917 = vmatmul.msk.f32.gmra.mxu0 %vm1455_vm14, %v4354_v22 }
0x1019   :  { %v10464_v54 = vpop.f32.mrf.mxu2 }
0x1021   :  { %v10468_v40 = vpop.f32.mrf.mxu2 }
0x1029   :  { %v10470_v59 = vpop.f32.mrf.mxu2 }
0x1031   :  { %v5252_v34 = vpop.f32.mrf.mxu2 }
0x1032   :  { %v10473_v52 = vadd.f32 %v5252_v34, %v4482_v1 }
0x1034   :  { %v4458_v27 = vpop.f32.mrf.mxu0 }
0x1039   :  { %v5255_v43 = vpop.f32.mrf.mxu2 }
0x103a   :  { %v10476_v23 = vadd.f32 %v5255_v43, %v4483_v44 }
0x1041   :  { %v5258_v25 = vpop.f32.mrf.mxu2 }
0x1042   :  { %v10479_v53 = vadd.f32 %v5258_v25, %v4484_v24  ;;  %v4488_v24 = vadd.f32 %v4458_v27, %v9139_v32 }
0x1044   :  { %v4461_v11 = vpop.f32.mrf.mxu0 }
0x1045   :  { %v4489_v44 = vadd.f32 %v4461_v11, %v9134_v47  ;;  %v10955_v11 = vld [vmem:[#allocation3_spill] sm:$0xff] }
0x1049   :  { %v5261_v4 = vpop.f32.mrf.mxu2 }
0x104a   :  { %v10482_v45 = vadd.f32 %v5261_v4, %v4485_v30 }
0x1051   :  { %v5264_v12 = vpop.f32.mrf.mxu2 }
0x1052   :  { %v10485_v39 = vadd.f32 %v5264_v12, %v4486_v37 }
0x1054   :  { %v4464_v48 = vpop.f32.mrf.mxu0  ;;  %v5343_v7 = vmul.f32 %v10485_v39, %v10485_v39 }
0x1055   :  { %v4490_v28 = vadd.f32 %v4464_v48, %v9129_v2 }
0x1059   :  { %v5267_v20 = vpop.f32.mrf.mxu2 }
0x105a   :  { %v10488_v49 = vadd.f32 %v5267_v20, %v4487_v51  ;;  %v5342_v51 = vmul.f32 %v10482_v45, %v10482_v45  ;;  %v10954_v20 = vld [vmem:[#allocation2_spill] sm:$0xff] }
0x105b   :  { %v4481_v27 = vadd.f32 %v10466_v55, %v10954_v20 }
0x105c   :  { %v5344_v12 = vmul.f32 %v10488_v49, %v10488_v49 }
0x105d   :  { %v10549_v48 = vadd.f32 %v10470_v59, %v4481_v27 }
0x1061   :  { %v5270_v56 = vpop.f32.mrf.mxu2 }
0x1062   :  { %v10521_v30 = vadd.f32 %v5270_v56, %v4488_v24  ;;  %v5341_v56 = vmul.f32 %v10479_v53, %v10479_v53  ;;  %v6525_v24 = vld [vmem:[%s10839_s6 + $0x18] sm:$0xff] }
0x1064   :  { %v5345_v37 = vmul.f32 %v10521_v30, %v10521_v30 }
0x1065   :  { %v4467_v33 = vpop.f32.mrf.mxu0 }
0x1066   :  { %v4491_v29 = vadd.f32 %v4467_v33, %v9124_v18  ;;  %v10956_v33 = vld [vmem:[#allocation4_spill] sm:$0xff] }
0x1067   :  { %v4479_v55 = vadd.f32 %v10458_v26, %v10956_v33 }
0x1069   :  { %v5273_v16 = vpop.f32.mrf.mxu2  ;;  %v10563_v59 = vadd.f32 %v10464_v54, %v4479_v55  ;;  %v6510_v54 = vld [vmem:[%s10839_s6] sm:$0xff] }
0x106a   :  { %v10516_v58 = vadd.f32 %v5273_v16, %v4489_v44  ;;  %v4480_v16 = vadd.f32 %v10462_v60, %v10955_v11  ;;  %v5339_v60 = vmul.f32 %v10473_v52, %v10473_v52  ;;  %v6523_v44 = vld [vmem:[%s10840_s7 + $0x28] sm:$0xff] }
0x106c   :  { %v5346_v19 = vmul.f32 %v10516_v58, %v10516_v58 }
0x1071   :  { %v5276_v46 = vpop.f32.mrf.mxu2 }
0x1072   :  { %v10510_v35 = vadd.f32 %v5276_v46, %v4490_v28  ;;  %v5340_v46 = vmul.f32 %v10476_v23, %v10476_v23  ;;  %v6521_v28 = vld [vmem:[%s10840_s7 + $0x38] sm:$0xff] }
0x1074   :  { %v5347_v4 = vmul.f32 %v10510_v35, %v10510_v35 }
0x1079   :  { %v5279_v21 = vpop.f32.mrf.mxu2 }
0x107a   :  { %v10504_v1 = vadd.f32 %v5279_v21, %v4491_v29  ;;  %v10557_v21 = vadd.f32 %v10468_v40, %v4480_v16  ;;  %v5336_v40 = vmul.f32 %v10563_v59, %v10563_v59  ;;  %v6519_v29 = vld [vmem:[%s10840_s7 + $0x40] sm:$0xff] }
0x107c   :  { %v5348_v25 = vmul.f32 %v10504_v1, %v10504_v1  ;;  %v5337_v26 = vmul.f32 %v10557_v21, %v10557_v21 }
0x107f   :  { %v4470_v36 = vpop.f32.mrf.mxu0 }
0x1080   :  { %v4492_v57 = vadd.f32 %v4470_v36, %v9119_v38  ;;  %v5338_v36 = vmul.f32 %v10549_v48, %v10549_v48 }
0x1081   :  { %v5282_v15 = vpop.f32.mrf.mxu2 }
0x1082   :  { %v10498_v22 = vadd.f32 %v5282_v15, %v4492_v57  ;;  %v6511_v15 = vld [vmem:[%s10840_s7 + $0x78] sm:$0xff] }
0x1083   :  { %v6516_v57 = vld [vmem:[%s10840_s7 + $0x58] sm:$0xff] }
0x1084   :  { %v5349_v43 = vmul.f32 %v10498_v22, %v10498_v22 }
0x1087   :  { %v4473_v5 = vpop.f32.mrf.mxu0 }
0x1088   :  { %v4493_v8 = vadd.f32 %v4473_v5, %v9115_v63  ;;  %v6512_v5 = vld [vmem:[%s10840_s7 + $0x70] sm:$0xff] }
0x1089   :  { %v5285_v61 = vpop.f32.mrf.mxu2 }
0x108a   :  { %v10493_v41 = vadd.f32 %v5285_v61, %v4493_v8  ;;  %v6513_v61 = vld [vmem:[%s10840_s7 + $0x68] sm:$0xff] }
0x108b   :  { %v6515_v8 = vld [vmem:[%s10839_s6 + $0x8] sm:$0xff] }
0x108c   :  { %v5350_v34 = vmul.f32 %v10493_v41, %v10493_v41 }
0x108f   :  { %v4476_v14 = vpop.f32.mrf.mxu0 }
0x1090   :  { %v4494_v13 = vadd.f32 %v4476_v14, %v9117_v3  ;;  %v6514_v14 = vld [vmem:[%s10840_s7 + $0x60] sm:$0xff] }
0x1095   :  { %v5288_v42 = vpop.f32.mrf.mxu2 }
0x1096   :  { %v10495_v62 = vadd.f32 %v5288_v42, %v4494_v13  ;;  %v6517_v13 = vld [vmem:[%s10840_s7 + $0x50] sm:$0xff]  ;;  %v6518_v42 = vld [vmem:[%s10840_s7 + $0x48] sm:$0xff] }
0x1098   :  { %v5351_v17 = vmul.f32 %v10495_v62, %v10495_v62  ;;  %5307 = vmatpush.msra.mxu0 %v10495_v62 }
0x109a   :  { %5308 = vmatpush.msra.mxu0 %v10493_v41  ;;  %5352 = vmatpush.msrb.mxu1 %v5351_v17  ;;  %v6520_v17 = vld [vmem:[%s10839_s6 + $0x10] sm:$0xff] }
0x109c   :  { %5309 = vmatpush.msra.mxu0 %v10498_v22  ;;  %5353 = vmatpush.msrb.mxu1 %v5350_v34  ;;  %v6522_v34 = vld [vmem:[%s10840_s7 + $0x30] sm:$0xff] }
0x109e   :  { %5310 = vmatpush.msra.mxu0 %v10504_v1  ;;  %5354 = vmatpush.msrb.mxu1 %v5349_v43  ;;  %v6524_v43 = vld [vmem:[%s10840_s7 + $0x20] sm:$0xff] }
0x10a0   :  { %5311 = vmatpush.msra.mxu0 %v10510_v35  ;;  %5355 = vmatpush.msrb.mxu1 %v5348_v25  ;;  %v6526_v25 = vld [vmem:[%s10840_s7 + $0x18] sm:$0xff] }
0x10a2   :  { %5312 = vmatpush.msra.mxu0 %v10516_v58  ;;  %5356 = vmatpush.msrb.mxu1 %v5347_v4  ;;  %v6527_v4 = vld [vmem:[%s10840_s7 + $0x10] sm:$0xff] }
0x10a4   :  { %5313 = vmatpush.msra.mxu0 %v10521_v30  ;;  %5357 = vmatpush.msrb.mxu1 %v5346_v19  ;;  %v6528_v19 = vld [vmem:[%s10840_s7 + $0x8] sm:$0xff] }
0x10a6   :  { %5314 = vmatpush.msra.mxu0 %v10488_v49  ;;  %5358 = vmatpush.msrb.mxu1 %v5345_v37  ;;  %v6529_v37 = vld [vmem:[%s10840_s7] sm:$0xff] }
0x10a8   :  { %5315 = vmatpush.msra.mxu0 %v10485_v39  ;;  %5359 = vmatpush.msrb.mxu1 %v5344_v12 }
0x10aa   :  { %5316 = vmatpush.msra.mxu0 %v10482_v45  ;;  %5360 = vmatpush.msrb.mxu1 %v5343_v7 }
0x10ac   :  { %5317 = vmatpush.msra.mxu0 %v10479_v53  ;;  %5361 = vmatpush.msrb.mxu1 %v5342_v51 }
0x10ae   :  { %5318 = vmatpush.msra.mxu0 %v10476_v23  ;;  %5362 = vmatpush.msrb.mxu1 %v5341_v56 }
0x10b0   :  { %5319 = vmatpush.msra.mxu0 %v10473_v52  ;;  %5363 = vmatpush.msrb.mxu1 %v5340_v46 }
0x10b2   :  { %5320 = vmatpush.msra.mxu0 %v10549_v48  ;;  %5364 = vmatpush.msrb.mxu1 %v5339_v60 }
0x10b4   :  { %5321 = vmatpush.msra.mxu0 %v10557_v21  ;;  %5365 = vmatpush.msrb.mxu1 %v5338_v36 }
0x10b6   :  { %5322 = vmatpush.msra.mxu0 %v10563_v59  ;;  %5366 = vmatpush.msrb.mxu1 %v5337_v26  ;;  %v5989_v26 = vld [vmem:[%s10845_s11 + $0xf8] sm:$0xff] }
0x10b7   :  { %5323 = vmatmul.f32.vlgmr.msra.gmra.mxu0 %v6510_v54  ;;  %5559 = vmatpush.msrb.mxu3 %v5989_v26 }
0x10b8   :  { %5367 = vmatpush.msrb.mxu1 %v5336_v40  ;;  %5381 = vmatpush.msrb.mxu0 %v6511_v15  ;;  %v5988_v40 = vld [vmem:[%s10845_s11 + $0xf0] sm:$0xff] }
0x10b9   :  { %5368 = vmatmul.f32.vlgmr.msrb.gmra.mxu1 %v6510_v54  ;;  %5560 = vmatpush.msrb.mxu3 %v5988_v40  ;;  %v5987_v54 = vld [vmem:[%s10845_s11 + $0xe8] sm:$0xff] }
0x10ba   :  { %5382 = vmatpush.msrb.mxu0 %v6512_v5  ;;  %6006 = vmatpush.msra.mxu1 %v6511_v15 }
0x10bb   :  { %5561 = vmatpush.msrb.mxu3 %v5987_v54  ;;  %v5974_v54 = vld [vmem:[%s10845_s11 + $0x80] sm:$0xff] }
0x10bc   :  { %5383 = vmatpush.msrb.mxu0 %v6513_v61  ;;  %6007 = vmatpush.msra.mxu1 %v6512_v5 }
0x10be   :  { %5384 = vmatpush.msrb.mxu0 %v6514_v14  ;;  %6008 = vmatpush.msra.mxu1 %v6513_v61 }
0x10bf   :  { %5326 = vmatmul.f32.gmra.mxu0 %v6515_v8 }
0x10c0   :  { %5385 = vmatpush.msrb.mxu0 %v6516_v57  ;;  %6009 = vmatpush.msra.mxu1 %v6514_v14 }
0x10c1   :  { %5371 = vmatmul.f32.gmra.mxu1 %v6515_v8  ;;  %v5983_v8 = vld [vmem:[%s10845_s11 + $0xc8] sm:$0xff] }
0x10c2   :  { %5386 = vmatpush.msrb.mxu0 %v6517_v13  ;;  %6010 = vmatpush.msra.mxu1 %v6516_v57 }
0x10c4   :  { %5387 = vmatpush.msrb.mxu0 %v6518_v42  ;;  %6011 = vmatpush.msra.mxu1 %v6517_v13 }
0x10c6   :  { %5388 = vmatpush.msrb.mxu0 %v6519_v29  ;;  %6012 = vmatpush.msra.mxu1 %v6518_v42 }
0x10c7   :  { %5329 = vmatmul.f32.gmra.mxu0 %v6520_v17 }
0x10c8   :  { %5389 = vmatpush.msrb.mxu0 %v6521_v28  ;;  %6013 = vmatpush.msra.mxu1 %v6519_v29 }
0x10c9   :  { %5374 = vmatmul.f32.gmra.mxu1 %v6520_v17 }
0x10ca   :  { %5390 = vmatpush.msrb.mxu0 %v6522_v34  ;;  %6014 = vmatpush.msra.mxu1 %v6521_v28 }
0x10cc   :  { %5391 = vmatpush.msrb.mxu0 %v6523_v44  ;;  %6015 = vmatpush.msra.mxu1 %v6522_v34 }
0x10ce   :  { %5392 = vmatpush.msrb.mxu0 %v6524_v43  ;;  %6016 = vmatpush.msra.mxu1 %v6523_v44 }
0x10cf   :  { %5332 = vmatmul.f32.gmra.mxu0 %v6525_v24 }
0x10d0   :  { %5393 = vmatpush.msrb.mxu0 %v6526_v25  ;;  %6017 = vmatpush.msra.mxu1 %v6524_v43 }
0x10d1   :  { %5377 = vmatmul.f32.gmra.mxu1 %v6525_v24 }
0x10d2   :  { %5394 = vmatpush.msrb.mxu0 %v6527_v4  ;;  %6018 = vmatpush.msra.mxu1 %v6526_v25 }
0x10d4   :  { %5395 = vmatpush.msrb.mxu0 %v6528_v19  ;;  %6019 = vmatpush.msra.mxu1 %v6527_v4 }
0x10d6   :  { %5396 = vmatpush.msrb.mxu0 %v6529_v37  ;;  %6020 = vmatpush.msra.mxu1 %v6528_v19 }
0x10d8   :  { %5410 = vmatpush.msra.mxu0 %v6511_v15  ;;  %6021 = vmatpush.msra.mxu1 %v6529_v37 }
0x10da   :  { %5411 = vmatpush.msra.mxu0 %v6512_v5  ;;  %v5986_v5 = vld [vmem:[%s10845_s11 + $0xe0] sm:$0xff] }
0x10db   :  { %5562 = vmatpush.msrb.mxu3 %v5986_v5 }
0x10dc   :  { %5412 = vmatpush.msra.mxu0 %v6513_v61  ;;  %v5985_v61 = vld [vmem:[%s10845_s11 + $0xd8] sm:$0xff] }
0x10dd   :  { %5563 = vmatpush.msrb.mxu3 %v5985_v61 }
0x10de   :  { %5413 = vmatpush.msra.mxu0 %v6514_v14  ;;  %v5984_v14 = vld [vmem:[%s10845_s11 + $0xd0] sm:$0xff] }
0x10df   :  { %5564 = vmatpush.msrb.mxu3 %v5984_v14 }
0x10e0   :  { %5414 = vmatpush.msra.mxu0 %v6516_v57 }
0x10e1   :  { %5565 = vmatpush.msrb.mxu3 %v5983_v8 }
0x10e2   :  { %5415 = vmatpush.msra.mxu0 %v6517_v13 }
0x10e4   :  { %5416 = vmatpush.msra.mxu0 %v6518_v42  ;;  %v5982_v42 = vld [vmem:[%s10845_s11 + $0xc0] sm:$0xff] }
0x10e5   :  { %5566 = vmatpush.msrb.mxu3 %v5982_v42 }
0x10e6   :  { %5417 = vmatpush.msra.mxu0 %v6519_v29 }
0x10e8   :  { %5418 = vmatpush.msra.mxu0 %v6521_v28  ;;  %v5981_v28 = vld [vmem:[%s10845_s11 + $0xb8] sm:$0xff] }
0x10e9   :  { %5567 = vmatpush.msrb.mxu3 %v5981_v28  ;;  %v10701_v28 = vld [vmem:[%s10842_s12 + $0x8] sm:$0x1f] }
0x10ea   :  { %5419 = vmatpush.msra.mxu0 %v6522_v34 }
0x10ec   :  { %5420 = vmatpush.msra.mxu0 %v6523_v44  ;;  %v5980_v44 = vld [vmem:[%s10845_s11 + $0xb0] sm:$0xff] }
0x10ed   :  { %5568 = vmatpush.msrb.mxu3 %v5980_v44 }
0x10ee   :  { %5421 = vmatpush.msra.mxu0 %v6524_v43 }
0x10f0   :  { %5422 = vmatpush.msra.mxu0 %v6526_v25  ;;  %v5979_v25 = vld [vmem:[%s10845_s11 + $0xa8] sm:$0xff] }
0x10f1   :  { %5569 = vmatpush.msrb.mxu3 %v5979_v25 }
0x10f2   :  { %5423 = vmatpush.msra.mxu0 %v6527_v4 }
0x10f4   :  { %5424 = vmatpush.msra.mxu0 %v6528_v19 }
0x10f6   :  { %5425 = vmatpush.msra.mxu0 %v6529_v37  ;;  %v5978_v37 = vld [vmem:[%s10845_s11 + $0xa0] sm:$0xff] }
0x10f7   :  { %5570 = vmatpush.msrb.mxu3 %v5978_v37 }
0x1134   :  { %v5324_v12 = vpop.f32.mrf.mxu0 }
0x1135   :  { %5397 = vmatmul.f32.vlgmr.msrb.gmra.mxu0 %v5324_v12 }
0x1136   :  { %v5369_v7 = vpop.f32.mrf.mxu1 }
0x113c   :  { %v5327_v51 = vpop.f32.mrf.mxu0 }
0x113d   :  { %5400 = vmatmul.f32.gmra.mxu0 %v5327_v51 }
0x113e   :  { %v5372_v27 = vpop.f32.mrf.mxu1 }
0x1144   :  { %v5330_v56 = vpop.f32.mrf.mxu0 }
0x1145   :  { %5403 = vmatmul.f32.gmra.mxu0 %v5330_v56 }
0x1146   :  { %v5375_v16 = vpop.f32.mrf.mxu1 }
0x114c   :  { %v5333_v46 = vpop.f32.mrf.mxu0 }
0x114d   :  { %5406 = vmatmul.f32.gmra.mxu0 %v5333_v46  ;;  %v5975_v46 = vld [vmem:[%s10845_s11 + $0x88] sm:$0xff] }
0x114e   :  { %v5378_v55 = vpop.f32.mrf.mxu1 }
0x114f   :  { %5435 = vmatmul.f32.vlgmr.msra.gmra.mxu1 %v5378_v55 }
0x1155   :  { %5426 = vmatmul.f32.vlgmr.msra.gmra.mxu0 %v5369_v7  ;;  %v5977_v7 = vld [vmem:[%s10845_s11 + $0x98] sm:$0xff] }
0x1156   :  { %5571 = vmatpush.msrb.mxu3 %v5977_v7 }
0x115d   :  { %5429 = vmatmul.f32.gmra.mxu0 %v5372_v27  ;;  %v5976_v27 = vld [vmem:[%s10845_s11 + $0x90] sm:$0xff] }
0x115e   :  { %5572 = vmatpush.msrb.mxu3 %v5976_v27  ;;  %v5504_v27 = vperm.slane %v10701_v28, 3 }
0x1160   :  { %5573 = vmatpush.msrb.mxu3 %v5975_v46 }
0x1162   :  { %5574 = vmatpush.msrb.mxu3 %v5974_v54 }
0x1165   :  { %5432 = vmatmul.f32.gmra.mxu0 %v5375_v16 }
0x11b2   :  { %v10634_v60 = vpop.f32.mrf.mxu0 }
0x11b3   :  { %v5439_v43 = vmul.f32 %v10634_v60, %v10634_v60 }
0x11ba   :  { %v10636_v36 = vpop.f32.mrf.mxu0 }
0x11bb   :  { %v5440_v16 = vmul.f32 %v10636_v36, %v10636_v36 }
0x11c2   :  { %v10647_v15 = vpop.f32.mrf.mxu0 }
0x11ca   :  { %v10661_v57 = vpop.f32.mrf.mxu0 }
0x11cb   :  { %v5442_v13 = vmul.f32 %v10661_v57, %v10661_v57 }
0x11cc   :  { %v5436_v29 = vpop.f32.mrf.mxu1 }
0x11cd   :  { %v5446_v17 = vsub.f32 %v5436_v29, %v5442_v13 }
0x11cf   :  { %v5450_v34 = vmax.f32 %v5446_v17, 0.0  ;;  %v5441_v17 = vmul.f32 %v10647_v15, %v10647_v15 }
0x11d1   :  { %v5454_v24 = vadd.f32 1e-05, %v5450_v34  ;;  %v10704_v34 = vperm.slane %v10701_v28, 2 }
0x11d2   :  { %v5427_v4 = vpop.f32.mrf.mxu0 }
0x11d3   :  { %6449 = vrsqrt.f32 %v5454_v24  ;;  %v5443_v19 = vsub.f32 %v5427_v4, %v5439_v43  ;;  %vm5491_vm9 = vweird.f32 %v5454_v24 }
0x11d5   :  { %v5447_v12 = vmax.f32 %v5443_v19, 0.0 }
0x11d7   :  { %v5451_v51 = vadd.f32 1e-05, %v5447_v12 }
0x11d9   :  { %v6450_v56 = vpop.eup %6449  ;;  %6451 = vrsqrt.f32 %v5451_v51  ;;  %vm5461_vm12 = vweird.f32 %v5451_v51 }
0x11da   :  { %v5486_v55 = vmul.f32 %v6450_v56, %v5454_v24  ;;  %v5430_v26 = vpop.f32.mrf.mxu0  ;;  %vm5492_vm14 = vweird.f32 %v6450_v56 }
0x11db   :  { %v5444_v40 = vsub.f32 %v5430_v26, %v5440_v16  ;;  %vm5493_vm10 = vmor %vm5491_vm9, %vm5492_vm14 }
0x11dc   :  { %v5487_v5 = vmul.f32 %v6450_v56, %v5486_v55 }
0x11dd   :  { %v5448_v61 = vmax.f32 %v5444_v40, 0.0 }
0x11de   :  { %v5488_v14 = vmul.f32 0.5, %v5487_v5 }
0x11df   :  { %v6452_v8 = vpop.eup %6451  ;;  %v5452_v13 = vadd.f32 1e-05, %v5448_v61 }
0x11e0   :  { %v5489_v42 = vsub.f32 1.5, %v5488_v14  ;;  %v5456_v29 = vmul.f32 %v6452_v8, %v5451_v51  ;;  %vm5462_vm11 = vweird.f32 %v6452_v8 }
0x11e1   :  { %6453 = vrsqrt.f32 %v5452_v13  ;;  %vm5463_vm13 = vmor %vm5461_vm12, %vm5462_vm11  ;;  %vm5471_vm0 = vweird.f32 %v5452_v13 }
0x11e2   :  { %v5490_v44 = vmul.f32 %v6450_v56, %v5489_v42  ;;  %v5457_v43 = vmul.f32 %v6452_v8, %v5456_v29  ;;  %v5433_v25 = vpop.f32.mrf.mxu0 }
0x11e3   :  { %v5445_v4 = vsub.f32 %v5433_v25, %v5441_v17 }
0x11e4   :  { %v5494_v19 = vsel %vm5493_vm10, %v6450_v56, %v5490_v44  ;;  %v5458_v37 = vmul.f32 0.5, %v5457_v43 }
0x11e5   :  { %v10707_v12 = vmul.f32 %v10704_v34, %v5494_v19  ;;  %v5449_v7 = vmax.f32 %v5445_v4, 0.0 }
0x11e6   :  { %v5459_v16 = vsub.f32 1.5, %v5458_v37 }
0x11e7   :  { %v6454_v46 = vpop.eup %6453  ;;  %v5453_v55 = vadd.f32 1e-05, %v5449_v7  ;;  %v5503_v26 = vmul.f32 %v10707_v12, %v10661_v57  ;;  %v5520_v54 = vmul.f32 %v10707_v12, %v10510_v35  ;;  %v5524_v14 = vmul.f32 %v10707_v12, %v10495_v62 }
0x11e8   :  { %v5460_v24 = vmul.f32 %v6452_v8, %v5459_v16  ;;  %v5466_v40 = vmul.f32 %v6454_v46, %v5452_v13  ;;  %vm5472_vm15 = vweird.f32 %v6454_v46 }
0x11e9   :  { %6455 = vrsqrt.f32 %v5453_v55  ;;  %v10712_v56 = vsub.f32 %v5504_v27, %v5503_v26  ;;  %vm5473_vm1 = vmor %vm5471_vm0, %vm5472_vm15  ;;  %vm5481_vm3 = vweird.f32 %v5453_v55 }
0x11ea   :  { %v5464_v5 = vsel %vm5463_vm13, %v6452_v8, %v5460_v24  ;;  %v5467_v61 = vmul.f32 %v6454_v46, %v5466_v40 }
0x11eb   :  { %v5496_v42 = vmul.f32 %v10704_v34, %v5464_v5  ;;  %v10720_v29 = vadd.f32 %v5520_v54, %v10712_v56  ;;  %v10723_v51 = vadd.f32 %v5524_v14, %v10712_v56 }
0x11ec   :  { %v5468_v57 = vmul.f32 0.5, %v5467_v61 }
0x11ed   :  { %v5500_v17 = vmul.f32 %v5496_v42, %v10634_v60  ;;  %v5509_v8 = vmul.f32 %v5496_v42, %v10563_v59  ;;  %v5517_v25 = vmul.f32 %v5496_v42, %v10488_v49  ;;  %v5521_v62 = vmul.f32 %v5496_v42, %v10504_v1 }
0x11ee   :  { %v5469_v44 = vsub.f32 1.5, %v5468_v57 }
0x11ef   :  { %v6456_v43 = vpop.eup %6455  ;;  %v5505_v35 = vsub.f32 %v5504_v27, %v5500_v17 }
0x11f0   :  { %v5470_v4 = vmul.f32 %v6454_v46, %v5469_v44  ;;  %v5476_v19 = vmul.f32 %v6456_v43, %v5453_v55  ;;  %vm5482_vm2 = vweird.f32 %v6456_v43 }
0x11f1   :  { %v5525_v37 = vadd.f32 %v5509_v8, %v5505_v35  ;;  %v5533_v7 = vadd.f32 %v5517_v25, %v5505_v35  ;;  %v5537_v16 = vadd.f32 %v5521_v62, %v5505_v35  ;;  %vm5483_vm4 = vmor %vm5481_vm3, %vm5482_vm2 }
0x11f2   :  { %v5474_v26 = vsel %vm5473_vm1, %v6454_v46, %v5470_v4  ;;  %v5477_v24 = vmul.f32 %v6456_v43, %v5476_v19  ;;  %v5512_v4 = vmul.f32 %v10707_v12, %v10473_v52  ;;  %v5516_v19 = vmul.f32 %v10707_v12, %v10485_v39 }
0x11f3   :  { %v5497_v60 = vmul.f32 %v10704_v34, %v5474_v26  ;;  %5575 = vmatmul.f32.vlgmr.msrb.gmra.mxu3 %v5525_v37 }
0x11f4   :  { %v5478_v40 = vmul.f32 0.5, %v5477_v24  ;;  %v5532_v52 = vadd.f32 %v5516_v19, %v10712_v56 }
0x11f5   :  { %v5501_v54 = vmul.f32 %v5497_v60, %v10636_v36  ;;  %v5510_v1 = vmul.f32 %v5497_v60, %v10557_v21  ;;  %v5518_v13 = vmul.f32 %v5497_v60, %v10521_v30  ;;  %v5522_v5 = vmul.f32 %v5497_v60, %v10498_v22 }
0x11f6   :  { %v5479_v59 = vsub.f32 1.5, %v5478_v40 }
0x11f7   :  { %v5506_v49 = vsub.f32 %v5504_v27, %v5501_v54 }
0x11f8   :  { %v5480_v61 = vmul.f32 %v6456_v43, %v5479_v59 }
0x11f9   :  { %v5526_v46 = vadd.f32 %v5510_v1, %v5506_v49  ;;  %v5534_v14 = vadd.f32 %v5518_v13, %v5506_v49  ;;  %v5538_v57 = vadd.f32 %v5522_v5, %v5506_v49 }
0x11fa   :  { %v5484_v17 = vsel %vm5483_vm4, %v6456_v43, %v5480_v61  ;;  %v5528_v43 = vadd.f32 %v5512_v4, %v10712_v56 }
0x11fb   :  { %v5498_v44 = vmul.f32 %v10704_v34, %v5484_v17  ;;  %5578 = vmatmul.f32.gmra.mxu3 %v5526_v46  ;;  %v5513_v34 = vmul.f32 %v5496_v42, %v10476_v23  ;;  %v10751_v23 = vperm.slane %v10701_v28, 4 }
0x11fd   :  { %v5502_v36 = vmul.f32 %v5498_v44, %v10647_v15  ;;  %v5511_v25 = vmul.f32 %v5498_v44, %v10549_v48  ;;  %v5519_v21 = vmul.f32 %v5498_v44, %v10516_v58  ;;  %v5523_v30 = vmul.f32 %v5498_v44, %v10493_v41 }
0x11fe   :  { %v5529_v15 = vadd.f32 %v5513_v34, %v5505_v35  ;;  %v5514_v48 = vmul.f32 %v5497_v60, %v10479_v53  ;;  %v5515_v41 = vmul.f32 %v5498_v44, %v10482_v45 }
0x11ff   :  { %v5507_v8 = vsub.f32 %v5504_v27, %v5502_v36 }
0x1200   :  { %v5530_v27 = vadd.f32 %v5514_v48, %v5506_v49 }
0x1201   :  { %v5527_v22 = vadd.f32 %v5511_v25, %v5507_v8  ;;  %v5535_v62 = vadd.f32 %v5519_v21, %v5507_v8  ;;  %v5539_v55 = vadd.f32 %v5523_v30, %v5507_v8  ;;  %v5531_v58 = vadd.f32 %v5515_v41, %v5507_v8 }
0x1203   :  { %5581 = vmatmul.f32.gmra.mxu3 %v5527_v22 }
0x120b   :  { %5584 = vmatmul.f32.gmra.mxu3 %v5528_v43 }
0x1213   :  { %5587 = vmatmul.f32.gmra.mxu3 %v5529_v15 }
0x121b   :  { %5590 = vmatmul.f32.gmra.mxu3 %v5530_v27 }
0x1223   :  { %5593 = vmatmul.f32.gmra.mxu3 %v5531_v58 }
0x122b   :  { %5596 = vmatmul.f32.gmra.mxu3 %v5532_v52 }
0x1233   :  { %5599 = vmatmul.f32.gmra.mxu3 %v5533_v7 }
0x123b   :  { %5602 = vmatmul.f32.gmra.mxu3 %v5534_v14 }
0x1243   :  { %5605 = vmatmul.f32.gmra.mxu3 %v5535_v62 }
0x124b   :  { %5608 = vmatmul.f32.gmra.mxu3 %v10720_v29 }
0x1253   :  { %5611 = vmatmul.f32.gmra.mxu3 %v5537_v16 }
0x125b   :  { %5614 = vmatmul.f32.gmra.mxu3 %v5538_v57 }
0x1263   :  { %5617 = vmatmul.f32.gmra.mxu3 %v5539_v55 }
0x126b   :  { %5620 = vmatmul.f32.gmra.mxu3 %v10723_v51 }
0x1276   :  { %v5576_v53 = vpop.f32.mrf.mxu3 }
0x1277   :  { %v5577_v45 = vadd.f32 %v5576_v53, %v10751_v23 }
0x1279   :  { %v5624_v39 = vadd.f32 %v5577_v45, %v10956_v33 }
0x127b   :  { %5640 = vst [vmem:[%s10846_s13] sm:$0xff] %v5624_v39 }
0x127e   :  { %v5579_v12 = vpop.f32.mrf.mxu3 }
0x127f   :  { %v5580_v56 = vadd.f32 %v5579_v12, %v10751_v23 }
0x1281   :  { %v5625_v42 = vadd.f32 %v5580_v56, %v10955_v11 }
0x1283   :  { %5641 = vst [vmem:[%s10846_s13 + $0x8] sm:$0xff] %v5625_v42 }
0x1286   :  { %v5582_v28 = vpop.f32.mrf.mxu3 }
0x1287   :  { %v5583_v29 = vadd.f32 %v5582_v28, %v10751_v23 }
0x1289   :  { %v5626_v51 = vadd.f32 %v5583_v29, %v10954_v20 }
0x128b   :  { %5642 = vst [vmem:[%s10846_s13 + $0x10] sm:$0xff] %v5626_v51 }
0x128e   :  { %v5585_v33 = vpop.f32.mrf.mxu3 }
0x128f   :  { %v5586_v35 = vadd.f32 %v5585_v33, %v10751_v23 }
0x1291   :  { %v5627_v37 = vadd.f32 %v5586_v35, %v9169_v50 }
0x1293   :  { %5643 = vst [vmem:[%s10846_s13 + $0x18] sm:$0xff] %v5627_v37 }
0x1296   :  { %v5588_v11 = vpop.f32.mrf.mxu3 }
0x1297   :  { %v5589_v7 = vadd.f32 %v5588_v11, %v10751_v23 }
0x1299   :  { %v5628_v16 = vadd.f32 %v5589_v7, %v9164_v9 }
0x129b   :  { %5644 = vst [vmem:[%s10846_s13 + $0x20] sm:$0xff] %v5628_v16 }
0x129e   :  { %v5591_v20 = vpop.f32.mrf.mxu3 }
0x129f   :  { %v5592_v26 = vadd.f32 %v5591_v20, %v10751_v23 }
0x12a1   :  { %v5629_v24 = vadd.f32 %v5592_v26, %v9159_v6 }
0x12a3   :  { %5645 = vst [vmem:[%s10846_s13 + $0x28] sm:$0xff] %v5629_v24 }
0x12a6   :  { %v5594_v50 = vpop.f32.mrf.mxu3 }
0x12a7   :  { %v5595_v60 = vadd.f32 %v5594_v50, %v10751_v23 }
0x12a9   :  { %v5630_v40 = vadd.f32 %v5595_v60, %v9154_v0 }
0x12ab   :  { %5646 = vst [vmem:[%s10846_s13 + $0x30] sm:$0xff] %v5630_v40 }
0x12ae   :  { %v5597_v9 = vpop.f32.mrf.mxu3 }
0x12af   :  { %v5598_v54 = vadd.f32 %v5597_v9, %v10751_v23 }
0x12b1   :  { %v5631_v59 = vadd.f32 %v5598_v54, %v9149_v31 }
0x12b3   :  { %5647 = vst [vmem:[%s10846_s13 + $0x38] sm:$0xff] %v5631_v59 }
0x12b6   :  { %v5600_v6 = vpop.f32.mrf.mxu3 }
0x12b7   :  { %v5601_v49 = vadd.f32 %v5600_v6, %v10751_v23 }
0x12b9   :  { %v5632_v1 = vadd.f32 %v5601_v49, %v9144_v10 }
0x12bb   :  { %5648 = vst [vmem:[%s10846_s13 + $0x40] sm:$0xff] %v5632_v1 }
0x12be   :  { %v5603_v0 = vpop.f32.mrf.mxu3 }
0x12bf   :  { %v5604_v13 = vadd.f32 %v5603_v0, %v10751_v23 }
0x12c1   :  { %v5633_v5 = vadd.f32 %v5604_v13, %v9139_v32 }
0x12c3   :  { %5649 = vst [vmem:[%s10846_s13 + $0x48] sm:$0xff] %v5633_v5 }
0x12c6   :  { %v5606_v31 = vpop.f32.mrf.mxu3 }
0x12c7   :  { %v5607_v61 = vadd.f32 %v5606_v31, %v10751_v23 }
0x12c9   :  { %v5634_v46 = vadd.f32 %v5607_v61, %v9134_v47 }
0x12cb   :  { %5650 = vst [vmem:[%s10846_s13 + $0x50] sm:$0xff] %v5634_v46 }
0x12ce   :  { %v5609_v10 = vpop.f32.mrf.mxu3 }
0x12cf   :  { %v5610_v14 = vadd.f32 %v5609_v10, %v10751_v23 }
0x12d1   :  { %v5635_v57 = vadd.f32 %v5610_v14, %v9129_v2 }
0x12d3   :  { %5651 = vst [vmem:[%s10846_s13 + $0x58] sm:$0xff] %v5635_v57 }
0x12d6   :  { %v5612_v32 = vpop.f32.mrf.mxu3 }
0x12d7   :  { %v5613_v17 = vadd.f32 %v5612_v32, %v10751_v23 }
0x12d9   :  { %v5636_v44 = vadd.f32 %v5613_v17, %v9124_v18 }
0x12db   :  { %5652 = vst [vmem:[%s10846_s13 + $0x60] sm:$0xff] %v5636_v44 }
0x12de   :  { %v5615_v47 = vpop.f32.mrf.mxu3 }
0x12df   :  { %v5616_v36 = vadd.f32 %v5615_v47, %v10751_v23 }
0x12e1   :  { %v5637_v8 = vadd.f32 %v5616_v36, %v9119_v38 }
0x12e3   :  { %5653 = vst [vmem:[%s10846_s13 + $0x68] sm:$0xff] %v5637_v8 }
0x12e6   :  { %v5618_v2 = vpop.f32.mrf.mxu3 }
0x12e7   :  { %v5619_v25 = vadd.f32 %v5618_v2, %v10751_v23 }
0x12e9   :  { %v5638_v21 = vadd.f32 %v5619_v25, %v9115_v63 }
0x12eb   :  { %5654 = vst [vmem:[%s10846_s13 + $0x70] sm:$0xff] %v5638_v21 }
0x12ee   :  { %v5621_v18 = vpop.f32.mrf.mxu3 }
0x12ef   :  { %v5622_v30 = vadd.f32 %v5621_v18, %v10751_v23 }
0x12f1   :  { %v5639_v22 = vadd.f32 %v5622_v30, %v9117_v3 }
0x12f3   :  { %5655 = vst [vmem:[%s10846_s13 + $0x78] sm:$0xff] %v5639_v22 }

</bundles_post_ra>
